<compile_context>
chip_gen: v6e
topology: v6e:2x2x1
jax: 0.10.0
libtpu: 0.0.40
codegen_flags: <defaults>
</compile_context>

<pallas_src>
import jax
import jax.numpy as jnp
from jax.experimental import pallas as pl
from jax.experimental.pallas import tpu as pltpu

C_SE_IN = 36     # conv2d116 in channels
C_MID = 864      # conv2d116 out / conv2d117 in
C_BN1 = 200      # conv2d117 out
C_OUT = 1200     # conv2d118 out
EPS = 1e-3

# conv2d118 / BN70 output-channel blocking: 2 "parallel" halves x 3 steps.
N_PAR = 2
N_SEQ = 3
ROWS = C_OUT // (N_PAR * N_SEQ)          # 200 rows per block
assert ROWS * N_PAR * N_SEQ == C_OUT and ROWS % 8 == 0


def _fused_kernel(xse_ref, w116_ref, b116_ref, x_ref, w117_ref,
                  g69_ref, be69_ref, w118_ref, g70_ref, be70_ref,
                  o_ref, y1n_ref):
    nhw = x_ref.shape[1]
    inv_n = jnp.float32(1.0 / nhw)

    # ---- Stage 1 (once per core): SE gate + conv117 + BN69 -> bf16 scratch --
    @pl.when(pl.program_id(1) == 0)
    def _():
        # conv2d116 (1x1 conv on 1x1 spatial == matvec) + bias + sigmoid.
        # w116 is pre-transposed [C_MID, C_SE_IN]; xse is a [C_SE_IN, 1] column.
        se = jnp.dot(w116_ref[...], xse_ref[...],
                     preferred_element_type=jnp.float32) + b116_ref[...]
        gate = jax.nn.sigmoid(se)                              # [C_MID, 1] f32

        # Fold the per-channel gate into the f32->bf16 cast of x (free).
        xb = (x_ref[...] * gate).astype(jnp.bfloat16)          # [C_MID, HW]

        # conv2d117 as bf16 MXU matmul, fp32 accumulation.
        y1 = jnp.dot(w117_ref[...], xb,
                     preferred_element_type=jnp.float32)       # [C_BN1, HW]

        # batchnorm2d69 (training mode: batch stats, biased var, eps=1e-3),
        # two-pass variance for numerical safety.
        m1 = jnp.sum(y1, axis=1, keepdims=True) * inv_n
        d1 = y1 - m1
        v1 = jnp.sum(d1 * d1, axis=1, keepdims=True) * inv_n
        y1n = d1 * (jax.lax.rsqrt(v1 + EPS) * g69_ref[...]) + be69_ref[...]
        y1n_ref[...] = y1n.astype(jnp.bfloat16)                # persistent scratch

    # ---- Stage 2 (per 200-row block): conv2d118 + BN70 ----------------------
    y2 = jnp.dot(w118_ref[...], y1n_ref[...],
                 preferred_element_type=jnp.float32)           # [ROWS, HW]
    m2 = jnp.sum(y2, axis=1, keepdims=True) * inv_n
    d2 = y2 - m2
    v2 = jnp.sum(d2 * d2, axis=1, keepdims=True) * inv_n
    o_ref[...] = d2 * (jax.lax.rsqrt(v2 + EPS) * g70_ref[...]) + be70_ref[...]


def make_params(key):
    ks = jax.random.split(key, 8)
    s = 0.1
    return dict(
        # w116 pre-transposed to [C_out, C_in] = [C_MID, C_SE_IN] so the SE
        # matvec produces the gate directly as a [C_MID, 1] column.
        w116=s * jax.random.normal(ks[0], (C_MID, C_SE_IN), jnp.float32),
        b116=s * jax.random.normal(ks[1], (C_MID, 1), jnp.float32),
        # conv weights kept in PyTorch [C_out, C_in] layout, stored bf16.
        w117=(s * jax.random.normal(ks[2], (C_BN1, C_MID), jnp.float32)
              ).astype(jnp.bfloat16),
        g69=1.0 + s * jax.random.normal(ks[3], (C_BN1, 1), jnp.float32),
        be69=s * jax.random.normal(ks[4], (C_BN1, 1), jnp.float32),
        w118=(s * jax.random.normal(ks[5], (C_OUT, C_BN1), jnp.float32)
              ).astype(jnp.bfloat16),
        g70=1.0 + s * jax.random.normal(ks[6], (C_OUT, 1), jnp.float32),
        be70=s * jax.random.normal(ks[7], (C_OUT, 1), jnp.float32),
    )


@jax.jit
def forward(x363, x360, params):
    # x363: [1, 36, 1, 1], x360: [1, 864, H, W] (module uses N == 1)
    n, c_se, _, _ = x363.shape
    _, c_mid, h, w = x360.shape
    assert n == 1 and c_se == C_SE_IN and c_mid == C_MID
    hw = h * w

    xse = x363.reshape(C_SE_IN, 1)        # free reshape (column vector)
    x_cm = x360.reshape(C_MID, hw)        # free reshape of NCHW (channels-major)

    # Resident inputs: constant block index -> loaded once per core.
    res = lambda shape: pl.BlockSpec(shape, lambda p, j: (0, 0))
    # Blocked over output rows: block index p*N_SEQ + j.
    blk = lambda shape: pl.BlockSpec(shape, lambda p, j: (p * N_SEQ + j, 0))

    flops = 2 * (C_SE_IN * C_MID + C_MID * C_BN1 * hw + C_BN1 * C_OUT * hw)
    bytes_accessed = (
        xse.size * 4 + x_cm.size * 4
        + params["w116"].size * 4 + params["b116"].size * 4
        + params["w117"].size * 2 + params["w118"].size * 2
        + (params["g69"].size + params["be69"].size
           + params["g70"].size + params["be70"].size) * 4
        + C_OUT * hw * 4)

    out_cm = pl.pallas_call(
        _fused_kernel,
        out_shape=jax.ShapeDtypeStruct((C_OUT, hw), jnp.float32),
        grid=(N_PAR, N_SEQ),
        in_specs=[
            res((C_SE_IN, 1)),           # xse column
            res((C_MID, C_SE_IN)),       # w116 (pre-transposed)
            res((C_MID, 1)),             # b116
            res((C_MID, hw)),            # x, channels-major
            res((C_BN1, C_MID)),         # w117 (bf16)
            res((C_BN1, 1)),             # gamma69
            res((C_BN1, 1)),             # beta69
            blk((ROWS, C_BN1)),          # w118 block (bf16)
            blk((ROWS, 1)),              # gamma70 block
            blk((ROWS, 1)),              # beta70 block
        ],
        out_specs=blk((ROWS, hw)),
        scratch_shapes=[pltpu.VMEM((C_BN1, hw), jnp.bfloat16)],
        compiler_params=pltpu.CompilerParams(
            dimension_semantics=("parallel", "arbitrary"),
            vmem_limit_bytes=32 * 1024 * 1024),
        cost_estimate=pl.CostEstimate(
            flops=flops,
            transcendentals=C_MID + C_BN1 + C_OUT,
            bytes_accessed=bytes_accessed),
    )(xse, params["w116"], params["b116"], x_cm, params["w117"],
      params["g69"], params["be69"], params["w118"], params["g70"],
      params["be70"])

    return out_cm.reshape(1, C_OUT, h, w)  # free reshape back to NCHW


def forward_ref(x363, x360, params):
    # Pure-JAX fp32 reference (textbook BN form) for a sanity check.
    n, c_se, _, _ = x363.shape
    _, c_mid, h, w = x360.shape
    xse = x363.reshape(n, c_se)
    gate = jax.nn.sigmoid(xse @ params["w116"].T + params["b116"].T)   # [1, 864]
    x_nhwc = jnp.transpose(x360, (0, 2, 3, 1)).reshape(n * h * w, c_mid)
    gated = x_nhwc * gate
    w117 = params["w117"].astype(jnp.float32).T                        # [864, 200]
    y1 = gated @ w117
    m1 = jnp.mean(y1, axis=0, keepdims=True)
    v1 = jnp.mean((y1 - m1) ** 2, axis=0, keepdims=True)
    y1n = (y1 - m1) / jnp.sqrt(v1 + EPS) * params["g69"].T + params["be69"].T
    w118 = params["w118"].astype(jnp.float32).T                        # [200, 1200]
    y2 = y1n @ w118
    m2 = jnp.mean(y2, axis=0, keepdims=True)
    v2 = jnp.mean((y2 - m2) ** 2, axis=0, keepdims=True)
    out = (y2 - m2) / jnp.sqrt(v2 + EPS) * params["g70"].T + params["be70"].T
    return jnp.transpose(out.reshape(n, h, w, C_OUT), (0, 3, 1, 2))


if __name__ == "__main__":
    key = jax.random.PRNGKey(0)
    kx1, kx2, kp = jax.random.split(key, 3)

    # shapes implied by the module's forward
    x363 = jax.random.normal(kx1, (1, C_SE_IN, 1, 1), jnp.float32)   # [1, 36, 1, 1]
    x360 = jax.random.normal(kx2, (1, C_MID, 14, 14), jnp.float32)   # [1, 864, 14, 14]
    params = make_params(kp)

    out = forward(x363, x360, params)
    jax.block_until_ready(out)

    ref = forward_ref(x363, x360, params)
    assert out.shape == (1, C_OUT, 14, 14), out.shape
    # bf16 MXU operands (fp32 accumulation) vs. fp32 reference: allow slack.
    err = float(jnp.max(jnp.abs(out - ref)))
    assert err < 3e-2, f"mismatch vs reference: max abs err {err}"

    print("KERNEL_OK")
</pallas_src>

<mosaic_0001>
module attributes {stable_mosaic.version = 11 : i64} {
  func.func @_fused_kernel(%arg0: i32, %arg1: i32, %arg2: memref<36x1xf32, #tpu.memory_space<vmem>>, %arg3: memref<864x36xf32, #tpu.memory_space<vmem>>, %arg4: memref<864x1xf32, #tpu.memory_space<vmem>>, %arg5: memref<864x196xf32, #tpu.memory_space<vmem>>, %arg6: memref<200x864xbf16, #tpu.memory_space<vmem>>, %arg7: memref<200x1xf32, #tpu.memory_space<vmem>>, %arg8: memref<200x1xf32, #tpu.memory_space<vmem>>, %arg9: memref<200x200xbf16, #tpu.memory_space<vmem>>, %arg10: memref<200x1xf32, #tpu.memory_space<vmem>>, %arg11: memref<200x1xf32, #tpu.memory_space<vmem>>, %arg12: memref<200x196xf32, #tpu.memory_space<vmem>>, %arg13: memref<200x196xbf16, #tpu.memory_space<vmem>>) attributes {dimension_semantics = [#tpu.dimension_semantics<parallel>, #tpu.dimension_semantics<arbitrary>], iteration_bounds = array<i64: 2, 3>, scalar_prefetch = 0 : i64, scratch_operands = 1 : i64, tpu.core_type = #tpu.core_type<tc>, window_params = [{pipeline_mode = #tpu.pipeline_mode<synchronous>, transform_indices = @transform_0, window_bounds = array<i64: 36, 1>}, {pipeline_mode = #tpu.pipeline_mode<synchronous>, transform_indices = @transform_1, window_bounds = array<i64: 864, 36>}, {pipeline_mode = #tpu.pipeline_mode<synchronous>, transform_indices = @transform_2, window_bounds = array<i64: 864, 1>}, {pipeline_mode = #tpu.pipeline_mode<synchronous>, transform_indices = @transform_3, window_bounds = array<i64: 864, 196>}, {pipeline_mode = #tpu.pipeline_mode<synchronous>, transform_indices = @transform_4, window_bounds = array<i64: 200, 864>}, {pipeline_mode = #tpu.pipeline_mode<synchronous>, transform_indices = @transform_5, window_bounds = array<i64: 200, 1>}, {pipeline_mode = #tpu.pipeline_mode<synchronous>, transform_indices = @transform_6, window_bounds = array<i64: 200, 1>}, {transform_indices = @transform_7, window_bounds = array<i64: 200, 200>}, {transform_indices = @transform_8, window_bounds = array<i64: 200, 1>}, {transform_indices = @transform_9, window_bounds = array<i64: 200, 1>}, {transform_indices = @transform_10, window_bounds = array<i64: 200, 196>}]} {
    %c0_i32 = arith.constant 0 : i32
    %0 = arith.cmpi eq, %arg1, %c0_i32 : i32
    %1 = arith.extui %0 : i1 to i32
    %cst = arith.constant 0.00510204071 : f32
    %c0_i32_0 = arith.constant 0 : i32
    %2 = arith.cmpi ne, %1, %c0_i32_0 : i32
    scf.if %2 {
      %c0_16 = arith.constant 0 : index
      %c0_17 = arith.constant 0 : index
      %28 = vector.load %arg3[%c0_16, %c0_17] : memref<864x36xf32, #tpu.memory_space<vmem>>, vector<864x36xf32>
      %c0_18 = arith.constant 0 : index
      %c0_19 = arith.constant 0 : index
      %29 = vector.load %arg2[%c0_18, %c0_19] : memref<36x1xf32, #tpu.memory_space<vmem>>, vector<36x1xf32>
      %cst_20 = arith.constant dense<0.000000e+00> : vector<864x1xf32>
      %30 = tpu.matmul %28, %29, %cst_20 {dimension_numbers = #tpu.dot_dimension_numbers<[1], [0], [0], [1], [0, 0, 1, 1], [], []>} : vector<864x36xf32>, vector<36x1xf32>, vector<864x1xf32> -> vector<864x1xf32>
      %c0_21 = arith.constant 0 : index
      %c0_22 = arith.constant 0 : index
      %31 = vector.load %arg4[%c0_21, %c0_22] : memref<864x1xf32, #tpu.memory_space<vmem>>, vector<864x1xf32>
      %32 = arith.addf %30, %31 : vector<864x1xf32>
      %33 = arith.negf %32 : vector<864x1xf32>
      %34 = math.exp %33 : vector<864x1xf32>
      %cst_23 = arith.constant 1.000000e+00 : f32
      %35 = vector.broadcast %cst_23 : f32 to vector<864x1xf32>
      %36 = arith.addf %35, %34 : vector<864x1xf32>
      %37 = arith.divf %35, %36 : vector<864x1xf32>
      %c0_24 = arith.constant 0 : index
      %c0_25 = arith.constant 0 : index
      %38 = vector.load %arg5[%c0_24, %c0_25] : memref<864x196xf32, #tpu.memory_space<vmem>>, vector<864x196xf32>
      %39 = vector.broadcast %37 : vector<864x1xf32> to vector<864x196xf32>
      %40 = arith.mulf %38, %39 : vector<864x196xf32>
      %41 = arith.truncf %40 : vector<864x196xf32> to vector<864x196xbf16>
      %c0_26 = arith.constant 0 : index
      %c0_27 = arith.constant 0 : index
      %42 = vector.load %arg6[%c0_26, %c0_27] : memref<200x864xbf16, #tpu.memory_space<vmem>>, vector<200x864xbf16>
      %cst_28 = arith.constant dense<0.000000e+00> : vector<200x196xf32>
      %43 = tpu.matmul %42, %41, %cst_28 {dimension_numbers = #tpu.dot_dimension_numbers<[1], [0], [0], [1], [0, 0, 1, 1], [], []>} : vector<200x864xbf16>, vector<864x196xbf16>, vector<200x196xf32> -> vector<200x196xf32>
      %cst_29 = arith.constant dense<0.000000e+00> : vector<200xf32>
      %44 = vector.multi_reduction <add>, %43, %cst_29 [1] : vector<200x196xf32> to vector<200xf32>
      %45 = vector.shape_cast %44 : vector<200xf32> to vector<200x1xf32>
      %46 = vector.broadcast %cst : f32 to vector<200x1xf32>
      %47 = arith.mulf %45, %46 : vector<200x1xf32>
      %48 = vector.broadcast %47 : vector<200x1xf32> to vector<200x196xf32>
      %49 = arith.subf %43, %48 : vector<200x196xf32>
      %50 = arith.mulf %49, %49 : vector<200x196xf32>
      %cst_30 = arith.constant dense<0.000000e+00> : vector<200xf32>
      %51 = vector.multi_reduction <add>, %50, %cst_30 [1] : vector<200x196xf32> to vector<200xf32>
      %52 = vector.shape_cast %51 : vector<200xf32> to vector<200x1xf32>
      %53 = vector.broadcast %cst : f32 to vector<200x1xf32>
      %54 = arith.mulf %52, %53 : vector<200x1xf32>
      %cst_31 = arith.constant 1.000000e-03 : f32
      %55 = vector.broadcast %cst_31 : f32 to vector<200x1xf32>
      %56 = arith.addf %54, %55 : vector<200x1xf32>
      %57 = math.rsqrt %56 : vector<200x1xf32>
      %c0_32 = arith.constant 0 : index
      %c0_33 = arith.constant 0 : index
      %58 = vector.load %arg7[%c0_32, %c0_33] : memref<200x1xf32, #tpu.memory_space<vmem>>, vector<200x1xf32>
      %59 = arith.mulf %57, %58 : vector<200x1xf32>
      %60 = vector.broadcast %59 : vector<200x1xf32> to vector<200x196xf32>
      %61 = arith.mulf %49, %60 : vector<200x196xf32>
      %c0_34 = arith.constant 0 : index
      %c0_35 = arith.constant 0 : index
      %62 = vector.load %arg8[%c0_34, %c0_35] : memref<200x1xf32, #tpu.memory_space<vmem>>, vector<200x1xf32>
      %63 = vector.broadcast %62 : vector<200x1xf32> to vector<200x196xf32>
      %64 = arith.addf %61, %63 : vector<200x196xf32>
      %65 = arith.truncf %64 : vector<200x196xf32> to vector<200x196xbf16>
      %c0_36 = arith.constant 0 : index
      %c0_37 = arith.constant 0 : index
      %66 = vector.load %arg13[%c0_36, %c0_37] : memref<200x196xbf16, #tpu.memory_space<vmem>>, vector<200x196xbf16>
      tpu.vector_store %arg13[%c0_36, %c0_37], %65 {strides = array<i32>} : memref<200x196xbf16, #tpu.memory_space<vmem>>, vector<200x196xbf16>,
    } else {
    }
    %c0 = arith.constant 0 : index
    %c0_1 = arith.constant 0 : index
    %3 = vector.load %arg9[%c0, %c0_1] : memref<200x200xbf16, #tpu.memory_space<vmem>>, vector<200x200xbf16>
    %c0_2 = arith.constant 0 : index
    %c0_3 = arith.constant 0 : index
    %4 = vector.load %arg13[%c0_2, %c0_3] : memref<200x196xbf16, #tpu.memory_space<vmem>>, vector<200x196xbf16>
    %cst_4 = arith.constant dense<0.000000e+00> : vector<200x196xf32>
    %5 = tpu.matmul %3, %4, %cst_4 {dimension_numbers = #tpu.dot_dimension_numbers<[1], [0], [0], [1], [0, 0, 1, 1], [], []>} : vector<200x200xbf16>, vector<200x196xbf16>, vector<200x196xf32> -> vector<200x196xf32>
    %cst_5 = arith.constant dense<0.000000e+00> : vector<200xf32>
    %6 = vector.multi_reduction <add>, %5, %cst_5 [1] : vector<200x196xf32> to vector<200xf32>
    %7 = vector.shape_cast %6 : vector<200xf32> to vector<200x1xf32>
    %cst_6 = arith.constant 0.00510204071 : f32
    %8 = vector.broadcast %cst_6 : f32 to vector<200x1xf32>
    %9 = arith.mulf %7, %8 : vector<200x1xf32>
    %10 = vector.broadcast %9 : vector<200x1xf32> to vector<200x196xf32>
    %11 = arith.subf %5, %10 : vector<200x196xf32>
    %12 = arith.mulf %11, %11 : vector<200x196xf32>
    %cst_7 = arith.constant dense<0.000000e+00> : vector<200xf32>
    %13 = vector.multi_reduction <add>, %12, %cst_7 [1] : vector<200x196xf32> to vector<200xf32>
    %14 = vector.shape_cast %13 : vector<200xf32> to vector<200x1xf32>
    %cst_8 = arith.constant 0.00510204071 : f32
    %15 = vector.broadcast %cst_8 : f32 to vector<200x1xf32>
    %16 = arith.mulf %14, %15 : vector<200x1xf32>
    %cst_9 = arith.constant 1.000000e-03 : f32
    %17 = vector.broadcast %cst_9 : f32 to vector<200x1xf32>
    %18 = arith.addf %16, %17 : vector<200x1xf32>
    %19 = math.rsqrt %18 : vector<200x1xf32>
    %c0_10 = arith.constant 0 : index
    %c0_11 = arith.constant 0 : index
    %20 = vector.load %arg10[%c0_10, %c0_11] : memref<200x1xf32, #tpu.memory_space<vmem>>, vector<200x1xf32>
    %21 = arith.mulf %19, %20 : vector<200x1xf32>
    %22 = vector.broadcast %21 : vector<200x1xf32> to vector<200x196xf32>
    %23 = arith.mulf %11, %22 : vector<200x196xf32>
    %c0_12 = arith.constant 0 : index
    %c0_13 = arith.constant 0 : index
    %24 = vector.load %arg11[%c0_12, %c0_13] : memref<200x1xf32, #tpu.memory_space<vmem>>, vector<200x1xf32>
    %25 = vector.broadcast %24 : vector<200x1xf32> to vector<200x196xf32>
    %26 = arith.addf %23, %25 : vector<200x196xf32>
    %c0_14 = arith.constant 0 : index
    %c0_15 = arith.constant 0 : index
    %27 = vector.load %arg12[%c0_14, %c0_15] : memref<200x196xf32, #tpu.memory_space<vmem>>, vector<200x196xf32>
    tpu.vector_store %arg12[%c0_14, %c0_15], %26 {strides = array<i32>} : memref<200x196xf32, #tpu.memory_space<vmem>>, vector<200x196xf32>,
    return
  }
  func.func @transform_0(%arg0: i32, %arg1: i32) -> (i32, i32) {
    %c0_i32 = arith.constant 0 : i32
    %c0_i32_0 = arith.constant 0 : i32
    %c0_i32_1 = arith.constant 0 : i32
    return %c0_i32, %c0_i32_0 : i32, i32
  }
  func.func @transform_1(%arg0: i32, %arg1: i32) -> (i32, i32) {
    %c0_i32 = arith.constant 0 : i32
    %c0_i32_0 = arith.constant 0 : i32
    %c0_i32_1 = arith.constant 0 : i32
    return %c0_i32, %c0_i32_0 : i32, i32
  }
  func.func @transform_2(%arg0: i32, %arg1: i32) -> (i32, i32) {
    %c0_i32 = arith.constant 0 : i32
    %c0_i32_0 = arith.constant 0 : i32
    %c0_i32_1 = arith.constant 0 : i32
    return %c0_i32, %c0_i32_0 : i32, i32
  }
  func.func @transform_3(%arg0: i32, %arg1: i32) -> (i32, i32) {
    %c0_i32 = arith.constant 0 : i32
    %c0_i32_0 = arith.constant 0 : i32
    %c0_i32_1 = arith.constant 0 : i32
    return %c0_i32, %c0_i32_0 : i32, i32
  }
  func.func @transform_4(%arg0: i32, %arg1: i32) -> (i32, i32) {
    %c0_i32 = arith.constant 0 : i32
    %c0_i32_0 = arith.constant 0 : i32
    %c0_i32_1 = arith.constant 0 : i32
    return %c0_i32, %c0_i32_0 : i32, i32
  }
  func.func @transform_5(%arg0: i32, %arg1: i32) -> (i32, i32) {
    %c0_i32 = arith.constant 0 : i32
    %c0_i32_0 = arith.constant 0 : i32
    %c0_i32_1 = arith.constant 0 : i32
    return %c0_i32, %c0_i32_0 : i32, i32
  }
  func.func @transform_6(%arg0: i32, %arg1: i32) -> (i32, i32) {
    %c0_i32 = arith.constant 0 : i32
    %c0_i32_0 = arith.constant 0 : i32
    %c0_i32_1 = arith.constant 0 : i32
    return %c0_i32, %c0_i32_0 : i32, i32
  }
  func.func @transform_7(%arg0: i32, %arg1: i32) -> (i32, i32) {
    %c3_i32 = arith.constant 3 : i32
    %0 = arith.muli %arg0, %c3_i32 : i32
    %1 = arith.addi %0, %arg1 : i32
    %c0_i32 = arith.constant 0 : i32
    %c0_i32_0 = arith.constant 0 : i32
    return %1, %c0_i32 : i32, i32
  }
  func.func @transform_8(%arg0: i32, %arg1: i32) -> (i32, i32) {
    %c3_i32 = arith.constant 3 : i32
    %0 = arith.muli %arg0, %c3_i32 : i32
    %1 = arith.addi %0, %arg1 : i32
    %c0_i32 = arith.constant 0 : i32
    %c0_i32_0 = arith.constant 0 : i32
    return %1, %c0_i32 : i32, i32
  }
  func.func @transform_9(%arg0: i32, %arg1: i32) -> (i32, i32) {
    %c3_i32 = arith.constant 3 : i32
    %0 = arith.muli %arg0, %c3_i32 : i32
    %1 = arith.addi %0, %arg1 : i32
    %c0_i32 = arith.constant 0 : i32
    %c0_i32_0 = arith.constant 0 : i32
    return %1, %c0_i32 : i32, i32
  }
  func.func @transform_10(%arg0: i32, %arg1: i32) -> (i32, i32) {
    %c3_i32 = arith.constant 3 : i32
    %0 = arith.muli %arg0, %c3_i32 : i32
    %1 = arith.addi %0, %arg1 : i32
    %c0_i32 = arith.constant 0 : i32
    %c0_i32_0 = arith.constant 0 : i32
    return %1, %c0_i32 : i32, i32
  }
}

</mosaic_0001>

<bundles_post_ra>
// kernel: forward.1
= control target key start
LH: loop header
LB: loop body
LE: loop exit
PB: predicated region body
PF: predicated region fallthrough
CT: control target
= control target key end

     0   :  { %s8724_s13 = smov 0   ;;  %s8726_s14 = smov 0   ;;  %s12631_s0 = inlined_call_operand.vmem [shape: f32[36,1], index: 0, kind: input, shape index: {}]   ;;  %s12632_s1 = inlined_call_operand.vmem [shape: f32[864,36], index: 1, kind: input, shape index: {}]   ;;  %s12633_s2 = inlined_call_operand.vmem [shape: f32[864,1], index: 2, kind: input, shape index: {}]   ;;  %s12634_s3 = inlined_call_operand.vmem [shape: f32[864,196], index: 3, kind: input, shape index: {}]   ;;  %s12635_s4 = inlined_call_operand.vmem [shape: bf16[200,864], index: 4, kind: input, shape index: {}]   ;;  %s12636_s5 = inlined_call_operand.vmem [shape: f32[200,1], index: 5, kind: input, shape index: {}]   ;;  %s12637_s6 = inlined_call_operand.vmem [shape: f32[200,1], index: 6, kind: input, shape index: {}]   ;;  %s12638_s7 = inlined_call_operand.vmem [shape: bf16[1200,200], index: 7, kind: input, shape index: {}]   ;;  %s12639_s8 = inlined_call_operand.vmem [shape: f32[1200,1], index: 8, kind: input, shape index: {}]   ;;  %s12640_s9 = inlined_call_operand.vmem [shape: f32[1200,1], index: 9, kind: input, shape index: {}]   ;;  %s12641_s10 = inlined_call_operand.vmem [shape: f32[1200,196], index: 10, kind: output, shape index: {}]  }
   0x1   :  { %s8728_s15 = smov 0   ;;  %s8730_s16 = smov 0  }
   0x2   :  { %s8732_s17 = smov 0  }
   0x3 LB: > { %s29_s18 = sadd.s32 1, %s8657_s15  ;;  %s32_s19 = sadd.s32 1, %s8661_s16  ;;  %s8665_s17 = sphi %s8732_s17, %s20_s17   ;;  %s8661_s16 = sphi %s8730_s16, %s12807_s16   ;;  %s8657_s15 = sphi %s8728_s15, %s12806_s15   ;;  %s8653_s14 = sphi %s8726_s14, %s12805_s14   ;;  %s8649_s13 = sphi %s8724_s13, %s12804_s13  }
   0x4   : > { %p30_p0 = scmp.ge.s32.totalorder %s29_s18, 3  ;;  %p7074_p1 = scmp.ge.s32.totalorder %s8665_s17, 1 }
   0x5   : > { %p376_p2 = scmp.lt.s32.totalorder %s8665_s17, 7 }
   0x6   : > { %s12809_s18 = smov (%p30_p0, %s29_s18), 0  ;;  %s12811_s19 = smov (!%p30_p0, %s32_s19), %s8661_s16 }
   0x7   : > { %p377_p3 = pnand %p7074_p1, %p376_p2  ;;  %p34_p4 = scmp.ge.s32.totalorder %s12811_s19, 2 }
   0x9   : > { %s12813_s19 = smov (%p34_p4, %s12811_s19), 0  ;;  %380 = sbr.rel (%p377_p3) target bundleno = 2201 (0x899), region = 60 }
   0xa   : > { %12684 = sst [smem:[#allocation3_spill]] %s12813_s19 }
   0xe   : > { %s434_s20 = smul.u32 3, %s8653_s14  ;;  %p7081_p6 = scmp.ne.s32.totalorder %s8649_s13, 0 }
  0x10   : > { %s435_s21 = sadd.s32 %s8649_s13, %s434_s20 }
  0x11   : > { %s436_s22 = smul.u32 25, %s435_s21 }
  0x13   : > { %p437_p5 = scmp.lt.s32.totalorder %s436_s22, 149 }
  0x14   : > { %480 = sbr.rel (%p7081_p6) target bundleno = 1417 (0x589), region = 64 }
  0x15   : > { %s12815_s22 = smov (!%p437_p5, %s436_s22), 149 }
  0x16   : > { %s7496_s23 = sshll.u32 %s12815_s22, 3  ;;  %s7497_s24 = sshll.u32 %s12815_s22, 4 }
  0x17   : > { %s8757_s27 = scalar_lea.vmem %s12638_s7, %s7496_s23  ;;  %s8762_s30 = scalar_lea.vmem %s12639_s8, %s7496_s23 }
  0x18   : > { %s8767_s14 = scalar_lea.vmem %s12640_s9, %s7496_s23  ;;  %s8772_s19 = scalar_lea.vmem %s12641_s10, %s7497_s24 }
  0x19   : > { %v593_v0 = vld [vmem:[%s12631_s0 + $0x20] sm:$0xf]  ;;  %vm1027_vm0 = vcmask 1043456   ;;  %v592_v1 = vld [vmem:[%s12631_s0 + $0x18] sm:$0xff]  ;;  %vm702_vm1 = vcmask 293888   ;;  %v591_v2 = vld [vmem:[%s12631_s0 + $0x10] sm:$0xff] }
  0x1a   : > { %7636 = vmatprep.subr.msk.mxu0 %vm1027_vm0, %v593_v0  ;;  %v481_v3 = vld [vmem:[%s12632_s1] sm:$0xff]  ;;  %v590_v4 = vld [vmem:[%s12631_s0 + $0x8] sm:$0xff]  ;;  %v483_v7 = vld [vmem:[%s12632_s1 + $0x10] sm:$0xff]  ;;  %vm3908_vm2 = vcmask 785408   ;;  %vm4592_vm3 = vcmask 556032   ;;  %vm5570_vm4 = vcmask 556036  }
  0x1b   : > { %7637 = vmatpush3.msk.msra.mxu0 %vm1027_vm0, %v593_v0  ;;  %7646 = vmatprep.mubr.msk.f32.mxu0 %vm702_vm1, %v481_v3  ;;  %v589_v5 = vld [vmem:[%s12631_s0] sm:$0xff]  ;;  %v482_v6 = vld [vmem:[%s12632_s1 + $0x8] sm:$0xff]  ;;  %v484_v8 = vld [vmem:[%s12632_s1 + $0x18] sm:$0xff] }
  0x1c   : > { %7638 = vmatprep.subr.mxu0 %v592_v1  ;;  %v485_v9 = vld [vmem:[%s12632_s1 + $0x20] sm:$0xff]  ;;  %v486_v10 = vld [vmem:[%s12632_s1 + $0x28] sm:$0xff]  ;;  %v487_v11 = vld [vmem:[%s12632_s1 + $0x30] sm:$0xff] }
  0x1d   : > { %7639 = vmatpush3.msra.mxu0 %v592_v1  ;;  %v488_v12 = vld [vmem:[%s12632_s1 + $0x38] sm:$0xff]  ;;  %v489_v13 = vld [vmem:[%s12632_s1 + $0x40] sm:$0xff]  ;;  %v490_v14 = vld [vmem:[%s12632_s1 + $0x48] sm:$0xff] }
  0x1e   : > { %7640 = vmatprep.subr.mxu0 %v591_v2  ;;  %v491_v15 = vld [vmem:[%s12632_s1 + $0x50] sm:$0xff]  ;;  %v492_v16 = vld [vmem:[%s12632_s1 + $0x58] sm:$0xff]  ;;  %v493_v17 = vld [vmem:[%s12632_s1 + $0x60] sm:$0xff] }
  0x1f   : > { %7641 = vmatpush3.msra.mxu0 %v591_v2  ;;  %v494_v18 = vld [vmem:[%s12632_s1 + $0x68] sm:$0xff]  ;;  %v495_v19 = vld [vmem:[%s12632_s1 + $0x70] sm:$0xff]  ;;  %v496_v20 = vld [vmem:[%s12632_s1 + $0x78] sm:$0xff] }
  0x20   : > { %7642 = vmatprep.subr.mxu0 %v590_v4  ;;  %v497_v21 = vld [vmem:[%s12632_s1 + $0x80] sm:$0xff]  ;;  %v498_v22 = vld [vmem:[%s12632_s1 + $0x88] sm:$0xff]  ;;  %v499_v23 = vld [vmem:[%s12632_s1 + $0x90] sm:$0xff] }
  0x21   : > { %7643 = vmatpush3.msra.mxu0 %v590_v4  ;;  %v500_v24 = vld [vmem:[%s12632_s1 + $0x98] sm:$0xff]  ;;  %v501_v25 = vld [vmem:[%s12632_s1 + $0xa0] sm:$0xff]  ;;  %v502_v26 = vld [vmem:[%s12632_s1 + $0xa8] sm:$0xff] }
  0x22   : > { %7644 = vmatprep.subr.mxu0 %v589_v5  ;;  %v503_v27 = vld [vmem:[%s12632_s1 + $0xb0] sm:$0xff]  ;;  %v504_v28 = vld [vmem:[%s12632_s1 + $0xb8] sm:$0xff]  ;;  %v505_v29 = vld [vmem:[%s12632_s1 + $0xc0] sm:$0xff] }
  0x23   : > { %7645 = vmatpush3.msra.mxu0 %v589_v5  ;;  %v506_v30 = vld [vmem:[%s12632_s1 + $0xc8] sm:$0xff]  ;;  %v507_v31 = vld [vmem:[%s12632_s1 + $0xd0] sm:$0xff]  ;;  %v508_v32 = vld [vmem:[%s12632_s1 + $0xd8] sm:$0xff] }
  0x24   : > { %7647 = vmatmul.mubr.msk.f32.vlgmr.msra.gmra.mxu0 %vm702_vm1, %v482_v6  ;;  %v509_v33 = vld [vmem:[%s12632_s1 + $0xe0] sm:$0xff]  ;;  %v510_v34 = vld [vmem:[%s12632_s1 + $0xe8] sm:$0xff]  ;;  %v511_v35 = vld [vmem:[%s12632_s1 + $0xf0] sm:$0xff] }
  0x25   : > { %7649 = vmatprep.mubr.msk.f32.mxu0 %vm702_vm1, %v483_v7  ;;  %v512_v36 = vld [vmem:[%s12632_s1 + $0xf8] sm:$0xff]  ;;  %v513_v37 = vld [vmem:[%s12632_s1 + $0x100] sm:$0xff]  ;;  %v514_v38 = vld [vmem:[%s12632_s1 + $0x108] sm:$0xff]  ;;  %v8667_v7 = vmov 0  }
  0x26   : > { %v515_v39 = vld [vmem:[%s12632_s1 + $0x110] sm:$0xff]  ;;  %v516_v40 = vld [vmem:[%s12632_s1 + $0x118] sm:$0xff]  ;;  %v517_v41 = vld [vmem:[%s12632_s1 + $0x120] sm:$0xff]  ;;  %7889 = vset.pattern.permute.xlu1 %v8667_v7  ;;  %7888 = vset.pattern.permute.xlu0 %v8667_v7 }
  0x27   : > { %v518_v42 = vld [vmem:[%s12632_s1 + $0x128] sm:$0xff]  ;;  %v519_v43 = vld [vmem:[%s12632_s1 + $0x130] sm:$0xff]  ;;  %v520_v44 = vld [vmem:[%s12632_s1 + $0x138] sm:$0xff] }
  0x28   : > { %7650 = vmatmul.mubr.msk.f32.gmra.mxu0 %vm702_vm1, %v484_v8  ;;  %v521_v45 = vld [vmem:[%s12632_s1 + $0x140] sm:$0xff]  ;;  %v522_v46 = vld [vmem:[%s12632_s1 + $0x148] sm:$0xff]  ;;  %v523_v47 = vld [vmem:[%s12632_s1 + $0x150] sm:$0xff] }
  0x29   : > { %7652 = vmatprep.mubr.msk.f32.mxu0 %vm702_vm1, %v485_v9  ;;  %v524_v48 = vld [vmem:[%s12632_s1 + $0x158] sm:$0xff]  ;;  %v525_v49 = vld [vmem:[%s12632_s1 + $0x160] sm:$0xff]  ;;  %v526_v50 = vld [vmem:[%s12632_s1 + $0x168] sm:$0xff] }
  0x2a   : > { %v527_v51 = vld [vmem:[%s12632_s1 + $0x170] sm:$0xff]  ;;  %v528_v52 = vld [vmem:[%s12632_s1 + $0x178] sm:$0xff]  ;;  %v529_v53 = vld [vmem:[%s12632_s1 + $0x180] sm:$0xff] }
  0x2b   : > { %v530_v54 = vld [vmem:[%s12632_s1 + $0x188] sm:$0xff]  ;;  %v531_v55 = vld [vmem:[%s12632_s1 + $0x190] sm:$0xff]  ;;  %v532_v56 = vld [vmem:[%s12632_s1 + $0x198] sm:$0xff] }
  0x2c   : > { %7653 = vmatmul.mubr.msk.f32.gmra.mxu0 %vm702_vm1, %v486_v10  ;;  %v533_v57 = vld [vmem:[%s12632_s1 + $0x1a0] sm:$0xff]  ;;  %v534_v58 = vld [vmem:[%s12632_s1 + $0x1a8] sm:$0xff]  ;;  %v535_v59 = vld [vmem:[%s12632_s1 + $0x1b0] sm:$0xff] }
  0x2d   : > { %7655 = vmatprep.mubr.msk.f32.mxu0 %vm702_vm1, %v487_v11  ;;  %v536_v60 = vld [vmem:[%s12632_s1 + $0x1b8] sm:$0xff]  ;;  %v537_v61 = vld [vmem:[%s12632_s1 + $0x1c0] sm:$0xff]  ;;  %v538_v62 = vld [vmem:[%s12632_s1 + $0x1c8] sm:$0xff] }
  0x2e   : > { %v539_v63 = vld [vmem:[%s12632_s1 + $0x1d0] sm:$0xff]  ;;  %v540_v0 = vld [vmem:[%s12632_s1 + $0x1d8] sm:$0xff]  ;;  %v541_v1 = vld [vmem:[%s12632_s1 + $0x1e0] sm:$0xff] }
  0x2f   : > { %v542_v2 = vld [vmem:[%s12632_s1 + $0x1e8] sm:$0xff]  ;;  %v543_v3 = vld [vmem:[%s12632_s1 + $0x1f0] sm:$0xff]  ;;  %v544_v4 = vld [vmem:[%s12632_s1 + $0x1f8] sm:$0xff] }
  0x30   : > { %7656 = vmatmul.mubr.msk.f32.gmra.mxu0 %vm702_vm1, %v488_v12  ;;  %v545_v5 = vld [vmem:[%s12632_s1 + $0x200] sm:$0xff]  ;;  %v546_v6 = vld [vmem:[%s12632_s1 + $0x208] sm:$0xff]  ;;  %v547_v8 = vld [vmem:[%s12632_s1 + $0x210] sm:$0xff] }
  0x31   : > { %7658 = vmatprep.mubr.msk.f32.mxu0 %vm702_vm1, %v489_v13  ;;  %v548_v9 = vld [vmem:[%s12632_s1 + $0x218] sm:$0xff]  ;;  %v549_v10 = vld [vmem:[%s12632_s1 + $0x220] sm:$0xff]  ;;  %v550_v11 = vld [vmem:[%s12632_s1 + $0x228] sm:$0xff] }
  0x32   : > { %v551_v12 = vld [vmem:[%s12632_s1 + $0x230] sm:$0xff]  ;;  %v552_v13 = vld [vmem:[%s12632_s1 + $0x238] sm:$0xff]  ;;  %vm11731_vm5 = vmor %vm5570_vm4, %vm1027_vm0 }
  0x34   : > { %7659 = vmatmul.mubr.msk.f32.gmra.mxu0 %vm702_vm1, %v490_v14  ;;  %v553_v14 = vld [vmem:[%s12632_s1 + $0x240] sm:$0xff] }
  0x35   : > { %7661 = vmatprep.mubr.msk.f32.mxu0 %vm702_vm1, %v491_v15  ;;  %v554_v15 = vld [vmem:[%s12632_s1 + $0x248] sm:$0xff] }
  0x38   : > { %7662 = vmatmul.mubr.msk.f32.gmra.mxu0 %vm702_vm1, %v492_v16  ;;  %v555_v16 = vld [vmem:[%s12632_s1 + $0x250] sm:$0xff] }
  0x39   : > { %7664 = vmatprep.mubr.msk.f32.mxu0 %vm702_vm1, %v493_v17  ;;  %v556_v17 = vld [vmem:[%s12632_s1 + $0x258] sm:$0xff] }
  0x3c   : > { %7665 = vmatmul.mubr.msk.f32.gmra.mxu0 %vm702_vm1, %v494_v18  ;;  %v557_v18 = vld [vmem:[%s12632_s1 + $0x260] sm:$0xff] }
  0x3d   : > { %7667 = vmatprep.mubr.msk.f32.mxu0 %vm702_vm1, %v495_v19  ;;  %v558_v19 = vld [vmem:[%s12632_s1 + $0x268] sm:$0xff] }
  0x40   : > { %7668 = vmatmul.mubr.msk.f32.gmra.mxu0 %vm702_vm1, %v496_v20  ;;  %v559_v20 = vld [vmem:[%s12632_s1 + $0x270] sm:$0xff] }
  0x41   : > { %7670 = vmatprep.mubr.msk.f32.mxu0 %vm702_vm1, %v497_v21  ;;  %v560_v21 = vld [vmem:[%s12632_s1 + $0x278] sm:$0xff] }
  0x44   : > { %7671 = vmatmul.mubr.msk.f32.gmra.mxu0 %vm702_vm1, %v498_v22  ;;  %v561_v22 = vld [vmem:[%s12632_s1 + $0x280] sm:$0xff] }
  0x45   : > { %7673 = vmatprep.mubr.msk.f32.mxu0 %vm702_vm1, %v499_v23  ;;  %v562_v23 = vld [vmem:[%s12632_s1 + $0x288] sm:$0xff] }
  0x48   : > { %7674 = vmatmul.mubr.msk.f32.gmra.mxu0 %vm702_vm1, %v500_v24  ;;  %v563_v24 = vld [vmem:[%s12632_s1 + $0x290] sm:$0xff] }
  0x49   : > { %7676 = vmatprep.mubr.msk.f32.mxu0 %vm702_vm1, %v501_v25  ;;  %v564_v25 = vld [vmem:[%s12632_s1 + $0x298] sm:$0xff] }
  0x4c   : > { %7677 = vmatmul.mubr.msk.f32.gmra.mxu0 %vm702_vm1, %v502_v26  ;;  %v565_v26 = vld [vmem:[%s12632_s1 + $0x2a0] sm:$0xff] }
  0x4d   : > { %7679 = vmatprep.mubr.msk.f32.mxu0 %vm702_vm1, %v503_v27  ;;  %v566_v27 = vld [vmem:[%s12632_s1 + $0x2a8] sm:$0xff] }
  0x50   : > { %7680 = vmatmul.mubr.msk.f32.gmra.mxu0 %vm702_vm1, %v504_v28  ;;  %v567_v28 = vld [vmem:[%s12632_s1 + $0x2b0] sm:$0xff] }
  0x51   : > { %7682 = vmatprep.mubr.msk.f32.mxu0 %vm702_vm1, %v505_v29  ;;  %v568_v29 = vld [vmem:[%s12632_s1 + $0x2b8] sm:$0xff] }
  0x54   : > { %7683 = vmatmul.mubr.msk.f32.gmra.mxu0 %vm702_vm1, %v506_v30  ;;  %v569_v30 = vld [vmem:[%s12632_s1 + $0x2c0] sm:$0xff] }
  0x55   : > { %7685 = vmatprep.mubr.msk.f32.mxu0 %vm702_vm1, %v507_v31  ;;  %v570_v31 = vld [vmem:[%s12632_s1 + $0x2c8] sm:$0xff] }
  0x58   : > { %7686 = vmatmul.mubr.msk.f32.gmra.mxu0 %vm702_vm1, %v508_v32  ;;  %v571_v32 = vld [vmem:[%s12632_s1 + $0x2d0] sm:$0xff] }
  0x59   : > { %7688 = vmatprep.mubr.msk.f32.mxu0 %vm702_vm1, %v509_v33  ;;  %v572_v33 = vld [vmem:[%s12632_s1 + $0x2d8] sm:$0xff] }
  0x5c   : > { %7689 = vmatmul.mubr.msk.f32.gmra.mxu0 %vm702_vm1, %v510_v34  ;;  %v573_v34 = vld [vmem:[%s12632_s1 + $0x2e0] sm:$0xff] }
  0x5d   : > { %7691 = vmatprep.mubr.msk.f32.mxu0 %vm702_vm1, %v511_v35  ;;  %v574_v35 = vld [vmem:[%s12632_s1 + $0x2e8] sm:$0xff] }
  0x60   : > { %7692 = vmatmul.mubr.msk.f32.gmra.mxu0 %vm702_vm1, %v512_v36  ;;  %v575_v36 = vld [vmem:[%s12632_s1 + $0x2f0] sm:$0xff] }
  0x61   : > { %7694 = vmatprep.mubr.msk.f32.mxu0 %vm702_vm1, %v513_v37  ;;  %v576_v37 = vld [vmem:[%s12632_s1 + $0x2f8] sm:$0xff] }
  0x64   : > { %7695 = vmatmul.mubr.msk.f32.gmra.mxu0 %vm702_vm1, %v514_v38  ;;  %v577_v38 = vld [vmem:[%s12632_s1 + $0x300] sm:$0xff] }
  0x65   : > { %7697 = vmatprep.mubr.msk.f32.mxu0 %vm702_vm1, %v515_v39  ;;  %v578_v39 = vld [vmem:[%s12632_s1 + $0x308] sm:$0xff] }
  0x68   : > { %7698 = vmatmul.mubr.msk.f32.gmra.mxu0 %vm702_vm1, %v516_v40  ;;  %v579_v40 = vld [vmem:[%s12632_s1 + $0x310] sm:$0xff] }
  0x69   : > { %7700 = vmatprep.mubr.msk.f32.mxu0 %vm702_vm1, %v517_v41 }
  0x6c   : > { %7701 = vmatmul.mubr.msk.f32.gmra.mxu0 %vm702_vm1, %v518_v42  ;;  %v580_v42 = vld [vmem:[%s12632_s1 + $0x318] sm:$0xff] }
  0x6d   : > { %7703 = vmatprep.mubr.msk.f32.mxu0 %vm702_vm1, %v519_v43 }
  0x70   : > { %7704 = vmatmul.mubr.msk.f32.gmra.mxu0 %vm702_vm1, %v520_v44  ;;  %v581_v44 = vld [vmem:[%s12632_s1 + $0x320] sm:$0xff] }
  0x71   : > { %7706 = vmatprep.mubr.msk.f32.mxu0 %vm702_vm1, %v521_v45 }
  0x74   : > { %7707 = vmatmul.mubr.msk.f32.gmra.mxu0 %vm702_vm1, %v522_v46  ;;  %v582_v46 = vld [vmem:[%s12632_s1 + $0x328] sm:$0xff] }
  0x75   : > { %7709 = vmatprep.mubr.msk.f32.mxu0 %vm702_vm1, %v523_v47 }
  0x78   : > { %7710 = vmatmul.mubr.msk.f32.gmra.mxu0 %vm702_vm1, %v524_v48  ;;  %v583_v48 = vld [vmem:[%s12632_s1 + $0x330] sm:$0xff] }
  0x79   : > { %7712 = vmatprep.mubr.msk.f32.mxu0 %vm702_vm1, %v525_v49 }
  0x7c   : > { %7713 = vmatmul.mubr.msk.f32.gmra.mxu0 %vm702_vm1, %v526_v50  ;;  %v584_v50 = vld [vmem:[%s12632_s1 + $0x338] sm:$0xff] }
  0x7d   : > { %7715 = vmatprep.mubr.msk.f32.mxu0 %vm702_vm1, %v527_v51 }
  0x80   : > { %7716 = vmatmul.mubr.msk.f32.gmra.mxu0 %vm702_vm1, %v528_v52  ;;  %v585_v52 = vld [vmem:[%s12632_s1 + $0x340] sm:$0xff] }
  0x81   : > { %7718 = vmatprep.mubr.msk.f32.mxu0 %vm702_vm1, %v529_v53 }
  0x84   : > { %7719 = vmatmul.mubr.msk.f32.gmra.mxu0 %vm702_vm1, %v530_v54  ;;  %v586_v54 = vld [vmem:[%s12632_s1 + $0x348] sm:$0xff] }
  0x85   : > { %7721 = vmatprep.mubr.msk.f32.mxu0 %vm702_vm1, %v531_v55 }
  0x88   : > { %7722 = vmatmul.mubr.msk.f32.gmra.mxu0 %vm702_vm1, %v532_v56  ;;  %v587_v56 = vld [vmem:[%s12632_s1 + $0x350] sm:$0xff] }
  0x89   : > { %7724 = vmatprep.mubr.msk.f32.mxu0 %vm702_vm1, %v533_v57  ;;  %v595_v57 = vld [vmem:[%s12633_s2 + $0x8] sm:$0xff] }
  0x8c   : > { %7725 = vmatmul.mubr.msk.f32.gmra.mxu0 %vm702_vm1, %v534_v58 }
  0x8d   : > { %7727 = vmatprep.mubr.msk.f32.mxu0 %vm702_vm1, %v535_v59  ;;  %v597_v59 = vld [vmem:[%s12633_s2 + $0x18] sm:$0xff] }
  0x90   : > { %7728 = vmatmul.mubr.msk.f32.gmra.mxu0 %vm702_vm1, %v536_v60  ;;  %v588_v60 = vld [vmem:[%s12632_s1 + $0x358] sm:$0xff] }
  0x91   : > { %7730 = vmatprep.mubr.msk.f32.mxu0 %vm702_vm1, %v537_v61 }
  0x94   : > { %7731 = vmatmul.mubr.msk.f32.gmra.mxu0 %vm702_vm1, %v538_v62 }
  0x95   : > { %7733 = vmatprep.mubr.msk.f32.mxu0 %vm702_vm1, %v539_v63  ;;  %v599_v63 = vld [vmem:[%s12633_s2 + $0x28] sm:$0xff] }
  0x98   : > { %7734 = vmatmul.mubr.msk.f32.gmra.mxu0 %vm702_vm1, %v540_v0 }
  0x99   : > { %7736 = vmatprep.mubr.msk.f32.mxu0 %vm702_vm1, %v541_v1 }
  0x9c   : > { %7737 = vmatmul.mubr.msk.f32.gmra.mxu0 %vm702_vm1, %v542_v2 }
  0x9d   : > { %7739 = vmatprep.mubr.msk.f32.mxu0 %vm702_vm1, %v543_v3  ;;  %v601_v3 = vld [vmem:[%s12633_s2 + $0x38] sm:$0xff] }
  0xa0   : > { %7740 = vmatmul.mubr.msk.f32.gmra.mxu0 %vm702_vm1, %v544_v4 }
  0xa1   : > { %7742 = vmatprep.mubr.msk.f32.mxu0 %vm702_vm1, %v545_v5  ;;  %v607_v5 = vld [vmem:[%s12633_s2 + $0x68] sm:$0xff] }
  0xa4   : > { %7743 = vmatmul.mubr.msk.f32.gmra.mxu0 %vm702_vm1, %v546_v6 }
  0xa5   : > { %7745 = vmatprep.mubr.msk.f32.mxu0 %vm702_vm1, %v547_v8  ;;  %v605_v8 = vld [vmem:[%s12633_s2 + $0x58] sm:$0xff] }
  0xa8   : > { %7746 = vmatmul.mubr.msk.f32.gmra.mxu0 %vm702_vm1, %v548_v9 }
  0xa9   : > { %7748 = vmatprep.mubr.msk.f32.mxu0 %vm702_vm1, %v549_v10 }
  0xac   : > { %7749 = vmatmul.mubr.msk.f32.gmra.mxu0 %vm702_vm1, %v550_v11  ;;  %v606_v11 = vld [vmem:[%s12633_s2 + $0x60] sm:$0xff] }
  0xad   : > { %7751 = vmatprep.mubr.msk.f32.mxu0 %vm702_vm1, %v551_v12 }
  0xb0   : > { %7752 = vmatmul.mubr.msk.f32.gmra.mxu0 %vm702_vm1, %v552_v13 }
  0xb1   : > { %7754 = vmatprep.mubr.msk.f32.mxu0 %vm702_vm1, %v553_v14 }
  0xb4   : > { %7755 = vmatmul.mubr.msk.f32.gmra.mxu0 %vm702_vm1, %v554_v15  ;;  %v600_v15 = vld [vmem:[%s12633_s2 + $0x30] sm:$0xff] }
  0xb5   : > { %7757 = vmatprep.mubr.msk.f32.mxu0 %vm702_vm1, %v555_v16 }
  0xb8   : > { %7758 = vmatmul.mubr.msk.f32.gmra.mxu0 %vm702_vm1, %v556_v17 }
  0xb9   : > { %7760 = vmatprep.mubr.msk.f32.mxu0 %vm702_vm1, %v557_v18  ;;  %v609_v18 = vld [vmem:[%s12633_s2 + $0x78] sm:$0xff] }
  0xbc   : > { %7761 = vmatmul.mubr.msk.f32.gmra.mxu0 %vm702_vm1, %v558_v19 }
  0xbd   : > { %7763 = vmatprep.mubr.msk.f32.mxu0 %vm702_vm1, %v559_v20 }
  0xc0   : > { %7764 = vmatmul.mubr.msk.f32.gmra.mxu0 %vm702_vm1, %v560_v21  ;;  %v603_v21 = vld [vmem:[%s12633_s2 + $0x48] sm:$0xff] }
  0xc1   : > { %7766 = vmatprep.mubr.msk.f32.mxu0 %vm702_vm1, %v561_v22 }
  0xc4   : > { %7767 = vmatmul.mubr.msk.f32.gmra.mxu0 %vm702_vm1, %v562_v23  ;;  %v608_v23 = vld [vmem:[%s12633_s2 + $0x70] sm:$0xff] }
  0xc5   : > { %7769 = vmatprep.mubr.msk.f32.mxu0 %vm702_vm1, %v563_v24 }
  0xc8   : > { %7770 = vmatmul.mubr.msk.f32.gmra.mxu0 %vm702_vm1, %v564_v25 }
  0xc9   : > { %7772 = vmatprep.mubr.msk.f32.mxu0 %vm702_vm1, %v565_v26  ;;  %v604_v26 = vld [vmem:[%s12633_s2 + $0x50] sm:$0xff] }
  0xcc   : > { %7773 = vmatmul.mubr.msk.f32.gmra.mxu0 %vm702_vm1, %v566_v27 }
  0xcd   : > { %7775 = vmatprep.mubr.msk.f32.mxu0 %vm702_vm1, %v567_v28 }
  0xd0   : > { %7776 = vmatmul.mubr.msk.f32.gmra.mxu0 %vm702_vm1, %v568_v29 }
  0xd1   : > { %7778 = vmatprep.mubr.msk.f32.mxu0 %vm702_vm1, %v569_v30 }
  0xd4   : > { %7779 = vmatmul.mubr.msk.f32.gmra.mxu0 %vm702_vm1, %v570_v31 }
  0xd5   : > { %7781 = vmatprep.mubr.msk.f32.mxu0 %vm702_vm1, %v571_v32  ;;  %v602_v32 = vld [vmem:[%s12633_s2 + $0x40] sm:$0xff] }
  0xd8   : > { %7782 = vmatmul.mubr.msk.f32.gmra.mxu0 %vm702_vm1, %v572_v33 }
  0xd9   : > { %7784 = vmatprep.mubr.msk.f32.mxu0 %vm702_vm1, %v573_v34 }
  0xdc   : > { %7785 = vmatmul.mubr.msk.f32.gmra.mxu0 %vm702_vm1, %v574_v35 }
  0xdd   : > { %7787 = vmatprep.mubr.msk.f32.mxu0 %vm702_vm1, %v575_v36 }
  0xe0   : > { %7788 = vmatmul.mubr.msk.f32.gmra.mxu0 %vm702_vm1, %v576_v37 }
  0xe1   : > { %7790 = vmatprep.mubr.msk.f32.mxu0 %vm702_vm1, %v577_v38 }
  0xe4   : > { %v7648_v41 = vpop.f32.mrf.mxu0  ;;  %7791 = vmatmul.mubr.msk.f32.gmra.mxu0 %vm702_vm1, %v578_v39  ;;  %v594_v39 = vld [vmem:[%s12633_s2] sm:$0xff] }
  0xe5   : > { %7793 = vmatprep.mubr.msk.f32.mxu0 %vm702_vm1, %v579_v40  ;;  %v1103_v62 = vadd.f32 %v7648_v41, %v595_v57 }
  0xe6   : > { %v9192_v43 = vpop.f32.mrf.mxu0 }
  0xe7   : > { %v7192_v6 = vmul.f32 -1.442695, %v1103_v62 }
  0xe8   : > { %v7651_v45 = vpop.f32.mrf.mxu0  ;;  %7794 = vmatmul.mubr.msk.f32.gmra.mxu0 %vm702_vm1, %v580_v42  ;;  %v596_v42 = vld [vmem:[%s12633_s2 + $0x10] sm:$0xff] }
  0xe9   : > { %7796 = vmatprep.mubr.msk.f32.mxu0 %vm702_vm1, %v581_v44  ;;  %v1113_v0 = vadd.f32 %v7651_v45, %v597_v59  ;;  %8017 = vpow2.f32 %v7192_v6  ;;  %v598_v45 = vld [vmem:[%s12633_s2 + $0x20] sm:$0xff]  ;;  %v611_v6 = vld [vmem:[%s12633_s2 + $0x88] sm:$0xff] }
  0xea   : > { %v9202_v47 = vpop.f32.mrf.mxu0 }
  0xeb   : > { %v7194_v9 = vmul.f32 -1.442695, %v1113_v0 }
  0xec   : > { %v7654_v49 = vpop.f32.mrf.mxu0  ;;  %7797 = vmatmul.mubr.msk.f32.gmra.mxu0 %vm702_vm1, %v582_v46 }
  0xed   : > { %7799 = vmatprep.mubr.msk.f32.mxu0 %vm702_vm1, %v583_v48  ;;  %v1123_v2 = vadd.f32 %v7654_v49, %v599_v63  ;;  %8019 = vpow2.f32 %v7194_v9  ;;  %v1098_v49 = vadd.f32 %v9192_v43, %v594_v39 }
  0xee   : > { %v9212_v51 = vpop.f32.mrf.mxu0 }
  0xef   : > { %v7196_v14 = vmul.f32 -1.442695, %v1123_v2 }
  0xf0   : > { %v7657_v53 = vpop.f32.mrf.mxu0  ;;  %7800 = vmatmul.mubr.msk.f32.gmra.mxu0 %vm702_vm1, %v584_v50  ;;  %v1108_v50 = vadd.f32 %v9202_v47, %v596_v42  ;;  %v619_v42 = vld [vmem:[%s12633_s2 + $0xc8] sm:$0xff] }
  0xf1   : > { %7802 = vmatprep.mubr.msk.f32.mxu0 %vm702_vm1, %v585_v52  ;;  %v1133_v12 = vadd.f32 %v7657_v53, %v601_v3  ;;  %8021 = vpow2.f32 %v7196_v14 }
  0xf2   : > { %v1127_v55 = vpop.f32.mrf.mxu0  ;;  %v7193_v59 = vmul.f32 -1.442695, %v1108_v50  ;;  %v621_v50 = vld [vmem:[%s12633_s2 + $0xd8] sm:$0xff] }
  0xf3   : > { %v7198_v24 = vmul.f32 -1.442695, %v1133_v12  ;;  %v1128_v25 = vadd.f32 %v1127_v55, %v600_v15 }
  0xf4   : > { %v7660_v58 = vpop.f32.mrf.mxu0  ;;  %7803 = vmatmul.mubr.msk.f32.gmra.mxu0 %vm702_vm1, %v586_v54  ;;  %v1118_v54 = vadd.f32 %v9212_v51, %v598_v45  ;;  %v625_v45 = vld [vmem:[%s12633_s2 + $0xf8] sm:$0xff] }
  0xf5   : > { %7805 = vmatprep.mubr.msk.f32.mxu0 %vm702_vm1, %v587_v56  ;;  %v1143_v31 = vadd.f32 %v7660_v58, %v603_v21  ;;  %v7197_v37 = vmul.f32 -1.442695, %v1128_v25  ;;  %v7191_v58 = vmul.f32 -1.442695, %v1098_v49  ;;  %v617_v21 = vld [vmem:[%s12633_s2 + $0xb8] sm:$0xff] }
  0xf6   : > { %v1137_v61 = vpop.f32.mrf.mxu0  ;;  %v8018_v55 = vpop.eup %8017  ;;  %v7195_v43 = vmul.f32 -1.442695, %v1118_v54 }
  0xf7   : > { %v1138_v40 = vadd.f32 %v1137_v61, %v602_v32  ;;  %v7200_v44 = vmul.f32 -1.442695, %v1143_v31  ;;  %v1961_v0 = vadd.f32 1.0, %v8018_v55 }
  0xf8   : > { %v7663_v1 = vpop.f32.mrf.mxu0  ;;  %7806 = vmatmul.mubr.msk.f32.gmra.mxu0 %vm702_vm1, %v588_v60 }
  0xf9   : > { %v1153_v16 = vadd.f32 %v7663_v1, %v605_v8  ;;  %v7199_v52 = vmul.f32 -1.442695, %v1138_v40 }
  0xfa   : > { %v1147_v4 = vpop.f32.mrf.mxu0  ;;  %v8020_v57 = vpop.eup %8019 }
  0xfb   : > { %v7202_v29 = vmul.f32 -1.442695, %v1153_v16  ;;  %v1148_v35 = vadd.f32 %v1147_v4, %v604_v26  ;;  %v1963_v2 = vadd.f32 1.0, %v8020_v57  ;;  %v615_v16 = vld [vmem:[%s12633_s2 + $0xa8] sm:$0xff]  ;;  %v616_v26 = vld [vmem:[%s12633_s2 + $0xb0] sm:$0xff] }
  0xfc   : > { %v7666_v10 = vpop.f32.mrf.mxu0  ;;  %v624_v57 = vld [vmem:[%s12633_s2 + $0xf0] sm:$0xff] }
  0xfd   : > { %v1163_v13 = vadd.f32 %v7666_v10, %v607_v5  ;;  %v7201_v46 = vmul.f32 -1.442695, %v1148_v35 }
  0xfe   : > { %v1157_v17 = vpop.f32.mrf.mxu0  ;;  %v8022_v61 = vpop.eup %8021 }
  0xff   : > { %v7204_v19 = vmul.f32 -1.442695, %v1163_v13  ;;  %v1158_v20 = vadd.f32 %v1157_v17, %v606_v11  ;;  %v1965_v11 = vadd.f32 1.0, %v8022_v61  ;;  %v620_v61 = vld [vmem:[%s12633_s2 + $0xd0] sm:$0xff] }
 0x100   : > { %v7669_v22 = vpop.f32.mrf.mxu0 }
 0x101   : > { %v7203_v27 = vmul.f32 -1.442695, %v1158_v20  ;;  %v1173_v28 = vadd.f32 %v7669_v22, %v609_v18  ;;  %8023 = vpow2.f32 %v7204_v19 }
 0x102   : > { %v1167_v30 = vpop.f32.mrf.mxu0 }
 0x103   : > { %v7206_v33 = vmul.f32 -1.442695, %v1173_v28  ;;  %v1168_v34 = vadd.f32 %v1167_v30, %v608_v23  ;;  %8025 = vpow2.f32 %v7203_v27 }
 0x104   : > { %v7672_v36 = vpop.f32.mrf.mxu0  ;;  %8027 = vpow2.f32 %v7198_v24 }
 0x105   : > { %v7205_v38 = vmul.f32 -1.442695, %v1168_v34  ;;  %8029 = vpow2.f32 %v7202_v29  ;;  %v1183_v15 = vadd.f32 %v7672_v36, %v611_v6  ;;  %v623_v29 = vld [vmem:[%s12633_s2 + $0xe8] sm:$0xff]  ;;  %v622_v36 = vld [vmem:[%s12633_s2 + $0xe0] sm:$0xff] }
 0x106   : > { %v9273_v41 = vpop.f32.mrf.mxu0  ;;  %8031 = vpow2.f32 %v7206_v33 }
 0x107   : > { %8033 = vpow2.f32 %v7205_v38  ;;  %v7208_v27 = vmul.f32 -1.442695, %v1183_v15  ;;  %v613_v15 = vld [vmem:[%s12633_s2 + $0x98] sm:$0xff] }
 0x108   : > { %v9281_v48 = vpop.f32.mrf.mxu0  ;;  %8035 = vpow2.f32 %v7197_v37 }
 0x109   : > { %8037 = vpow2.f32 %v7200_v44 }
 0x10a   : > { %v9285_v53 = vpop.f32.mrf.mxu0  ;;  %8039 = vpow2.f32 %v7201_v46 }
 0x10b   : > { %8041 = vpow2.f32 %v7199_v52 }
 0x10c   : > { %v7678_v56 = vpop.f32.mrf.mxu0  ;;  %8043 = vpow2.f32 %v7191_v58 }
 0x10d   : > { %8045 = vpow2.f32 %v7193_v59  ;;  %v1203_v25 = vadd.f32 %v7678_v56, %v615_v16 }
 0x10e   : > { %v9288_v60 = vpop.f32.mrf.mxu0  ;;  %v8024_v62 = vpop.eup %8023  ;;  %8047 = vpow2.f32 %v7195_v43 }
 0x10f   : > { %v1973_v5 = vadd.f32 1.0, %v8024_v62  ;;  %v7212_v37 = vmul.f32 -1.442695, %v1203_v25 }
 0x110   : > { %v7681_v63 = vpop.f32.mrf.mxu0  ;;  %v8026_v47 = vpop.eup %8025 }
 0x111   : > { %v8028_v1 = vpop.eup %8027  ;;  %v1972_v51 = vadd.f32 1.0, %v8026_v47  ;;  %v1213_v32 = vadd.f32 %v7681_v63, %v617_v21  ;;  %v618_v47 = vld [vmem:[%s12633_s2 + $0xc0] sm:$0xff] }
 0x112   : > { %v1207_v3 = vpop.f32.mrf.mxu0  ;;  %v8030_v4 = vpop.eup %8029  ;;  %v1967_v13 = vadd.f32 1.0, %v8028_v1 }
 0x113   : > { %v8032_v8 = vpop.eup %8031  ;;  %8049 = vrcp.f32 %v1972_v51  ;;  %v1971_v18 = vadd.f32 1.0, %v8030_v4  ;;  %v1208_v34 = vadd.f32 %v1207_v3, %v616_v26  ;;  %v7214_v49 = vmul.f32 -1.442695, %v1213_v32 }
 0x114   : > { %v7684_v9 = vpop.f32.mrf.mxu0  ;;  %v8034_v10 = vpop.eup %8033  ;;  %8051 = vrcp.f32 %v1961_v0  ;;  %v1975_v20 = vadd.f32 1.0, %v8032_v8 }
 0x115   : > { %v8036_v12 = vpop.eup %8035  ;;  %8053 = vrcp.f32 %v1963_v2  ;;  %v1974_v14 = vadd.f32 1.0, %v8034_v10  ;;  %v7213_v55 = vmul.f32 -1.442695, %v1208_v34  ;;  %v1223_v59 = vadd.f32 %v7684_v9, %v619_v42  ;;  %v610_v10 = vld [vmem:[%s12633_s2 + $0x80] sm:$0xff] }
 0x116   : > { %v9296_v17 = vpop.f32.mrf.mxu0  ;;  %8055 = vrcp.f32 %v1973_v5  ;;  %v8038_v19 = vpop.eup %8037  ;;  %v1966_v24 = vadd.f32 1.0, %v8036_v12 }
 0x117   : > { %8057 = vrcp.f32 %v1974_v14  ;;  %v8040_v23 = vpop.eup %8039  ;;  %v1969_v31 = vadd.f32 1.0, %v8038_v19  ;;  %v1218_v12 = vadd.f32 %v9296_v17, %v618_v47  ;;  %v612_v17 = vld [vmem:[%s12633_s2 + $0x90] sm:$0xff] }
 0x118   : > { %v7687_v22 = vpop.f32.mrf.mxu0  ;;  %8059 = vrcp.f32 %v1965_v11  ;;  %v8042_v30 = vpop.eup %8041  ;;  %v1970_v33 = vadd.f32 1.0, %v8040_v23  ;;  %v7216_v11 = vmul.f32 -1.442695, %v1223_v59  ;;  %v614_v23 = vld [vmem:[%s12633_s2 + $0xa0] sm:$0xff] }
 0x119   : > { %8061 = vrcp.f32 %v1967_v13  ;;  %v9310_v39 = vpop.eup %8043  ;;  %v1968_v40 = vadd.f32 1.0, %v8042_v30  ;;  %v1233_v0 = vadd.f32 %v7687_v22, %v621_v50  ;;  %v1178_v22 = vadd.f32 %v9273_v41, %v610_v10 }
 0x11a   : > { %v1227_v28 = vpop.f32.mrf.mxu0  ;;  %8063 = vrcp.f32 %v1971_v18  ;;  %v9318_v46 = vpop.eup %8045  ;;  %v1960_v30 = vadd.f32 1.0, %v9310_v39  ;;  %v1198_v34 = vadd.f32 %v9288_v60, %v614_v23 }
 0x11b   : > { %8065 = vrcp.f32 %v1975_v20  ;;  %v8048_v54 = vpop.eup %8047  ;;  %v1228_v6 = vadd.f32 %v1227_v28, %v620_v61  ;;  %v7218_v16 = vmul.f32 -1.442695, %v1233_v0  ;;  %v7215_v28 = vmul.f32 -1.442695, %v1218_v12 }
 0x11c   : > { %v7690_v35 = vpop.f32.mrf.mxu0  ;;  %8067 = vrcp.f32 %v1966_v24  ;;  %v1964_v20 = vadd.f32 1.0, %v8048_v54 }
 0x11d   : > { %v1243_v38 = vadd.f32 %v7690_v35, %v623_v29  ;;  %8069 = vpow2.f32 %v7208_v27  ;;  %v7217_v24 = vmul.f32 -1.442695, %v1228_v6  ;;  %v1193_v27 = vadd.f32 %v9281_v48, %v613_v15 }
 0x11e   : > { %v1237_v44 = vpop.f32.mrf.mxu0  ;;  %8071 = vrcp.f32 %v1969_v31  ;;  %v1188_v31 = vadd.f32 %v9285_v53, %v612_v17  ;;  %v7207_v48 = vmul.f32 -1.442695, %v1178_v22  ;;  %v639_v17 = vld [vmem:[%s12633_s2 + $0x168] sm:$0xff] }
 0x11f   : > { %v1238_v52 = vadd.f32 %v1237_v44, %v622_v36  ;;  %8073 = vrcp.f32 %v1970_v33  ;;  %v7220_v43 = vmul.f32 -1.442695, %v1243_v38  ;;  %v1962_v33 = vadd.f32 1.0, %v9318_v46  ;;  %v627_v46 = vld [vmem:[%s12633_s2 + $0x108] sm:$0xff] }
 0x120   : > { %v7693_v56 = vpop.f32.mrf.mxu0  ;;  %v8050_v58 = vpop.eup %8049  ;;  %8075 = vpow2.f32 %v7212_v37  ;;  %v7210_v38 = vmul.f32 -1.442695, %v1193_v27  ;;  %v7209_v39 = vmul.f32 -1.442695, %v1188_v31  ;;  %v7211_v44 = vmul.f32 -1.442695, %v1198_v34 }
 0x121   : > { %v1253_v62 = vadd.f32 %v7693_v56, %v625_v45  ;;  %v9329_v63 = vpop.eup %8051  ;;  %8077 = vrcp.f32 %v1968_v40  ;;  %2562 = vperm.xlu1 %7889, %v8050_v58   ;;  %v7219_v51 = vmul.f32 -1.442695, %v1238_v52  ;;  %v637_v27 = vld [vmem:[%s12633_s2 + $0x158] sm:$0xff] }
 0x122   : > { %v1247_v1 = vpop.f32.mrf.mxu0  ;;  %v9334_v2 = vpop.eup %8053  ;;  %8079 = vpow2.f32 %v7214_v49 }
 0x123   : > { %v7222_v3 = vmul.f32 -1.442695, %v1253_v62  ;;  %v1248_v4 = vadd.f32 %v1247_v1, %v624_v57  ;;  %v8056_v5 = vpop.eup %8055  ;;  %8081 = vpow2.f32 %v7213_v55 }
 0x124   : > { %v9336_v8 = vpop.f32.mrf.mxu0  ;;  %v8058_v9 = vpop.eup %8057  ;;  %8083 = vpow2.f32 %v7220_v43  ;;  %v626_v43 = vld [vmem:[%s12633_s2 + $0x100] sm:$0xff] }
 0x125   : > { %v7221_v13 = vmul.f32 -1.442695, %v1248_v4  ;;  %v9342_v14 = vpop.eup %8059  ;;  %8085 = vpow2.f32 %v7222_v3  ;;  %2572 = vperm.xlu0 %7888, %v8058_v9   ;;  %2567 = vperm.xlu1 %7889, %v8056_v5   ;;  %v1263_v58 = vadd.f32 %v9336_v8, %v627_v46  ;;  %v633_v9 = vld [vmem:[%s12633_s2 + $0x138] sm:$0xff] }
 0x126   : > { %v9347_v18 = vpop.f32.mrf.mxu0  ;;  %v8062_v19 = vpop.eup %8061  ;;  %8087 = vpow2.f32 %v7219_v51 }
 0x127   : > { %v8064_v21 = vpop.eup %8063  ;;  %8089 = vpow2.f32 %v7221_v13  ;;  %v7224_v6 = vmul.f32 -1.442695, %v1263_v58  ;;  %v1258_v8 = vadd.f32 %v9347_v18, %v626_v43 }
 0x128   : > { %v9356_v25 = vpop.f32.mrf.mxu0  ;;  %v8066_v26 = vpop.eup %8065  ;;  %8091 = vpow2.f32 %v7216_v11 }
 0x129   : > { %v8068_v29 = vpop.eup %8067  ;;  %8093 = vpow2.f32 %v7218_v16  ;;  %2577 = vperm.xlu0 %7888, %v8066_v26   ;;  %2557 = vperm.xlu1 %7889, %v8064_v21   ;;  %v7223_v22 = vmul.f32 -1.442695, %v1258_v8  ;;  %v628_v8 = vld [vmem:[%s12633_s2 + $0x110] sm:$0xff] }
 0x12a   : > { %v9361_v41 = vpop.f32.mrf.mxu0  ;;  %v8070_v32 = vpop.eup %8069  ;;  %8095 = vrcp.f32 %v1964_v20 }
 0x12b   : > { %v8072_v35 = vpop.eup %8071  ;;  %8097 = vpow2.f32 %v7217_v24  ;;  %v1977_v60 = vadd.f32 1.0, %v8070_v32 }
 0x12c   : > { %v9365_v36 = vpop.f32.mrf.mxu0  ;;  %v8074_v37 = vpop.eup %8073  ;;  %8099 = vpow2.f32 %v7215_v28 }
 0x12d   : > { %v8076_v53 = vpop.eup %8075  ;;  %8101 = vrcp.f32 %v1960_v30  ;;  %2547 = vperm.xlu1 %7889, %v8072_v35   ;;  %2552 = vperm.xlu0 %7888, %v8074_v37   ;;  %v641_v35 = vld [vmem:[%s12633_s2 + $0x178] sm:$0xff]  ;;  %v635_v37 = vld [vmem:[%s12633_s2 + $0x148] sm:$0xff] }
 0x12e   : > { %v9367_v40 = vpop.f32.mrf.mxu0  ;;  %v8078_v42 = vpop.eup %8077  ;;  %8103 = vrcp.f32 %v1962_v33  ;;  %v1981_v52 = vadd.f32 1.0, %v8076_v53  ;;  %v636_v53 = vld [vmem:[%s12633_s2 + $0x150] sm:$0xff] }
 0x12f   : > { %v8080_v45 = vpop.eup %8079  ;;  %8105 = vpow2.f32 %v7207_v48 }
 0x130   : > { %v7705_v49 = vpop.f32.mrf.mxu0  ;;  %v8082_v50 = vpop.eup %8081  ;;  %8107 = vpow2.f32 %v7210_v38  ;;  %v1983_v57 = vadd.f32 1.0, %v8080_v45 }
 0x131   : > { %v8084_v54 = vpop.eup %8083  ;;  %8109 = vpow2.f32 %v7209_v39  ;;  %2537 = vperm.xlu1 %7889, %v8062_v19   ;;  %2542 = vperm.xlu0 %7888, %v8078_v42   ;;  %v1982_v0 = vadd.f32 1.0, %v8082_v50  ;;  %v1293_v20 = vadd.f32 %v7705_v49, %v633_v9  ;;  %v634_v49 = vld [vmem:[%s12633_s2 + $0x140] sm:$0xff] }
 0x132   : > { %v1287_v55 = vpop.f32.mrf.mxu0  ;;  %v8086_v56 = vpop.eup %8085  ;;  %8111 = vpow2.f32 %v7211_v44  ;;  %v1989_v51 = vadd.f32 1.0, %v8084_v54 }
 0x133   : > { %v8088_v59 = vpop.eup %8087  ;;  %8113 = vrcp.f32 %v1977_v60  ;;  %v1991_v61 = vadd.f32 1.0, %v8086_v56  ;;  %v7230_v33 = vmul.f32 -1.442695, %v1293_v20  ;;  %v640_v60 = vld [vmem:[%s12633_s2 + $0x170] sm:$0xff] }
 0x134   : > { %v9376_v62 = vpop.f32.mrf.mxu0  ;;  %v8090_v47 = vpop.eup %8089  ;;  %8115 = vrcp.f32 %v1981_v52  ;;  %v1988_v11 = vadd.f32 1.0, %v8088_v59 }
 0x135   : > { %v8092_v1 = vpop.eup %8091  ;;  %8117 = vrcp.f32 %v1991_v61  ;;  %v1990_v3 = vadd.f32 1.0, %v8090_v47  ;;  %2527 = vperm.xlu1 %7889, %v9342_v14   ;;  %2532 = vperm.xlu0 %7888, %v8068_v29   ;;  %v632_v14 = vld [vmem:[%s12633_s2 + $0x130] sm:$0xff] }
 0x136   : > { %v9379_v4 = vpop.f32.mrf.mxu0  ;;  %v8094_v5 = vpop.eup %8093  ;;  %8119 = vrcp.f32 %v1983_v57  ;;  %v1985_v15 = vadd.f32 1.0, %v8092_v1  ;;  %v1288_v26 = vadd.f32 %v1287_v55, %v632_v14  ;;  %v1303_v55 = vadd.f32 %v9376_v62, %v635_v37  ;;  %v629_v62 = vld [vmem:[%s12633_s2 + $0x118] sm:$0xff]  ;;  %v630_v14 = vld [vmem:[%s12633_s2 + $0x120] sm:$0xff] }
 0x137   : > { %v8096_v10 = vpop.eup %8095  ;;  %8121 = vrcp.f32 %v1990_v3  ;;  %v1987_v19 = vadd.f32 1.0, %v8094_v5 }
 0x138   : > { %v7711_v12 = vpop.f32.mrf.mxu0  ;;  %v8098_v13 = vpop.eup %8097  ;;  %8123 = vrcp.f32 %v1982_v0  ;;  %v7229_v44 = vmul.f32 -1.442695, %v1288_v26  ;;  %v1298_v0 = vadd.f32 %v9379_v4, %v634_v49 }
 0x139   : > { %v8100_v16 = vpop.eup %8099  ;;  %8125 = vrcp.f32 %v1989_v51  ;;  %2517 = vperm.xlu1 %7889, %v9334_v2   ;;  %2522 = vperm.xlu0 %7888, %v8096_v10   ;;  %v1986_v24 = vadd.f32 1.0, %v8098_v13  ;;  %v638_v2 = vld [vmem:[%s12633_s2 + $0x160] sm:$0xff]  ;;  %v1313_v38 = vadd.f32 %v7711_v12, %v637_v27  ;;  %v7232_v12 = vmul.f32 -1.442695, %v1303_v55 }
 0x13a   : > { %v1307_v18 = vpop.f32.mrf.mxu0  ;;  %v8102_v21 = vpop.eup %8101  ;;  %8127 = vpow2.f32 %v7224_v6  ;;  %v1984_v30 = vadd.f32 1.0, %v8100_v16  ;;  %v7231_v16 = vmul.f32 -1.442695, %v1298_v0  ;;  %v1278_v27 = vadd.f32 %v9367_v40, %v630_v14  ;;  %v649_v0 = vld [vmem:[%s12633_s2 + $0x1b8] sm:$0xff] }
 0x13b   : > { %v8104_v23 = vpop.eup %8103  ;;  %8129 = vrcp.f32 %v1988_v11  ;;  %v1308_v56 = vadd.f32 %v1307_v18, %v636_v53  ;;  %v7234_v59 = vmul.f32 -1.442695, %v1313_v38  ;;  %v631_v11 = vld [vmem:[%s12633_s2 + $0x128] sm:$0xff] }
 0x13c   : > { %v7714_v28 = vpop.f32.mrf.mxu0  ;;  %v9398_v29 = vpop.eup %8105  ;;  %8131 = vrcp.f32 %v1985_v15  ;;  %v1273_v15 = vadd.f32 %v9356_v25, %v629_v62  ;;  %v1283_v25 = vadd.f32 %v9365_v36, %v631_v11 }
 0x13d   : > { %v1323_v31 = vadd.f32 %v7714_v28, %v639_v17  ;;  %v9400_v32 = vpop.eup %8107  ;;  %8133 = vrcp.f32 %v1987_v19  ;;  %2507 = vperm.xlu1 %7889, %v9329_v63   ;;  %2512 = vperm.xlu0 %7888, %v8104_v23   ;;  %v7233_v9 = vmul.f32 -1.442695, %v1308_v56  ;;  %v1976_v18 = vadd.f32 1.0, %v9398_v29 }
 0x13e   : > { %v1317_v34 = vpop.f32.mrf.mxu0  ;;  %v9406_v48 = vpop.eup %8109  ;;  %8135 = vpow2.f32 %v7223_v22  ;;  %v1268_v17 = vadd.f32 %v9361_v41, %v628_v8  ;;  %v1979_v22 = vadd.f32 1.0, %v9400_v32  ;;  %v7228_v36 = vmul.f32 -1.442695, %v1283_v25 }
 0x13f   : > { %v7236_v39 = vmul.f32 -1.442695, %v1323_v31  ;;  %v1318_v63 = vadd.f32 %v1317_v34, %v638_v2  ;;  %v8112_v42 = vpop.eup %8111  ;;  %8137 = vrcp.f32 %v1986_v24  ;;  %v1978_v26 = vadd.f32 1.0, %v9406_v48 }
 0x140   : > { %v7717_v45 = vpop.f32.mrf.mxu0  ;;  %v9417_v46 = vpop.eup %8113  ;;  %8139 = vrcp.f32 %v1984_v30  ;;  %v1980_v3 = vadd.f32 1.0, %v8112_v42  ;;  %v7226_v2 = vmul.f32 -1.442695, %v1273_v15  ;;  %v7225_v30 = vmul.f32 -1.442695, %v1268_v17 }
 0x141   : > { %v7235_v50 = vmul.f32 -1.442695, %v1318_v63  ;;  %v1333_v52 = vadd.f32 %v7717_v45, %v641_v35  ;;  %v9422_v54 = vpop.eup %8115  ;;  %8141 = vpow2.f32 %v7230_v33  ;;  %2502 = vperm.xlu0 %7888, %v8102_v21   ;;  %v7227_v34 = vmul.f32 -1.442695, %v1278_v27 }
 0x142   : > { %v1327_v57 = vpop.f32.mrf.mxu0  ;;  %v8118_v58 = vpop.eup %8117  ;;  %8143 = vpow2.f32 %v7236_v39  ;;  %v643_v39 = vld [vmem:[%s12633_s2 + $0x188] sm:$0xff] }
 0x143   : > { %v7238_v61 = vmul.f32 -1.442695, %v1333_v52  ;;  %v1328_v43 = vadd.f32 %v1327_v57, %v640_v60  ;;  %v9425_v47 = vpop.eup %8119  ;;  %8145 = vpow2.f32 %v7229_v44  ;;  %2657 = vperm.xlu1 %7889, %v8118_v58  }
 0x144   : > { %v9428_v1 = vpop.f32.mrf.mxu0  ;;  %v8122_v51 = vpop.eup %8121  ;;  %8147 = vpow2.f32 %v7235_v50 }
 0x145   : > { %v7237_v5 = vmul.f32 -1.442695, %v1328_v43  ;;  %v9433_v6 = vpop.eup %8123  ;;  %8149 = vpow2.f32 %v7238_v61  ;;  %2652 = vperm.xlu0 %7888, %v8122_v51   ;;  %v1343_v55 = vadd.f32 %v9428_v1, %v643_v39 }
 0x146   : > { %v9438_v4 = vpop.f32.mrf.mxu0  ;;  %v8126_v10 = vpop.eup %8125  ;;  %8151 = vpow2.f32 %v7234_v59  ;;  %v647_v59 = vld [vmem:[%s12633_s2 + $0x1a8] sm:$0xff] }
 0x147   : > { %v8128_v13 = vpop.eup %8127  ;;  %8153 = vpow2.f32 %v7237_v5  ;;  %2647 = vperm.xlu1 %7889, %v8126_v10   ;;  %v7240_v5 = vmul.f32 -1.442695, %v1343_v55 }
 0x148   : > { %v9447_v19 = vpop.f32.mrf.mxu0  ;;  %v8130_v20 = vpop.eup %8129  ;;  %8155 = vrcp.f32 %v1980_v3  ;;  %v1993_v40 = vadd.f32 1.0, %v8128_v13  ;;  %v655_v13 = vld [vmem:[%s12633_s2 + $0x1e8] sm:$0xff] }
 0x149   : > { %v8132_v21 = vpop.eup %8131  ;;  %8157 = vpow2.f32 %v7233_v9  ;;  %2642 = vperm.xlu0 %7888, %v8130_v20  }
 0x14a   : > { %v9453_v23 = vpop.f32.mrf.mxu0  ;;  %v8134_v24 = vpop.eup %8133  ;;  %8159 = vpow2.f32 %v7232_v12 }
 0x14b   : > { %v8136_v28 = vpop.eup %8135  ;;  %8161 = vpow2.f32 %v7231_v16  ;;  %2637 = vperm.xlu1 %7889, %v8134_v24  }
 0x14c   : > { %v7726_v41 = vpop.f32.mrf.mxu0  ;;  %v8138_v29 = vpop.eup %8137  ;;  %8163 = vrcp.f32 %v1976_v18  ;;  %v1992_v38 = vadd.f32 1.0, %v8136_v28  ;;  %v653_v18 = vld [vmem:[%s12633_s2 + $0x1d8] sm:$0xff] }
 0x14d   : > { %v8140_v31 = vpop.eup %8139  ;;  %8165 = vrcp.f32 %v1979_v22  ;;  %2632 = vperm.xlu0 %7888, %v8138_v29   ;;  %v1363_v8 = vadd.f32 %v7726_v41, %v647_v59  ;;  %v651_v29 = vld [vmem:[%s12633_s2 + $0x1c8] sm:$0xff] }
 0x14e   : > { %v9457_v32 = vpop.f32.mrf.mxu0  ;;  %v8142_v33 = vpop.eup %8141  ;;  %8167 = vrcp.f32 %v1978_v26 }
 0x14f   : > { %v8144_v35 = vpop.eup %8143  ;;  %8169 = vpow2.f32 %v7226_v2  ;;  %2627 = vperm.xlu1 %7889, %v8132_v21   ;;  %v1999_v52 = vadd.f32 1.0, %v8142_v33  ;;  %v654_v21 = vld [vmem:[%s12633_s2 + $0x1e0] sm:$0xff]  ;;  %v7244_v25 = vmul.f32 -1.442695, %v1363_v8  ;;  %v657_v2 = vld [vmem:[%s12633_s2 + $0x1f8] sm:$0xff] }
 0x150   : > { %v7729_v48 = vpop.f32.mrf.mxu0  ;;  %v8146_v37 = vpop.eup %8145  ;;  %8171 = vpow2.f32 %v7225_v30  ;;  %v2005_v44 = vadd.f32 1.0, %v8144_v35 }
 0x151   : > { %v8148_v53 = vpop.eup %8147  ;;  %8173 = vpow2.f32 %v7228_v36  ;;  %2622 = vperm.xlu0 %7888, %v8140_v31   ;;  %v1373_v11 = vadd.f32 %v7729_v48, %v649_v0  ;;  %v652_v31 = vld [vmem:[%s12633_s2 + $0x1d0] sm:$0xff]  ;;  %v645_v0 = vld [vmem:[%s12633_s2 + $0x198] sm:$0xff] }
 0x152   : > { %v1367_v63 = vpop.f32.mrf.mxu0  ;;  %v8150_v42 = vpop.eup %8149  ;;  %8175 = vpow2.f32 %v7227_v34  ;;  %v2004_v57 = vadd.f32 1.0, %v8148_v53  ;;  %v656_v48 = vld [vmem:[%s12633_s2 + $0x1f0] sm:$0xff] }
 0x153   : > { %v8152_v45 = vpop.eup %8151  ;;  %8177 = vrcp.f32 %v1993_v40  ;;  %v2007_v60 = vadd.f32 1.0, %v8150_v42  ;;  %2617 = vperm.xlu1 %7889, %v9425_v47   ;;  %v1998_v47 = vadd.f32 1.0, %v8146_v37  ;;  %v7246_v27 = vmul.f32 -1.442695, %v1373_v11  ;;  %v650_v42 = vld [vmem:[%s12633_s2 + $0x1c0] sm:$0xff] }
 0x154   : > { %v9463_v49 = vpop.f32.mrf.mxu0  ;;  %v8154_v50 = vpop.eup %8153  ;;  %8179 = vrcp.f32 %v1992_v38  ;;  %v2003_v51 = vadd.f32 1.0, %v8152_v45 }
 0x155   : > { %v8156_v56 = vpop.eup %8155  ;;  %8181 = vrcp.f32 %v2007_v60  ;;  %v2006_v58 = vadd.f32 1.0, %v8154_v50  ;;  %2612 = vperm.xlu0 %7888, %v9433_v6   ;;  %v648_v6 = vld [vmem:[%s12633_s2 + $0x1b0] sm:$0xff] }
 0x156   : > { %v9470_v61 = vpop.f32.mrf.mxu0  ;;  %v8158_v43 = vpop.eup %8157  ;;  %8183 = vrcp.f32 %v2005_v44  ;;  %v1368_v20 = vadd.f32 %v1367_v63, %v648_v6  ;;  %v1383_v63 = vadd.f32 %v9463_v49, %v651_v29  ;;  %v642_v49 = vld [vmem:[%s12633_s2 + $0x180] sm:$0xff] }
 0x157   : > { %v8160_v1 = vpop.eup %8159  ;;  %8185 = vrcp.f32 %v2006_v58  ;;  %2607 = vperm.xlu1 %7889, %v9422_v54   ;;  %v2002_v10 = vadd.f32 1.0, %v8158_v43  ;;  %v1378_v59 = vadd.f32 %v9470_v61, %v650_v42  ;;  %v1338_v6 = vadd.f32 %v9438_v4, %v642_v49 }
 0x158   : > { %v7735_v3 = vpop.f32.mrf.mxu0  ;;  %v8162_v62 = vpop.eup %8161  ;;  %8187 = vrcp.f32 %v1999_v52  ;;  %v2001_v15 = vadd.f32 1.0, %v8160_v1  ;;  %v7245_v35 = vmul.f32 -1.442695, %v1368_v20 }
 0x159   : > { %v8164_v9 = vpop.eup %8163  ;;  %8189 = vrcp.f32 %v2004_v57  ;;  %2602 = vperm.xlu0 %7888, %v8156_v56   ;;  %v2000_v16 = vadd.f32 1.0, %v8162_v62  ;;  %v1393_v30 = vadd.f32 %v7735_v3, %v653_v18  ;;  %v644_v62 = vld [vmem:[%s12633_s2 + $0x190] sm:$0xff] }
 0x15a   : > { %v1387_v12 = vpop.f32.mrf.mxu0  ;;  %v8166_v54 = vpop.eup %8165  ;;  %8191 = vrcp.f32 %v1998_v47 }
 0x15b   : > { %v8168_v14 = vpop.eup %8167  ;;  %8193 = vrcp.f32 %v2003_v51  ;;  %2597 = vperm.xlu1 %7889, %v8166_v54   ;;  %v7250_v60 = vmul.f32 -1.442695, %v1393_v30  ;;  %v7892_v54 = vld [vmem:[%s12635_s4 + $0x4] ss:$28 sps:$4 sm:$0xff]  }
 0x15c   : > { %v7738_v17 = vpop.f32.mrf.mxu0  ;;  %v9488_v22 = vpop.eup %8169  ;;  %8195 = vpow2.f32 %v7240_v5  ;;  %v7248_v5 = vmul.f32 -1.442695, %v1383_v63  ;;  %3980 = vmatprep.mubr.bf16.mxu1 %v7892_v54  ;;  %v670_v54 = vld [vmem:[%s12633_s2 + $0x260] sm:$0xff] }
 0x15d   : > { %v1403_v24 = vadd.f32 %v7738_v17, %v655_v13  ;;  %v9490_v26 = vpop.eup %8171  ;;  %8197 = vrcp.f32 %v2002_v10  ;;  %2592 = vperm.xlu0 %7888, %v8168_v14   ;;  %v7247_v13 = vmul.f32 -1.442695, %v1378_v59  ;;  %v1995_v4 = vadd.f32 1.0, %v9488_v22 }
 0x15e   : > { %v1397_v28 = vpop.f32.mrf.mxu0  ;;  %v8174_v41 = vpop.eup %8173  ;;  %8199 = vrcp.f32 %v2001_v15  ;;  %v1348_v14 = vadd.f32 %v9453_v23, %v644_v62  ;;  %v1994_v18 = vadd.f32 1.0, %v9490_v26 }
 0x15f   : > { %v7252_v36 = vmul.f32 -1.442695, %v1403_v24  ;;  %v1398_v33 = vadd.f32 %v1397_v28, %v654_v21  ;;  %v8176_v34 = vpop.eup %8175  ;;  %8201 = vrcp.f32 %v2000_v16  ;;  %2587 = vperm.xlu1 %7889, %v9417_v46   ;;  %v1388_v46 = vadd.f32 %v1387_v12, %v652_v31 }
 0x160   : > { %v7741_v40 = vpop.f32.mrf.mxu0  ;;  %v9505_v37 = vpop.eup %8177  ;;  %8203 = vpow2.f32 %v7244_v25  ;;  %v1997_v58 = vadd.f32 1.0, %v8174_v41  ;;  %v1996_v8 = vadd.f32 1.0, %v8176_v34  ;;  %v1353_v12 = vadd.f32 %v9447_v19, %v645_v0 }
 0x161   : > { %v7251_v38 = vmul.f32 -1.442695, %v1398_v33  ;;  %v1413_v53 = vadd.f32 %v7741_v40, %v657_v2  ;;  %v9507_v39 = vpop.eup %8179  ;;  %8205 = vpow2.f32 %v7246_v27  ;;  %2582 = vperm.xlu0 %7888, %v8164_v9   ;;  %v7249_v1 = vmul.f32 -1.442695, %v1388_v46  ;;  %v646_v9 = vld [vmem:[%s12633_s2 + $0x1a0] sm:$0xff]  ;;  %v659_v33 = vld [vmem:[%s12633_s2 + $0x208] sm:$0xff] }
 0x162   : > { %v1407_v44 = vpop.f32.mrf.mxu0  ;;  %v8182_v45 = vpop.eup %8181  ;;  %8207 = vpow2.f32 %v7252_v36  ;;  %v1358_v17 = vadd.f32 %v9457_v32, %v646_v9  ;;  %v7239_v21 = vmul.f32 -1.442695, %v1338_v6  ;;  %v7242_v24 = vmul.f32 -1.442695, %v1353_v12 }
 0x163   : > { %v7254_v50 = vmul.f32 -1.442695, %v1413_v53  ;;  %v1408_v52 = vadd.f32 %v1407_v44, %v656_v48  ;;  %v8184_v55 = vpop.eup %8183  ;;  %8209 = vpow2.f32 %v7245_v35  ;;  %2737 = vperm.xlu1 %7889, %v8182_v45   ;;  %v7241_v27 = vmul.f32 -1.442695, %v1348_v14  ;;  %v658_v44 = vld [vmem:[%s12633_s2 + $0x200] sm:$0xff] }
 0x164   : > { %v9513_v56 = vpop.f32.mrf.mxu0  ;;  %v8186_v57 = vpop.eup %8185  ;;  %8211 = vpow2.f32 %v7251_v38  ;;  %v7243_v32 = vmul.f32 -1.442695, %v1358_v17  ;;  %v665_v17 = vld [vmem:[%s12633_s2 + $0x238] sm:$0xff] }
 0x165   : > { %v7253_v43 = vmul.f32 -1.442695, %v1408_v52  ;;  %v9519_v47 = vpop.eup %8187  ;;  %8213 = vpow2.f32 %v7254_v50  ;;  %2732 = vperm.xlu0 %7888, %v8186_v57   ;;  %v1423_v46 = vadd.f32 %v9513_v56, %v659_v33 }
 0x166   : > { %v9524_v51 = vpop.f32.mrf.mxu0  ;;  %v8190_v3 = vpop.eup %8189  ;;  %8215 = vpow2.f32 %v7250_v60 }
 0x167   : > { %v9529_v61 = vpop.eup %8191  ;;  %8217 = vpow2.f32 %v7253_v43  ;;  %2727 = vperm.xlu1 %7889, %v8184_v55   ;;  %v1418_v59 = vadd.f32 %v9524_v51, %v658_v44  ;;  %v7256_v0 = vmul.f32 -1.442695, %v1423_v46  ;;  %v671_v51 = vld [vmem:[%s12633_s2 + $0x268] sm:$0xff] }
 0x168   : > { %v9535_v10 = vpop.f32.mrf.mxu0  ;;  %v8194_v11 = vpop.eup %8193  ;;  %8219 = vrcp.f32 %v1997_v58  ;;  %v661_v58 = vld [vmem:[%s12633_s2 + $0x218] sm:$0xff] }
 0x169   : > { %v8196_v15 = vpop.eup %8195  ;;  %8221 = vpow2.f32 %v7249_v1  ;;  %2722 = vperm.xlu0 %7888, %v8190_v3   ;;  %v663_v1 = vld [vmem:[%s12633_s2 + $0x228] sm:$0xff] }
 0x16a   : > { %v9543_v16 = vpop.f32.mrf.mxu0  ;;  %v8198_v20 = vpop.eup %8197  ;;  %8223 = vpow2.f32 %v7248_v5  ;;  %v2009_v41 = vadd.f32 1.0, %v8196_v15  ;;  %v1433_v5 = vadd.f32 %v9535_v10, %v661_v58 }
 0x16b   : > { %v8200_v19 = vpop.eup %8199  ;;  %8225 = vrcp.f32 %v1996_v8  ;;  %2717 = vperm.xlu1 %7889, %v8194_v11   ;;  %v7255_v11 = vmul.f32 -1.442695, %v1418_v59 }
 0x16c   : > { %v9547_v25 = vpop.f32.mrf.mxu0  ;;  %v8202_v22 = vpop.eup %8201  ;;  %8227 = vpow2.f32 %v7247_v13  ;;  %v669_v13 = vld [vmem:[%s12633_s2 + $0x258] sm:$0xff] }
 0x16d   : > { %v8204_v23 = vpop.eup %8203  ;;  %8229 = vrcp.f32 %v1995_v4  ;;  %2712 = vperm.xlu0 %7888, %v8198_v20   ;;  %v1443_v12 = vadd.f32 %v9547_v25, %v663_v1 }
 0x16e   : > { %v9549_v28 = vpop.f32.mrf.mxu0  ;;  %v8206_v26 = vpop.eup %8205  ;;  %8231 = vrcp.f32 %v1994_v18  ;;  %v2013_v31 = vadd.f32 1.0, %v8204_v23  ;;  %v7258_v18 = vmul.f32 -1.442695, %v1433_v5  ;;  %v668_v23 = vld [vmem:[%s12633_s2 + $0x250] sm:$0xff] }
 0x16f   : > { %v8208_v2 = vpop.eup %8207  ;;  %8233 = vpow2.f32 %v7239_v21  ;;  %2707 = vperm.xlu1 %7889, %v8200_v19   ;;  %v2015_v42 = vadd.f32 1.0, %v8206_v26  ;;  %v673_v21 = vld [vmem:[%s12633_s2 + $0x278] sm:$0xff] }
 0x170   : > { %v9551_v29 = vpop.f32.mrf.mxu0  ;;  %v8210_v30 = vpop.eup %8209  ;;  %8235 = vpow2.f32 %v7242_v24  ;;  %v2021_v40 = vadd.f32 1.0, %v8208_v2  ;;  %v7260_v2 = vmul.f32 -1.442695, %v1443_v12 }
 0x171   : > { %v8212_v36 = vpop.eup %8211  ;;  %8237 = vpow2.f32 %v7241_v27  ;;  %2702 = vperm.xlu0 %7888, %v8202_v22   ;;  %v2014_v57 = vadd.f32 1.0, %v8210_v30  ;;  %v664_v22 = vld [vmem:[%s12633_s2 + $0x230] sm:$0xff] }
 0x172   : > { %v9556_v34 = vpop.f32.mrf.mxu0  ;;  %v8214_v35 = vpop.eup %8213  ;;  %8239 = vpow2.f32 %v7243_v32  ;;  %v2020_v60 = vadd.f32 1.0, %v8212_v36  ;;  %v672_v30 = vld [vmem:[%s12633_s2 + $0x270] sm:$0xff]  ;;  %v1453_v36 = vadd.f32 %v9551_v29, %v665_v17 }
 0x173   : > { %v8216_v48 = vpop.eup %8215  ;;  %8241 = vrcp.f32 %v2009_v41  ;;  %v2023_v38 = vadd.f32 1.0, %v8214_v35  ;;  %2697 = vperm.xlu1 %7889, %v9519_v47  }
 0x174   : > { %v9559_v53 = vpop.f32.mrf.mxu0  ;;  %v8218_v63 = vpop.eup %8217  ;;  %8243 = vrcp.f32 %v2013_v31  ;;  %v2019_v49 = vadd.f32 1.0, %v8216_v48  ;;  %v1448_v48 = vadd.f32 %v9556_v34, %v664_v22  ;;  %v7262_v34 = vmul.f32 -1.442695, %v1453_v36 }
 0x175   : > { %v8220_v45 = vpop.eup %8219  ;;  %8245 = vrcp.f32 %v2023_v38  ;;  %v2022_v50 = vadd.f32 1.0, %v8218_v63  ;;  %2692 = vperm.xlu0 %7888, %v9529_v61  }
 0x176   : > { %v9566_v52 = vpop.f32.mrf.mxu0  ;;  %v8222_v55 = vpop.eup %8221  ;;  %8247 = vrcp.f32 %v2021_v40 }
 0x177   : > { %v8224_v56 = vpop.eup %8223  ;;  %8249 = vrcp.f32 %v2022_v50  ;;  %2687 = vperm.xlu1 %7889, %v8220_v45   ;;  %v2018_v62 = vadd.f32 1.0, %v8222_v55 }
 0x178   : > { %v7759_v43 = vpop.f32.mrf.mxu0  ;;  %v8226_v47 = vpop.eup %8225  ;;  %8251 = vrcp.f32 %v2015_v42  ;;  %v2017_v6 = vadd.f32 1.0, %v8224_v56  ;;  %v667_v42 = vld [vmem:[%s12633_s2 + $0x248] sm:$0xff] }
 0x179   : > { %v8228_v3 = vpop.eup %8227  ;;  %8253 = vrcp.f32 %v2020_v60  ;;  %2682 = vperm.xlu0 %7888, %v8226_v47   ;;  %v1473_v24 = vadd.f32 %v7759_v43, %v669_v13  ;;  %v1463_v58 = vadd.f32 %v9559_v53, %v667_v42  ;;  %v660_v43 = vld [vmem:[%s12633_s2 + $0x210] sm:$0xff]  ;;  %v7261_v47 = vmul.f32 -1.442695, %v1448_v48 }
 0x17a   : > { %v1467_v61 = vpop.f32.mrf.mxu0  ;;  %v8230_v8 = vpop.eup %8229  ;;  %8255 = vrcp.f32 %v2014_v57  ;;  %v2016_v4 = vadd.f32 1.0, %v8228_v3  ;;  %v662_v3 = vld [vmem:[%s12633_s2 + $0x220] sm:$0xff] }
 0x17b   : > { %v8232_v9 = vpop.eup %8231  ;;  %8257 = vrcp.f32 %v2019_v49  ;;  %2677 = vperm.xlu1 %7889, %v8230_v8   ;;  %v1468_v38 = vadd.f32 %v1467_v61, %v668_v23  ;;  %v7266_v46 = vmul.f32 -1.442695, %v1473_v24  ;;  %v1428_v8 = vadd.f32 %v9543_v16, %v660_v43 }
 0x17c   : > { %v7762_v10 = vpop.f32.mrf.mxu0  ;;  %v9586_v15 = vpop.eup %8233  ;;  %8259 = vpow2.f32 %v7256_v0 }
 0x17d   : > { %v1483_v14 = vadd.f32 %v7762_v10, %v671_v51  ;;  %v9588_v20 = vpop.eup %8235  ;;  %8261 = vrcp.f32 %v2018_v62  ;;  %2672 = vperm.xlu0 %7888, %v8232_v9   ;;  %v7265_v56 = vmul.f32 -1.442695, %v1468_v38  ;;  %v2008_v16 = vadd.f32 1.0, %v9586_v15 }
 0x17e   : > { %v1477_v19 = vpop.f32.mrf.mxu0  ;;  %v9596_v25 = vpop.eup %8237  ;;  %8263 = vrcp.f32 %v2017_v6  ;;  %v2011_v61 = vadd.f32 1.0, %v9588_v20  ;;  %v7264_v6 = vmul.f32 -1.442695, %v1463_v58  ;;  %v7257_v20 = vmul.f32 -1.442695, %v1428_v8  ;;  %v687_v58 = vld [vmem:[%s12633_s2 + $0x2e8] sm:$0xff] }
 0x17f   : > { %v7268_v27 = vmul.f32 -1.442695, %v1483_v14  ;;  %v1478_v26 = vadd.f32 %v1477_v19, %v670_v54  ;;  %v8240_v32 = vpop.eup %8239  ;;  %8265 = vpow2.f32 %v7255_v11  ;;  %2667 = vperm.xlu1 %7889, %v9505_v37   ;;  %v2010_v12 = vadd.f32 1.0, %v9596_v25  ;;  %v684_v8 = vld [vmem:[%s12633_s2 + $0x2d0] sm:$0xff] }
 0x180   : > { %v7765_v41 = vpop.f32.mrf.mxu0  ;;  %v9608_v31 = vpop.eup %8241  ;;  %8267 = vrcp.f32 %v2016_v4  ;;  %v2012_v1 = vadd.f32 1.0, %v8240_v32 }
 0x181   : > { %v7267_v33 = vmul.f32 -1.442695, %v1478_v26  ;;  %v1493_v35 = vadd.f32 %v7765_v41, %v673_v21  ;;  %v9611_v40 = vpop.eup %8243  ;;  %8269 = vpow2.f32 %v7258_v18  ;;  %2662 = vperm.xlu0 %7888, %v9507_v39   ;;  %v666_v39 = vld [vmem:[%s12633_s2 + $0x240] sm:$0xff] }
 0x182   : > { %v1487_v37 = vpop.f32.mrf.mxu0  ;;  %v8246_v63 = vpop.eup %8245  ;;  %8271 = vpow2.f32 %v7268_v27  ;;  %v1458_v53 = vadd.f32 %v9566_v52, %v666_v39  ;;  %v1438_v52 = vadd.f32 %v9549_v28, %v662_v3 }
 0x183   : > { %v7270_v44 = vmul.f32 -1.442695, %v1493_v35  ;;  %v1488_v29 = vadd.f32 %v1487_v37, %v672_v30  ;;  %v8248_v45 = vpop.eup %8247  ;;  %8273 = vpow2.f32 %v7260_v2  ;;  %2817 = vperm.xlu1 %7889, %v8246_v63  }
 0x184   : > { %v9618_v60 = vpop.f32.mrf.mxu0  ;;  %v8250_v50 = vpop.eup %8249  ;;  %8275 = vpow2.f32 %v7267_v33  ;;  %v7263_v10 = vmul.f32 -1.442695, %v1458_v53  ;;  %v7259_v28 = vmul.f32 -1.442695, %v1438_v52  ;;  %v675_v33 = vld [vmem:[%s12633_s2 + $0x288] sm:$0xff] }
 0x185   : > { %v7269_v55 = vmul.f32 -1.442695, %v1488_v29  ;;  %v9623_v57 = vpop.eup %8251  ;;  %8277 = vpow2.f32 %v7270_v44  ;;  %2812 = vperm.xlu0 %7888, %v8250_v50   ;;  %v1503_v29 = vadd.f32 %v9618_v60, %v675_v33 }
 0x186   : > { %v9626_v49 = vpop.f32.mrf.mxu0  ;;  %v8254_v59 = vpop.eup %8253  ;;  %8279 = vpow2.f32 %v7266_v46 }
 0x187   : > { %v9631_v0 = vpop.eup %8255  ;;  %8281 = vpow2.f32 %v7269_v55  ;;  %2807 = vperm.xlu1 %7889, %v8248_v45   ;;  %v7272_v60 = vmul.f32 -1.442695, %v1503_v29  ;;  %v2312_v29 = vld [vmem:[%s12634_s3 + $0xe0] sm:$0xff] }
 0x188   : > { %v9637_v62 = vpop.f32.mrf.mxu0  ;;  %v8258_v5 = vpop.eup %8257  ;;  %8283 = vpow2.f32 %v7262_v34 }
 0x189   : > { %v8260_v51 = vpop.eup %8259  ;;  %8285 = vpow2.f32 %v7265_v56  ;;  %2802 = vperm.xlu0 %7888, %v8254_v59  }
 0x18a   : > { %v9641_v9 = vpop.f32.mrf.mxu0  ;;  %v8262_v11 = vpop.eup %8261  ;;  %8287 = vpow2.f32 %v7261_v47  ;;  %v2025_v21 = vadd.f32 1.0, %v8260_v51  ;;  %v683_v51 = vld [vmem:[%s12633_s2 + $0x2c8] sm:$0xff] }
 0x18b   : > { %v8264_v13 = vpop.eup %8263  ;;  %8289 = vrcp.f32 %v2012_v1  ;;  %2797 = vperm.xlu1 %7889, %v8258_v5  }
 0x18c   : > { %v9645_v54 = vpop.f32.mrf.mxu0  ;;  %v8266_v4 = vpop.eup %8265  ;;  %8291 = vrcp.f32 %v2011_v61 }
 0x18d   : > { %v8268_v14 = vpop.eup %8267  ;;  %8293 = vpow2.f32 %v7264_v6  ;;  %2792 = vperm.xlu0 %7888, %v8262_v11   ;;  %v2024_v24 = vadd.f32 1.0, %v8266_v4  ;;  %v689_v11 = vld [vmem:[%s12633_s2 + $0x2f8] sm:$0xff] }
 0x18e   : > { %v9648_v18 = vpop.f32.mrf.mxu0  ;;  %v8270_v17 = vpop.eup %8269  ;;  %8295 = vrcp.f32 %v2010_v12 }
 0x18f   : > { %v8272_v19 = vpop.eup %8271  ;;  %8297 = vpow2.f32 %v7263_v10  ;;  %2787 = vperm.xlu1 %7889, %v8264_v13   ;;  %v2027_v36 = vadd.f32 1.0, %v8270_v17 }
 0x190   : > { %v9650_v25 = vpop.f32.mrf.mxu0  ;;  %v8274_v22 = vpop.eup %8273  ;;  %8299 = vrcp.f32 %v2008_v16  ;;  %v2037_v26 = vadd.f32 1.0, %v8272_v19 }
 0x191   : > { %v8276_v15 = vpop.eup %8275  ;;  %8301 = vpow2.f32 %v7257_v20  ;;  %2782 = vperm.xlu0 %7888, %v8268_v14   ;;  %v2029_v42 = vadd.f32 1.0, %v8274_v22  ;;  %v688_v20 = vld [vmem:[%s12633_s2 + $0x2f0] sm:$0xff] }
 0x192   : > { %v9652_v23 = vpop.f32.mrf.mxu0  ;;  %v8278_v27 = vpop.eup %8277  ;;  %8303 = vpow2.f32 %v7259_v28  ;;  %v2036_v48 = vadd.f32 1.0, %v8276_v15  ;;  %v681_v28 = vld [vmem:[%s12633_s2 + $0x2b8] sm:$0xff] }
 0x193   : > { %v8280_v32 = vpop.eup %8279  ;;  %8305 = vrcp.f32 %v2025_v21  ;;  %v2039_v2 = vadd.f32 1.0, %v8278_v27  ;;  %2777 = vperm.xlu1 %7889, %v9623_v57  }
 0x194   : > { %v9655_v41 = vpop.f32.mrf.mxu0  ;;  %v8282_v30 = vpop.eup %8281  ;;  %8307 = vrcp.f32 %v2024_v24  ;;  %v2035_v44 = vadd.f32 1.0, %v8280_v32 }
 0x195   : > { %v8284_v35 = vpop.eup %8283  ;;  %8309 = vrcp.f32 %v2039_v2  ;;  %v2038_v38 = vadd.f32 1.0, %v8282_v30  ;;  %2772 = vperm.xlu0 %7888, %v9631_v0   ;;  %v686_v0 = vld [vmem:[%s12633_s2 + $0x2e0] sm:$0xff]  ;;  %v1543_v19 = vadd.f32 %v9655_v41, %v683_v51 }
 0x196   : > { %v9661_v37 = vpop.f32.mrf.mxu0  ;;  %v8286_v63 = vpop.eup %8285  ;;  %8311 = vrcp.f32 %v2037_v26  ;;  %v2031_v34 = vadd.f32 1.0, %v8284_v35  ;;  %v674_v30 = vld [vmem:[%s12633_s2 + $0x280] sm:$0xff] }
 0x197   : > { %v8288_v46 = vpop.eup %8287  ;;  %8313 = vrcp.f32 %v2038_v38  ;;  %2767 = vperm.xlu1 %7889, %v9611_v40   ;;  %v2034_v55 = vadd.f32 1.0, %v8286_v63  ;;  %v685_v40 = vld [vmem:[%s12633_s2 + $0x2d8] sm:$0xff] }
 0x198   : > { %v7783_v45 = vpop.f32.mrf.mxu0  ;;  %v8290_v50 = vpop.eup %8289  ;;  %8315 = vrcp.f32 %v2027_v36  ;;  %v2030_v59 = vadd.f32 1.0, %v8288_v46  ;;  %v2309_v36 = vld [vmem:[%s12634_s3 + $0xc8] sm:$0xff]  ;;  %v2315_v38 = vld [vmem:[%s12634_s3 + $0xf8] sm:$0xff]  ;;  %v1533_v46 = vadd.f32 %v9650_v25, %v681_v28 }
 0x199   : > { %v8292_v39 = vpop.eup %8291  ;;  %8317 = vrcp.f32 %v2036_v48  ;;  %2762 = vperm.xlu0 %7888, %v8290_v50   ;;  %v1553_v52 = vadd.f32 %v7783_v45, %v685_v40  ;;  %v2313_v48 = vld [vmem:[%s12634_s3 + $0xe8] sm:$0xff]  ;;  %v2314_v45 = vld [vmem:[%s12634_s3 + $0xf0] sm:$0xff] }
 0x19a   : > { %v1547_v57 = vpop.f32.mrf.mxu0  ;;  %v8294_v56 = vpop.eup %8293  ;;  %8319 = vrcp.f32 %v2029_v42 }
 0x19b   : > { %v8296_v43 = vpop.eup %8295  ;;  %8321 = vrcp.f32 %v2035_v44  ;;  %2757 = vperm.xlu1 %7889, %v8292_v39   ;;  %v2033_v61 = vadd.f32 1.0, %v8294_v56  ;;  %v1548_v21 = vadd.f32 %v1547_v57, %v684_v8  ;;  %v7282_v41 = vmul.f32 -1.442695, %v1553_v52  ;;  %v682_v44 = vld [vmem:[%s12633_s2 + $0x2c0] sm:$0xff] }
 0x19c   : > { %v7786_v47 = vpop.f32.mrf.mxu0  ;;  %v8298_v1 = vpop.eup %8297  ;;  %8323 = vrcp.f32 %v2031_v34  ;;  %v7280_v39 = vmul.f32 -1.442695, %v1543_v19 }
 0x19d   : > { %v1563_v3 = vadd.f32 %v7786_v47, %v687_v58  ;;  %v9674_v53 = vpop.permute.xlu1 %2562  ;;  %v8300_v5 = vpop.eup %8299  ;;  %8325 = vrcp.f32 %v2034_v55  ;;  %2752 = vperm.xlu0 %7888, %v8296_v43   ;;  %v2032_v16 = vadd.f32 1.0, %v8298_v1  ;;  %v7281_v55 = vmul.f32 -1.442695, %v1548_v21  ;;  %v679_v1 = vld [vmem:[%s12633_s2 + $0x2a8] sm:$0xff] }
 0x19e   : > { %v1557_v6 = vpop.f32.mrf.mxu0  ;;  %v9685_v12 = vpop.eup %8301  ;;  %8327 = vrcp.f32 %v2030_v59  ;;  %v2310_v59 = vld [vmem:[%s12634_s3 + $0xd0] sm:$0xff]  ;;  %v3065_v52 = vmul.f32 %v9674_v53, %v2309_v36 }
 0x19f   : > { %v7284_v13 = vmul.f32 -1.442695, %v1563_v3  ;;  %v1558_v10 = vadd.f32 %v1557_v6, %v686_v0  ;;  %v8304_v4 = vpop.eup %8303  ;;  %8329 = vpow2.f32 %v7272_v60  ;;  %2747 = vperm.xlu1 %7889, %v9608_v31   ;;  %v2311_v31 = vld [vmem:[%s12634_s3 + $0xd8] sm:$0xff]  ;;  %v680_v3 = vld [vmem:[%s12633_s2 + $0x2b0] sm:$0xff]  ;;  %v1498_v6 = vadd.f32 %v9626_v49, %v674_v30 }
 0x1a0   : > { %v7789_v14 = vpop.f32.mrf.mxu0  ;;  %v9691_v17 = vpop.eup %8305  ;;  %8331 = vrcp.f32 %v2033_v61  ;;  %v9714_v42 = vadd.f32 1.0, %v8304_v4  ;;  %v677_v49 = vld [vmem:[%s12633_s2 + $0x298] sm:$0xff] }
 0x1a1   : > { %v7283_v22 = vmul.f32 -1.442695, %v1558_v10  ;;  %v1573_v24 = vadd.f32 %v7789_v14, %v689_v11  ;;  %v2573_v15 = vpop.permute.xlu0 %2572  ;;  %v2568_v27 = vpop.permute.xlu1 %2567  ;;  %2742 = vperm.xlu0 %7888, %v8300_v5   ;;  %8333 = vpow2.f32 %v7284_v13  ;;  %v1538_v5 = vadd.f32 %v9661_v37, %v682_v44  ;;  %v2308_v11 = vld [vmem:[%s12634_s3 + $0xc0] sm:$0xff]  ;;  %v2305_v13 = vld [vmem:[%s12634_s3 + $0xa8] sm:$0xff] }
 0x1a2   : > { %v9697_v26 = vpop.eup %8307  ;;  %v1567_v32 = vpop.f32.mrf.mxu0  ;;  %8335 = vrcp.f32 %v2032_v16  ;;  %v3067_v43 = vmul.f32 %v2568_v27, %v2311_v31  ;;  %v3069_v60 = vmul.f32 %v2573_v15, %v2313_v48  ;;  %v3068_v61 = vmul.f32 %v2573_v15, %v2312_v29  ;;  %v2306_v48 = vld [vmem:[%s12634_s3 + $0xb0] sm:$0xff] }
 0x1a3   : > { %v8310_v2 = vpop.eup %8309  ;;  %v7286_v33 = vmul.f32 -1.442695, %v1573_v24  ;;  %v1568_v35 = vadd.f32 %v1567_v32, %v688_v20  ;;  %8337 = vpow2.f32 %v7283_v22  ;;  %v2026_v16 = vadd.f32 1.0, %v9685_v12  ;;  %v2307_v20 = vld [vmem:[%s12634_s3 + $0xb8] sm:$0xff]  ;;  %v678_v12 = vld [vmem:[%s12633_s2 + $0x2a0] sm:$0xff] }
 0x1a4   : > { %v8312_v63 = vpop.eup %8311  ;;  %2897 = vperm.xlu1 %7889, %v8310_v2   ;;  %v9726_v50 = vpop.f32.mrf.mxu0  ;;  %v3066_v14 = vmul.f32 %v2568_v27, %v2310_v59  ;;  %v1523_v24 = vadd.f32 %v9645_v54, %v679_v1  ;;  %v7278_v15 = vmul.f32 -1.442695, %v1533_v46  ;;  %v1528_v31 = vadd.f32 %v9652_v23, %v680_v3  ;;  %v2304_v27 = vld [vmem:[%s12634_s3 + $0xa0] sm:$0xff]  ;;  %v2302_v3 = vld [vmem:[%s12634_s3 + $0x90] sm:$0xff] }
 0x1a5   : > { %v8314_v34 = vpop.eup %8313  ;;  %v7285_v25 = vmul.f32 -1.442695, %v1568_v35  ;;  %v2578_v57 = vpop.permute.xlu0 %2577  ;;  %8339 = vpow2.f32 %v7286_v33  ;;  %v3269_v32 = vpack.c.bf16 %v3067_v43, %v3065_v52  ;;  %v3064_v54 = vmul.f32 %v9674_v53, %v2308_v11  ;;  %v2301_v53 = vld [vmem:[%s12634_s3 + $0x88] sm:$0xff]  ;;  %v2299_v52 = vld [vmem:[%s12634_s3 + $0x78] sm:$0xff] }
 0x1a6   : > { %v9728_v58 = vpop.permute.xlu1 %2557  ;;  %v9730_v56 = vpop.eup %8315  ;;  %2892 = vperm.xlu0 %7888, %v8314_v34   ;;  %v3071_v40 = vmul.f32 %v2578_v57, %v2315_v38  ;;  %8341 = vpow2.f32 %v7282_v41  ;;  %v3070_v51 = vmul.f32 %v2578_v57, %v2314_v45  ;;  %v7279_v41 = vmul.f32 -1.442695, %v1538_v5 }
 0x1a7   : > { %v9735_v47 = vpop.f32.mrf.mxu0  ;;  %v8318_v0 = vpop.eup %8317  ;;  %8343 = vpow2.f32 %v7285_v25  ;;  %v7271_v23 = vmul.f32 -1.442695, %v1498_v6  ;;  %v1513_v35 = vadd.f32 %v9637_v62, %v677_v49  ;;  %v3063_v38 = vmul.f32 %v9728_v58, %v2307_v20  ;;  %v2303_v62 = vld [vmem:[%s12634_s3 + $0x98] sm:$0xff]  ;;  %v2300_v25 = vld [vmem:[%s12634_s3 + $0x80] sm:$0xff] }
 0x1a8   : > { %v9744_v8 = vpop.eup %8319  ;;  %2887 = vperm.xlu1 %7889, %v8312_v63   ;;  %v3271_v37 = vpack.c.bf16 %v3071_v40, %v3069_v60  ;;  %8345 = vpow2.f32 %v7281_v55  ;;  %v3270_v21 = vpack.c.bf16 %v3070_v51, %v3068_v61  ;;  %v3268_v34 = vpack.c.bf16 %v3066_v14, %v3064_v54  ;;  %v2297_v61 = vld [vmem:[%s12634_s3 + $0x68] sm:$0xff]  ;;  %v2296_v14 = vld [vmem:[%s12634_s3 + $0x60] sm:$0xff] }
 0x1a9   : > { %v9754_v10 = vpop.f32.mrf.mxu0  ;;  %v8322_v4 = vpop.eup %8321  ;;  %8347 = vpow2.f32 %v7280_v39  ;;  %v676_v39 = vld [vmem:[%s12633_s2 + $0x290] sm:$0xff]  ;;  %v7276_v55 = vmul.f32 -1.442695, %v1523_v24  ;;  %v7277_v43 = vmul.f32 -1.442695, %v1528_v31  ;;  %v3062_v60 = vmul.f32 %v9728_v58, %v2306_v48 }
 0x1aa   : > { %v9763_v28 = vpop.permute.xlu1 %2547  ;;  %v2553_v19 = vpop.permute.xlu0 %2552  ;;  %3948 = vmatprep.subr.bf16.mxu1 %v3271_v37  ;;  %2882 = vperm.xlu0 %7888, %v8318_v0   ;;  %8349 = vrcp.f32 %v9714_v42  ;;  %v1518_v42 = vadd.f32 %v9648_v18, %v678_v12  ;;  %v7274_v1 = vmul.f32 -1.442695, %v1513_v35  ;;  %v1508_v6 = vadd.f32 %v9641_v9, %v676_v39 }
 0x1ab   : > { %v9765_v22 = vpop.eup %8323  ;;  %v9775_v2 = vpop.f32.mrf.mxu0  ;;  %v3061_v36 = vmul.f32 %v2553_v19, %v2305_v13  ;;  %3949 = vmatpush1.bf16.msra.mxu1 %v3270_v21  ;;  %8351 = vrcp.f32 %v2026_v16  ;;  %v3060_v44 = vmul.f32 %v2553_v19, %v2304_v27  ;;  %v3059_v5 = vmul.f32 %v9763_v28, %v2303_v62  ;;  %v2298_v27 = vld [vmem:[%s12634_s3 + $0x70] sm:$0xff]  ;;  %v2292_v62 = vld [vmem:[%s12634_s3 + $0x40] sm:$0xff] }
 0x1ac   : > { %v8326_v30 = vpop.eup %8325  ;;  %2877 = vperm.xlu1 %7889, %v8322_v4   ;;  %3950 = vmatprep.subr.bf16.mxu1 %v3269_v32  ;;  %8353 = vpow2.f32 %v7278_v15  ;;  %v7275_v11 = vmul.f32 -1.442695, %v1518_v42  ;;  %v3058_v24 = vmul.f32 %v9763_v28, %v2302_v3  ;;  %v7273_v54 = vmul.f32 -1.442695, %v1508_v6  ;;  %v2288_v6 = vld [vmem:[%s12634_s3 + $0x20] sm:$0xff] }
 0x1ad   : > { %v9778_v33 = vpop.eup %8327  ;;  %v9789_v63 = vpop.f32.mrf.mxu0  ;;  %v3267_v18 = vpack.c.bf16 %v3063_v38, %v3061_v36  ;;  %8355 = vpow2.f32 %v7279_v41  ;;  %v3266_v16 = vpack.c.bf16 %v3062_v60, %v3060_v44  ;;  %v2295_v36 = vld [vmem:[%s12634_s3 + $0x58] sm:$0xff] }
 0x1ae   : > { %v9791_v46 = vpop.eup %8329  ;;  %v9797_v29 = vpop.permute.xlu1 %2537  ;;  %2872 = vperm.xlu0 %7888, %v8326_v30   ;;  %8357 = vpow2.f32 %v7271_v23  ;;  %v2293_v30 = vld [vmem:[%s12634_s3 + $0x48] sm:$0xff] }
 0x1af   : > { %v2543_v45 = vpop.permute.xlu0 %2542  ;;  %v9805_v57 = vpop.f32.mrf.mxu0  ;;  %3951 = vmatpush1.bf16.msra.mxu1 %v3268_v34  ;;  %8359 = vpow2.f32 %v7276_v55  ;;  %v3055_v32 = vmul.f32 %v9797_v29, %v2299_v52  ;;  %v3054_v34 = vmul.f32 %v9797_v29, %v2298_v27  ;;  %v2289_v55 = vld [vmem:[%s12634_s3 + $0x28] sm:$0xff]  ;;  %v701_v29 = vld [vmem:[%s12633_s2 + $0x358] sm:$0xff] }
 0x1b0   : > { %v8332_v59 = vpop.eup %8331  ;;  %v3057_v40 = vmul.f32 %v2543_v45, %v2301_v53  ;;  %3952 = vmatprep.subr.bf16.mxu1 %v3267_v18  ;;  %v3056_v13 = vmul.f32 %v2543_v45, %v2300_v25  ;;  %8361 = vpow2.f32 %v7277_v43 }
 0x1b1   : > { %v8334_v0 = vpop.eup %8333  ;;  %2867 = vperm.xlu1 %7889, %v8332_v59   ;;  %v9815_v51 = vpop.f32.mrf.mxu0  ;;  %8363 = vpow2.f32 %v7274_v1  ;;  %v2294_v59 = vld [vmem:[%s12634_s3 + $0x50] sm:$0xff] }
 0x1b2   : > { %v8336_v58 = vpop.eup %8335  ;;  %v9821_v37 = vpop.permute.xlu1 %2527  ;;  %v3265_v20 = vpack.c.bf16 %v3059_v5, %v3057_v40  ;;  %v2053_v21 = vadd.f32 1.0, %v8334_v0  ;;  %8365 = vpow2.f32 %v7275_v11  ;;  %v3264_v38 = vpack.c.bf16 %v3058_v24, %v3056_v13  ;;  %v2291_v0 = vld [vmem:[%s12634_s3 + $0x38] sm:$0xff] }
 0x1b3   : > { %v2533_v4 = vpop.permute.xlu0 %2532  ;;  %v8338_v49 = vpop.eup %8337  ;;  %2862 = vperm.xlu0 %7888, %v8336_v58   ;;  %3953 = vmatpush1.bf16.msra.mxu1 %v3266_v16  ;;  %v2041_v16 = vadd.f32 1.0, %v9791_v46  ;;  %v2290_v46 = vld [vmem:[%s12634_s3 + $0x30] sm:$0xff] }
 0x1b4   : > { %v9826_v19 = vpop.f32.mrf.mxu0  ;;  %v8340_v9 = vpop.eup %8339  ;;  %v3053_v12 = vmul.f32 %v2533_v4, %v2297_v61  ;;  %3954 = vmatprep.subr.bf16.mxu1 %v3265_v20  ;;  %v3052_v23 = vmul.f32 %v2533_v4, %v2296_v14  ;;  %v700_v61 = vld [vmem:[%s12633_s2 + $0x350] sm:$0xff]  ;;  %v3050_v14 = vmul.f32 %v9821_v37, %v2294_v59 }
 0x1b5   : > { %v8342_v15 = vpop.eup %8341  ;;  %v2055_v31 = vadd.f32 1.0, %v8340_v9  ;;  %2857 = vperm.xlu1 %7889, %v9765_v22   ;;  %v2052_v22 = vadd.f32 1.0, %v8338_v49  ;;  %v2285_v9 = vld [vmem:[%s12634_s3 + $0x8] sm:$0xff] }
 0x1b6   : > { %v7804_v41 = vpop.f32.mrf.mxu0  ;;  %v8344_v28 = vpop.eup %8343  ;;  %v3263_v44 = vpack.c.bf16 %v3055_v32, %v3053_v12  ;;  %v2051_v18 = vadd.f32 1.0, %v8342_v15  ;;  %v3262_v5 = vpack.c.bf16 %v3054_v34, %v3052_v23  ;;  %v697_v32 = vld [vmem:[%s12633_s2 + $0x338] sm:$0xff] }
 0x1b7   : > { %v9840_v35 = vpop.permute.xlu1 %2517  ;;  %v2523_v48 = vpop.permute.xlu0 %2522  ;;  %8367 = vrcp.f32 %v2055_v31  ;;  %v2054_v42 = vadd.f32 1.0, %v8344_v28  ;;  %2852 = vperm.xlu0 %7888, %v9778_v33   ;;  %3955 = vmatpush1.bf16.msra.mxu1 %v3264_v38  ;;  %v3051_v33 = vmul.f32 %v9821_v37, %v2295_v36 }
 0x1b8   : > { %v8346_v53 = vpop.eup %8345  ;;  %v1617_v45 = vpop.f32.mrf.mxu0  ;;  %8369 = vrcp.f32 %v2053_v21  ;;  %v3049_v39 = vmul.f32 %v2523_v48, %v2293_v30  ;;  %3956 = vmatprep.subr.bf16.mxu1 %v3263_v44  ;;  %v3048_v1 = vmul.f32 %v2523_v48, %v2292_v62  ;;  %v698_v21 = vld [vmem:[%s12633_s2 + $0x340] sm:$0xff]  ;;  %v3047_v37 = vmul.f32 %v9840_v35, %v2291_v0  ;;  %v2287_v30 = vld [vmem:[%s12634_s3 + $0x18] sm:$0xff] }
 0x1b9   : > { %v8348_v25 = vpop.eup %8347  ;;  %8371 = vrcp.f32 %v2054_v42  ;;  %2847 = vperm.xlu1 %7889, %v9744_v8   ;;  %v2050_v40 = vadd.f32 1.0, %v8346_v53  ;;  %v699_v8 = vld [vmem:[%s12633_s2 + $0x348] sm:$0xff]  ;;  %v1618_v38 = vadd.f32 %v1617_v45, %v698_v21  ;;  %v3046_v34 = vmul.f32 %v9840_v35, %v2290_v46  ;;  %v2286_v45 = vld [vmem:[%s12634_s3 + $0x10] sm:$0xff] }
 0x1ba   : > { %v7807_v43 = vpop.f32.mrf.mxu0  ;;  %v8350_v60 = vpop.eup %8349  ;;  %8373 = vpow2.f32 %v7273_v54  ;;  %v3261_v52 = vpack.c.bf16 %v3051_v33, %v3049_v39  ;;  %v2049_v49 = vadd.f32 1.0, %v8348_v25  ;;  %v1623_v15 = vadd.f32 %v7804_v41, %v699_v8  ;;  %v2284_v41 = vld [vmem:[%s12634_s3] sm:$0xff] }
 0x1bb   : > { %v2513_v3 = vpop.permute.xlu0 %2512  ;;  %v8352_v58 = vpop.eup %8351  ;;  %8375 = vrcp.f32 %v2052_v22  ;;  %2842 = vperm.xlu0 %7888, %v8350_v60   ;;  %3957 = vmatpush1.bf16.msra.mxu1 %v3262_v5  ;;  %v1633_v24 = vadd.f32 %v7807_v43, %v701_v29  ;;  %v3260_v36 = vpack.c.bf16 %v3050_v14, %v3048_v1  ;;  %v695_v29 = vld [vmem:[%s12633_s2 + $0x328] sm:$0xff]  ;;  %v2347_v60 = vld [vmem:[%s12634_s3 + $0x1f8] sm:$0xff]  ;;  %v2344_v5 = vld [vmem:[%s12634_s3 + $0x1e0] sm:$0xff] }
 0x1bc   : > { %v3045_v11 = vmul.f32 %v2513_v3, %v2289_v55  ;;  %v1627_v13 = vpop.f32.mrf.mxu0  ;;  %v8354_v4 = vpop.eup %8353  ;;  %8377 = vrcp.f32 %v2051_v18  ;;  %3958 = vmatprep.subr.bf16.mxu1 %v3261_v52  ;;  %v3044_v28 = vmul.f32 %v2513_v3, %v2288_v6  ;;  %v2345_v55 = vld [vmem:[%s12634_s3 + $0x1e8] sm:$0xff]  ;;  %v1613_v18 = vadd.f32 %v9815_v51, %v697_v32  ;;  %v2340_v32 = vld [vmem:[%s12634_s3 + $0x1c0] sm:$0xff] }
 0x1bd   : > { %v9872_v20 = vpop.permute.xlu1 %2507  ;;  %v8356_v12 = vpop.eup %8355  ;;  %2837 = vperm.xlu1 %7889, %v9730_v56   ;;  %v1628_v31 = vadd.f32 %v1627_v13, %v700_v61  ;;  %8379 = vrcp.f32 %v2050_v40  ;;  %v7298_v23 = vmul.f32 -1.442695, %v1633_v24  ;;  %v696_v56 = vld [vmem:[%s12633_s2 + $0x330] sm:$0xff]  ;;  %v2047_v62 = vadd.f32 1.0, %v8354_v4  ;;  %v2341_v13 = vld [vmem:[%s12634_s3 + $0x1c8] sm:$0xff] }
 0x1be   : > { %v9885_v27 = vpop.eup %8357  ;;  %v3259_v53 = vpack.c.bf16 %v3047_v37, %v3045_v11  ;;  %8381 = vrcp.f32 %v2041_v16  ;;  %v2048_v44 = vadd.f32 1.0, %v8356_v12  ;;  %v3043_v59 = vmul.f32 %v9872_v20, %v2287_v30 }
 0x1bf   : > { %v2503_v54 = vpop.permute.xlu0 %2502  ;;  %2832 = vperm.xlu0 %7888, %v8352_v58   ;;  %v7297_v22 = vmul.f32 -1.442695, %v1628_v31  ;;  %v8360_v42 = vpop.eup %8359  ;;  %3959 = vmatpush1.bf16.msra.mxu1 %v3260_v36  ;;  %v7296_v33 = vmul.f32 -1.442695, %v1623_v15  ;;  %8383 = vpow2.f32 %v7298_v23  ;;  %v1608_v43 = vadd.f32 %v9826_v19, %v696_v56  ;;  %v692_v15 = vld [vmem:[%s12633_s2 + $0x310] sm:$0xff] }
 0x1c0   : > { %v3041_v48 = vmul.f32 %v2503_v54, %v2285_v9  ;;  %v8362_v25 = vpop.eup %8361  ;;  %3960 = vmatprep.subr.bf16.mxu1 %v3259_v53  ;;  %8385 = vrcp.f32 %v2049_v49  ;;  %v3040_v51 = vmul.f32 %v2503_v54, %v2284_v41  ;;  %v3258_v0 = vpack.c.bf16 %v3046_v34, %v3044_v28  ;;  %v693_v9 = vld [vmem:[%s12633_s2 + $0x318] sm:$0xff]  ;;  %v2337_v41 = vld [vmem:[%s12634_s3 + $0x1a8] sm:$0xff] }
 0x1c1   : > { %v9900_v39 = vpop.permute.xlu1 %2657  ;;  %2827 = vperm.xlu1 %7889, %v9691_v17   ;;  %v8364_v35 = vpop.eup %8363  ;;  %v694_v17 = vld [vmem:[%s12633_s2 + $0x320] sm:$0xff]  ;;  %v7295_v3 = vmul.f32 -1.442695, %v1618_v38  ;;  %8387 = vpow2.f32 %v7297_v22  ;;  %v2045_v58 = vadd.f32 1.0, %v8360_v42  ;;  %v2046_v6 = vadd.f32 1.0, %v8362_v25  ;;  %v2342_v22 = vld [vmem:[%s12634_s3 + $0x1d0] sm:$0xff] }
 0x1c2   : > { %v8366_v1 = vpop.eup %8365  ;;  %v3257_v19 = vpack.c.bf16 %v3043_v59, %v3041_v48  ;;  %8389 = vrcp.f32 %v2048_v44  ;;  %v3042_v11 = vmul.f32 %v9872_v20, %v2286_v45  ;;  %v1603_v16 = vadd.f32 %v9789_v63, %v695_v29  ;;  %v2343_v63 = vld [vmem:[%s12634_s3 + $0x1d8] sm:$0xff]  ;;  %v691_v48 = vld [vmem:[%s12633_s2 + $0x308] sm:$0xff]  ;;  %v2336_v59 = vld [vmem:[%s12634_s3 + $0x1a0] sm:$0xff] }
 0x1c3   : > { %v2653_v40 = vpop.permute.xlu0 %2652  ;;  %2822 = vperm.xlu0 %7888, %v9697_v26   ;;  %3961 = vmatpush1.bf16.msra.mxu1 %v3258_v0  ;;  %v7294_v49 = vmul.f32 -1.442695, %v1613_v18  ;;  %8391 = vpow2.f32 %v7296_v33  ;;  %v2346_v26 = vld [vmem:[%s12634_s3 + $0x1f0] sm:$0xff]  ;;  %v3103_v14 = vmul.f32 %v9900_v39, %v2347_v60  ;;  %v1598_v21 = vadd.f32 %v9805_v57, %v694_v17  ;;  %v690_v18 = vld [vmem:[%s12633_s2 + $0x300] sm:$0xff]  ;;  %v2333_v60 = vld [vmem:[%s12634_s3 + $0x188] sm:$0xff] }
 0x1c4   : > { %v3101_v8 = vmul.f32 %v2653_v40, %v2345_v55  ;;  %v8368_v61 = vpop.eup %8367  ;;  %3962 = vmatprep.subr.bf16.mxu1 %v3257_v19  ;;  %8393 = vrcp.f32 %v2047_v62  ;;  %v3100_v24 = vmul.f32 %v2653_v40, %v2344_v5  ;;  %v3256_v46 = vpack.c.bf16 %v3042_v11, %v3040_v51  ;;  %v2338_v17 = vld [vmem:[%s12634_s3 + $0x1b0] sm:$0xff]  ;;  %v2335_v19 = vld [vmem:[%s12634_s3 + $0x198] sm:$0xff]  ;;  %v2332_v11 = vld [vmem:[%s12634_s3 + $0x180] sm:$0xff] }
 0x1c5   : > { %v2648_v52 = vpop.permute.xlu1 %2647  ;;  %v8370_v4 = vpop.eup %8369  ;;  %2977 = vperm.xlu1 %7889, %v8368_v61   ;;  %v7293_v31 = vmul.f32 -1.442695, %v1608_v43  ;;  %8395 = vpow2.f32 %v7295_v3  ;;  %v2043_v54 = vadd.f32 1.0, %v8364_v35  ;;  %v2044_v36 = vadd.f32 1.0, %v8366_v1 }
 0x1c6   : > { %v8372_v20 = vpop.eup %8371  ;;  %v3287_v57 = vpack.c.bf16 %v3103_v14, %v3101_v8  ;;  %8397 = vrcp.f32 %v2046_v6  ;;  %v3102_v23 = vmul.f32 %v9900_v39, %v2346_v26  ;;  %v1593_v38 = vadd.f32 %v9754_v10, %v693_v9  ;;  %v2339_v39 = vld [vmem:[%s12634_s3 + $0x1b8] sm:$0xff]  ;;  %v2329_v26 = vld [vmem:[%s12634_s3 + $0x168] sm:$0xff]  ;;  %v2334_v9 = vld [vmem:[%s12634_s3 + $0x190] sm:$0xff] }
 0x1c7   : > { %v2643_v12 = vpop.permute.xlu0 %2642  ;;  %v8374_v37 = vpop.eup %8373  ;;  %2972 = vperm.xlu0 %7888, %v8372_v20   ;;  %3963 = vmatpush1.bf16.msra.mxu1 %v3256_v46  ;;  %v7292_v53 = vmul.f32 -1.442695, %v1603_v16  ;;  %8399 = vpow2.f32 %v7294_v49  ;;  %v3099_v42 = vmul.f32 %v2648_v52, %v2343_v63  ;;  %v1588_v44 = vadd.f32 %v9775_v2, %v692_v15  ;;  %v2331_v46 = vld [vmem:[%s12634_s3 + $0x178] sm:$0xff] }
 0x1c8   : > { %v3097_v30 = vmul.f32 %v2643_v12, %v2341_v13  ;;  %v8376_v28 = vpop.eup %8375  ;;  %3964 = vmatprep.subr.bf16.mxu1 %v3287_v57  ;;  %8401 = vrcp.f32 %v2045_v58  ;;  %v3096_v34 = vmul.f32 %v2643_v12, %v2340_v32  ;;  %v3286_v10 = vpack.c.bf16 %v3102_v23, %v3100_v24 }
 0x1c9   : > { %v2638_v56 = vpop.permute.xlu1 %2637  ;;  %2967 = vperm.xlu1 %7889, %v8370_v4   ;;  %v8378_v62 = vpop.eup %8377  ;;  %v7291_v45 = vmul.f32 -1.442695, %v1598_v21  ;;  %8403 = vpow2.f32 %v7293_v31  ;;  %v2042_v35 = vadd.f32 1.0, %v8374_v37  ;;  %v1583_v29 = vadd.f32 %v9726_v50, %v691_v48 }
 0x1ca   : > { %v8380_v25 = vpop.eup %8379  ;;  %v3285_v2 = vpack.c.bf16 %v3099_v42, %v3097_v30  ;;  %8405 = vrcp.f32 %v2044_v36  ;;  %v3098_v43 = vmul.f32 %v2648_v52, %v2342_v22  ;;  %v2040_v0 = vadd.f32 1.0, %v9885_v27  ;;  %v2328_v30 = vld [vmem:[%s12634_s3 + $0x160] sm:$0xff] }
 0x1cb   : > { %v2633_v55 = vpop.permute.xlu0 %2632  ;;  %2962 = vperm.xlu0 %7888, %v8376_v28   ;;  %3965 = vmatpush2.bf16.msra.mxu1 %v3286_v10  ;;  %v9972_v40 = vpop.eup %8381  ;;  %v7290_v1 = vmul.f32 -1.442695, %v1593_v38  ;;  %8407 = vpow2.f32 %v7292_v53  ;;  %v3095_v3 = vmul.f32 %v2638_v56, %v2339_v39  ;;  %v1578_v5 = vadd.f32 %v9735_v47, %v690_v18  ;;  %v2330_v38 = vld [vmem:[%s12634_s3 + $0x170] sm:$0xff]  ;;  %v2324_v10 = vld [vmem:[%s12634_s3 + $0x140] sm:$0xff] }
 0x1cc   : > { %v3093_v33 = vmul.f32 %v2633_v55, %v2337_v41  ;;  %3966 = vmatprep.subr.bf16.mxu1 %v3285_v2  ;;  %v8384_v50 = vpop.eup %8383  ;;  %8409 = vrcp.f32 %v2043_v54  ;;  %v3092_v8 = vmul.f32 %v2633_v55, %v2336_v59  ;;  %v3284_v27 = vpack.c.bf16 %v3098_v43, %v3096_v34  ;;  %v2321_v2 = vld [vmem:[%s12634_s3 + $0x128] sm:$0xff]  ;;  %v2326_v43 = vld [vmem:[%s12634_s3 + $0x150] sm:$0xff] }
 0x1cd   : > { %v2628_v51 = vpop.permute.xlu1 %2627  ;;  %2957 = vperm.xlu1 %7889, %v8378_v62   ;;  %v8386_v58 = vpop.eup %8385  ;;  %v7289_v6 = vmul.f32 -1.442695, %v1588_v44  ;;  %8411 = vpow2.f32 %v7291_v45  ;;  %v7288_v47 = vmul.f32 -1.442695, %v1583_v29  ;;  %v3094_v16 = vmul.f32 %v2638_v56, %v2338_v17  ;;  %v2325_v56 = vld [vmem:[%s12634_s3 + $0x148] sm:$0xff]  ;;  %v2327_v62 = vld [vmem:[%s12634_s3 + $0x158] sm:$0xff] }
 0x1ce   : > { %v3283_v13 = vpack.c.bf16 %v3095_v3, %v3093_v33  ;;  %v8388_v4 = vpop.eup %8387  ;;  %8413 = vrcp.f32 %v2042_v35  ;;  %v2067_v20 = vadd.f32 1.0, %v8384_v50  ;;  %v3091_v21 = vmul.f32 %v2628_v51, %v2335_v19 }
 0x1cf   : > { %v2623_v61 = vpop.permute.xlu0 %2622  ;;  %2952 = vperm.xlu0 %7888, %v8380_v25   ;;  %3967 = vmatpush2.bf16.msra.mxu1 %v3284_v27  ;;  %v8390_v14 = vpop.eup %8389  ;;  %8415 = vpow2.f32 %v7290_v1  ;;  %v7287_v63 = vmul.f32 -1.442695, %v1578_v5  ;;  %v3282_v15 = vpack.c.bf16 %v3094_v16, %v3092_v8  ;;  %v2066_v32 = vadd.f32 1.0, %v8388_v4  ;;  %v2323_v1 = vld [vmem:[%s12634_s3 + $0x138] sm:$0xff]  ;;  %v2320_v8 = vld [vmem:[%s12634_s3 + $0x120] sm:$0xff]  ;;  %v2322_v4 = vld [vmem:[%s12634_s3 + $0x130] sm:$0xff] }
 0x1d0   : > { %v3089_v52 = vmul.f32 %v2623_v61, %v2333_v60  ;;  %3968 = vmatprep.subr.bf16.mxu1 %v3283_v13  ;;  %v8392_v24 = vpop.eup %8391  ;;  %8417 = vrcp.f32 %v2040_v0  ;;  %v3088_v12 = vmul.f32 %v2623_v61, %v2332_v11  ;;  %v3090_v36 = vmul.f32 %v2628_v51, %v2334_v9  ;;  %v2317_v11 = vld [vmem:[%s12634_s3 + $0x108] sm:$0xff] }
 0x1d1   : > { %v2618_v49 = vpop.permute.xlu1 %2617  ;;  %2947 = vperm.xlu1 %7889, %v8386_v58   ;;  %v8394_v31 = vpop.eup %8393  ;;  %8419 = vpow2.f32 %v7289_v6  ;;  %v2065_v48 = vadd.f32 1.0, %v8392_v24  ;;  %v2316_v24 = vld [vmem:[%s12634_s3 + $0x100] sm:$0xff] }
 0x1d2   : > { %v3281_v28 = vpack.c.bf16 %v3091_v21, %v3089_v52  ;;  %v8396_v54 = vpop.eup %8395  ;;  %8421 = vpow2.f32 %v7288_v47  ;;  %v3087_v53 = vmul.f32 %v2618_v49, %v2331_v46  ;;  %v3280_v34 = vpack.c.bf16 %v3090_v36, %v3088_v12 }
 0x1d3   : > { %v2613_v37 = vpop.permute.xlu0 %2612  ;;  %2942 = vperm.xlu0 %7888, %v8390_v14   ;;  %3969 = vmatpush2.bf16.msra.mxu1 %v3282_v15  ;;  %v8398_v41 = vpop.eup %8397  ;;  %8423 = vrcp.f32 %v2067_v20  ;;  %v2064_v55 = vadd.f32 1.0, %v8396_v54  ;;  %v3086_v59 = vmul.f32 %v2618_v49, %v2330_v38 }
 0x1d4   : > { %v3085_v57 = vmul.f32 %v2613_v37, %v2329_v26  ;;  %3970 = vmatprep.subr.bf16.mxu1 %v3281_v28  ;;  %v8400_v22 = vpop.eup %8399  ;;  %8425 = vpow2.f32 %v7287_v63  ;;  %v3084_v42 = vmul.f32 %v2613_v37, %v2328_v30  ;;  %v2319_v26 = vld [vmem:[%s12634_s3 + $0x118] sm:$0xff] }
 0x1d5   : > { %v2608_v23 = vpop.permute.xlu1 %2607  ;;  %2937 = vperm.xlu1 %7889, %v8394_v31   ;;  %v8402_v39 = vpop.eup %8401  ;;  %8427 = vrcp.f32 %v2066_v32  ;;  %v2063_v29 = vadd.f32 1.0, %v8400_v22  ;;  %v2377_v31 = vld [vmem:[%s12634_s3 + $0x2e8] sm:$0xff] }
 0x1d6   : > { %v3279_v18 = vpack.c.bf16 %v3087_v53, %v3085_v57  ;;  %v8404_v45 = vpop.eup %8403  ;;  %8429 = vrcp.f32 %v2065_v48  ;;  %v3083_v51 = vmul.f32 %v2608_v23, %v2327_v62  ;;  %v3278_v3 = vpack.c.bf16 %v3086_v59, %v3084_v42  ;;  %v2318_v57 = vld [vmem:[%s12634_s3 + $0x110] sm:$0xff]  ;;  %v2376_v53 = vld [vmem:[%s12634_s3 + $0x2e0] sm:$0xff] }
 0x1d7   : > { %v2603_v44 = vpop.permute.xlu0 %2602  ;;  %2932 = vperm.xlu0 %7888, %v8398_v41   ;;  %3971 = vmatpush2.bf16.msra.mxu1 %v3280_v34  ;;  %v8406_v35 = vpop.eup %8405  ;;  %v2062_v5 = vadd.f32 1.0, %v8404_v45  ;;  %8431 = vrcp.f32 %v2064_v55  ;;  %v3082_v58 = vmul.f32 %v2608_v23, %v2326_v43  ;;  %v2379_v23 = vld [vmem:[%s12634_s3 + $0x2f8] sm:$0xff]  ;;  %v2373_v34 = vld [vmem:[%s12634_s3 + $0x2c8] sm:$0xff]  ;;  %v2378_v55 = vld [vmem:[%s12634_s3 + $0x2f0] sm:$0xff] }
 0x1d8   : > { %v3081_v25 = vmul.f32 %v2603_v44, %v2325_v56  ;;  %3972 = vmatprep.subr.bf16.mxu1 %v3279_v18  ;;  %v8408_v60 = vpop.eup %8407  ;;  %v3080_v0 = vmul.f32 %v2603_v44, %v2324_v10  ;;  %8433 = vrcp.f32 %v2063_v29  ;;  %v2375_v45 = vld [vmem:[%s12634_s3 + $0x2d8] sm:$0xff]  ;;  %v2372_v29 = vld [vmem:[%s12634_s3 + $0x2c0] sm:$0xff] }
 0x1d9   : > { %v2598_v33 = vpop.permute.xlu1 %2597  ;;  %2927 = vperm.xlu1 %7889, %v8402_v39   ;;  %v8410_v50 = vpop.eup %8409  ;;  %v2061_v13 = vadd.f32 1.0, %v8408_v60  ;;  %8435 = vrcp.f32 %v2062_v5  ;;  %v7890_v60 = vld [vmem:[%s12635_s4] ss:$28 sps:$4 sm:$0xff]   ;;  %v2374_v5 = vld [vmem:[%s12634_s3 + $0x2d0] sm:$0xff] }
 0x1da   : > { %v3277_v61 = vpack.c.bf16 %v3083_v51, %v3081_v25  ;;  %v8412_v27 = vpop.eup %8411  ;;  %v3079_v47 = vmul.f32 %v2598_v33, %v2323_v1  ;;  %v3276_v20 = vpack.c.bf16 %v3082_v58, %v3080_v0  ;;  %v3078_v37 = vmul.f32 %v2598_v33, %v2322_v4  ;;  %v2371_v58 = vld [vmem:[%s12634_s3 + $0x2b8] sm:$0xff] }
 0x1db   : > { %v2593_v17 = vpop.permute.xlu0 %2592  ;;  %2922 = vperm.xlu0 %7888, %v8406_v35   ;;  %3973 = vmatpush2.bf16.msra.mxu1 %v3278_v3  ;;  %v8414_v52 = vpop.eup %8413  ;;  %v2060_v21 = vadd.f32 1.0, %v8412_v27  ;;  %8437 = vrcp.f32 %v2061_v13  ;;  %v2369_v3 = vld [vmem:[%s12634_s3 + $0x2a8] sm:$0xff] }
 0x1dc   : > { %v3077_v19 = vmul.f32 %v2593_v17, %v2321_v2  ;;  %3974 = vmatprep.subr.bf16.mxu1 %v3277_v61  ;;  %v8416_v16 = vpop.eup %8415  ;;  %v3076_v49 = vmul.f32 %v2593_v17, %v2320_v8  ;;  %v7939_v2 = vld [vmem:[%s12635_s4 + $0x14] ss:$28 sps:$4 sm:$0xff]  }
 0x1dd   : > { %v2588_v6 = vpop.permute.xlu1 %2587  ;;  %2917 = vperm.xlu1 %7889, %v8410_v50   ;;  %v8418_v9 = vpop.eup %8417  ;;  %v2059_v30 = vadd.f32 1.0, %v8416_v16  ;;  %8439 = vrcp.f32 %v2060_v21  ;;  %v7893_v50 = vld [vmem:[%s12635_s4 + $0x3c] ss:$28 sps:$4 sm:$0xff]   ;;  %4302 = vmatprep.mubr.bf16.mxu0 %v7939_v2 }
 0x1de   : > { %v3275_v12 = vpack.c.bf16 %v3079_v47, %v3077_v19  ;;  %v8420_v46 = vpop.eup %8419  ;;  %v3075_v28 = vmul.f32 %v2588_v6, %v2319_v26  ;;  %v3274_v41 = vpack.c.bf16 %v3078_v37, %v3076_v49  ;;  %v3074_v62 = vmul.f32 %v2588_v6, %v2318_v57  ;;  %v2365_v49 = vld [vmem:[%s12634_s3 + $0x288] sm:$0xff]  ;;  %v2370_v26 = vld [vmem:[%s12634_s3 + $0x2b0] sm:$0xff] }
 0x1df   : > { %v2583_v14 = vpop.permute.xlu0 %2582  ;;  %2912 = vperm.xlu0 %7888, %v8414_v52   ;;  %3975 = vmatpush2.bf16.msra.mxu1 %v3276_v20  ;;  %v8422_v32 = vpop.eup %8421  ;;  %v2058_v38 = vadd.f32 1.0, %v8420_v46  ;;  %8441 = vrcp.f32 %v2059_v30  ;;  %v2361_v57 = vld [vmem:[%s12634_s3 + $0x268] sm:$0xff] }
 0x1e0   : > { %v3073_v63 = vmul.f32 %v2583_v14, %v2317_v11  ;;  %3976 = vmatprep.subr.bf16.mxu1 %v3275_v12  ;;  %v8424_v54 = vpop.eup %8423  ;;  %v3072_v36 = vmul.f32 %v2583_v14, %v2316_v24  ;;  %v2057_v39 = vadd.f32 1.0, %v8422_v32  ;;  %v2368_v11 = vld [vmem:[%s12634_s3 + $0x2a0] sm:$0xff]  ;;  %v2367_v24 = vld [vmem:[%s12634_s3 + $0x298] sm:$0xff] }
 0x1e1   : > { %v2738_v15 = vpop.permute.xlu1 %2737  ;;  %2907 = vperm.xlu1 %7889, %v9972_v40   ;;  %v8426_v48 = vpop.eup %8425  ;;  %8443 = vrcp.f32 %v2058_v38  ;;  %v2364_v12 = vld [vmem:[%s12634_s3 + $0x280] sm:$0xff] }
 0x1e2   : > { %v3273_v42 = vpack.c.bf16 %v3075_v28, %v3073_v63  ;;  %v8428_v40 = vpop.eup %8427  ;;  %v3135_v10 = vmul.f32 %v2738_v15, %v2379_v23  ;;  %v3272_v33 = vpack.c.bf16 %v3074_v62, %v3072_v36  ;;  %v2056_v35 = vadd.f32 1.0, %v8426_v48  ;;  %v7896_v28 = vld [vmem:[%s12635_s4 + $0x74] ss:$28 sps:$4 sm:$0xff]   ;;  %v2363_v48 = vld [vmem:[%s12634_s3 + $0x278] sm:$0xff] }
 0x1e3   : > { %v2733_v56 = vpop.permute.xlu0 %2732  ;;  %2902 = vperm.xlu0 %7888, %v8418_v9   ;;  %3977 = vmatpush2.bf16.msra.mxu1 %v3274_v41  ;;  %v8430_v25 = vpop.eup %8429  ;;  %v3134_v1 = vmul.f32 %v2738_v15, %v2378_v55  ;;  %8445 = vrcp.f32 %v2057_v39  ;;  %v7895_v15 = vld [vmem:[%s12635_s4 + $0x38] ss:$28 sps:$4 sm:$0xff]  }
 0x1e4   : > { %v3133_v22 = vmul.f32 %v2733_v56, %v2377_v31  ;;  %3978 = vmatprep.subr.bf16.mxu1 %v3273_v42  ;;  %v3132_v18 = vmul.f32 %v2733_v56, %v2376_v53  ;;  %v8432_v0 = vpop.eup %8431  ;;  %8447 = vrcp.f32 %v2056_v35  ;;  %v2360_v53 = vld [vmem:[%s12634_s3 + $0x260] sm:$0xff]  ;;  %v2362_v39 = vld [vmem:[%s12634_s3 + $0x270] sm:$0xff] }
 0x1e5   : > { %v2728_v44 = vpop.permute.xlu1 %2727  ;;  %3037 = vperm.xlu1 %7889, %v8424_v54   ;;  %v8434_v19 = vpop.eup %8433  ;;  %v2366_v54 = vld [vmem:[%s12634_s3 + $0x290] sm:$0xff] }
 0x1e6   : > { %v3303_v51 = vpack.c.bf16 %v3135_v10, %v3133_v22  ;;  %v3131_v8 = vmul.f32 %v2728_v44, %v2375_v45  ;;  %v3302_v61 = vpack.c.bf16 %v3134_v1, %v3132_v18  ;;  %v8436_v4 = vpop.eup %8435  ;;  %v3130_v47 = vmul.f32 %v2728_v44, %v2374_v5  ;;  %v2359_v45 = vld [vmem:[%s12634_s3 + $0x258] sm:$0xff]  ;;  %v7899_v1 = vld [vmem:[%s12635_s4 + $0xac] ss:$28 sps:$4 sm:$0xff]  }
 0x1e7   : > { %v2723_v59 = vpop.permute.xlu0 %2722  ;;  %3032 = vperm.xlu0 %7888, %v8428_v40   ;;  %3979 = vmatpush2.bf16.msra.mxu1 %v3272_v33  ;;  %v2356_v33 = vld [vmem:[%s12634_s3 + $0x240] sm:$0xff] }
 0x1e8   : > { %v3129_v43 = vmul.f32 %v2723_v59, %v2373_v34  ;;  %4109 = vmatprep.subr.bf16.mxu1 %v3303_v51  ;;  %v3128_v27 = vmul.f32 %v2723_v59, %v2372_v29  ;;  %v8438_v20 = vpop.eup %8437  ;;  %v2357_v34 = vld [vmem:[%s12634_s3 + $0x248] sm:$0xff] }
 0x1e9   : > { %v2718_v17 = vpop.permute.xlu1 %2717  ;;  %3027 = vperm.xlu1 %7889, %v8430_v25   ;;  %v7898_v29 = vld [vmem:[%s12635_s4 + $0x70] ss:$28 sps:$4 sm:$0xff]  }
 0x1ea   : > { %3981 = vmatmul.mubr.bf16.vlgmr.msra.gmra.mxu1 %v7890_v60  ;;  %v3301_v13 = vpack.c.bf16 %v3131_v8, %v3129_v43  ;;  %v3127_v14 = vmul.f32 %v2718_v17, %v2371_v58  ;;  %v3300_v9 = vpack.c.bf16 %v3130_v47, %v3128_v27  ;;  %v8440_v31 = vpop.eup %8439  ;;  %v3126_v32 = vmul.f32 %v2718_v17, %v2370_v26  ;;  %v2358_v17 = vld [vmem:[%s12634_s3 + $0x250] sm:$0xff]  ;;  %v2355_v8 = vld [vmem:[%s12634_s3 + $0x238] sm:$0xff]  ;;  %v2352_v27 = vld [vmem:[%s12634_s3 + $0x220] sm:$0xff] }
 0x1eb   : > { %v2713_v6 = vpop.permute.xlu0 %2712  ;;  %3022 = vperm.xlu0 %7888, %v8432_v0   ;;  %4110 = vmatpush1.bf16.msra.mxu1 %v3302_v61  ;;  %v2353_v0 = vld [vmem:[%s12634_s3 + $0x228] sm:$0xff]  ;;  %v5218_v61 = vld [vmem:[%s12637_s6] sm:$0xff]  ;;  %v2354_v47 = vld [vmem:[%s12634_s3 + $0x230] sm:$0xff] }
 0x1ec   : > { %v3125_v52 = vmul.f32 %v2713_v6, %v2369_v3  ;;  %3990 = vmatprep.mubr.bf16.mxu1 %v7893_v50  ;;  %4111 = vmatprep.subr.bf16.mxu1 %v3301_v13  ;;  %v3124_v21 = vmul.f32 %v2713_v6, %v2368_v11  ;;  %v8442_v23 = vpop.eup %8441  ;;  %v2349_v13 = vld [vmem:[%s12634_s3 + $0x208] sm:$0xff] }
 0x1ed   : > { %v2708_v16 = vpop.permute.xlu1 %2707  ;;  %3017 = vperm.xlu1 %7889, %v8434_v19  }
 0x1ee   : > { %v3299_v37 = vpack.c.bf16 %v3127_v14, %v3125_v52  ;;  %v3123_v36 = vmul.f32 %v2708_v16, %v2367_v24  ;;  %v3298_v56 = vpack.c.bf16 %v3126_v32, %v3124_v21  ;;  %v8444_v40 = vpop.eup %8443  ;;  %v3122_v62 = vmul.f32 %v2708_v16, %v2366_v54  ;;  %v2351_v14 = vld [vmem:[%s12634_s3 + $0x218] sm:$0xff]  ;;  %v2348_v21 = vld [vmem:[%s12634_s3 + $0x200] sm:$0xff] }
 0x1ef   : > { %v2703_v63 = vpop.permute.xlu0 %2702  ;;  %3012 = vperm.xlu0 %7888, %v8436_v4   ;;  %4112 = vmatpush1.bf16.msra.mxu1 %v3300_v9  ;;  %v5219_v4 = vld [vmem:[%s12637_s6 + $0x8] sm:$0xff]  ;;  %v5220_v9 = vld [vmem:[%s12637_s6 + $0x10] sm:$0xff]  ;;  %v7902_v32 = vld [vmem:[%s12635_s4 + $0xe4] ss:$28 sps:$4 sm:$0xff]  }
 0x1f0   : > { %v3121_v46 = vmul.f32 %v2703_v63, %v2365_v49  ;;  %4113 = vmatprep.subr.bf16.mxu1 %v3299_v37  ;;  %v3120_v41 = vmul.f32 %v2703_v63, %v2364_v12  ;;  %v8446_v10 = vpop.eup %8445  ;;  %v7901_v12 = vld [vmem:[%s12635_s4 + $0xa8] ss:$28 sps:$4 sm:$0xff]  }
 0x1f1   : > { %v2698_v30 = vpop.permute.xlu1 %2697  ;;  %3007 = vperm.xlu1 %7889, %v8438_v20   ;;  %v8448_v43 = vpop.eup %8447 }
 0x1f2   : > { %3991 = vmatmul.mubr.bf16.gmra.mxu1 %v7895_v15  ;;  %v3297_v42 = vpack.c.bf16 %v3123_v36, %v3121_v46  ;;  %v3119_v55 = vmul.f32 %v2698_v30, %v2363_v48  ;;  %v3296_v25 = vpack.c.bf16 %v3122_v62, %v3120_v41  ;;  %v3118_v51 = vmul.f32 %v2698_v30, %v2362_v39  ;;  %v2409_v15 = vld [vmem:[%s12634_s3 + $0x3e8] sm:$0xff]  ;;  %v2350_v30 = vld [vmem:[%s12634_s3 + $0x210] sm:$0xff]  ;;  %v2411_v36 = vld [vmem:[%s12634_s3 + $0x3f8] sm:$0xff] }
 0x1f3   : > { %v2693_v38 = vpop.permute.xlu0 %2692  ;;  %3002 = vperm.xlu0 %7888, %v8440_v31   ;;  %4114 = vmatpush1.bf16.msra.mxu1 %v3298_v56  ;;  %v5221_v31 = vld [vmem:[%s12637_s6 + $0x18] sm:$0xff]  ;;  %v5222_v56 = vld [vmem:[%s12637_s6 + $0x20] sm:$0xff]  ;;  %v2410_v62 = vld [vmem:[%s12634_s3 + $0x3f0] sm:$0xff] }
 0x1f4   : > { %v3117_v22 = vmul.f32 %v2693_v38, %v2361_v57  ;;  %4000 = vmatprep.mubr.bf16.mxu1 %v7896_v28  ;;  %4115 = vmatprep.subr.bf16.mxu1 %v3297_v42  ;;  %v3116_v18 = vmul.f32 %v2693_v38, %v2360_v53  ;;  %v2408_v41 = vld [vmem:[%s12634_s3 + $0x3e0] sm:$0xff]  ;;  %v2405_v42 = vld [vmem:[%s12634_s3 + $0x3c8] sm:$0xff] }
 0x1f5   : > { %v2688_v44 = vpop.permute.xlu1 %2687  ;;  %2997 = vperm.xlu1 %7889, %v8442_v23  }
 0x1f6   : > { %v3295_v35 = vpack.c.bf16 %v3119_v55, %v3117_v22  ;;  %v3115_v3 = vmul.f32 %v2688_v44, %v2359_v45  ;;  %v3294_v50 = vpack.c.bf16 %v3118_v51, %v3116_v18  ;;  %v3114_v11 = vmul.f32 %v2688_v44, %v2358_v17  ;;  %v2407_v55 = vld [vmem:[%s12634_s3 + $0x3d8] sm:$0xff]  ;;  %v2404_v18 = vld [vmem:[%s12634_s3 + $0x3c0] sm:$0xff] }
 0x1f7   : > { %v2683_v59 = vpop.permute.xlu0 %2682  ;;  %2992 = vperm.xlu0 %7888, %v8444_v40   ;;  %4116 = vmatpush1.bf16.msra.mxu1 %v3296_v25  ;;  %v5223_v40 = vld [vmem:[%s12637_s6 + $0x28] sm:$0xff]  ;;  %v5224_v25 = vld [vmem:[%s12637_s6 + $0x30] sm:$0xff]  ;;  %v7905_v51 = vld [vmem:[%s12635_s4 + $0x11c] ss:$28 sps:$4 sm:$0xff]  }
 0x1f8   : > { %v3113_v2 = vmul.f32 %v2683_v59, %v2357_v34  ;;  %4117 = vmatprep.subr.bf16.mxu1 %v3295_v35  ;;  %v3112_v5 = vmul.f32 %v2683_v59, %v2356_v33  ;;  %v7904_v33 = vld [vmem:[%s12635_s4 + $0xe0] ss:$28 sps:$4 sm:$0xff]  }
 0x1f9   : > { %v2678_v60 = vpop.permute.xlu1 %2677  ;;  %2987 = vperm.xlu1 %7889, %v8446_v10  }
 0x1fa   : > { %4001 = vmatmul.mubr.bf16.gmra.mxu1 %v7898_v29  ;;  %v3293_v6 = vpack.c.bf16 %v3115_v3, %v3113_v2  ;;  %v3111_v16 = vmul.f32 %v2678_v60, %v2355_v8  ;;  %v3292_v49 = vpack.c.bf16 %v3114_v11, %v3112_v5  ;;  %v3110_v46 = vmul.f32 %v2678_v60, %v2354_v47  ;;  %v2401_v29 = vld [vmem:[%s12634_s3 + $0x3a8] sm:$0xff]  ;;  %v2406_v60 = vld [vmem:[%s12634_s3 + $0x3d0] sm:$0xff]  ;;  %v2403_v3 = vld [vmem:[%s12634_s3 + $0x3b8] sm:$0xff] }
 0x1fb   : > { %v2673_v19 = vpop.permute.xlu0 %2672  ;;  %2982 = vperm.xlu0 %7888, %v8448_v43   ;;  %4118 = vmatpush1.bf16.msra.mxu1 %v3294_v50  ;;  %v5225_v43 = vld [vmem:[%s12637_s6 + $0x38] sm:$0xff]  ;;  %v5226_v5 = vld [vmem:[%s12637_s6 + $0x40] sm:$0xff]  ;;  %v5227_v11 = vld [vmem:[%s12637_s6 + $0x48] sm:$0xff] }
 0x1fc   : > { %v3109_v58 = vmul.f32 %v2673_v19, %v2353_v0  ;;  %4010 = vmatprep.mubr.bf16.mxu1 %v7899_v1  ;;  %4119 = vmatprep.subr.bf16.mxu1 %v3293_v6  ;;  %v3108_v26 = vmul.f32 %v2673_v19, %v2352_v27  ;;  %v2400_v8 = vld [vmem:[%s12634_s3 + $0x3a0] sm:$0xff]  ;;  %v2397_v6 = vld [vmem:[%s12634_s3 + $0x388] sm:$0xff] }
 0x1fd   : > { %v2668_v52 = vpop.permute.xlu1 %2667  ;;  %5245 = vperm.xlu1 %7889, %v5218_v61  }
 0x1fe   : > { %v3291_v63 = vpack.c.bf16 %v3111_v16, %v3109_v58  ;;  %v3107_v57 = vmul.f32 %v2668_v52, %v2351_v14  ;;  %v3290_v28 = vpack.c.bf16 %v3110_v46, %v3108_v26  ;;  %v3106_v53 = vmul.f32 %v2668_v52, %v2350_v30  ;;  %v2402_v52 = vld [vmem:[%s12634_s3 + $0x3b0] sm:$0xff]  ;;  %v2399_v16 = vld [vmem:[%s12634_s3 + $0x398] sm:$0xff]  ;;  %v2396_v14 = vld [vmem:[%s12634_s3 + $0x380] sm:$0xff] }
 0x1ff   : > { %v2663_v20 = vpop.permute.xlu0 %2662  ;;  %5250 = vperm.xlu0 %7888, %v5219_v4   ;;  %4120 = vmatpush1.bf16.msra.mxu1 %v3292_v49  ;;  %v5228_v26 = vld [vmem:[%s12637_s6 + $0x50] sm:$0xff]  ;;  %v5229_v46 = vld [vmem:[%s12637_s6 + $0x58] sm:$0xff] }
 0x200   : > { %v3105_v24 = vmul.f32 %v2663_v20, %v2349_v13  ;;  %4121 = vmatprep.subr.bf16.mxu1 %v3291_v63  ;;  %v3104_v54 = vmul.f32 %v2663_v20, %v2348_v21  ;;  %v7907_v21 = vld [vmem:[%s12635_s4 + $0x118] ss:$28 sps:$4 sm:$0xff]  }
 0x201   : > { %v2818_v37 = vpop.permute.xlu1 %2817  ;;  %5255 = vperm.xlu1 %7889, %v5220_v9  }
 0x202   : > { %4011 = vmatmul.mubr.bf16.gmra.mxu1 %v7901_v12  ;;  %v3289_v38 = vpack.c.bf16 %v3107_v57, %v3105_v24  ;;  %v3167_v44 = vmul.f32 %v2818_v37, %v2411_v36  ;;  %v3288_v34 = vpack.c.bf16 %v3106_v53, %v3104_v54  ;;  %v3166_v2 = vmul.f32 %v2818_v37, %v2410_v62  ;;  %v2393_v12 = vld [vmem:[%s12634_s3 + $0x368] sm:$0xff]  ;;  %v7908_v37 = vld [vmem:[%s12635_s4 + $0x154] ss:$28 sps:$4 sm:$0xff]   ;;  %v2395_v57 = vld [vmem:[%s12634_s3 + $0x378] sm:$0xff] }
 0x203   : > { %v2813_v23 = vpop.permute.xlu0 %2812  ;;  %5260 = vperm.xlu0 %7888, %v5221_v31   ;;  %4122 = vmatpush1.bf16.msra.mxu1 %v3290_v28  ;;  %v5230_v54 = vld [vmem:[%s12637_s6 + $0x60] sm:$0xff]  ;;  %v2394_v53 = vld [vmem:[%s12634_s3 + $0x370] sm:$0xff]  ;;  %v2391_v62 = vld [vmem:[%s12634_s3 + $0x358] sm:$0xff] }
 0x204   : > { %v3165_v48 = vmul.f32 %v2813_v23, %v2409_v15  ;;  %4020 = vmatprep.mubr.bf16.mxu1 %v7902_v32  ;;  %4123 = vmatprep.subr.bf16.mxu1 %v3289_v38  ;;  %v3164_v39 = vmul.f32 %v2813_v23, %v2408_v41  ;;  %v2398_v15 = vld [vmem:[%s12634_s3 + $0x390] sm:$0xff]  ;;  %v2392_v36 = vld [vmem:[%s12634_s3 + $0x360] sm:$0xff]  ;;  %v2389_v38 = vld [vmem:[%s12634_s3 + $0x348] sm:$0xff] }
 0x205   : > { %v2808_v22 = vpop.permute.xlu1 %2807  ;;  %5265 = vperm.xlu1 %7889, %v5222_v56  }
 0x206   : > { %v3319_v59 = vpack.c.bf16 %v3167_v44, %v3165_v48  ;;  %v3163_v0 = vmul.f32 %v2808_v22, %v2407_v55  ;;  %v3318_v1 = vpack.c.bf16 %v3166_v2, %v3164_v39  ;;  %v3162_v27 = vmul.f32 %v2808_v22, %v2406_v60  ;;  %v2384_v60 = vld [vmem:[%s12634_s3 + $0x320] sm:$0xff] }
 0x207   : > { %v2803_v10 = vpop.permute.xlu0 %2802  ;;  %5270 = vperm.xlu0 %7888, %v5223_v40   ;;  %4124 = vmatpush1.bf16.msra.mxu1 %v3288_v34  ;;  %v2388_v34 = vld [vmem:[%s12634_s3 + $0x340] sm:$0xff] }
 0x208   : > { %v3161_v45 = vmul.f32 %v2803_v10, %v2405_v42  ;;  %4125 = vmatprep.subr.bf16.mxu1 %v3319_v59  ;;  %v3160_v17 = vmul.f32 %v2803_v10, %v2404_v18  ;;  %v7910_v10 = vld [vmem:[%s12635_s4 + $0x150] ss:$28 sps:$4 sm:$0xff]  }
 0x209   : > { %v2798_v35 = vpop.permute.xlu1 %2797  ;;  %5275 = vperm.xlu1 %7889, %v5224_v25   ;;  %v7911_v59 = vld [vmem:[%s12635_s4 + $0x18c] ss:$28 sps:$4 sm:$0xff]  }
 0x20a   : > { %4021 = vmatmul.mubr.bf16.gmra.mxu1 %v7904_v33  ;;  %v3317_v61 = vpack.c.bf16 %v3163_v0, %v3161_v45  ;;  %v3159_v13 = vmul.f32 %v2798_v35, %v2403_v3  ;;  %v3316_v4 = vpack.c.bf16 %v3162_v27, %v3160_v17  ;;  %v3158_v24 = vmul.f32 %v2798_v35, %v2402_v52  ;;  %v2385_v45 = vld [vmem:[%s12634_s3 + $0x328] sm:$0xff]  ;;  %v2390_v33 = vld [vmem:[%s12634_s3 + $0x350] sm:$0xff]  ;;  %v2383_v27 = vld [vmem:[%s12634_s3 + $0x318] sm:$0xff] }
 0x20b   : > { %v2793_v50 = vpop.permute.xlu0 %2792  ;;  %5280 = vperm.xlu0 %7888, %v5225_v43   ;;  %4126 = vmatpush2.bf16.msra.mxu1 %v3318_v1  ;;  %v2387_v43 = vld [vmem:[%s12634_s3 + $0x338] sm:$0xff]  ;;  %v2442_v52 = vld [vmem:[%s12634_s3 + $0x4f0] sm:$0xff] }
 0x20c   : > { %v3157_v19 = vmul.f32 %v2793_v50, %v2401_v29  ;;  %4030 = vmatprep.mubr.bf16.mxu1 %v7905_v51  ;;  %4127 = vmatprep.subr.bf16.mxu1 %v3317_v61  ;;  %v3156_v47 = vmul.f32 %v2793_v50, %v2400_v8  ;;  %v2381_v50 = vld [vmem:[%s12634_s3 + $0x308] sm:$0xff] }
 0x20d   : > { %v2788_v58 = vpop.permute.xlu1 %2787  ;;  %5285 = vperm.xlu1 %7889, %v5226_v5   ;;  %v2386_v5 = vld [vmem:[%s12634_s3 + $0x330] sm:$0xff] }
 0x20e   : > { %v3315_v9 = vpack.c.bf16 %v3159_v13, %v3157_v19  ;;  %v3155_v31 = vmul.f32 %v2788_v58, %v2399_v16  ;;  %v3314_v32 = vpack.c.bf16 %v3158_v24, %v3156_v47  ;;  %v3154_v41 = vmul.f32 %v2788_v58, %v2398_v15  ;;  %v2380_v58 = vld [vmem:[%s12634_s3 + $0x300] sm:$0xff]  ;;  %v2443_v13 = vld [vmem:[%s12634_s3 + $0x4f8] sm:$0xff] }
 0x20f   : > { %v2783_v49 = vpop.permute.xlu0 %2782  ;;  %5290 = vperm.xlu0 %7888, %v5227_v11   ;;  %4128 = vmatpush2.bf16.msra.mxu1 %v3316_v4  ;;  %v7913_v47 = vld [vmem:[%s12635_s4 + $0x188] ss:$28 sps:$4 sm:$0xff]  }
 0x210   : > { %v3153_v20 = vmul.f32 %v2783_v49, %v2397_v6  ;;  %4129 = vmatprep.subr.bf16.mxu1 %v3315_v9  ;;  %v3152_v30 = vmul.f32 %v2783_v49, %v2396_v14  ;;  %v2441_v14 = vld [vmem:[%s12634_s3 + $0x4e8] sm:$0xff]  ;;  %v2382_v9 = vld [vmem:[%s12634_s3 + $0x310] sm:$0xff] }
 0x211   : > { %v2778_v63 = vpop.permute.xlu1 %2777  ;;  %5295 = vperm.xlu1 %7889, %v5228_v26   ;;  %v2440_v26 = vld [vmem:[%s12634_s3 + $0x4e0] sm:$0xff] }
 0x212   : > { %4031 = vmatmul.mubr.bf16.gmra.mxu1 %v7907_v21  ;;  %v3313_v56 = vpack.c.bf16 %v3155_v31, %v3153_v20  ;;  %v3151_v22 = vmul.f32 %v2778_v63, %v2395_v57  ;;  %v3312_v42 = vpack.c.bf16 %v3154_v41, %v3152_v30  ;;  %v3150_v25 = vmul.f32 %v2778_v63, %v2394_v53  ;;  %v7914_v20 = vld [vmem:[%s12635_s4 + $0x1c4] ss:$28 sps:$4 sm:$0xff]  }
 0x213   : > { %v2773_v28 = vpop.permute.xlu0 %2772  ;;  %5300 = vperm.xlu0 %7888, %v5229_v46   ;;  %4130 = vmatpush2.bf16.msra.mxu1 %v3314_v32  ;;  %v2438_v32 = vld [vmem:[%s12634_s3 + $0x4d0] sm:$0xff] }
 0x214   : > { %v3149_v23 = vmul.f32 %v2773_v28, %v2393_v12  ;;  %4040 = vmatprep.mubr.bf16.mxu1 %v7908_v37  ;;  %4131 = vmatprep.subr.bf16.mxu1 %v3313_v56  ;;  %v3148_v40 = vmul.f32 %v2773_v28, %v2392_v36  ;;  %v2439_v28 = vld [vmem:[%s12634_s3 + $0x4d8] sm:$0xff]  ;;  %v2436_v36 = vld [vmem:[%s12634_s3 + $0x4c0] sm:$0xff] }
 0x215   : > { %v2768_v48 = vpop.permute.xlu1 %2767  ;;  %5305 = vperm.xlu1 %7889, %v5230_v54  }
 0x216   : > { %v3311_v55 = vpack.c.bf16 %v3151_v22, %v3149_v23  ;;  %v3147_v2 = vmul.f32 %v2768_v48, %v2391_v62  ;;  %v3310_v35 = vpack.c.bf16 %v3150_v25, %v3148_v40  ;;  %v3146_v17 = vmul.f32 %v2768_v48, %v2390_v33  ;;  %v2437_v23 = vld [vmem:[%s12634_s3 + $0x4c8] sm:$0xff]  ;;  %v2434_v62 = vld [vmem:[%s12634_s3 + $0x4b0] sm:$0xff]  ;;  %v7917_v25 = vld [vmem:[%s12635_s4 + $0x1fc] ss:$28 sps:$4 sm:$0xff]  }
 0x217   : > { %v2763_v44 = vpop.permute.xlu0 %2762  ;;  %4132 = vmatpush2.bf16.msra.mxu1 %v3312_v42 }
 0x218   : > { %v3145_v39 = vmul.f32 %v2763_v44, %v2389_v38  ;;  %4133 = vmatprep.subr.bf16.mxu1 %v3311_v55  ;;  %v3144_v29 = vmul.f32 %v2763_v44, %v2388_v34  ;;  %v2435_v44 = vld [vmem:[%s12634_s3 + $0x4b8] sm:$0xff]  ;;  %v2432_v55 = vld [vmem:[%s12634_s3 + $0x4a0] sm:$0xff] }
 0x219   : > { %v2758_v18 = vpop.permute.xlu1 %2757  ;;  %v7916_v34 = vld [vmem:[%s12635_s4 + $0x1c0] ss:$28 sps:$4 sm:$0xff]  }
 0x21a   : > { %4041 = vmatmul.mubr.bf16.gmra.mxu1 %v7910_v10  ;;  %v3309_v1 = vpack.c.bf16 %v3147_v2, %v3145_v39  ;;  %v3143_v8 = vmul.f32 %v2758_v18, %v2387_v43  ;;  %v3308_v19 = vpack.c.bf16 %v3146_v17, %v3144_v29  ;;  %v3142_v16 = vmul.f32 %v2758_v18, %v2386_v5  ;;  %v2433_v10 = vld [vmem:[%s12634_s3 + $0x4a8] sm:$0xff]  ;;  %v2430_v43 = vld [vmem:[%s12634_s3 + $0x490] sm:$0xff] }
 0x21b   : > { %v2753_v51 = vpop.permute.xlu0 %2752  ;;  %4134 = vmatpush2.bf16.msra.mxu1 %v3310_v35  ;;  %4050 = vmatprep.mubr.bf16.mxu1 %v7911_v59 }
 0x21c   : > { %v3141_v0 = vmul.f32 %v2753_v51, %v2385_v45  ;;  %4135 = vmatprep.subr.bf16.mxu1 %v3309_v1  ;;  %v3140_v61 = vmul.f32 %v2753_v51, %v2384_v60  ;;  %v2431_v51 = vld [vmem:[%s12634_s3 + $0x498] sm:$0xff]  ;;  %v2429_v1 = vld [vmem:[%s12634_s3 + $0x488] sm:$0xff] }
 0x21d   : > { %v2748_v3 = vpop.permute.xlu1 %2747 }
 0x21e   : > { %v3307_v4 = vpack.c.bf16 %v3143_v8, %v3141_v0  ;;  %v3139_v21 = vmul.f32 %v2748_v3, %v2383_v27  ;;  %v3306_v24 = vpack.c.bf16 %v3142_v16, %v3140_v61  ;;  %v3138_v57 = vmul.f32 %v2748_v3, %v2382_v9  ;;  %v2428_v0 = vld [vmem:[%s12634_s3 + $0x480] sm:$0xff]  ;;  %v2426_v27 = vld [vmem:[%s12634_s3 + $0x470] sm:$0xff] }
 0x21f   : > { %v2743_v6 = vpop.permute.xlu0 %2742  ;;  %4136 = vmatpush2.bf16.msra.mxu1 %v3308_v19 }
 0x220   : > { %v3137_v11 = vmul.f32 %v2743_v6, %v2381_v50  ;;  %4137 = vmatprep.subr.bf16.mxu1 %v3307_v4  ;;  %v3136_v63 = vmul.f32 %v2743_v6, %v2380_v58  ;;  %v2427_v58 = vld [vmem:[%s12634_s3 + $0x478] sm:$0xff]  ;;  %v7920_v4 = vld [vmem:[%s12635_s4 + $0x234] ss:$28 sps:$4 sm:$0xff]  }
 0x221   : > { %v2898_v49 = vpop.permute.xlu1 %2897  ;;  %v7919_v6 = vld [vmem:[%s12635_s4 + $0x1f8] ss:$28 sps:$4 sm:$0xff]  }
 0x222   : > { %v3198_v12 = vmul.f32 %v2898_v49, %v2442_v52  ;;  %v3199_v37 = vmul.f32 %v2898_v49, %v2443_v13  ;;  %4051 = vmatmul.mubr.bf16.gmra.mxu1 %v7913_v47  ;;  %v3305_v30 = vpack.c.bf16 %v3139_v21, %v3137_v11  ;;  %v3304_v48 = vpack.c.bf16 %v3138_v57, %v3136_v63  ;;  %v2424_v52 = vld [vmem:[%s12634_s3 + $0x460] sm:$0xff]  ;;  %v2425_v13 = vld [vmem:[%s12634_s3 + $0x468] sm:$0xff]  ;;  %v2422_v21 = vld [vmem:[%s12634_s3 + $0x450] sm:$0xff] }
 0x223   : > { %v2893_v46 = vpop.permute.xlu0 %2892  ;;  %4138 = vmatpush2.bf16.msra.mxu1 %v3306_v24  ;;  %4060 = vmatprep.mubr.bf16.mxu1 %v7914_v20  ;;  %v2423_v24 = vld [vmem:[%s12634_s3 + $0x458] sm:$0xff] }
 0x224   : > { %v3196_v15 = vmul.f32 %v2893_v46, %v2440_v26  ;;  %v3197_v31 = vmul.f32 %v2893_v46, %v2441_v14  ;;  %4139 = vmatprep.subr.bf16.mxu1 %v3305_v30  ;;  %v2421_v46 = vld [vmem:[%s12634_s3 + $0x448] sm:$0xff] }
 0x225   : > { %v2888_v54 = vpop.permute.xlu1 %2887 }
 0x226   : > { %v3334_v56 = vpack.c.bf16 %v3198_v12, %v3196_v15  ;;  %v3335_v41 = vpack.c.bf16 %v3199_v37, %v3197_v31  ;;  %v3194_v53 = vmul.f32 %v2888_v54, %v2438_v32  ;;  %v3195_v22 = vmul.f32 %v2888_v54, %v2439_v28  ;;  %v2420_v12 = vld [vmem:[%s12634_s3 + $0x440] sm:$0xff]  ;;  %v2418_v54 = vld [vmem:[%s12634_s3 + $0x430] sm:$0xff] }
 0x227   : > { %v2883_v38 = vpop.permute.xlu0 %2882  ;;  %4140 = vmatpush2.bf16.msra.mxu1 %v3304_v48  ;;  %v2417_v48 = vld [vmem:[%s12634_s3 + $0x428] sm:$0xff] }
 0x228   : > { %v3192_v42 = vmul.f32 %v2883_v38, %v2436_v36  ;;  %v3193_v40 = vmul.f32 %v2883_v38, %v2437_v23  ;;  %4270 = vmatprep.subr.bf16.mxu0 %v3335_v41  ;;  %v2419_v36 = vld [vmem:[%s12634_s3 + $0x438] sm:$0xff]  ;;  %v7922_v23 = vld [vmem:[%s12635_s4 + $0x230] ss:$28 sps:$4 sm:$0xff]   ;;  %v2416_v41 = vld [vmem:[%s12634_s3 + $0x420] sm:$0xff] }
 0x229   : > { %v2878_v39 = vpop.permute.xlu1 %2877  ;;  %4271 = vmatpush1.bf16.msra.mxu0 %v3334_v56  ;;  %v7923_v38 = vld [vmem:[%s12635_s4 + $0x26c] ss:$28 sps:$4 sm:$0xff]  }
 0x22a   : > { %v3332_v18 = vpack.c.bf16 %v3194_v53, %v3192_v42  ;;  %v3333_v45 = vpack.c.bf16 %v3195_v22, %v3193_v40  ;;  %v3190_v59 = vmul.f32 %v2878_v39, %v2434_v62  ;;  %v3191_v2 = vmul.f32 %v2878_v39, %v2435_v44  ;;  %4061 = vmatmul.mubr.bf16.gmra.mxu1 %v7916_v34  ;;  %v2414_v39 = vld [vmem:[%s12634_s3 + $0x410] sm:$0xff] }
 0x22b   : > { %v2873_v33 = vpop.permute.xlu0 %2872  ;;  %4070 = vmatprep.mubr.bf16.mxu1 %v7917_v25  ;;  %v2412_v25 = vld [vmem:[%s12634_s3 + $0x400] sm:$0xff] }
 0x22c   : > { %v3188_v35 = vmul.f32 %v2873_v33, %v2432_v55  ;;  %v3189_v29 = vmul.f32 %v2873_v33, %v2433_v10  ;;  %4272 = vmatprep.subr.bf16.mxu0 %v3333_v45  ;;  %v2415_v55 = vld [vmem:[%s12634_s3 + $0x418] sm:$0xff]  ;;  %v3460_v33 = vld [vmem:[%s12635_s4 + $0x2a0] sm:$0xff] }
 0x22d   : > { %v2868_v60 = vpop.permute.xlu1 %2867  ;;  %4273 = vmatpush1.bf16.msra.mxu0 %v3332_v18  ;;  %v2413_v18 = vld [vmem:[%s12634_s3 + $0x408] sm:$0xff] }
 0x22e   : > { %v3330_v17 = vpack.c.bf16 %v3190_v59, %v3188_v35  ;;  %v3331_v3 = vpack.c.bf16 %v3191_v2, %v3189_v29  ;;  %v3186_v5 = vmul.f32 %v2868_v60, %v2430_v43  ;;  %v3187_v8 = vmul.f32 %v2868_v60, %v2431_v51  ;;  %v2474_v60 = vld [vmem:[%s12634_s3 + $0x5f0] sm:$0xff] }
 0x22f   : > { %v2863_v50 = vpop.permute.xlu0 %2862 }
 0x230   : > { %v3184_v19 = vmul.f32 %v2863_v50, %v2428_v0  ;;  %v3185_v61 = vmul.f32 %v2863_v50, %v2429_v1  ;;  %4274 = vmatprep.subr.bf16.mxu0 %v3331_v3  ;;  %v7925_v0 = vld [vmem:[%s12635_s4 + $0x268] ss:$28 sps:$4 sm:$0xff]   ;;  %v2475_v1 = vld [vmem:[%s12634_s3 + $0x5f8] sm:$0xff] }
 0x231   : > { %v2858_v11 = vpop.permute.xlu1 %2857  ;;  %4275 = vmatpush1.bf16.msra.mxu0 %v3330_v17  ;;  %v2472_v3 = vld [vmem:[%s12634_s3 + $0x5e0] sm:$0xff]  ;;  %v2473_v50 = vld [vmem:[%s12634_s3 + $0x5e8] sm:$0xff] }
 0x232   : > { %v3328_v47 = vpack.c.bf16 %v3186_v5, %v3184_v19  ;;  %v3329_v16 = vpack.c.bf16 %v3187_v8, %v3185_v61  ;;  %v3182_v49 = vmul.f32 %v2858_v11, %v2426_v27  ;;  %v3183_v14 = vmul.f32 %v2858_v11, %v2427_v58  ;;  %4071 = vmatmul.mubr.bf16.gmra.mxu1 %v7919_v6 }
 0x233   : > { %v2853_v26 = vpop.permute.xlu0 %2852  ;;  %4080 = vmatprep.mubr.bf16.mxu1 %v7920_v4  ;;  %v7384_v5 = vcombine.high %v3460_v33, %v3460_v33 }
 0x234   : > { %v3180_v20 = vmul.f32 %v2853_v26, %v2424_v52  ;;  %v3181_v9 = vmul.f32 %v2853_v26, %v2425_v13  ;;  %4276 = vmatprep.subr.bf16.mxu0 %v3329_v16  ;;  %v2470_v52 = vld [vmem:[%s12634_s3 + $0x5d0] sm:$0xff]  ;;  %v2471_v13 = vld [vmem:[%s12634_s3 + $0x5d8] sm:$0xff]  ;;  %v2469_v16 = vld [vmem:[%s12634_s3 + $0x5c8] sm:$0xff] }
 0x235   : > { %v2848_v63 = vpop.permute.xlu1 %2847  ;;  %4277 = vmatpush1.bf16.msra.mxu0 %v3328_v47  ;;  %v2468_v47 = vld [vmem:[%s12634_s3 + $0x5c0] sm:$0xff] }
 0x236   : > { %v3326_v37 = vpack.c.bf16 %v3182_v49, %v3180_v20  ;;  %v3327_v15 = vpack.c.bf16 %v3183_v14, %v3181_v9  ;;  %v3178_v32 = vmul.f32 %v2848_v63, %v2422_v21  ;;  %v3179_v30 = vmul.f32 %v2848_v63, %v2423_v24 }
 0x237   : > { %v2843_v31 = vpop.permute.xlu0 %2842  ;;  %v7383_v20 = vcombine.low %v3460_v33, %v3460_v33  ;;  %v2457_v33 = vld [vmem:[%s12634_s3 + $0x568] sm:$0xff] }
 0x238   : > { %v3176_v57 = vmul.f32 %v2843_v31, %v2420_v12  ;;  %v3177_v28 = vmul.f32 %v2843_v31, %v2421_v46  ;;  %4278 = vmatprep.subr.bf16.mxu0 %v3327_v15  ;;  %v2466_v12 = vld [vmem:[%s12634_s3 + $0x5b0] sm:$0xff]  ;;  %v2467_v46 = vld [vmem:[%s12634_s3 + $0x5b8] sm:$0xff]  ;;  %v2464_v15 = vld [vmem:[%s12634_s3 + $0x5a0] sm:$0xff] }
 0x239   : > { %v2838_v56 = vpop.permute.xlu1 %2837  ;;  %4279 = vmatpush1.bf16.msra.mxu0 %v3326_v37  ;;  %v2465_v31 = vld [vmem:[%s12634_s3 + $0x5a8] sm:$0xff] }
 0x23a   : > { %v3324_v53 = vpack.c.bf16 %v3178_v32, %v3176_v57  ;;  %v3325_v22 = vpack.c.bf16 %v3179_v30, %v3177_v28  ;;  %v3174_v42 = vmul.f32 %v2838_v56, %v2418_v54  ;;  %v3175_v62 = vmul.f32 %v2838_v56, %v2419_v36  ;;  %4081 = vmatmul.mubr.bf16.gmra.mxu1 %v7922_v23  ;;  %v7930_v32 = vld [vmem:[%s12635_s4 + $0xc] ss:$28 sps:$4 sm:$0xff]  }
 0x23b   : > { %v2833_v40 = vpop.permute.xlu0 %2832  ;;  %4090 = vmatprep.mubr.bf16.mxu1 %v7923_v38 }
 0x23c   : > { %v3172_v44 = vmul.f32 %v2833_v40, %v2416_v41  ;;  %v3173_v34 = vmul.f32 %v2833_v40, %v2417_v48  ;;  %4280 = vmatprep.subr.bf16.mxu0 %v3325_v22  ;;  %v2462_v41 = vld [vmem:[%s12634_s3 + $0x590] sm:$0xff]  ;;  %v2463_v48 = vld [vmem:[%s12634_s3 + $0x598] sm:$0xff]  ;;  %v2461_v22 = vld [vmem:[%s12634_s3 + $0x588] sm:$0xff] }
 0x23d   : > { %v2828_v10 = vpop.permute.xlu1 %2827  ;;  %4281 = vmatpush1.bf16.msra.mxu0 %v3324_v53  ;;  %v2460_v53 = vld [vmem:[%s12634_s3 + $0x580] sm:$0xff] }
 0x23e   : > { %v3322_v45 = vpack.c.bf16 %v3174_v42, %v3172_v44  ;;  %v3323_v59 = vpack.c.bf16 %v3175_v62, %v3173_v34  ;;  %v3170_v35 = vmul.f32 %v2828_v10, %v2414_v39  ;;  %v3171_v29 = vmul.f32 %v2828_v10, %v2415_v55  ;;  %v2458_v10 = vld [vmem:[%s12634_s3 + $0x570] sm:$0xff] }
 0x23f   : > { %v2823_v2 = vpop.permute.xlu0 %2822 }
 0x240   : > { %v3168_v43 = vmul.f32 %v2823_v2, %v2412_v25  ;;  %v3169_v51 = vmul.f32 %v2823_v2, %v2413_v18  ;;  %4282 = vmatprep.subr.bf16.mxu0 %v3323_v59  ;;  %v2459_v25 = vld [vmem:[%s12634_s3 + $0x578] sm:$0xff]  ;;  %v7928_v18 = vld [vmem:[%s12635_s4 + $0x8] ss:$28 sps:$4 sm:$0xff]  }
 0x241   : > { %v2978_v17 = vpop.permute.xlu1 %2977  ;;  %4283 = vmatpush1.bf16.msra.mxu0 %v3322_v45  ;;  %v2456_v59 = vld [vmem:[%s12634_s3 + $0x560] sm:$0xff] }
 0x242   : > { %v3320_v8 = vpack.c.bf16 %v3170_v35, %v3168_v43  ;;  %v3321_v19 = vpack.c.bf16 %v3171_v29, %v3169_v51  ;;  %v3230_v61 = vmul.f32 %v2978_v17, %v2474_v60  ;;  %v3231_v58 = vmul.f32 %v2978_v17, %v2475_v1  ;;  %4091 = vmatmul.mubr.bf16.gmra.mxu1 %v7925_v0  ;;  %v7931_v2 = vld [vmem:[%s12635_s4 + $0x44] ss:$28 sps:$4 sm:$0xff]   ;;  %v2454_v17 = vld [vmem:[%s12634_s3 + $0x550] sm:$0xff] }
 0x243   : > { %v2973_v27 = vpop.permute.xlu0 %2972  ;;  %4100 = vmatprep.mubr.bf16.mxu1 %v7384_v5  ;;  %v2452_v5 = vld [vmem:[%s12634_s3 + $0x540] sm:$0xff] }
 0x244   : > { %v3228_v6 = vmul.f32 %v2973_v27, %v2472_v3  ;;  %v3229_v11 = vmul.f32 %v2973_v27, %v2473_v50  ;;  %4284 = vmatprep.subr.bf16.mxu0 %v3321_v19  ;;  %v2455_v3 = vld [vmem:[%s12634_s3 + $0x558] sm:$0xff] }
 0x245   : > { %v2968_v4 = vpop.permute.xlu1 %2967  ;;  %4285 = vmatpush1.bf16.msra.mxu0 %v3320_v8  ;;  %v2453_v8 = vld [vmem:[%s12634_s3 + $0x548] sm:$0xff] }
 0x246   : > { %v3350_v49 = vpack.c.bf16 %v3230_v61, %v3228_v6  ;;  %v3351_v26 = vpack.c.bf16 %v3231_v58, %v3229_v11  ;;  %v3226_v9 = vmul.f32 %v2968_v4, %v2470_v52  ;;  %v3227_v21 = vmul.f32 %v2968_v4, %v2471_v13  ;;  %v2450_v13 = vld [vmem:[%s12634_s3 + $0x530] sm:$0xff]  ;;  %v2451_v4 = vld [vmem:[%s12634_s3 + $0x538] sm:$0xff] }
 0x247   : > { %v2963_v14 = vpop.permute.xlu0 %2962 }
 0x248   : > { %v3224_v24 = vmul.f32 %v2963_v14, %v2468_v47  ;;  %v3225_v63 = vmul.f32 %v2963_v14, %v2469_v16  ;;  %4286 = vmatprep.subr.bf16.mxu0 %v3351_v26  ;;  %v7933_v47 = vld [vmem:[%s12635_s4 + $0x40] ss:$28 sps:$4 sm:$0xff]   ;;  %v2449_v26 = vld [vmem:[%s12634_s3 + $0x528] sm:$0xff] }
 0x249   : > { %v2958_v37 = vpop.permute.xlu1 %2957  ;;  %4287 = vmatpush2.bf16.msra.mxu0 %v3350_v49  ;;  %v2448_v49 = vld [vmem:[%s12634_s3 + $0x520] sm:$0xff]  ;;  %v7934_v14 = vld [vmem:[%s12635_s4 + $0x7c] ss:$28 sps:$4 sm:$0xff]  }
 0x24a   : > { %v3348_v30 = vpack.c.bf16 %v3226_v9, %v3224_v24  ;;  %v3349_v57 = vpack.c.bf16 %v3227_v21, %v3225_v63  ;;  %v3222_v28 = vmul.f32 %v2958_v37, %v2466_v12  ;;  %v3223_v36 = vmul.f32 %v2958_v37, %v2467_v46  ;;  %4101 = vmatmul.mubr.bf16.gmra.mxu1 %v7383_v20  ;;  %v2446_v37 = vld [vmem:[%s12634_s3 + $0x510] sm:$0xff] }
 0x24b   : > { %v2953_v54 = vpop.permute.xlu0 %2952  ;;  %4141 = vmatprep.mubr.bf16.mxu1 %v7930_v32  ;;  %v2444_v32 = vld [vmem:[%s12634_s3 + $0x500] sm:$0xff] }
 0x24c   : > { %v3220_v23 = vmul.f32 %v2953_v54, %v2464_v15  ;;  %v3221_v56 = vmul.f32 %v2953_v54, %v2465_v31  ;;  %4288 = vmatprep.subr.bf16.mxu0 %v3349_v57  ;;  %v2447_v15 = vld [vmem:[%s12634_s3 + $0x518] sm:$0xff] }
 0x24d   : > { %v2948_v38 = vpop.permute.xlu1 %2947  ;;  %4289 = vmatpush2.bf16.msra.mxu0 %v3348_v30  ;;  %v2445_v30 = vld [vmem:[%s12634_s3 + $0x508] sm:$0xff] }
 0x24e   : > { %v3346_v42 = vpack.c.bf16 %v3222_v28, %v3220_v23  ;;  %v3347_v40 = vpack.c.bf16 %v3223_v36, %v3221_v56  ;;  %v3218_v44 = vmul.f32 %v2948_v38, %v2462_v41  ;;  %v3219_v34 = vmul.f32 %v2948_v38, %v2463_v48  ;;  %v2498_v48 = vld [vmem:[%s12634_s3 + $0x6b0] sm:$0xff]  ;;  %v2499_v38 = vld [vmem:[%s12634_s3 + $0x6b8] sm:$0xff] }
 0x24f   : > { %v2943_v62 = vpop.permute.xlu0 %2942 }
 0x250   : > { %v3216_v39 = vmul.f32 %v2943_v62, %v2460_v53  ;;  %v3217_v55 = vmul.f32 %v2943_v62, %v2461_v22  ;;  %4290 = vmatprep.subr.bf16.mxu0 %v3347_v40  ;;  %v7936_v53 = vld [vmem:[%s12635_s4 + $0x78] ss:$28 sps:$4 sm:$0xff]   ;;  %v2497_v40 = vld [vmem:[%s12634_s3 + $0x6a8] sm:$0xff] }
 0x251   : > { %v2938_v45 = vpop.permute.xlu1 %2937  ;;  %4291 = vmatpush2.bf16.msra.mxu0 %v3346_v42  ;;  %v2496_v42 = vld [vmem:[%s12634_s3 + $0x6a0] sm:$0xff]  ;;  %v7940_v62 = vld [vmem:[%s12635_s4 + $0xb4] ss:$28 sps:$4 sm:$0xff]  }
 0x252   : > { %v3344_v35 = vpack.c.bf16 %v3218_v44, %v3216_v39  ;;  %v3345_v29 = vpack.c.bf16 %v3219_v34, %v3217_v55  ;;  %v3214_v43 = vmul.f32 %v2938_v45, %v2458_v10  ;;  %v3215_v60 = vmul.f32 %v2938_v45, %v2459_v25  ;;  %4142 = vmatmul.mubr.bf16.vlgmr.msra.gmra.mxu1 %v7928_v18  ;;  %v2494_v45 = vld [vmem:[%s12634_s3 + $0x690] sm:$0xff] }
 0x253   : > { %v2933_v51 = vpop.permute.xlu0 %2932  ;;  %4151 = vmatprep.mubr.bf16.mxu1 %v7931_v2 }
 0x254   : > { %v3212_v0 = vmul.f32 %v2933_v51, %v2456_v59  ;;  %v3213_v1 = vmul.f32 %v2933_v51, %v2457_v33  ;;  %4292 = vmatprep.subr.bf16.mxu0 %v3345_v29  ;;  %v7937_v59 = vld [vmem:[%s12635_s4 + $0x10] ss:$28 sps:$4 sm:$0xff]   ;;  %v2495_v33 = vld [vmem:[%s12634_s3 + $0x698] sm:$0xff] }
 0x255   : > { %v2928_v50 = vpop.permute.xlu1 %2927  ;;  %4293 = vmatpush2.bf16.msra.mxu0 %v3344_v35  ;;  %v2492_v35 = vld [vmem:[%s12634_s3 + $0x680] sm:$0xff]  ;;  %v2493_v29 = vld [vmem:[%s12634_s3 + $0x688] sm:$0xff] }
 0x256   : > { %v3342_v19 = vpack.c.bf16 %v3214_v43, %v3212_v0  ;;  %v3343_v61 = vpack.c.bf16 %v3215_v60, %v3213_v1  ;;  %v3210_v58 = vmul.f32 %v2928_v50, %v2454_v17  ;;  %v3211_v6 = vmul.f32 %v2928_v50, %v2455_v3  ;;  %v7945_v1 = vld [vmem:[%s12635_s4 + $0x4c] ss:$28 sps:$4 sm:$0xff]  }
 0x257   : > { %v2923_v27 = vpop.permute.xlu0 %2922 }
 0x258   : > { %v3208_v11 = vmul.f32 %v2923_v27, %v2452_v5  ;;  %v3209_v52 = vmul.f32 %v2923_v27, %v2453_v8  ;;  %4294 = vmatprep.subr.bf16.mxu0 %v3343_v61  ;;  %v2490_v5 = vld [vmem:[%s12634_s3 + $0x670] sm:$0xff]  ;;  %v2488_v27 = vld [vmem:[%s12634_s3 + $0x660] sm:$0xff] }
 0x259   : > { %v2918_v16 = vpop.permute.xlu1 %2917  ;;  %4295 = vmatpush2.bf16.msra.mxu0 %v3342_v19  ;;  %v7942_v8 = vld [vmem:[%s12635_s4 + $0xb0] ss:$28 sps:$4 sm:$0xff]   ;;  %v2491_v19 = vld [vmem:[%s12634_s3 + $0x678] sm:$0xff] }
 0x25a   : > { %v3340_v20 = vpack.c.bf16 %v3210_v58, %v3208_v11  ;;  %v3341_v9 = vpack.c.bf16 %v3211_v6, %v3209_v52  ;;  %v3206_v21 = vmul.f32 %v2918_v16, %v2450_v13  ;;  %v3207_v63 = vmul.f32 %v2918_v16, %v2451_v4  ;;  %4152 = vmatmul.mubr.bf16.gmra.mxu1 %v7933_v47  ;;  %v2489_v58 = vld [vmem:[%s12634_s3 + $0x668] sm:$0xff] }
 0x25b   : > { %v2913_v24 = vpop.permute.xlu0 %2912  ;;  %4161 = vmatprep.mubr.bf16.mxu1 %v7934_v14  ;;  %v7946_v4 = vld [vmem:[%s12635_s4 + $0xec] ss:$28 sps:$4 sm:$0xff]  }
 0x25c   : > { %v3204_v12 = vmul.f32 %v2913_v24, %v2448_v49  ;;  %v3205_v46 = vmul.f32 %v2913_v24, %v2449_v26  ;;  %4296 = vmatprep.subr.bf16.mxu0 %v3341_v9  ;;  %v2486_v26 = vld [vmem:[%s12634_s3 + $0x650] sm:$0xff]  ;;  %v7943_v14 = vld [vmem:[%s12635_s4 + $0x48] ss:$28 sps:$4 sm:$0xff]  }
 0x25d   : > { %v2908_v31 = vpop.permute.xlu1 %2907  ;;  %4297 = vmatpush2.bf16.msra.mxu0 %v3340_v20  ;;  %v2487_v20 = vld [vmem:[%s12634_s3 + $0x658] sm:$0xff]  ;;  %v2485_v24 = vld [vmem:[%s12634_s3 + $0x648] sm:$0xff] }
 0x25e   : > { %v3338_v57 = vpack.c.bf16 %v3206_v21, %v3204_v12  ;;  %v3339_v28 = vpack.c.bf16 %v3207_v63, %v3205_v46  ;;  %v3202_v36 = vmul.f32 %v2908_v31, %v2446_v37  ;;  %v3203_v23 = vmul.f32 %v2908_v31, %v2447_v15  ;;  %v2484_v21 = vld [vmem:[%s12634_s3 + $0x640] sm:$0xff] }
 0x25f   : > { %v2903_v54 = vpop.permute.xlu0 %2902  ;;  %v7951_v15 = vld [vmem:[%s12635_s4 + $0x84] ss:$28 sps:$4 sm:$0xff]  }
 0x260   : > { %v3200_v56 = vmul.f32 %v2903_v54, %v2444_v32  ;;  %v3201_v41 = vmul.f32 %v2903_v54, %v2445_v30  ;;  %4298 = vmatprep.subr.bf16.mxu0 %v3339_v28  ;;  %v7948_v28 = vld [vmem:[%s12635_s4 + $0xe8] ss:$28 sps:$4 sm:$0xff]   ;;  %v2483_v54 = vld [vmem:[%s12634_s3 + $0x638] sm:$0xff] }
 0x261   : > { %v3038_v22 = vpop.permute.xlu1 %3037  ;;  %4299 = vmatpush2.bf16.msra.mxu0 %v3338_v57  ;;  %v2482_v57 = vld [vmem:[%s12634_s3 + $0x630] sm:$0xff] }
 0x262   : > { %v3336_v44 = vpack.c.bf16 %v3202_v36, %v3200_v56  ;;  %v3337_v34 = vpack.c.bf16 %v3203_v23, %v3201_v41  ;;  %v3254_v39 = vmul.f32 %v3038_v22, %v2498_v48  ;;  %v3255_v10 = vmul.f32 %v3038_v22, %v2499_v38  ;;  %4162 = vmatmul.mubr.bf16.gmra.mxu1 %v7936_v53  ;;  %v2480_v23 = vld [vmem:[%s12634_s3 + $0x620] sm:$0xff]  ;;  %v2481_v56 = vld [vmem:[%s12634_s3 + $0x628] sm:$0xff] }
 0x263   : > { %v3033_v55 = vpop.permute.xlu0 %3032  ;;  %4171 = vmatprep.mubr.bf16.mxu1 %v7940_v62  ;;  %v7952_v22 = vld [vmem:[%s12635_s4 + $0x124] ss:$28 sps:$4 sm:$0xff]  }
 0x264   : > { %v3252_v25 = vmul.f32 %v3033_v55, %v2496_v42  ;;  %v3253_v18 = vmul.f32 %v3033_v55, %v2497_v40  ;;  %4300 = vmatprep.subr.bf16.mxu0 %v3337_v34  ;;  %v7949_v34 = vld [vmem:[%s12635_s4 + $0x80] ss:$28 sps:$4 sm:$0xff]  }
 0x265   : > { %v3028_v2 = vpop.permute.xlu1 %3027  ;;  %4301 = vmatpush2.bf16.msra.mxu0 %v3336_v44  ;;  %v2478_v44 = vld [vmem:[%s12634_s3 + $0x610] sm:$0xff] }
 0x266   : > { %v3362_v43 = vpack.c.bf16 %v3254_v39, %v3252_v25  ;;  %v3363_v51 = vpack.c.bf16 %v3255_v10, %v3253_v18  ;;  %v3250_v60 = vmul.f32 %v3028_v2, %v2494_v45  ;;  %v3251_v17 = vmul.f32 %v3028_v2, %v2495_v33  ;;  %v2479_v39 = vld [vmem:[%s12634_s3 + $0x618] sm:$0xff]  ;;  %v2476_v10 = vld [vmem:[%s12634_s3 + $0x600] sm:$0xff]  ;;  %v2477_v25 = vld [vmem:[%s12634_s3 + $0x608] sm:$0xff] }
 0x267   : > { %v3023_v0 = vpop.permute.xlu0 %3022 }
 0x268   : > { %v3248_v3 = vmul.f32 %v3023_v0, %v2492_v35  ;;  %v3249_v50 = vmul.f32 %v3023_v0, %v2493_v29  ;;  %4303 = vmatmul.mubr.bf16.vlgmr.msra.gmra.mxu0 %v7937_v59  ;;  %4435 = vmatprep.subr.bf16.mxu0 %v3363_v51  ;;  %v7957_v59 = vld [vmem:[%s12635_s4 + $0xbc] ss:$28 sps:$4 sm:$0xff]  }
 0x269   : > { %7808 = vmatprep.subr.bf16.mxu1 %v3363_v51  ;;  %v3018_v61 = vpop.permute.xlu1 %3017  ;;  %4436 = vmatpush1.bf16.msra.mxu0 %v3362_v43  ;;  %v7954_v51 = vld [vmem:[%s12635_s4 + $0x120] ss:$28 sps:$4 sm:$0xff]  }
 0x26a   : > { %v3360_v6 = vpack.c.bf16 %v3250_v60, %v3248_v3  ;;  %7814 = vmatpush1.bf16.msra.mxu1 %v3362_v43  ;;  %v3361_v11 = vpack.c.bf16 %v3251_v17, %v3249_v50  ;;  %v3246_v52 = vmul.f32 %v3018_v61, %v2490_v5  ;;  %4312 = vmatprep.mubr.bf16.mxu0 %v7945_v1  ;;  %v7958_v1 = vld [vmem:[%s12635_s4 + $0x15c] ss:$28 sps:$4 sm:$0xff]   ;;  %v7963_v3 = vld [vmem:[%s12635_s4 + $0xf4] ss:$28 sps:$4 sm:$0xff]  }
 0x26b   : > { %v3013_v13 = vpop.permute.xlu0 %3012  ;;  %v3247_v47 = vmul.f32 %v3018_v61, %v2491_v19  ;;  %4172 = vmatmul.mubr.bf16.gmra.mxu1 %v7942_v8  ;;  %v7955_v17 = vld [vmem:[%s12635_s4 + $0xb8] ss:$28 sps:$4 sm:$0xff]   ;;  %v7961_v8 = vld [vmem:[%s12635_s4 + $0xf0] ss:$28 sps:$4 sm:$0xff]  }
 0x26c   : > { %v3244_v16 = vmul.f32 %v3013_v13, %v2488_v27  ;;  %v3245_v49 = vmul.f32 %v3013_v13, %v2489_v58  ;;  %4437 = vmatprep.subr.bf16.mxu0 %v3361_v11  ;;  %7809 = vmatprep.subr.bf16.mxu1 %v3361_v11  ;;  %v7960_v50 = vld [vmem:[%s12635_s4 + $0x158] ss:$28 sps:$4 sm:$0xff]   ;;  %v7969_v19 = vld [vmem:[%s12635_s4 + $0x12c] ss:$28 sps:$4 sm:$0xff]   ;;  %v7973_v13 = vld [vmem:[%s12635_s4 + $0x160] ss:$28 sps:$4 sm:$0xff]  }
 0x26d   : > { %v3008_v9 = vpop.permute.xlu1 %3007  ;;  %4438 = vmatpush1.bf16.msra.mxu0 %v3360_v6  ;;  %4181 = vmatprep.mubr.bf16.mxu1 %v7946_v4  ;;  %v7964_v5 = vld [vmem:[%s12635_s4 + $0x194] ss:$28 sps:$4 sm:$0xff]   ;;  %v7970_v27 = vld [vmem:[%s12635_s4 + $0x1cc] ss:$28 sps:$4 sm:$0xff]   ;;  %v7981_v4 = vld [vmem:[%s12635_s4 + $0x19c] ss:$28 sps:$4 sm:$0xff]  }
 0x26e   : > { %v3358_v63 = vpack.c.bf16 %v3246_v52, %v3244_v16  ;;  %7815 = vmatpush1.bf16.msra.mxu1 %v3360_v6  ;;  %v3359_v12 = vpack.c.bf16 %v3247_v47, %v3245_v49  ;;  %v3242_v46 = vmul.f32 %v3008_v9, %v2486_v26  ;;  %v3243_v31 = vmul.f32 %v3008_v9, %v2487_v20  ;;  %v7966_v61 = vld [vmem:[%s12635_s4 + $0x190] ss:$28 sps:$4 sm:$0xff]   ;;  %v7967_v58 = vld [vmem:[%s12635_s4 + $0x128] ss:$28 sps:$4 sm:$0xff]   ;;  %v7978_v47 = vld [vmem:[%s12635_s4 + $0x200] ss:$28 sps:$4 sm:$0xff]  }
 0x26f   : > { %v3003_v37 = vpop.permute.xlu0 %3002  ;;  %v7975_v6 = vld [vmem:[%s12635_s4 + $0x164] ss:$28 sps:$4 sm:$0xff]   ;;  %v7982_v16 = vld [vmem:[%s12635_s4 + $0x23c] ss:$28 sps:$4 sm:$0xff]   ;;  %v7987_v26 = vld [vmem:[%s12635_s4 + $0x1d4] ss:$28 sps:$4 sm:$0xff]  }
 0x270   : > { %v3240_v32 = vmul.f32 %v3003_v37, %v2484_v21  ;;  %v3241_v30 = vmul.f32 %v3003_v37, %v2485_v24  ;;  %4313 = vmatmul.mubr.bf16.gmra.mxu0 %v7943_v14  ;;  %4439 = vmatprep.subr.bf16.mxu0 %v3359_v12  ;;  %v7972_v11 = vld [vmem:[%s12635_s4 + $0x1c8] ss:$28 sps:$4 sm:$0xff]   ;;  %v7979_v49 = vld [vmem:[%s12635_s4 + $0x198] ss:$28 sps:$4 sm:$0xff]   ;;  %v7985_v9 = vld [vmem:[%s12635_s4 + $0x1d0] ss:$28 sps:$4 sm:$0xff]  }
 0x271   : > { %7810 = vmatprep.subr.bf16.mxu1 %v3359_v12  ;;  %v2998_v36 = vpop.permute.xlu1 %2997  ;;  %4440 = vmatpush1.bf16.msra.mxu0 %v3358_v63  ;;  %v7976_v52 = vld [vmem:[%s12635_s4 + $0x204] ss:$28 sps:$4 sm:$0xff]   ;;  %v7984_v14 = vld [vmem:[%s12635_s4 + $0x238] ss:$28 sps:$4 sm:$0xff]   ;;  %v7993_v21 = vld [vmem:[%s12635_s4 + $0x20c] ss:$28 sps:$4 sm:$0xff]  }
 0x272   : > { %v3356_v41 = vpack.c.bf16 %v3242_v46, %v3240_v32  ;;  %7816 = vmatpush1.bf16.msra.mxu1 %v3358_v63  ;;  %v3357_v48 = vpack.c.bf16 %v3243_v31, %v3241_v30  ;;  %v3238_v38 = vmul.f32 %v2998_v36, %v2482_v57  ;;  %4322 = vmatprep.mubr.bf16.mxu0 %v7951_v15  ;;  %v7988_v20 = vld [vmem:[%s12635_s4 + $0x274] ss:$28 sps:$4 sm:$0xff]   ;;  %v3461_v24 = vld [vmem:[%s12635_s4 + $0x2a8] sm:$0xff]  ;;  %v7998_v15 = vld [vmem:[%s12635_s4 + $0x244] ss:$28 sps:$4 sm:$0xff]  }
 0x273   : > { %v2993_v53 = vpop.permute.xlu0 %2992  ;;  %v3239_v42 = vmul.f32 %v2998_v36, %v2483_v54  ;;  %4182 = vmatmul.mubr.bf16.gmra.mxu1 %v7948_v28  ;;  %v7990_v63 = vld [vmem:[%s12635_s4 + $0x270] ss:$28 sps:$4 sm:$0xff]   ;;  %v7386_v12 = vcombine.high %v3461_v24, %v3461_v24  ;;  %v7991_v37 = vld [vmem:[%s12635_s4 + $0x208] ss:$28 sps:$4 sm:$0xff]   ;;  %v7385_v30 = vcombine.low %v3461_v24, %v3461_v24  ;;  %v7996_v54 = vld [vmem:[%s12635_s4 + $0x240] ss:$28 sps:$4 sm:$0xff]  }
 0x274   : > { %v3236_v40 = vmul.f32 %v2993_v53, %v2480_v23  ;;  %v3237_v62 = vmul.f32 %v2993_v53, %v2481_v56  ;;  %4441 = vmatprep.subr.bf16.mxu0 %v3357_v48  ;;  %7811 = vmatprep.subr.bf16.mxu1 %v3357_v48  ;;  %v8002_v36 = vld [vmem:[%s12635_s4 + $0x27c] ss:$28 sps:$4 sm:$0xff]  }
 0x275   : > { %v2988_v55 = vpop.permute.xlu1 %2987  ;;  %4442 = vmatpush1.bf16.msra.mxu0 %v3356_v41  ;;  %4191 = vmatprep.mubr.bf16.mxu1 %v7952_v22  ;;  %v8000_v22 = vld [vmem:[%s12635_s4 + $0x278] ss:$28 sps:$4 sm:$0xff]  }
 0x276   : > { %v3354_v18 = vpack.c.bf16 %v3238_v38, %v3236_v40  ;;  %7817 = vmatpush1.bf16.msra.mxu1 %v3356_v41  ;;  %v3355_v45 = vpack.c.bf16 %v3239_v42, %v3237_v62  ;;  %v3234_v33 = vmul.f32 %v2988_v55, %v2478_v44  ;;  %v3235_v35 = vmul.f32 %v2988_v55, %v2479_v39  ;;  %v7999_v41 = vld [vmem:[%s12635_s4 + $0x88] ss:$28 sps:$4 sm:$0xff]   ;;  %v3462_v38 = vld [vmem:[%s12635_s4 + $0x2b0] sm:$0xff]  ;;  %v8003_v44 = vld [vmem:[%s12635_s4 + $0xc0] ss:$28 sps:$4 sm:$0xff]  }
 0x277   : > { %v2983_v2 = vpop.permute.xlu0 %2982  ;;  %v7388_v42 = vcombine.high %v3462_v38, %v3462_v38  ;;  %v7387_v55 = vcombine.low %v3462_v38, %v3462_v38 }
 0x278   : > { %v3232_v29 = vmul.f32 %v2983_v2, %v2476_v10  ;;  %v3233_v43 = vmul.f32 %v2983_v2, %v2477_v25  ;;  %4323 = vmatmul.mubr.bf16.gmra.mxu0 %v7949_v34  ;;  %4443 = vmatprep.subr.bf16.mxu0 %v3355_v45 }
 0x279   : > { %7812 = vmatprep.subr.bf16.mxu1 %v3355_v45  ;;  %4444 = vmatpush1.bf16.msra.mxu0 %v3354_v18 }
 0x27a   : > { %v3352_v60 = vpack.c.bf16 %v3234_v33, %v3232_v29  ;;  %7818 = vmatpush1.bf16.msra.mxu1 %v3354_v18  ;;  %v3353_v0 = vpack.c.bf16 %v3235_v35, %v3233_v43  ;;  %4332 = vmatprep.mubr.bf16.mxu0 %v7957_v59  ;;  %v8006_v18 = vld [vmem:[%s12635_s4 + $0xf8] ss:$28 sps:$4 sm:$0xff]   ;;  %v8008_v29 = vld [vmem:[%s12635_s4 + $0x130] ss:$28 sps:$4 sm:$0xff]  }
 0x27b   : > { %4192 = vmatmul.mubr.bf16.gmra.mxu1 %v7954_v51  ;;  %v8007_v33 = vld [vmem:[%s12635_s4 + $0x18] ss:$28 sps:$4 sm:$0xff]  }
 0x27c   : > { %4445 = vmatprep.subr.bf16.mxu0 %v3353_v0  ;;  %7813 = vmatprep.subr.bf16.mxu1 %v3353_v0 }
 0x27d   : > { %4446 = vmatpush1.bf16.msra.mxu0 %v3352_v60  ;;  %4201 = vmatprep.mubr.bf16.mxu1 %v7958_v1 }
 0x27e   : > { %7819 = vmatpush1.bf16.msra.mxu1 %v3352_v60  ;;  %v8009_v60 = vld [vmem:[%s12635_s4 + $0x50] ss:$28 sps:$4 sm:$0xff]  }
 0x280   : > { %4333 = vmatmul.mubr.bf16.gmra.mxu0 %v7955_v17  ;;  %v8010_v17 = vld [vmem:[%s12635_s4 + $0x168] ss:$28 sps:$4 sm:$0xff]  }
 0x281   : > { %4342 = vmatprep.mubr.bf16.mxu0 %v7963_v3 }
 0x283   : > { %4202 = vmatmul.mubr.bf16.gmra.mxu1 %v7960_v50 }
 0x284   : > { %4211 = vmatprep.mubr.bf16.mxu1 %v7964_v5 }
 0x288   : > { %4343 = vmatmul.mubr.bf16.gmra.mxu0 %v7961_v8 }
 0x289   : > { %4352 = vmatprep.mubr.bf16.mxu0 %v7969_v19  ;;  %v8011_v19 = vld [vmem:[%s12635_s4 + $0x1a0] ss:$28 sps:$4 sm:$0xff]  }
 0x28b   : > { %4212 = vmatmul.mubr.bf16.gmra.mxu1 %v7966_v61 }
 0x28c   : > { %4221 = vmatprep.mubr.bf16.mxu1 %v7970_v27 }
 0x290   : > { %4353 = vmatmul.mubr.bf16.gmra.mxu0 %v7967_v58 }
 0x291   : > { %4362 = vmatprep.mubr.bf16.mxu0 %v7975_v6 }
 0x293   : > { %4222 = vmatmul.mubr.bf16.gmra.mxu1 %v7972_v11  ;;  %v8012_v11 = vld [vmem:[%s12635_s4 + $0x1d8] ss:$28 sps:$4 sm:$0xff]  }
 0x294   : > { %4231 = vmatprep.mubr.bf16.mxu1 %v7976_v52 }
 0x298   : > { %4363 = vmatmul.mubr.bf16.gmra.mxu0 %v7973_v13 }
 0x299   : > { %4372 = vmatprep.mubr.bf16.mxu0 %v7981_v4 }
 0x29b   : > { %4232 = vmatmul.mubr.bf16.gmra.mxu1 %v7978_v47 }
 0x29c   : > { %4241 = vmatprep.mubr.bf16.mxu1 %v7982_v16  ;;  %v8013_v16 = vld [vmem:[%s12635_s4 + $0x210] ss:$28 sps:$4 sm:$0xff]  }
 0x2a0   : > { %4373 = vmatmul.mubr.bf16.gmra.mxu0 %v7979_v49 }
 0x2a1   : > { %4382 = vmatprep.mubr.bf16.mxu0 %v7987_v26 }
 0x2a3   : > { %4242 = vmatmul.mubr.bf16.gmra.mxu1 %v7984_v14 }
 0x2a4   : > { %4251 = vmatprep.mubr.bf16.mxu1 %v7988_v20 }
 0x2a8   : > { %4383 = vmatmul.mubr.bf16.gmra.mxu0 %v7985_v9  ;;  %v8014_v9 = vld [vmem:[%s12635_s4 + $0x248] ss:$28 sps:$4 sm:$0xff]  }
 0x2a9   : > { %4392 = vmatprep.mubr.bf16.mxu0 %v7993_v21 }
 0x2aa   : > { %v10736_v46 = vpop.f32.mrf.mxu1 }
 0x2ab   : > { %4252 = vmatmul.mubr.bf16.gmra.mxu1 %v7990_v63 }
 0x2ac   : > { %4261 = vmatprep.mubr.bf16.mxu1 %v7386_v12  ;;  %v10744_v31 = vpop.f32.mrf.mxu1 }
 0x2ae   : > { %v10746_v32 = vpop.f32.mrf.mxu1 }
 0x2b0   : > { %4393 = vmatmul.mubr.bf16.gmra.mxu0 %v7991_v37  ;;  %v10748_v57 = vpop.f32.mrf.mxu1  ;;  %v8015_v37 = vld [vmem:[%s12635_s4 + $0x280] ss:$28 sps:$4 sm:$0xff]  }
 0x2b1   : > { %4402 = vmatprep.mubr.bf16.mxu0 %v7998_v15 }
 0x2b2   : > { %v10750_v28 = vpop.f32.mrf.mxu1 }
 0x2b3   : > { %4262 = vmatmul.mubr.bf16.gmra.mxu1 %v7385_v30 }
 0x2b4   : > { %4483 = vmatprep.mubr.bf16.mxu1 %v8667_v7  ;;  %v10759_v23 = vpop.f32.mrf.mxu1 }
 0x2b6   : > { %v10761_v56 = vpop.f32.mrf.mxu1 }
 0x2b8   : > { %4403 = vmatmul.mubr.bf16.gmra.mxu0 %v7996_v54  ;;  %v10766_v48 = vpop.f32.mrf.mxu1 }
 0x2b9   : > { %4412 = vmatprep.mubr.bf16.mxu0 %v8002_v36 }
 0x2ba   : > { %v10771_v53 = vpop.f32.mrf.mxu1 }
 0x2bb   : > { %7392 = vmatmul.mubr.msk.bf16.vlgmr.msra.gmra.mxu1 %vm3908_vm2, %v7999_v41  ;;  %v8016_v41 = vld [vmem:[%s12635_s4 + $0x2b8] ss:$0 sps:$4 sm:$0xff]  }
 0x2bc   : > { %4493 = vmatprep.mubr.bf16.mxu1 %v8667_v7  ;;  %v10778_v40 = vpop.f32.mrf.mxu1 }
 0x2be   : > { %v10780_v62 = vpop.f32.mrf.mxu1 }
 0x2c0   : > { %4413 = vmatmul.mubr.bf16.gmra.mxu0 %v8000_v22  ;;  %v10785_v34 = vpop.f32.mrf.mxu1 }
 0x2c1   : > { %4422 = vmatprep.mubr.bf16.mxu0 %v7388_v42 }
 0x2c2   : > { %v10787_v39 = vpop.f32.mrf.mxu1 }
 0x2c3   : > { %7393 = vmatmul.mubr.msk.bf16.gmra.mxu1 %vm3908_vm2, %v8003_v44 }
 0x2c4   : > { %4503 = vmatprep.mubr.bf16.mxu1 %v8667_v7  ;;  %v10791_v10 = vpop.f32.mrf.mxu1 }
 0x2c6   : > { %v10793_v25 = vpop.f32.mrf.mxu1 }
 0x2c8   : > { %4423 = vmatmul.mubr.bf16.gmra.mxu0 %v7387_v55  ;;  %v10799_v45 = vpop.f32.mrf.mxu1 }
 0x2c9   : > { %4463 = vmatprep.mubr.bf16.mxu0 %v8667_v7 }
 0x2ca   : > { %v10801_v59 = vpop.f32.mrf.mxu1 }
 0x2cb   : > { %7394 = vmatmul.mubr.msk.bf16.gmra.mxu1 %vm3908_vm2, %v8006_v18 }
 0x2cc   : > { %4513 = vmatprep.mubr.bf16.mxu1 %v8667_v7  ;;  %v10808_v2 = vpop.f32.mrf.mxu1 }
 0x2ce   : > { %v10810_v35 = vpop.f32.mrf.mxu1 }
 0x2d0   : > { %7390 = vmatmul.mubr.msk.bf16.vlgmr.msra.gmra.mxu0 %vm3908_vm2, %v8007_v33  ;;  %v10817_v43 = vpop.f32.mrf.mxu1 }
 0x2d1   : > { %4473 = vmatprep.mubr.bf16.mxu0 %v8667_v7 }
 0x2d2   : > { %v10819_v51 = vpop.f32.mrf.mxu1 }
 0x2d3   : > { %7395 = vmatmul.mubr.msk.bf16.gmra.mxu1 %vm3908_vm2, %v8008_v29 }
 0x2d4   : > { %4523 = vmatprep.mubr.bf16.mxu1 %v8667_v7  ;;  %v10826_v0 = vpop.f32.mrf.mxu1 }
 0x2d6   : > { %v10828_v1 = vpop.f32.mrf.mxu1 }
 0x2d8   : > { %7391 = vmatmul.mubr.msk.bf16.gmra.mxu0 %vm3908_vm2, %v8009_v60  ;;  %v10834_v3 = vpop.f32.mrf.mxu1 }
 0x2da   : > { %v10836_v50 = vpop.f32.mrf.mxu1 }
 0x2db   : > { %7396 = vmatmul.mubr.msk.bf16.gmra.mxu1 %vm3908_vm2, %v8010_v17 }
 0x2dc   : > { %4533 = vmatprep.mubr.bf16.mxu1 %v8667_v7  ;;  %v10840_v5 = vpop.f32.mrf.mxu1 }
 0x2de   : > { %v10842_v8 = vpop.f32.mrf.mxu1 }
 0x2e0   : > { %v10847_v61 = vpop.f32.mrf.mxu1 }
 0x2e2   : > { %v10849_v27 = vpop.f32.mrf.mxu1 }
 0x2e3   : > { %7397 = vmatmul.mubr.msk.bf16.gmra.mxu1 %vm3908_vm2, %v8011_v19 }
 0x2e4   : > { %4543 = vmatprep.mubr.bf16.mxu1 %v8667_v7  ;;  %v10853_v58 = vpop.f32.mrf.mxu1 }
 0x2e6   : > { %v10855_v6 = vpop.f32.mrf.mxu1 }
 0x2e8   : > { %v10860_v52 = vpop.f32.mrf.mxu1 }
 0x2ea   : > { %v10862_v13 = vpop.f32.mrf.mxu1 }
 0x2eb   : > { %7398 = vmatmul.mubr.msk.bf16.gmra.mxu1 %vm3908_vm2, %v8012_v11 }
 0x2ec   : > { %4553 = vmatprep.mubr.bf16.mxu1 %v8667_v7  ;;  %v10866_v4 = vpop.f32.mrf.mxu1 }
 0x2ee   : > { %v10868_v47 = vpop.f32.mrf.mxu1 }
 0x2f0   : > { %v10873_v49 = vpop.f32.mrf.mxu1 }
 0x2f2   : > { %v10875_v26 = vpop.f32.mrf.mxu1 }
 0x2f3   : > { %7399 = vmatmul.mubr.msk.bf16.gmra.mxu1 %vm3908_vm2, %v8013_v16 }
 0x2f4   : > { %4563 = vmatprep.mubr.bf16.mxu1 %v8667_v7  ;;  %v10879_v14 = vpop.f32.mrf.mxu1 }
 0x2f6   : > { %v10881_v20 = vpop.f32.mrf.mxu1 }
 0x2f8   : > { %v10886_v21 = vpop.f32.mrf.mxu1 }
 0x2f9   : > { %12685 = vst [vmem:[#allocation4_spill] sm:$0xff] %v10886_v21 }
 0x2fa   : > { %v10888_v24 = vpop.f32.mrf.mxu1 }
 0x2fb   : > { %12686 = vst [vmem:[#allocation5_spill] sm:$0xff] %v10888_v24  ;;  %7400 = vmatmul.mubr.msk.bf16.gmra.mxu1 %vm3908_vm2, %v8014_v9 }
 0x2fc   : > { %4573 = vmatprep.mubr.bf16.mxu1 %v8667_v7  ;;  %v10892_v63 = vpop.f32.mrf.mxu1 }
 0x2fd   : > { %12687 = vst [vmem:[#allocation6_spill] sm:$0xff] %v10892_v63 }
 0x2fe   : > { %v10894_v12 = vpop.f32.mrf.mxu1 }
 0x2ff   : > { %12688 = vst [vmem:[#allocation7_spill] sm:$0xff] %v10894_v12 }
 0x300   : > { %v10899_v15 = vpop.f32.mrf.mxu1 }
 0x301   : > { %12689 = vst [vmem:[#allocation8_spill] sm:$0xff] %v10899_v15 }
 0x302   : > { %v10901_v30 = vpop.f32.mrf.mxu1 }
 0x303   : > { %12690 = vst [vmem:[#allocation9_spill] sm:$0xff] %v10901_v30  ;;  %7401 = vmatmul.mubr.msk.bf16.gmra.mxu1 %vm3908_vm2, %v8015_v37 }
 0x304   : > { %4583 = vmatprep.mubr.bf16.mxu1 %v8667_v7  ;;  %v10905_v54 = vpop.f32.mrf.mxu1 }
 0x305   : > { %12691 = vst [vmem:[#allocation10_spill] sm:$0xff] %v10905_v54 }
 0x306   : > { %v10907_v36 = vpop.f32.mrf.mxu1 }
 0x307   : > { %12692 = vst [vmem:[#allocation11_spill] sm:$0xff] %v10907_v36 }
 0x308   : > { %v10912_v38 = vpop.f32.mrf.mxu1 }
 0x309   : > { %12693 = vst [vmem:[#allocation12_spill] sm:$0xff] %v10912_v38 }
 0x30a   : > { %v10914_v22 = vpop.f32.mrf.mxu1 }
 0x30b   : > { %12694 = vst [vmem:[#allocation13_spill] sm:$0xff] %v10914_v22  ;;  %7402 = vmatmul.mubr.msk.bf16.gmra.mxu1 %vm3908_vm2, %v8016_v41 }
 0x30c   : > { %v10917_v42 = vpop.f32.mrf.mxu1 }
 0x30d   : > { %12695 = vst [vmem:[#allocation14_spill] sm:$0xff] %v10917_v42 }
 0x30e   : > { %v4106_v44 = vpop.f32.mrf.mxu1 }
 0x310   : > { %v4107_v55 = vpop.f32.mrf.mxu1 }
 0x312   : > { %v4143_v18 = vpop.f32.mrf.mxu1 }
 0x313   : > { %v4144_v37 = vadd.f32 %v4143_v18, %v10736_v46 }
 0x314   : > { %v4145_v7 = vpop.f32.mrf.mxu1 }
 0x315   : > { %v4146_v41 = vadd.f32 %v4145_v7, %v10744_v31 }
 0x316   : > { %v4147_v33 = vpop.f32.mrf.mxu1 }
 0x317   : > { %v4148_v42 = vadd.f32 %v4147_v33, %v10746_v32 }
 0x318   : > { %v4149_v29 = vpop.f32.mrf.mxu1 }
 0x319   : > { %v4150_v12 = vadd.f32 %v4149_v29, %v10748_v57 }
 0x31a   : > { %v4153_v60 = vpop.f32.mrf.mxu1 }
 0x31b   : > { %v4154_v18 = vadd.f32 %v4153_v60, %v10750_v28 }
 0x31c   : > { %v4155_v17 = vpop.f32.mrf.mxu1 }
 0x31d   : > { %v4156_v7 = vadd.f32 %v4155_v17, %v10759_v23 }
 0x31e   : > { %v4157_v19 = vpop.f32.mrf.mxu1 }
 0x320   : > { %v4159_v11 = vpop.f32.mrf.mxu1 }
 0x322   : > { %v4163_v16 = vpop.f32.mrf.mxu1 }
 0x323   : > { %v4164_v60 = vadd.f32 %v4163_v16, %v10771_v53 }
 0x324   : > { %v4165_v9 = vpop.f32.mrf.mxu1 }
 0x326   : > { %v4167_v38 = vpop.f32.mrf.mxu1 }
 0x328   : > { %v4304_v22 = vpop.f32.mrf.mxu0  ;;  %v4169_v44 = vpop.f32.mrf.mxu1 }
 0x329   : > { %v10921_v36 = vadd.f32 %v4304_v22, %v4144_v37 }
 0x32a   : > { %v4306_v55 = vpop.f32.mrf.mxu0 }
 0x32b   : > { %v10924_v54 = vadd.f32 %v4306_v55, %v4146_v41  ;;  %v4173_v30 = vpop.f32.mrf.mxu1  ;;  %v4158_v41 = vadd.f32 %v4157_v19, %v10761_v56 }
 0x32c   : > { %v4308_v15 = vpop.f32.mrf.mxu0 }
 0x32d   : > { %v10927_v63 = vadd.f32 %v4308_v15, %v4148_v42  ;;  %v4175_v24 = vpop.f32.mrf.mxu1  ;;  %v4160_v42 = vadd.f32 %v4159_v11, %v10766_v48 }
 0x32e   : > { %v4310_v46 = vpop.f32.mrf.mxu0 }
 0x32f   : > { %v10930_v21 = vadd.f32 %v4310_v46, %v4150_v12  ;;  %v4177_v31 = vpop.f32.mrf.mxu1 }
 0x330   : > { %v4314_v22 = vpop.f32.mrf.mxu0 }
 0x331   : > { %v10933_v37 = vadd.f32 %v4314_v22, %v4154_v18  ;;  %v4179_v32 = vpop.f32.mrf.mxu1  ;;  %v4166_v18 = vadd.f32 %v4165_v9, %v10778_v40 }
 0x332   : > { %v4316_v33 = vpop.f32.mrf.mxu0 }
 0x333   : > { %v10936_v55 = vadd.f32 %v4316_v33, %v4156_v7  ;;  %v4183_v57 = vpop.f32.mrf.mxu1  ;;  %v4168_v7 = vadd.f32 %v4167_v38, %v10780_v62 }
 0x334   : > { %v4318_v15 = vpop.f32.mrf.mxu0 }
 0x335   : > { %v10939_v29 = vadd.f32 %v4318_v15, %v4158_v41  ;;  %v4185_v28 = vpop.f32.mrf.mxu1  ;;  %v4170_v41 = vadd.f32 %v4169_v44, %v10785_v34 }
 0x336   : > { %v4320_v12 = vpop.f32.mrf.mxu0 }
 0x337   : > { %v10942_v46 = vadd.f32 %v4320_v12, %v4160_v42  ;;  %v4187_v23 = vpop.f32.mrf.mxu1  ;;  %v4174_v42 = vadd.f32 %v4173_v30, %v10787_v39 }
 0x338   : > { %v4324_v17 = vpop.f32.mrf.mxu0 }
 0x339   : > { %v10945_v22 = vadd.f32 %v4324_v17, %v4164_v60  ;;  %v4189_v56 = vpop.f32.mrf.mxu1  ;;  %v4176_v60 = vadd.f32 %v4175_v24, %v10791_v10 }
 0x33a   : > { %v4326_v19 = vpop.f32.mrf.mxu0 }
 0x33b   : > { %v10948_v33 = vadd.f32 %v4326_v19, %v4166_v18  ;;  %v4193_v48 = vpop.f32.mrf.mxu1  ;;  %v4178_v18 = vadd.f32 %v4177_v31, %v10793_v25 }
 0x33c   : > { %v4328_v11 = vpop.f32.mrf.mxu0 }
 0x33d   : > { %v10951_v15 = vadd.f32 %v4328_v11, %v4168_v7  ;;  %v4195_v53 = vpop.f32.mrf.mxu1  ;;  %v4180_v7 = vadd.f32 %v4179_v32, %v10799_v45 }
 0x33e   : > { %v4330_v16 = vpop.f32.mrf.mxu0 }
 0x33f   : > { %v10954_v12 = vadd.f32 %v4330_v16, %v4170_v41  ;;  %v4197_v40 = vpop.f32.mrf.mxu1  ;;  %v4184_v41 = vadd.f32 %v4183_v57, %v10801_v59 }
 0x340   : > { %v4334_v9 = vpop.f32.mrf.mxu0 }
 0x341   : > { %v10957_v17 = vadd.f32 %v4334_v9, %v4174_v42  ;;  %v4199_v62 = vpop.f32.mrf.mxu1  ;;  %v4186_v42 = vadd.f32 %v4185_v28, %v10808_v2 }
 0x342   : > { %v4336_v38 = vpop.f32.mrf.mxu0 }
 0x343   : > { %v10960_v19 = vadd.f32 %v4336_v38, %v4176_v60  ;;  %v4203_v34 = vpop.f32.mrf.mxu1  ;;  %v4188_v60 = vadd.f32 %v4187_v23, %v10810_v35 }
 0x344   : > { %v4338_v44 = vpop.f32.mrf.mxu0 }
 0x345   : > { %v10963_v11 = vadd.f32 %v4338_v44, %v4178_v18  ;;  %v4205_v39 = vpop.f32.mrf.mxu1  ;;  %v4190_v18 = vadd.f32 %v4189_v56, %v10817_v43 }
 0x346   : > { %v4340_v30 = vpop.f32.mrf.mxu0 }
 0x347   : > { %v10966_v16 = vadd.f32 %v4340_v30, %v4180_v7  ;;  %v4207_v10 = vpop.f32.mrf.mxu1  ;;  %v4194_v7 = vadd.f32 %v4193_v48, %v10819_v51 }
 0x348   : > { %v4344_v24 = vpop.f32.mrf.mxu0 }
 0x349   : > { %v10969_v9 = vadd.f32 %v4344_v24, %v4184_v41  ;;  %v4209_v25 = vpop.f32.mrf.mxu1  ;;  %v4196_v41 = vadd.f32 %v4195_v53, %v10826_v0 }
 0x34a   : > { %v4346_v31 = vpop.f32.mrf.mxu0 }
 0x34b   : > { %v10972_v38 = vadd.f32 %v4346_v31, %v4186_v42  ;;  %v4213_v45 = vpop.f32.mrf.mxu1  ;;  %v4198_v42 = vadd.f32 %v4197_v40, %v10828_v1 }
 0x34c   : > { %v4348_v32 = vpop.f32.mrf.mxu0 }
 0x34d   : > { %v10975_v44 = vadd.f32 %v4348_v32, %v4188_v60  ;;  %v4215_v59 = vpop.f32.mrf.mxu1  ;;  %v4200_v60 = vadd.f32 %v4199_v62, %v10834_v3 }
 0x34e   : > { %v4350_v57 = vpop.f32.mrf.mxu0 }
 0x34f   : > { %v10978_v30 = vadd.f32 %v4350_v57, %v4190_v18  ;;  %v4217_v2 = vpop.f32.mrf.mxu1  ;;  %v4204_v18 = vadd.f32 %v4203_v34, %v10836_v50 }
 0x350   : > { %v4354_v28 = vpop.f32.mrf.mxu0 }
 0x351   : > { %v10981_v24 = vadd.f32 %v4354_v28, %v4194_v7  ;;  %v4219_v35 = vpop.f32.mrf.mxu1  ;;  %v4206_v7 = vadd.f32 %v4205_v39, %v10840_v5 }
 0x352   : > { %v4356_v23 = vpop.f32.mrf.mxu0 }
 0x353   : > { %v10984_v31 = vadd.f32 %v4356_v23, %v4196_v41  ;;  %v4223_v43 = vpop.f32.mrf.mxu1  ;;  %v4208_v41 = vadd.f32 %v4207_v10, %v10842_v8 }
 0x354   : > { %v4358_v56 = vpop.f32.mrf.mxu0 }
 0x355   : > { %v10987_v32 = vadd.f32 %v4358_v56, %v4198_v42  ;;  %v4225_v51 = vpop.f32.mrf.mxu1  ;;  %v4210_v42 = vadd.f32 %v4209_v25, %v10847_v61 }
 0x356   : > { %v4360_v48 = vpop.f32.mrf.mxu0 }
 0x357   : > { %v10990_v57 = vadd.f32 %v4360_v48, %v4200_v60  ;;  %v4227_v0 = vpop.f32.mrf.mxu1  ;;  %v4214_v60 = vadd.f32 %v4213_v45, %v10849_v27 }
 0x358   : > { %v4364_v53 = vpop.f32.mrf.mxu0 }
 0x359   : > { %v10993_v28 = vadd.f32 %v4364_v53, %v4204_v18  ;;  %v4229_v1 = vpop.f32.mrf.mxu1  ;;  %v4216_v18 = vadd.f32 %v4215_v59, %v10853_v58 }
 0x35a   : > { %v4366_v40 = vpop.f32.mrf.mxu0 }
 0x35b   : > { %v10996_v23 = vadd.f32 %v4366_v40, %v4206_v7  ;;  %v4233_v3 = vpop.f32.mrf.mxu1  ;;  %v4218_v7 = vadd.f32 %v4217_v2, %v10855_v6 }
 0x35c   : > { %v4368_v62 = vpop.f32.mrf.mxu0 }
 0x35d   : > { %v10999_v56 = vadd.f32 %v4368_v62, %v4208_v41  ;;  %v4235_v50 = vpop.f32.mrf.mxu1  ;;  %v4220_v41 = vadd.f32 %v4219_v35, %v10860_v52 }
 0x35e   : > { %v4370_v34 = vpop.f32.mrf.mxu0 }
 0x35f   : > { %v11002_v48 = vadd.f32 %v4370_v34, %v4210_v42  ;;  %v4237_v5 = vpop.f32.mrf.mxu1  ;;  %v4224_v42 = vadd.f32 %v4223_v43, %v10862_v13 }
 0x360   : > { %v4374_v39 = vpop.f32.mrf.mxu0 }
 0x361   : > { %v11005_v53 = vadd.f32 %v4374_v39, %v4214_v60  ;;  %v4239_v8 = vpop.f32.mrf.mxu1  ;;  %v4226_v60 = vadd.f32 %v4225_v51, %v10866_v4 }
 0x362   : > { %v4376_v10 = vpop.f32.mrf.mxu0 }
 0x363   : > { %v11008_v40 = vadd.f32 %v4376_v10, %v4216_v18  ;;  %v4243_v61 = vpop.f32.mrf.mxu1  ;;  %v4228_v18 = vadd.f32 %v4227_v0, %v10868_v47 }
 0x364   : > { %v4378_v25 = vpop.f32.mrf.mxu0 }
 0x365   : > { %v11011_v62 = vadd.f32 %v4378_v25, %v4218_v7  ;;  %v4245_v27 = vpop.f32.mrf.mxu1  ;;  %v4230_v7 = vadd.f32 %v4229_v1, %v10873_v49 }
 0x366   : > { %v4380_v45 = vpop.f32.mrf.mxu0 }
 0x367   : > { %v11014_v34 = vadd.f32 %v4380_v45, %v4220_v41  ;;  %v4247_v58 = vpop.f32.mrf.mxu1  ;;  %v4234_v41 = vadd.f32 %v4233_v3, %v10875_v26 }
 0x368   : > { %v4384_v59 = vpop.f32.mrf.mxu0 }
 0x369   : > { %v11017_v39 = vadd.f32 %v4384_v59, %v4224_v42  ;;  %v4249_v6 = vpop.f32.mrf.mxu1  ;;  %v4236_v42 = vadd.f32 %v4235_v50, %v10879_v14 }
 0x36a   : > { %v4386_v2 = vpop.f32.mrf.mxu0 }
 0x36b   : > { %v11020_v10 = vadd.f32 %v4386_v2, %v4226_v60  ;;  %v4253_v52 = vpop.f32.mrf.mxu1  ;;  %v4238_v60 = vadd.f32 %v4237_v5, %v10881_v20 }
 0x36c   : > { %v4388_v35 = vpop.f32.mrf.mxu0 }
 0x36d   : > { %v11023_v25 = vadd.f32 %v4388_v35, %v4228_v18  ;;  %v4255_v13 = vpop.f32.mrf.mxu1  ;;  %v12700_v18 = vld [vmem:[#allocation4_spill] sm:$0xff] }
 0x36e   : > { %v4390_v43 = vpop.f32.mrf.mxu0  ;;  %v4240_v35 = vadd.f32 %v4239_v8, %v12700_v18 }
 0x36f   : > { %12696 = vst [vmem:[#allocation15_spill] sm:$0xff] %v11023_v25  ;;  %v11026_v45 = vadd.f32 %v4390_v43, %v4230_v7  ;;  %v4257_v4 = vpop.f32.mrf.mxu1  ;;  %v12702_v7 = vld [vmem:[#allocation5_spill] sm:$0xff] }
 0x370   : > { %v4394_v51 = vpop.f32.mrf.mxu0  ;;  %v4244_v43 = vadd.f32 %v4243_v61, %v12702_v7 }
 0x371   : > { %12697 = vst [vmem:[#allocation16_spill] sm:$0xff] %v11026_v45  ;;  %v11029_v59 = vadd.f32 %v4394_v51, %v4234_v41  ;;  %v4259_v47 = vpop.f32.mrf.mxu1  ;;  %v12703_v41 = vld [vmem:[#allocation6_spill] sm:$0xff] }
 0x372   : > { %v4396_v0 = vpop.f32.mrf.mxu0  ;;  %v4246_v51 = vadd.f32 %v4245_v27, %v12703_v41  ;;  %v12707_v41 = vld [vmem:[#allocation10_spill] sm:$0xff] }
 0x373   : > { %12698 = vst [vmem:[#allocation17_spill] sm:$0xff] %v11029_v59  ;;  %v11032_v2 = vadd.f32 %v4396_v0, %v4236_v42  ;;  %v4263_v49 = vpop.f32.mrf.mxu1  ;;  %v12704_v42 = vld [vmem:[#allocation7_spill] sm:$0xff] }
 0x374   : > { %v4398_v1 = vpop.f32.mrf.mxu0  ;;  %v4248_v0 = vadd.f32 %v4247_v58, %v12704_v42 }
 0x375   : > { %12699 = vst [vmem:[#allocation18_spill] sm:$0xff] %v11032_v2  ;;  %v11035_v25 = vadd.f32 %v4398_v1, %v4238_v60  ;;  %v4265_v26 = vpop.f32.mrf.mxu1  ;;  %v12705_v1 = vld [vmem:[#allocation8_spill] sm:$0xff] }
 0x376   : > { %v4400_v3 = vpop.f32.mrf.mxu0  ;;  %v4250_v18 = vadd.f32 %v4249_v6, %v12705_v1 }
 0x377   : > { %12701 = vst [vmem:[#allocation4_spill] sm:$0xff] %v11035_v25  ;;  %v11038_v45 = vadd.f32 %v4400_v3, %v4240_v35  ;;  %v4267_v14 = vpop.f32.mrf.mxu1  ;;  %v12706_v3 = vld [vmem:[#allocation9_spill] sm:$0xff] }
 0x378   : > { %v4404_v50 = vpop.f32.mrf.mxu0  ;;  %v4254_v7 = vadd.f32 %v4253_v52, %v12706_v3 }
 0x379   : > { %v11041_v59 = vadd.f32 %v4404_v50, %v4244_v43  ;;  %v4268_v20 = vpop.f32.mrf.mxu1 }
 0x37a   : > { %v4406_v5 = vpop.f32.mrf.mxu0 }
 0x37b   : > { %v11044_v2 = vadd.f32 %v4406_v5, %v4246_v51  ;;  %v4485_v60 = vpop.f32.mrf.mxu1  ;;  %v4256_v51 = vadd.f32 %v4255_v13, %v12707_v41  ;;  %v12710_v41 = vld [vmem:[#allocation13_spill] sm:$0xff] }
 0x37c   : > { %v4408_v8 = vpop.f32.mrf.mxu0  ;;  %v11056_v58 = vadd.f32 %v4485_v60, %v10945_v22 }
 0x37d   : > { %v11047_v25 = vadd.f32 %v4408_v8, %v4248_v0  ;;  %v4487_v35 = vpop.f32.mrf.mxu1  ;;  %v12708_v0 = vld [vmem:[#allocation11_spill] sm:$0xff] }
 0x37e   : > { %v4410_v61 = vpop.f32.mrf.mxu0  ;;  %v11053_v43 = vadd.f32 %v4487_v35, %v10948_v33  ;;  %v4258_v8 = vadd.f32 %v4257_v4, %v12708_v0 }
 0x37f   : > { %v11050_v27 = vadd.f32 %v4410_v61, %v4250_v18  ;;  %v4489_v50 = vpop.f32.mrf.mxu1  ;;  %v12709_v18 = vld [vmem:[#allocation12_spill] sm:$0xff] }
 0x380   : > { %v4414_v14 = vpop.f32.mrf.mxu0  ;;  %v4609_v6 = vsel %vm4592_vm3, %v11053_v43, 0.0  ;;  %v11071_v60 = vadd.f32 %v4489_v50, %v10951_v15  ;;  %v4260_v61 = vadd.f32 %v4259_v47, %v12709_v18 }
 0x381   : > { %v11061_v20 = vadd.f32 %v4414_v14, %v4254_v7  ;;  %v4610_v5 = vadd.f32 %v4609_v6, %v11056_v58  ;;  %v4491_v42 = vpop.f32.mrf.mxu1 }
 0x382   : > { %v4416_v52 = vpop.f32.mrf.mxu0  ;;  %v11068_v22 = vadd.f32 %v4491_v42, %v10954_v12  ;;  %v4264_v12 = vadd.f32 %v4263_v49, %v12710_v41 }
 0x383   : > { %v11065_v33 = vadd.f32 %v4416_v52, %v4256_v51  ;;  %v4495_v1 = vpop.f32.mrf.mxu1  ;;  %4611 = vadd.xlane.f32.xlu1 %v4610_v5  ;;  %v12711_v5 = vld [vmem:[#allocation14_spill] sm:$0xff] }
 0x384   : > { %v4418_v13 = vpop.f32.mrf.mxu0  ;;  %v4613_v35 = vsel %vm4592_vm3, %v11068_v22, 0.0  ;;  %v11086_v50 = vadd.f32 %v4495_v1, %v10957_v17  ;;  %v4266_v52 = vadd.f32 %v4265_v26, %v12711_v5 }
 0x385   : > { %v11076_v3 = vadd.f32 %v4418_v13, %v4258_v8  ;;  %v4614_v4 = vadd.f32 %v4613_v35, %v11071_v60  ;;  %v4497_v14 = vpop.f32.mrf.mxu1 }
 0x386   : > { %v4420_v7 = vpop.f32.mrf.mxu0  ;;  %v11083_v15 = vadd.f32 %v4497_v14, %v10960_v19 }
 0x387   : > { %v11080_v51 = vadd.f32 %v4420_v7, %v4260_v61  ;;  %v4499_v6 = vpop.f32.mrf.mxu1  ;;  %4615 = vadd.xlane.f32.xlu0 %v4614_v4 }
 0x388   : > { %v4424_v47 = vpop.f32.mrf.mxu0  ;;  %v4617_v42 = vsel %vm4592_vm3, %v11083_v15, 0.0  ;;  %v11100_v17 = vadd.f32 %v4499_v6, %v10963_v11 }
 0x389   : > { %v11091_v0 = vadd.f32 %v4424_v47, %v4264_v12  ;;  %v4618_v49 = vadd.f32 %v4617_v42, %v11086_v50  ;;  %v4501_v13 = vpop.f32.mrf.mxu1 }
 0x38a   : > { %v4426_v8 = vpop.f32.mrf.mxu0  ;;  %v11097_v19 = vadd.f32 %v4501_v13, %v10966_v16 }
 0x38b   : > { %v11094_v18 = vadd.f32 %v4426_v8, %v4266_v52  ;;  %v4505_v61 = vpop.f32.mrf.mxu1  ;;  %4619 = vadd.xlane.f32.xlu1 %v4618_v49 }
 0x38c   : > { %v4428_v1 = vpop.f32.mrf.mxu0  ;;  %v4621_v26 = vsel %vm4592_vm3, %v11097_v19, 0.0  ;;  %v11109_v41 = vadd.f32 %v4505_v61, %v10969_v9 }
 0x38d   : > { %v4622_v35 = vadd.f32 %v4621_v26, %v11100_v17  ;;  %v4507_v7 = vpop.f32.mrf.mxu1 }
 0x38e   : > { %v4429_v4 = vpop.f32.mrf.mxu0  ;;  %v11106_v14 = vadd.f32 %v4507_v7, %v10972_v38 }
 0x38f   : > { %v4509_v16 = vpop.f32.mrf.mxu1  ;;  %4623 = vadd.xlane.f32.xlu0 %v4622_v35 }
 0x390   : > { %v4465_v11 = vpop.f32.mrf.mxu0  ;;  %v4625_v12 = vsel %vm4592_vm3, %v11106_v14, 0.0  ;;  %v11121_v38 = vadd.f32 %v4509_v16, %v10975_v44 }
 0x391   : > { %v4626_v47 = vadd.f32 %v4625_v12, %v11109_v41  ;;  %v4511_v5 = vpop.f32.mrf.mxu1  ;;  %v11135_v44 = vadd.f32 %v4465_v11, %v10921_v36 }
 0x392   : > { %v4467_v6 = vpop.f32.mrf.mxu0  ;;  %v11118_v42 = vadd.f32 %v4511_v5, %v10978_v30 }
 0x393   : > { %v11115_v52 = vadd.f32 %v4467_v6, %v10924_v54  ;;  %v4515_v9 = vpop.f32.mrf.mxu1  ;;  %4627 = vadd.xlane.f32.xlu1 %v4626_v47 }
 0x394   : > { %v4469_v49 = vpop.f32.mrf.mxu0  ;;  %v4629_v8 = vsel %vm4592_vm3, %v11118_v42, 0.0  ;;  %v11138_v35 = vadd.f32 %v4515_v9, %v10981_v24 }
 0x395   : > { %v4630_v13 = vadd.f32 %v4629_v8, %v11121_v38  ;;  %v4517_v61 = vpop.f32.mrf.mxu1  ;;  %v4593_v54 = vsel %vm4592_vm3, %v11115_v52, 0.0  ;;  %v11153_v11 = vadd.f32 %v4469_v49, %v10927_v63 }
 0x396   : > { %v4471_v1 = vpop.f32.mrf.mxu0  ;;  %v11132_v30 = vadd.f32 %v4517_v61, %v10984_v31  ;;  %v4594_v12 = vadd.f32 %v4593_v54, %v11135_v44 }
 0x397   : > { %v11129_v26 = vadd.f32 %v4471_v1, %v10930_v21  ;;  %v4519_v4 = vpop.f32.mrf.mxu1  ;;  %4631 = vadd.xlane.f32.xlu0 %v4630_v13 }
 0x398   : > { %v4475_v7 = vpop.f32.mrf.mxu0  ;;  %v4633_v16 = vsel %vm4592_vm3, %v11132_v30, 0.0  ;;  %v11156_v5 = vadd.f32 %v4519_v4, %v10987_v32 }
 0x399   : > { %v4634_v21 = vadd.f32 %v4633_v16, %v11138_v35  ;;  %v4521_v6 = vpop.f32.mrf.mxu1  ;;  %v4597_v31 = vsel %vm4592_vm3, %v11129_v26, 0.0  ;;  %v11171_v54 = vadd.f32 %v4475_v7, %v10933_v37 }
 0x39a   : > { %v4477_v47 = vpop.f32.mrf.mxu0  ;;  %v11150_v24 = vadd.f32 %v4521_v6, %v10990_v57  ;;  %v4598_v1 = vadd.f32 %v4597_v31, %v11153_v11 }
 0x39b   : > { %v11147_v36 = vadd.f32 %v4477_v47, %v10936_v55  ;;  %v4525_v9 = vpop.f32.mrf.mxu1  ;;  %4635 = vadd.xlane.f32.xlu1 %v4634_v21  ;;  %4595 = vadd.xlane.f32.xlu0 %v4594_v12 }
 0x39c   : > { %v4479_v8 = vpop.f32.mrf.mxu0  ;;  %v4637_v13 = vsel %vm4592_vm3, %v11150_v24, 0.0  ;;  %v11174_v4 = vadd.f32 %v4525_v9, %v10993_v28 }
 0x39d   : > { %v4638_v55 = vadd.f32 %v4637_v13, %v11156_v5  ;;  %v4527_v57 = vpop.f32.mrf.mxu1  ;;  %v4601_v63 = vsel %vm4592_vm3, %v11147_v36, 0.0  ;;  %v11186_v28 = vadd.f32 %v4479_v8, %v10939_v29 }
 0x39e   : > { %v4481_v61 = vpop.f32.mrf.mxu0  ;;  %v11168_v32 = vadd.f32 %v4527_v57, %v10996_v23  ;;  %v4602_v21 = vadd.f32 %v4601_v63, %v11171_v54 }
 0x39f   : > { %v11165_v49 = vadd.f32 %v4481_v61, %v10942_v46  ;;  %v4529_v16 = vpop.f32.mrf.mxu1  ;;  %4599 = vadd.xlane.f32.xlu1 %v4598_v1  ;;  %4639 = vadd.xlane.f32.xlu0 %v4638_v55 }
 0x3a0   : > { %v4641_v12 = vsel %vm4592_vm3, %v11168_v32, 0.0  ;;  %v11195_v1 = vadd.f32 %v4529_v16, %v10999_v56 }
 0x3a1   : > { %v4642_v46 = vadd.f32 %v4641_v12, %v11174_v4  ;;  %v4531_v47 = vpop.f32.mrf.mxu1  ;;  %v4605_v23 = vsel %vm4592_vm3, %v11165_v49, 0.0 }
 0x3a2   : > { %v11183_v37 = vadd.f32 %v4531_v47, %v11002_v48  ;;  %v4606_v6 = vadd.f32 %v4605_v23, %v11186_v28 }
 0x3a3   : > { %v4535_v7 = vpop.f32.mrf.mxu1  ;;  %4643 = vadd.xlane.f32.xlu1 %v4642_v46  ;;  %4603 = vadd.xlane.f32.xlu0 %v4602_v21 }
 0x3a4   : > { %v4645_v9 = vsel %vm4592_vm3, %v11183_v37, 0.0  ;;  %v11198_v48 = vadd.f32 %v4535_v7, %v11005_v53  ;;  %v12712_v7 = vld [vmem:[#allocation16_spill] sm:$0xff] }
 0x3a5   : > { %v4537_v31 = vpop.f32.mrf.mxu1  ;;  %v4646_v55 = vadd.f32 %v4645_v9, %v11195_v1 }
 0x3a6   : > { %v11192_v13 = vadd.f32 %v4537_v31, %v11008_v40  ;;  %v12713_v31 = vld [vmem:[#allocation15_spill] sm:$0xff] }
 0x3a7   : > { %v4539_v29 = vpop.f32.mrf.mxu1  ;;  %4607 = vadd.xlane.f32.xlu0 %v4606_v6 }
 0x3a8   : > { %v4649_v8 = vsel %vm4592_vm3, %v11192_v13, 0.0  ;;  %v11208_v40 = vadd.f32 %v4539_v29, %v11011_v62 }
 0x3a9   : > { %v4650_v61 = vadd.f32 %v4649_v8, %v11198_v48  ;;  %v4541_v57 = vpop.f32.mrf.mxu1 }
 0x3aa   : > { %v11205_v63 = vadd.f32 %v4541_v57, %v11014_v34  ;;  %v12715_v57 = vld [vmem:[#allocation17_spill] sm:$0xff] }
 0x3ab   : > { %v4545_v56 = vpop.f32.mrf.mxu1  ;;  %4651 = vadd.xlane.f32.xlu1 %v4650_v61  ;;  %4647 = vadd.xlane.f32.xlu0 %v4646_v55  ;;  %v12714_v55 = vld [vmem:[#allocation18_spill] sm:$0xff] }
 0x3ac   : > { %v4653_v53 = vsel %vm4592_vm3, %v11205_v63, 0.0  ;;  %v11217_v46 = vadd.f32 %v4545_v56, %v11017_v39 }
 0x3ad   : > { %v4654_v16 = vadd.f32 %v4653_v53, %v11208_v40  ;;  %v4547_v12 = vpop.f32.mrf.mxu1 }
 0x3ae   : > { %v11214_v21 = vadd.f32 %v4547_v12, %v11020_v10 }
 0x3af   : > { %v4549_v34 = vpop.f32.mrf.mxu1  ;;  %4655 = vadd.xlane.f32.xlu0 %v4654_v16 }
 0x3b0   : > { %v4657_v62 = vsel %vm4592_vm3, %v11214_v21, 0.0  ;;  %v11226_v9 = vadd.f32 %v4549_v34, %v12713_v31 }
 0x3b1   : > { %v4658_v47 = vadd.f32 %v4657_v62, %v11217_v46  ;;  %v4551_v23 = vpop.f32.mrf.mxu1 }
 0x3b2   : > { %v11223_v6 = vadd.f32 %v4551_v23, %v12712_v7 }
 0x3b3   : > { %v4555_v29 = vpop.f32.mrf.mxu1  ;;  %4659 = vadd.xlane.f32.xlu1 %v4658_v47  ;;  %v12716_v47 = vld [vmem:[#allocation4_spill] sm:$0xff] }
 0x3b4   : > { %v4661_v39 = vsel %vm4592_vm3, %v11223_v6, 0.0  ;;  %v11235_v56 = vadd.f32 %v4555_v29, %v12715_v57 }
 0x3b5   : > { %v4662_v10 = vadd.f32 %v4661_v39, %v11226_v9  ;;  %v4557_v8 = vpop.f32.mrf.mxu1 }
 0x3b6   : > { %v11232_v61 = vadd.f32 %v4557_v8, %v12714_v55 }
 0x3b7   : > { %v4559_v53 = vpop.f32.mrf.mxu1  ;;  %4663 = vadd.xlane.f32.xlu0 %v4662_v10 }
 0x3b8   : > { %v4665_v16 = vsel %vm4592_vm3, %v11232_v61, 0.0  ;;  %v11244_v23 = vadd.f32 %v4559_v53, %v12716_v47 }
 0x3b9   : > { %v4666_v12 = vadd.f32 %v4665_v16, %v11235_v56  ;;  %v4561_v34 = vpop.f32.mrf.mxu1 }
 0x3ba   : > { %v11241_v62 = vadd.f32 %v4561_v34, %v11038_v45 }
 0x3bb   : > { %v4565_v7 = vpop.f32.mrf.mxu1  ;;  %4667 = vadd.xlane.f32.xlu1 %v4666_v12 }
 0x3bc   : > { %v4669_v31 = vsel %vm4592_vm3, %v11241_v62, 0.0  ;;  %v11253_v8 = vadd.f32 %v4565_v7, %v11041_v59 }
 0x3bd   : > { %v4670_v29 = vadd.f32 %v4669_v31, %v11244_v23  ;;  %v4567_v39 = vpop.f32.mrf.mxu1 }
 0x3be   : > { %v11250_v10 = vadd.f32 %v4567_v39, %v11044_v2 }
 0x3bf   : > { %v4569_v55 = vpop.f32.mrf.mxu1  ;;  %4671 = vadd.xlane.f32.xlu0 %v4670_v29 }
 0x3c0   : > { %v4673_v45 = vsel %vm4592_vm3, %v11250_v10, 0.0  ;;  %v11262_v12 = vadd.f32 %v4569_v55, %v11047_v25 }
 0x3c1   : > { %v4674_v57 = vadd.f32 %v4673_v45, %v11253_v8  ;;  %v4571_v53 = vpop.f32.mrf.mxu1 }
 0x3c2   : > { %v11259_v16 = vadd.f32 %v4571_v53, %v11050_v27 }
 0x3c3   : > { %v4575_v34 = vpop.f32.mrf.mxu1  ;;  %4675 = vadd.xlane.f32.xlu1 %v4674_v57 }
 0x3c4   : > { %v4677_v59 = vsel %vm4592_vm3, %v11259_v16, 0.0  ;;  %v11271_v31 = vadd.f32 %v4575_v34, %v11061_v20 }
 0x3c5   : > { %v4678_v2 = vadd.f32 %v4677_v59, %v11262_v12  ;;  %v4577_v47 = vpop.f32.mrf.mxu1 }
 0x3c6   : > { %v11268_v7 = vadd.f32 %v4577_v47, %v11065_v33 }
 0x3c7   : > { %v4579_v29 = vpop.f32.mrf.mxu1  ;;  %4679 = vadd.xlane.f32.xlu0 %v4678_v2 }
 0x3c8   : > { %v4681_v25 = vsel %vm4592_vm3, %v11268_v7, 0.0  ;;  %v11280_v45 = vadd.f32 %v4579_v29, %v11076_v3  ;;  %v5232_v29 = vld [vmem:[%s12637_s6 + $0x70] sm:$0xff] }
 0x3c9   : > { %v4682_v27 = vadd.f32 %v4681_v25, %v11271_v31  ;;  %v4581_v39 = vpop.f32.mrf.mxu1  ;;  %v11300_v25 = vpop.permute.xlu1 %5245 }
 0x3ca   : > { %v11277_v55 = vadd.f32 %v4581_v39, %v11080_v51  ;;  %12717 = vst [vmem:[#allocation5_spill] sm:$0xff] %v11300_v25 }
 0x3cb   : > { %v4585_v57 = vpop.f32.mrf.mxu1  ;;  %4683 = vadd.xlane.f32.xlu1 %v4682_v27  ;;  %v11304_v27 = vpop.permute.xlu0 %5250 }
 0x3cc   : > { %v4685_v20 = vsel %vm4592_vm3, %v11277_v55, 0.0  ;;  %v11289_v59 = vadd.f32 %v4585_v57, %v11091_v0  ;;  %12719 = vst [vmem:[#allocation7_spill] sm:$0xff] %v11304_v27 }
 0x3cd   : > { %v4686_v33 = vadd.f32 %v4685_v20, %v11280_v45  ;;  %v4587_v53 = vpop.f32.mrf.mxu1  ;;  %v11302_v0 = vpop.permute.xlu1 %5255 }
 0x3ce   : > { %v11286_v34 = vadd.f32 %v4587_v53, %v11094_v18  ;;  %v5231_v18 = vld [vmem:[%s12637_s6 + $0x68] sm:$0xff]  ;;  %12718 = vst [vmem:[#allocation6_spill] sm:$0xff] %v11302_v0 }
 0x3cf   : > { %4687 = vadd.xlane.f32.xlu0 %v4686_v33  ;;  %v4589_v51 = vpop.f32.mrf.mxu1  ;;  %v11308_v57 = vpop.permute.xlu0 %5260 }
 0x3d0   : > { %v4689_v3 = vsel %vm4592_vm3, %v11286_v34, 0.0  ;;  %12720 = vst [vmem:[#allocation8_spill] sm:$0xff] %v11308_v57 }
 0x3d1   : > { %v4690_v2 = vadd.f32 %v4689_v3, %v11289_v59  ;;  %v4590_v47 = vpop.f32.mrf.mxu1  ;;  %v11306_v39 = vpop.permute.xlu1 %5265 }
 0x3d3   : > { %4691 = vadd.xlane.f32.xlu1 %v4690_v2  ;;  %v11312_v33 = vpop.permute.xlu0 %5270 }
 0x3d4   : > { %12722 = vst [vmem:[#allocation10_spill] sm:$0xff] %v11312_v33 }
 0x3d5   : > { %v11310_v20 = vpop.permute.xlu1 %5275 }
 0x3d6   : > { %12721 = vst [vmem:[#allocation9_spill] sm:$0xff] %v11310_v20 }
 0x3d7   : > { %v11316_v51 = vpop.permute.xlu0 %5280 }
 0x3d8   : > { %12724 = vst [vmem:[#allocation12_spill] sm:$0xff] %v11316_v51 }
 0x3d9   : > { %v11314_v53 = vpop.permute.xlu1 %5285 }
 0x3da   : > { %12723 = vst [vmem:[#allocation11_spill] sm:$0xff] %v11314_v53 }
 0x3db   : > { %v11320_v2 = vpop.permute.xlu0 %5290 }
 0x3dc   : > { %12726 = vst [vmem:[#allocation14_spill] sm:$0xff] %v11320_v2 }
 0x3dd   : > { %v11318_v3 = vpop.permute.xlu1 %5295 }
 0x3de   : > { %12725 = vst [vmem:[#allocation13_spill] sm:$0xff] %v11318_v3 }
 0x3e1   : > { %v11322_v47 = vpop.permute.xlu1 %5305 }
 0x3e2   : > { %12727 = vst [vmem:[#allocation16_spill] sm:$0xff] %v11322_v47 }
 0x3e4   : > { %5315 = vperm.xlu1 %7889, %v5232_v29   ;;  %v11324_v29 = vpop.permute.xlu0 %5300 }
 0x3e5   : > { %5310 = vperm.xlu0 %7888, %v5231_v18   ;;  %12728 = vst [vmem:[#allocation15_spill] sm:$0xff] %v11324_v29 }
 0x40c   : > { %v4612_v18 = vpop.xlane.xlu1 %4611 }
 0x40d   : > { %v4697_v0 = vmul.f32 0.0051020407, %v4612_v18 }
 0x40f   : > { %v11327_v57 = vsub.f32 %v11056_v58, %v4697_v0  ;;  %v11330_v27 = vsub.f32 %v11053_v43, %v4697_v0 }
 0x410   : > { %v4616_v25 = vpop.xlane.xlu0 %4615 }
 0x411   : > { %v4776_v53 = vmul.f32 %v11327_v57, %v11327_v57  ;;  %v4777_v3 = vmul.f32 %v11330_v27, %v11330_v27  ;;  %v4698_v2 = vmul.f32 0.0051020407, %v4616_v25 }
 0x413   : > { %v11337_v47 = vsub.f32 %v11071_v60, %v4698_v2  ;;  %v11340_v29 = vsub.f32 %v11068_v22, %v4698_v2  ;;  %v4834_v58 = vsel %vm4592_vm3, %v4777_v3, 0.0 }
 0x414   : > { %v4620_v18 = vpop.xlane.xlu1 %4619  ;;  %v4835_v51 = vadd.f32 %v4834_v58, %v4776_v53 }
 0x415   : > { %v4778_v43 = vmul.f32 %v11337_v47, %v11337_v47  ;;  %v4779_v0 = vmul.f32 %v11340_v29, %v11340_v29  ;;  %v4699_v20 = vmul.f32 0.0051020407, %v4620_v18 }
 0x416   : > { %4836 = vadd.xlane.f32.xlu0 %v4835_v51 }
 0x417   : > { %v11348_v25 = vsub.f32 %v11086_v50, %v4699_v20  ;;  %v11351_v60 = vsub.f32 %v11083_v15, %v4699_v20  ;;  %v4838_v22 = vsel %vm4592_vm3, %v4779_v0, 0.0 }
 0x418   : > { %v4624_v2 = vpop.xlane.xlu0 %4623  ;;  %v4839_v3 = vadd.f32 %v4838_v22, %v4778_v43 }
 0x419   : > { %v4780_v53 = vmul.f32 %v11348_v25, %v11348_v25  ;;  %v4781_v58 = vmul.f32 %v11351_v60, %v11351_v60  ;;  %v4700_v33 = vmul.f32 0.0051020407, %v4624_v2 }
 0x41a   : > { %4840 = vadd.xlane.f32.xlu1 %v4839_v3 }
 0x41b   : > { %v11359_v51 = vsub.f32 %v11100_v17, %v4700_v33  ;;  %v11362_v50 = vsub.f32 %v11097_v19, %v4700_v33  ;;  %v4842_v15 = vsel %vm4592_vm3, %v4781_v58, 0.0 }
 0x41c   : > { %v4628_v20 = vpop.xlane.xlu1 %4627  ;;  %v4843_v18 = vadd.f32 %v4842_v15, %v4780_v53 }
 0x41d   : > { %v4782_v43 = vmul.f32 %v11359_v51, %v11359_v51  ;;  %v4783_v0 = vmul.f32 %v11362_v50, %v11362_v50  ;;  %v4701_v22 = vmul.f32 0.0051020407, %v4628_v20 }
 0x41e   : > { %4844 = vadd.xlane.f32.xlu0 %v4843_v18 }
 0x41f   : > { %v11370_v2 = vsub.f32 %v11109_v41, %v4701_v22  ;;  %v11373_v17 = vsub.f32 %v11106_v14, %v4701_v22  ;;  %v4846_v19 = vsel %vm4592_vm3, %v4783_v0, 0.0 }
 0x420   : > { %v4632_v33 = vpop.xlane.xlu0 %4631  ;;  %v4847_v3 = vadd.f32 %v4846_v19, %v4782_v43 }
 0x421   : > { %12729 = vst [vmem:[#allocation18_spill] sm:$0xff] %v11370_v2  ;;  %v4784_v53 = vmul.f32 %v11370_v2, %v11370_v2  ;;  %v4785_v58 = vmul.f32 %v11373_v17, %v11373_v17  ;;  %v4702_v15 = vmul.f32 0.0051020407, %v4632_v33 }
 0x422   : > { %4848 = vadd.xlane.f32.xlu1 %v4847_v3 }
 0x423   : > { %v11381_v20 = vsub.f32 %v11121_v38, %v4702_v15  ;;  %v11384_v41 = vsub.f32 %v11118_v42, %v4702_v15  ;;  %v4850_v14 = vsel %vm4592_vm3, %v4785_v58, 0.0 }
 0x424   : > { %v4636_v18 = vpop.xlane.xlu1 %4635  ;;  %v4596_v0 = vpop.xlane.xlu0 %4595  ;;  %v4851_v22 = vadd.f32 %v4850_v14, %v4784_v53 }
 0x425   : > { %12730 = vst [vmem:[#allocation17_spill] sm:$0xff] %v11384_v41  ;;  %v4787_v43 = vmul.f32 %v11384_v41, %v11384_v41  ;;  %v4703_v19 = vmul.f32 0.0051020407, %v4636_v18  ;;  %v4693_v2 = vmul.f32 0.0051020407, %v4596_v0  ;;  %v4786_v33 = vmul.f32 %v11381_v20, %v11381_v20 }
 0x426   : > { %4852 = vadd.xlane.f32.xlu0 %v4851_v22 }
 0x427   : > { %v11392_v38 = vsub.f32 %v11132_v30, %v4703_v19  ;;  %v11395_v42 = vsub.f32 %v11135_v44, %v4693_v2  ;;  %v11398_v3 = vsub.f32 %v11115_v52, %v4693_v2  ;;  %v4854_v15 = vsel %vm4592_vm3, %v4787_v43, 0.0 }
 0x428   : > { %v4600_v58 = vpop.xlane.xlu1 %4599  ;;  %v4640_v53 = vpop.xlane.xlu0 %4639  ;;  %v11402_v14 = vsub.f32 %v11138_v35, %v4703_v19  ;;  %v4855_v52 = vadd.f32 %v4854_v15, %v4786_v33 }
 0x429   : > { %12731 = vst [vmem:[#allocation4_spill] sm:$0xff] %v11392_v38  ;;  %12732 = vst [vmem:[#allocation19_spill] sm:$0xff] %v11398_v3  ;;  %v4768_v18 = vmul.f32 %v11395_v42, %v11395_v42  ;;  %v4769_v30 = vmul.f32 %v11398_v3, %v11398_v3  ;;  %v4789_v44 = vmul.f32 %v11392_v38, %v11392_v38  ;;  %v4694_v0 = vmul.f32 0.0051020407, %v4600_v58 }
 0x42a   : > { %v4704_v22 = vmul.f32 0.0051020407, %v4640_v53  ;;  %4856 = vadd.xlane.f32.xlu1 %v4855_v52  ;;  %v4788_v38 = vmul.f32 %v11402_v14, %v11402_v14 }
 0x42b   : > { %v4818_v2 = vsel %vm4592_vm3, %v4769_v30, 0.0  ;;  %v11412_v41 = vsub.f32 %v11153_v11, %v4694_v0  ;;  %v11415_v35 = vsub.f32 %v11129_v26, %v4694_v0 }
 0x42c   : > { %v11418_v43 = vsub.f32 %v11150_v24, %v4704_v22  ;;  %v4644_v19 = vpop.xlane.xlu1 %4643  ;;  %v4604_v3 = vpop.xlane.xlu0 %4603  ;;  %v4819_v33 = vadd.f32 %v4818_v2, %v4768_v18  ;;  %v11427_v26 = vsub.f32 %v11156_v5, %v4704_v22  ;;  %v4858_v24 = vsel %vm4592_vm3, %v4789_v44, 0.0 }
 0x42d   : > { %v4705_v58 = vmul.f32 0.0051020407, %v4644_v19  ;;  %v4695_v53 = vmul.f32 0.0051020407, %v4604_v3  ;;  %v4770_v15 = vmul.f32 %v11412_v41, %v11412_v41  ;;  %v4771_v11 = vmul.f32 %v11415_v35, %v11415_v35 }
 0x42e   : > { %v4791_v30 = vmul.f32 %v11418_v43, %v11418_v43  ;;  %4820 = vadd.xlane.f32.xlu0 %v4819_v33  ;;  %v4859_v2 = vadd.f32 %v4858_v24, %v4788_v38 }
 0x42f   : > { %v11433_v0 = vsub.f32 %v11168_v32, %v4705_v58  ;;  %v11436_v3 = vsub.f32 %v11171_v54, %v4695_v53  ;;  %v11439_v18 = vsub.f32 %v11147_v36, %v4695_v53  ;;  %v11442_v52 = vsub.f32 %v11174_v4, %v4705_v58 }
 0x430   : > { %v4608_v5 = vpop.xlane.xlu0 %4607  ;;  %v4822_v22 = vsel %vm4592_vm3, %v4771_v11, 0.0  ;;  %v4790_v36 = vmul.f32 %v11427_v26, %v11427_v26  ;;  %v4862_v4 = vsel %vm4592_vm3, %v4791_v30, 0.0 }
 0x431   : > { %12733 = vst [vmem:[#allocation20_spill] sm:$0xff] %v11436_v3  ;;  %12734 = vst [vmem:[#allocation21_spill] sm:$0xff] %v11439_v18  ;;  %v4793_v44 = vmul.f32 %v11433_v0, %v11433_v0  ;;  %v4772_v32 = vmul.f32 %v11436_v3, %v11436_v3  ;;  %v4773_v54 = vmul.f32 %v11439_v18, %v11439_v18  ;;  %v4696_v19 = vmul.f32 0.0051020407, %v4608_v5 }
 0x432   : > { %v4823_v53 = vadd.f32 %v4822_v22, %v4770_v15  ;;  %4860 = vadd.xlane.f32.xlu0 %v4859_v2  ;;  %v4792_v33 = vmul.f32 %v11442_v52, %v11442_v52  ;;  %v4863_v2 = vadd.f32 %v4862_v4, %v4790_v36 }
 0x433   : > { %v4826_v58 = vsel %vm4592_vm3, %v4773_v54, 0.0  ;;  %v11458_v11 = vsub.f32 %v11186_v28, %v4696_v19  ;;  %v11461_v3 = vsub.f32 %v11165_v49, %v4696_v19  ;;  %v4866_v22 = vsel %vm4592_vm3, %v4793_v44, 0.0 }
 0x434   : > { %4824 = vadd.xlane.f32.xlu1 %v4823_v53  ;;  %v4652_v38 = vpop.xlane.xlu1 %4651  ;;  %v4648_v24 = vpop.xlane.xlu0 %4647  ;;  %v4827_v18 = vadd.f32 %v4826_v58, %v4772_v32  ;;  %v4867_v53 = vadd.f32 %v4866_v22, %v4792_v33 }
 0x435   : > { %v4707_v5 = vmul.f32 0.0051020407, %v4652_v38  ;;  %v4706_v15 = vmul.f32 0.0051020407, %v4648_v24  ;;  %v4774_v30 = vmul.f32 %v11458_v11, %v11458_v11  ;;  %v4775_v54 = vmul.f32 %v11461_v3, %v11461_v3 }
 0x436   : > { %4828 = vadd.xlane.f32.xlu0 %v4827_v18 }
 0x437   : > { %v11469_v28 = vsub.f32 %v11198_v48, %v4707_v5  ;;  %v11472_v49 = vsub.f32 %v11192_v13, %v4707_v5  ;;  %v11475_v19 = vsub.f32 %v11195_v1, %v4706_v15  ;;  %v11478_v32 = vsub.f32 %v11183_v37, %v4706_v15 }
 0x438   : > { %4864 = vadd.xlane.f32.xlu1 %v4863_v2  ;;  %v4656_v44 = vpop.xlane.xlu0 %4655  ;;  %v4830_v58 = vsel %vm4592_vm3, %v4775_v54, 0.0 }
 0x439   : > { %v4796_v36 = vmul.f32 %v11469_v28, %v11469_v28  ;;  %v4797_v48 = vmul.f32 %v11472_v49, %v11472_v49  ;;  %v4794_v13 = vmul.f32 %v11475_v19, %v11475_v19  ;;  %v4795_v1 = vmul.f32 %v11478_v32, %v11478_v32 }
 0x43a   : > { %v4708_v37 = vmul.f32 0.0051020407, %v4656_v44  ;;  %v4831_v4 = vadd.f32 %v4830_v58, %v4774_v30  ;;  %4868 = vadd.xlane.f32.xlu0 %v4867_v53 }
 0x43b   : > { %v4874_v18 = vsel %vm4592_vm3, %v4797_v48, 0.0  ;;  %v4870_v33 = vsel %vm4592_vm3, %v4795_v1, 0.0 }
 0x43c   : > { %v11492_v38 = vsub.f32 %v11208_v40, %v4708_v37  ;;  %v11495_v24 = vsub.f32 %v11205_v63, %v4708_v37  ;;  %4832 = vadd.xlane.f32.xlu1 %v4831_v4  ;;  %v4660_v5 = vpop.xlane.xlu1 %4659  ;;  %v4875_v15 = vadd.f32 %v4874_v18, %v4796_v36  ;;  %v4871_v22 = vadd.f32 %v4870_v33, %v4794_v13 }
 0x43d   : > { %v4709_v54 = vmul.f32 0.0051020407, %v4660_v5 }
 0x43e   : > { %v4798_v2 = vmul.f32 %v11492_v38, %v11492_v38  ;;  %v4799_v30 = vmul.f32 %v11495_v24, %v11495_v24  ;;  %4876 = vadd.xlane.f32.xlu0 %v4875_v15 }
 0x43f   : > { %v11502_v44 = vsub.f32 %v11217_v46, %v4709_v54  ;;  %v11505_v40 = vsub.f32 %v11214_v21, %v4709_v54 }
 0x440   : > { %4872 = vadd.xlane.f32.xlu1 %v4871_v22  ;;  %v4664_v63 = vpop.xlane.xlu0 %4663  ;;  %v4878_v53 = vsel %vm4592_vm3, %v4799_v30, 0.0 }
 0x441   : > { %v4800_v58 = vmul.f32 %v11502_v44, %v11502_v44  ;;  %v4801_v36 = vmul.f32 %v11505_v40, %v11505_v40  ;;  %v4710_v48 = vmul.f32 0.0051020407, %v4664_v63  ;;  %v4879_v13 = vadd.f32 %v4878_v53, %v4798_v2 }
 0x443   : > { %v11513_v1 = vsub.f32 %v11226_v9, %v4710_v48  ;;  %v11516_v46 = vsub.f32 %v11223_v6, %v4710_v48  ;;  %v4882_v21 = vsel %vm4592_vm3, %v4801_v36, 0.0 }
 0x444   : > { %4880 = vadd.xlane.f32.xlu1 %v4879_v13  ;;  %v4668_v37 = vpop.xlane.xlu1 %4667  ;;  %v4883_v4 = vadd.f32 %v4882_v21, %v4800_v58 }
 0x445   : > { %v4802_v18 = vmul.f32 %v11513_v1, %v11513_v1  ;;  %v4803_v33 = vmul.f32 %v11516_v46, %v11516_v46  ;;  %v4711_v5 = vmul.f32 0.0051020407, %v4668_v37 }
 0x446   : > { %4884 = vadd.xlane.f32.xlu0 %v4883_v4 }
 0x447   : > { %v11524_v15 = vsub.f32 %v11235_v56, %v4711_v5  ;;  %v11527_v9 = vsub.f32 %v11232_v61, %v4711_v5  ;;  %v4886_v6 = vsel %vm4592_vm3, %v4803_v33, 0.0 }
 0x448   : > { %v4672_v22 = vpop.xlane.xlu0 %4671  ;;  %v4887_v54 = vadd.f32 %v4886_v6, %v4802_v18 }
 0x449   : > { %v4804_v2 = vmul.f32 %v11524_v15, %v11524_v15  ;;  %v4805_v30 = vmul.f32 %v11527_v9, %v11527_v9  ;;  %v4712_v63 = vmul.f32 0.0051020407, %v4672_v22 }
 0x44a   : > { %4888 = vadd.xlane.f32.xlu1 %v4887_v54 }
 0x44b   : > { %v11535_v53 = vsub.f32 %v11244_v23, %v4712_v63  ;;  %v11538_v56 = vsub.f32 %v11241_v62, %v4712_v63  ;;  %v4890_v61 = vsel %vm4592_vm3, %v4805_v30, 0.0 }
 0x44c   : > { %v4676_v58 = vpop.xlane.xlu1 %4675  ;;  %v4891_v36 = vadd.f32 %v4890_v61, %v4804_v2 }
 0x44d   : > { %v4806_v48 = vmul.f32 %v11535_v53, %v11535_v53  ;;  %v4807_v13 = vmul.f32 %v11538_v56, %v11538_v56  ;;  %v4713_v21 = vmul.f32 0.0051020407, %v4676_v58 }
 0x44e   : > { %4892 = vadd.xlane.f32.xlu0 %v4891_v36 }
 0x44f   : > { %v11546_v37 = vsub.f32 %v11253_v8, %v4713_v21  ;;  %v11549_v23 = vsub.f32 %v11250_v10, %v4713_v21  ;;  %v4894_v62 = vsel %vm4592_vm3, %v4807_v13, 0.0 }
 0x450   : > { %v4680_v4 = vpop.xlane.xlu0 %4679  ;;  %v4895_v18 = vadd.f32 %v4894_v62, %v4806_v48 }
 0x451   : > { %v4808_v33 = vmul.f32 %v11546_v37, %v11546_v37  ;;  %v4809_v5 = vmul.f32 %v11549_v23, %v11549_v23  ;;  %v4714_v6 = vmul.f32 0.0051020407, %v4680_v4 }
 0x452   : > { %4896 = vadd.xlane.f32.xlu1 %v4895_v18 }
 0x453   : > { %v11557_v22 = vsub.f32 %v11262_v12, %v4714_v6  ;;  %v11560_v8 = vsub.f32 %v11259_v16, %v4714_v6  ;;  %v4898_v10 = vsel %vm4592_vm3, %v4809_v5, 0.0 }
 0x454   : > { %v4684_v54 = vpop.xlane.xlu1 %4683  ;;  %v4899_v2 = vadd.f32 %v4898_v10, %v4808_v33 }
 0x455   : > { %v4810_v30 = vmul.f32 %v11557_v22, %v11557_v22  ;;  %v4811_v63 = vmul.f32 %v11560_v8, %v11560_v8  ;;  %v4715_v61 = vmul.f32 0.0051020407, %v4684_v54 }
 0x456   : > { %4900 = vadd.xlane.f32.xlu0 %v4899_v2 }
 0x457   : > { %v11568_v58 = vsub.f32 %v11271_v31, %v4715_v61  ;;  %v11571_v12 = vsub.f32 %v11268_v7, %v4715_v61  ;;  %v4902_v16 = vsel %vm4592_vm3, %v4811_v63, 0.0 }
 0x458   : > { %v4688_v36 = vpop.xlane.xlu0 %4687  ;;  %v4903_v48 = vadd.f32 %v4902_v16, %v4810_v30 }
 0x459   : > { %v4812_v13 = vmul.f32 %v11568_v58, %v11568_v58  ;;  %v4813_v21 = vmul.f32 %v11571_v12, %v11571_v12  ;;  %v4716_v62 = vmul.f32 0.0051020407, %v4688_v36  ;;  %v5238_v36 = vld [vmem:[%s12637_s6 + $0xa0] sm:$0xff] }
 0x45a   : > { %4904 = vadd.xlane.f32.xlu1 %v4903_v48  ;;  %v5233_v48 = vld [vmem:[%s12637_s6 + $0x78] sm:$0xff] }
 0x45b   : > { %v11579_v4 = vsub.f32 %v11280_v45, %v4716_v62  ;;  %v11582_v31 = vsub.f32 %v11277_v55, %v4716_v62  ;;  %v4906_v7 = vsel %vm4592_vm3, %v4813_v21, 0.0  ;;  %v5235_v21 = vld [vmem:[%s12637_s6 + $0x88] sm:$0xff]  ;;  %v5237_v62 = vld [vmem:[%s12637_s6 + $0x98] sm:$0xff] }
 0x45c   : > { %v4692_v18 = vpop.xlane.xlu1 %4691  ;;  %v4907_v33 = vadd.f32 %v4906_v7, %v4812_v13  ;;  %v5240_v13 = vld [vmem:[%s12637_s6 + $0xb0] sm:$0xff]  ;;  %v5239_v7 = vld [vmem:[%s12637_s6 + $0xa8] sm:$0xff] }
 0x45d   : > { %12735 = vst [vmem:[#allocation22_spill] sm:$0xff] %v11579_v4  ;;  %12736 = vst [vmem:[#allocation23_spill] sm:$0xff] %v11582_v31  ;;  %v4814_v5 = vmul.f32 %v11579_v4, %v11579_v4  ;;  %v4815_v6 = vmul.f32 %v11582_v31, %v11582_v31  ;;  %v4717_v10 = vmul.f32 0.0051020407, %v4692_v18 }
 0x45e   : > { %4908 = vadd.xlane.f32.xlu0 %v4907_v33 }
 0x45f   : > { %v11590_v54 = vsub.f32 %v11289_v59, %v4717_v10  ;;  %v11593_v45 = vsub.f32 %v11286_v34, %v4717_v10  ;;  %v4910_v55 = vsel %vm4592_vm3, %v4815_v6, 0.0  ;;  %v5234_v59 = vld [vmem:[%s12637_s6 + $0x80] sm:$0xff]  ;;  %v5236_v34 = vld [vmem:[%s12637_s6 + $0x90] sm:$0xff] }
 0x460   : > { %v4911_v2 = vadd.f32 %v4910_v55, %v4814_v5  ;;  %v11625_v18 = vpop.permute.xlu0 %5310  ;;  %v11627_v33 = vpop.permute.xlu1 %5315 }
 0x461   : > { %v4816_v30 = vmul.f32 %v11590_v54, %v11590_v54  ;;  %v4817_v63 = vmul.f32 %v11593_v45, %v11593_v45 }
 0x462   : > { %4912 = vadd.xlane.f32.xlu1 %v4911_v2 }
 0x463   : > { %v4914_v61 = vsel %vm4592_vm3, %v4817_v63, 0.0 }
 0x464   : > { %v4915_v16 = vadd.f32 %v4914_v61, %v4816_v30 }
 0x466   : > { %4916 = vadd.xlane.f32.xlu0 %v4915_v16 }
 0x473   : > { %5325 = vperm.xlu1 %7889, %v5234_v59  }
 0x477   : > { %5335 = vperm.xlu1 %7889, %v5236_v34  }
 0x47b   : > { %5345 = vperm.xlu1 %7889, %v5238_v36  }
 0x47c   : > { %5320 = vperm.xlu0 %7888, %v5233_v48  }
 0x47f   : > { %5355 = vperm.xlu1 %7889, %v5240_v13   ;;  %v4997_v13 = vld [vmem:[%s12636_s5 + $0x20] sm:$0xff] }
 0x480   : > { %5330 = vperm.xlu0 %7888, %v5235_v21  }
 0x484   : > { %5340 = vperm.xlu0 %7888, %v5237_v62  }
 0x488   : > { %5350 = vperm.xlu0 %7888, %v5239_v7  }
 0x49f   : > { %v4837_v5 = vpop.xlane.xlu0 %4836 }
 0x4a0   : > { %v4922_v6 = vmul.f32 0.0051020407, %v4837_v5 }
 0x4a2   : > { %v4947_v10 = vadd.f32 0.001, %v4922_v6  ;;  %v4998_v6 = vld [vmem:[%s12636_s5 + $0x28] sm:$0xff] }
 0x4a3   : > { %v4841_v55 = vpop.xlane.xlu1 %4840 }
 0x4a4   : > { %8449 = vrsqrt.f32 %v4947_v10  ;;  %v4923_v2 = vmul.f32 0.0051020407, %v4841_v55 }
 0x4a6   : > { %v4948_v30 = vadd.f32 0.001, %v4923_v2 }
 0x4a7   : > { %v4845_v63 = vpop.xlane.xlu0 %4844 }
 0x4a8   : > { %8451 = vrsqrt.f32 %v4948_v30  ;;  %v4924_v61 = vmul.f32 0.0051020407, %v4845_v63  ;;  %v4999_v63 = vld [vmem:[%s12636_s5 + $0x30] sm:$0xff] }
 0x4aa   : > { %v4949_v16 = vadd.f32 0.001, %v4924_v61 }
 0x4ab   : > { %v4849_v59 = vpop.xlane.xlu1 %4848 }
 0x4ac   : > { %8453 = vrsqrt.f32 %v4949_v16  ;;  %v4925_v34 = vmul.f32 0.0051020407, %v4849_v59 }
 0x4ae   : > { %v4950_v36 = vadd.f32 0.001, %v4925_v34 }
 0x4af   : > { %v4853_v48 = vpop.xlane.xlu0 %4852 }
 0x4b0   : > { %8455 = vrsqrt.f32 %v4950_v36  ;;  %v4926_v21 = vmul.f32 0.0051020407, %v4853_v48 }
 0x4b1   : > { %v8450_v62 = vpop.eup %8449 }
 0x4b2   : > { %v4951_v7 = vadd.f32 0.001, %v4926_v21  ;;  %v5022_v5 = vmul.f32 %v8450_v62, %v4997_v13  ;;  %v5000_v13 = vld [vmem:[%s12636_s5 + $0x38] sm:$0xff] }
 0x4b3   : > { %v4857_v55 = vpop.xlane.xlu1 %4856 }
 0x4b4   : > { %8457 = vrsqrt.f32 %v4951_v7  ;;  %5065 = vperm.xlu0 %7888, %v5022_v5   ;;  %v4927_v2 = vmul.f32 0.0051020407, %v4857_v55 }
 0x4b5   : > { %v8452_v10 = vpop.eup %8451 }
 0x4b6   : > { %v5023_v30 = vmul.f32 %v8452_v10, %v4998_v6  ;;  %v4952_v61 = vadd.f32 0.001, %v4927_v2  ;;  %v5001_v2 = vld [vmem:[%s12636_s5 + $0x40] sm:$0xff] }
 0x4b7   : > { %v4821_v16 = vpop.xlane.xlu0 %4820 }
 0x4b8   : > { %5070 = vperm.xlu1 %7889, %v5023_v30   ;;  %v4918_v34 = vmul.f32 0.0051020407, %v4821_v16  ;;  %8459 = vrsqrt.f32 %v4952_v61 }
 0x4b9   : > { %v8454_v59 = vpop.eup %8453 }
 0x4ba   : > { %v5024_v36 = vmul.f32 %v8454_v59, %v4999_v63  ;;  %v4943_v48 = vadd.f32 0.001, %v4918_v34 }
 0x4bb   : > { %v4861_v21 = vpop.xlane.xlu0 %4860 }
 0x4bc   : > { %5075 = vperm.xlu0 %7888, %v5024_v36   ;;  %8461 = vrsqrt.f32 %v4943_v48  ;;  %v4928_v5 = vmul.f32 0.0051020407, %v4861_v21 }
 0x4bd   : > { %v8456_v62 = vpop.eup %8455  ;;  %v4825_v7 = vpop.xlane.xlu1 %4824 }
 0x4be   : > { %v4919_v6 = vmul.f32 0.0051020407, %v4825_v7  ;;  %v5025_v10 = vmul.f32 %v8456_v62, %v5000_v13  ;;  %v4953_v55 = vadd.f32 0.001, %v4928_v5  ;;  %v5002_v7 = vld [vmem:[%s12636_s5 + $0x48] sm:$0xff] }
 0x4bf   : > { %v4829_v63 = vpop.xlane.xlu0 %4828 }
 0x4c0   : > { %v4944_v30 = vadd.f32 0.001, %v4919_v6  ;;  %5080 = vperm.xlu1 %7889, %v5025_v10   ;;  %8463 = vrsqrt.f32 %v4953_v55  ;;  %v4920_v59 = vmul.f32 0.0051020407, %v4829_v63 }
 0x4c1   : > { %v8458_v61 = vpop.eup %8457  ;;  %v4865_v16 = vpop.xlane.xlu1 %4864 }
 0x4c2   : > { %v4929_v34 = vmul.f32 0.0051020407, %v4865_v16  ;;  %v5026_v36 = vmul.f32 %v8458_v61, %v5001_v2  ;;  %8465 = vrsqrt.f32 %v4944_v30  ;;  %v4945_v31 = vadd.f32 0.001, %v4920_v59  ;;  %v4993_v2 = vld [vmem:[%s12636_s5] sm:$0xff] }
 0x4c3   : > { %v4869_v21 = vpop.xlane.xlu0 %4868 }
 0x4c4   : > { %v4954_v48 = vadd.f32 0.001, %v4929_v34  ;;  %5085 = vperm.xlu0 %7888, %v5026_v36   ;;  %v4930_v62 = vmul.f32 0.0051020407, %v4869_v21 }
 0x4c5   : > { %v4833_v13 = vpop.xlane.xlu1 %4832  ;;  %v8460_v6 = vpop.eup %8459 }
 0x4c6   : > { %8467 = vrsqrt.f32 %v4954_v48  ;;  %v4921_v5 = vmul.f32 0.0051020407, %v4833_v13  ;;  %v4955_v10 = vadd.f32 0.001, %v4930_v62  ;;  %v5027_v16 = vmul.f32 %v8460_v6, %v5002_v7 }
 0x4c7   : > { %8469 = vrsqrt.f32 %v4945_v31  ;;  %v4877_v63 = vpop.xlane.xlu0 %4876  ;;  %v5003_v31 = vld [vmem:[%s12636_s5 + $0x50] sm:$0xff] }
 0x4c8   : > { %v4946_v55 = vadd.f32 0.001, %v4921_v5  ;;  %8471 = vrsqrt.f32 %v4955_v10  ;;  %v4932_v61 = vmul.f32 0.0051020407, %v4877_v63  ;;  %5090 = vperm.xlu1 %7889, %v5027_v16   ;;  %v5004_v16 = vld [vmem:[%s12636_s5 + $0x58] sm:$0xff] }
 0x4c9   : > { %v4873_v30 = vpop.xlane.xlu1 %4872  ;;  %v8462_v59 = vpop.eup %8461 }
 0x4ca   : > { %v4931_v34 = vmul.f32 0.0051020407, %v4873_v30  ;;  %v4957_v36 = vadd.f32 0.001, %v4932_v61  ;;  %v5018_v21 = vmul.f32 %v8462_v59, %v4993_v2  ;;  %8473 = vrsqrt.f32 %v4946_v55  ;;  %v4994_v55 = vld [vmem:[%s12636_s5 + $0x8] sm:$0xff] }
 0x4cc   : > { %v4956_v48 = vadd.f32 0.001, %v4931_v34  ;;  %8475 = vrsqrt.f32 %v4957_v36  ;;  %5045 = vperm.xlu1 %7889, %v5018_v21  }
 0x4cd   : > { %v4881_v13 = vpop.xlane.xlu1 %4880  ;;  %v8464_v62 = vpop.eup %8463 }
 0x4ce   : > { %v4933_v7 = vmul.f32 0.0051020407, %v4881_v13  ;;  %v5028_v6 = vmul.f32 %v8464_v62, %v5003_v31  ;;  %8477 = vrsqrt.f32 %v4956_v48  ;;  %v5005_v48 = vld [vmem:[%s12636_s5 + $0x60] sm:$0xff]  ;;  %v4995_v13 = vld [vmem:[%s12636_s5 + $0x10] sm:$0xff] }
 0x4cf   : > { %v4885_v5 = vpop.xlane.xlu0 %4884  ;;  %v8466_v10 = vpop.eup %8465 }
 0x4d0   : > { %v4958_v63 = vadd.f32 0.001, %v4933_v7  ;;  %v4934_v30 = vmul.f32 0.0051020407, %v4885_v5  ;;  %5095 = vperm.xlu0 %7888, %v5028_v6   ;;  %v5019_v34 = vmul.f32 %v8466_v10, %v4994_v55 }
 0x4d2   : > { %v4959_v2 = vadd.f32 0.001, %v4934_v30  ;;  %8479 = vrsqrt.f32 %v4958_v63  ;;  %v5007_v30 = vld [vmem:[%s12636_s5 + $0x70] sm:$0xff] }
 0x4d3   : > { %v8468_v61 = vpop.eup %8467  ;;  %v4889_v59 = vpop.xlane.xlu1 %4888 }
 0x4d4   : > { %8481 = vrsqrt.f32 %v4959_v2  ;;  %v4935_v36 = vmul.f32 0.0051020407, %v4889_v59  ;;  %v5029_v21 = vmul.f32 %v8468_v61, %v5004_v16  ;;  %v8470_v31 = vpop.eup %8469  ;;  %5050 = vperm.xlu0 %7888, %v5019_v34   ;;  %v4996_v16 = vld [vmem:[%s12636_s5 + $0x18] sm:$0xff] }
 0x4d5   : > { %v8472_v62 = vpop.eup %8471  ;;  %v5020_v63 = vmul.f32 %v8470_v31, %v4995_v13  ;;  %v5006_v31 = vld [vmem:[%s12636_s5 + $0x68] sm:$0xff] }
 0x4d6   : > { %v4960_v7 = vadd.f32 0.001, %v4935_v36  ;;  %5100 = vperm.xlu1 %7889, %v5029_v21   ;;  %v5030_v6 = vmul.f32 %v8472_v62, %v5005_v48 }
 0x4d7   : > { %v4893_v5 = vpop.xlane.xlu0 %4892  ;;  %v8474_v55 = vpop.eup %8473 }
 0x4d8   : > { %8483 = vrsqrt.f32 %v4960_v7  ;;  %v4936_v10 = vmul.f32 0.0051020407, %v4893_v5  ;;  %5105 = vperm.xlu0 %7888, %v5030_v6   ;;  %v5021_v21 = vmul.f32 %v8474_v55, %v4996_v16  ;;  %v5009_v7 = vld [vmem:[%s12636_s5 + $0x80] sm:$0xff] }
 0x4d9   : > { %v8476_v2 = vpop.eup %8475 }
 0x4da   : > { %v4961_v61 = vadd.f32 0.001, %v4936_v10  ;;  %5055 = vperm.xlu1 %7889, %v5020_v63   ;;  %v5032_v34 = vmul.f32 %v8476_v2, %v5007_v30  ;;  %v5008_v30 = vld [vmem:[%s12636_s5 + $0x78] sm:$0xff] }
 0x4db   : > { %v4897_v59 = vpop.xlane.xlu1 %4896  ;;  %v8478_v48 = vpop.eup %8477 }
 0x4dc   : > { %8485 = vrsqrt.f32 %v4961_v61  ;;  %v4937_v36 = vmul.f32 0.0051020407, %v4897_v59  ;;  %5115 = vperm.xlu0 %7888, %v5032_v34   ;;  %v5031_v10 = vmul.f32 %v8478_v48, %v5006_v31  ;;  %v5010_v61 = vld [vmem:[%s12636_s5 + $0x88] sm:$0xff] }
 0x4de   : > { %v4962_v13 = vadd.f32 0.001, %v4937_v36  ;;  %5060 = vperm.xlu1 %7889, %v5021_v21  }
 0x4df   : > { %v4901_v62 = vpop.xlane.xlu0 %4900  ;;  %v8480_v5 = vpop.eup %8479 }
 0x4e0   : > { %8487 = vrsqrt.f32 %v4962_v13  ;;  %v4938_v6 = vmul.f32 0.0051020407, %v4901_v62  ;;  %v5033_v34 = vmul.f32 %v8480_v5, %v5008_v30  ;;  %v5011_v13 = vld [vmem:[%s12636_s5 + $0x90] sm:$0xff]  ;;  %v5012_v5 = vld [vmem:[%s12636_s5 + $0x98] sm:$0xff] }
 0x4e1   : > { %v8482_v63 = vpop.eup %8481 }
 0x4e2   : > { %v4963_v55 = vadd.f32 0.001, %v4938_v6  ;;  %5110 = vperm.xlu1 %7889, %v5031_v10   ;;  %v5034_v16 = vmul.f32 %v8482_v63, %v5009_v7 }
 0x4e3   : > { %v4905_v2 = vpop.xlane.xlu1 %4904 }
 0x4e4   : > { %8489 = vrsqrt.f32 %v4963_v55  ;;  %v4939_v59 = vmul.f32 0.0051020407, %v4905_v2  ;;  %5125 = vperm.xlu0 %7888, %v5034_v16  }
 0x4e5   : > { %v8484_v36 = vpop.eup %8483 }
 0x4e6   : > { %v4964_v21 = vadd.f32 0.001, %v4939_v59  ;;  %5120 = vperm.xlu1 %7889, %v5033_v34   ;;  %v5035_v48 = vmul.f32 %v8484_v36, %v5010_v61  ;;  %v5013_v59 = vld [vmem:[%s12636_s5 + $0xa0] sm:$0xff] }
 0x4e7   : > { %v4909_v31 = vpop.xlane.xlu0 %4908 }
 0x4e8   : > { %8491 = vrsqrt.f32 %v4964_v21  ;;  %v4940_v62 = vmul.f32 0.0051020407, %v4909_v31  ;;  %v5014_v31 = vld [vmem:[%s12636_s5 + $0xa8] sm:$0xff] }
 0x4e9   : > { %v8486_v7 = vpop.eup %8485 }
 0x4ea   : > { %v4965_v6 = vadd.f32 0.001, %v4940_v62  ;;  %5130 = vperm.xlu1 %7889, %v5035_v48   ;;  %v5036_v10 = vmul.f32 %v8486_v7, %v5011_v13  ;;  %v5015_v7 = vld [vmem:[%s12636_s5 + $0xb0] sm:$0xff] }
 0x4eb   : > { %v4913_v63 = vpop.xlane.xlu1 %4912 }
 0x4ec   : > { %8493 = vrsqrt.f32 %v4965_v6  ;;  %v4941_v30 = vmul.f32 0.0051020407, %v4913_v63  ;;  %5135 = vperm.xlu0 %7888, %v5036_v10   ;;  %v5016_v63 = vld [vmem:[%s12636_s5 + $0xb8] sm:$0xff] }
 0x4ed   : > { %v8488_v55 = vpop.eup %8487 }
 0x4ee   : > { %v4966_v16 = vadd.f32 0.001, %v4941_v30  ;;  %v5037_v2 = vmul.f32 %v8488_v55, %v5012_v5  ;;  %v5017_v55 = vld [vmem:[%s12636_s5 + $0xc0] sm:$0xff] }
 0x4ef   : > { %v4917_v61 = vpop.xlane.xlu0 %4916 }
 0x4f0   : > { %8495 = vrsqrt.f32 %v4966_v16  ;;  %v4942_v34 = vmul.f32 0.0051020407, %v4917_v61  ;;  %5140 = vperm.xlu1 %7889, %v5037_v2   ;;  %v5242_v2 = vld [vmem:[%s12637_s6 + $0xc0] sm:$0xff] }
 0x4f1   : > { %v8490_v36 = vpop.eup %8489 }
 0x4f2   : > { %v4967_v21 = vadd.f32 0.001, %v4942_v34  ;;  %v5038_v48 = vmul.f32 %v8490_v36, %v5013_v59  ;;  %v5241_v59 = vld [vmem:[%s12637_s6 + $0xb8] sm:$0xff]  ;;  %v11712_v36 = vpop.permute.xlu1 %5325 }
 0x4f4   : > { %8497 = vrsqrt.f32 %v4967_v21  ;;  %5145 = vperm.xlu0 %7888, %v5038_v48  }
 0x4f5   : > { %v8492_v13 = vpop.eup %8491 }
 0x4f6   : > { %v5039_v62 = vmul.f32 %v8492_v13, %v5014_v31  ;;  %v11716_v48 = vpop.permute.xlu1 %5335 }
 0x4f7   : > { %v11710_v34 = vpop.permute.xlu0 %5320 }
 0x4f8   : > { %5150 = vperm.xlu1 %7889, %v5039_v62  }
 0x4f9   : > { %v8494_v6 = vpop.eup %8493 }
 0x4fa   : > { %v5040_v10 = vmul.f32 %v8494_v6, %v5015_v7  ;;  %v11720_v13 = vpop.permute.xlu1 %5345 }
 0x4fb   : > { %v11714_v21 = vpop.permute.xlu0 %5330 }
 0x4fc   : > { %5155 = vperm.xlu0 %7888, %v5040_v10  }
 0x4fd   : > { %v8496_v5 = vpop.eup %8495 }
 0x4fe   : > { %v5041_v30 = vmul.f32 %v8496_v5, %v5016_v63  ;;  %v11724_v7 = vpop.permute.xlu1 %5355 }
 0x4ff   : > { %v11718_v31 = vpop.permute.xlu0 %5340 }
 0x500   : > { %5160 = vperm.xlu1 %7889, %v5041_v30  }
 0x501   : > { %v8498_v16 = vpop.eup %8497 }
 0x502   : > { %v5042_v61 = vmul.f32 %v8498_v16, %v5017_v55 }
 0x503   : > { %v11722_v62 = vpop.permute.xlu0 %5350 }
 0x504   : > { %5365 = vperm.xlu1 %7889, %v5242_v2   ;;  %5165 = vperm.xlu0 %7888, %v5042_v61  }
 0x508   : > { %5360 = vperm.xlu0 %7888, %v5241_v59  }
 0x52f   : > { %v5066_v6 = vpop.permute.xlu0 %5065 }
 0x530   : > { %v5176_v10 = vmul.f32 %v5066_v6, %v11327_v57  ;;  %v5177_v63 = vmul.f32 %v5066_v6, %v11330_v27  ;;  %v12739_v57 = vld [vmem:[#allocation10_spill] sm:$0xff] }
 0x532   : > { %v5376_v5 = vadd.f32 %v11306_v39, %v5176_v10  ;;  %v5377_v30 = vadd.f32 %v11306_v39, %v5177_v63 }
 0x533   : > { %v5071_v16 = vpop.permute.xlu1 %5070 }
 0x534   : > { %v7502_v2 = vpack.c.bf16 %v5377_v30, %v5376_v5  ;;  %v5178_v61 = vmul.f32 %v5071_v16, %v11337_v47  ;;  %v5179_v59 = vmul.f32 %v5071_v16, %v11340_v29  ;;  %v12740_v5 = vld [vmem:[#allocation9_spill] sm:$0xff] }
 0x536   : > { %5576 = vst.msk [vmem:[#allocation2 + $0x20] sm:$0xff] %vm11731_vm5, %v7502_v2  ;;  %v5378_v27 = vadd.f32 %v12739_v57, %v5178_v61  ;;  %v5379_v6 = vadd.f32 %v12739_v57, %v5179_v59  ;;  %v12741_v59 = vld [vmem:[#allocation12_spill] sm:$0xff] }
 0x537   : > { %v5076_v10 = vpop.permute.xlu0 %5075 }
 0x538   : > { %v7503_v39 = vpack.c.bf16 %v5379_v6, %v5378_v27  ;;  %v5180_v63 = vmul.f32 %v5076_v10, %v11348_v25  ;;  %v5181_v4 = vmul.f32 %v5076_v10, %v11351_v60  ;;  %v12742_v6 = vld [vmem:[#allocation18_spill] sm:$0xff] }
 0x53a   : > { %5577 = vst.msk [vmem:[#allocation2 + $0x28] sm:$0xff] %vm11731_vm5, %v7503_v39  ;;  %v5380_v47 = vadd.f32 %v12740_v5, %v5180_v63  ;;  %v5381_v29 = vadd.f32 %v12740_v5, %v5181_v4  ;;  %v12743_v4 = vld [vmem:[#allocation11_spill] sm:$0xff] }
 0x53b   : > { %v5081_v30 = vpop.permute.xlu1 %5080 }
 0x53c   : > { %v7504_v16 = vpack.c.bf16 %v5381_v29, %v5380_v47  ;;  %v5182_v2 = vmul.f32 %v5081_v30, %v11359_v51  ;;  %v5183_v61 = vmul.f32 %v5081_v30, %v11362_v50  ;;  %v12744_v29 = vld [vmem:[#allocation17_spill] sm:$0xff] }
 0x53e   : > { %5578 = vst.msk [vmem:[#allocation2 + $0x30] sm:$0xff] %vm11731_vm5, %v7504_v16  ;;  %v5382_v25 = vadd.f32 %v12741_v59, %v5182_v2  ;;  %v5383_v60 = vadd.f32 %v12741_v59, %v5183_v61  ;;  %v12745_v16 = vld [vmem:[#allocation14_spill] sm:$0xff] }
 0x53f   : > { %v5086_v57 = vpop.permute.xlu0 %5085 }
 0x540   : > { %v7505_v27 = vpack.c.bf16 %v5383_v60, %v5382_v25  ;;  %v5184_v10 = vmul.f32 %v5086_v57, %v12742_v6  ;;  %v5185_v39 = vmul.f32 %v5086_v57, %v11373_v17  ;;  %v12746_v60 = vld [vmem:[#allocation19_spill] sm:$0xff] }
 0x542   : > { %5579 = vst.msk [vmem:[#allocation2 + $0x38] sm:$0xff] %vm11731_vm5, %v7505_v27  ;;  %v5384_v51 = vadd.f32 %v12743_v4, %v5184_v10  ;;  %v5385_v50 = vadd.f32 %v12743_v4, %v5185_v39  ;;  %v12747_v27 = vld [vmem:[#allocation5_spill] sm:$0xff]  ;;  %v12748_v4 = vld [vmem:[#allocation4_spill] sm:$0xff] }
 0x543   : > { %v5091_v5 = vpop.permute.xlu1 %5090 }
 0x544   : > { %v7506_v63 = vpack.c.bf16 %v5385_v50, %v5384_v51  ;;  %v5186_v47 = vmul.f32 %v5091_v5, %v11381_v20  ;;  %v5187_v30 = vmul.f32 %v5091_v5, %v12744_v29 }
 0x546   : > { %5580 = vst.msk [vmem:[#allocation2 + $0x40] sm:$0xff] %vm11731_vm5, %v7506_v63  ;;  %v5386_v2 = vadd.f32 %v12745_v16, %v5186_v47  ;;  %v5387_v17 = vadd.f32 %v12745_v16, %v5187_v30  ;;  %v12749_v63 = vld [vmem:[#allocation13_spill] sm:$0xff] }
 0x547   : > { %v5046_v61 = vpop.permute.xlu1 %5045 }
 0x548   : > { %v7507_v59 = vpack.c.bf16 %v5387_v17, %v5386_v2  ;;  %v5168_v25 = vmul.f32 %v5046_v61, %v11395_v42  ;;  %v5169_v57 = vmul.f32 %v5046_v61, %v12746_v60  ;;  %v12750_v61 = vld [vmem:[#allocation7_spill] sm:$0xff] }
 0x549   : > { %v12751_v60 = vld [vmem:[#allocation15_spill] sm:$0xff] }
 0x54a   : > { %5581 = vst.msk [vmem:[#allocation2 + $0x48] sm:$0xff] %vm11731_vm5, %v7507_v59  ;;  %v5368_v6 = vadd.f32 %v12747_v27, %v5168_v25  ;;  %v5369_v10 = vadd.f32 %v12747_v27, %v5169_v57 }
 0x54b   : > { %v5096_v20 = vpop.permute.xlu0 %5095 }
 0x54c   : > { %v5188_v39 = vmul.f32 %v5096_v20, %v11402_v14  ;;  %v5189_v51 = vmul.f32 %v5096_v20, %v12748_v4  ;;  %v7498_v50 = vpack.c.bf16 %v5369_v10, %v5368_v6  ;;  %v12753_v4 = vld [vmem:[#allocation21_spill] sm:$0xff] }
 0x54e   : > { %v5388_v5 = vadd.f32 %v12749_v63, %v5188_v39  ;;  %v5389_v47 = vadd.f32 %v12749_v63, %v5189_v51  ;;  %5572 = vst.msk [vmem:[#allocation2] sm:$0xff] %vm11731_vm5, %v7498_v50  ;;  %v12754_v50 = vld [vmem:[#allocation16_spill] sm:$0xff] }
 0x54f   : > { %v5051_v42 = vpop.permute.xlu0 %5050 }
 0x550   : > { %v7508_v29 = vpack.c.bf16 %v5389_v47, %v5388_v5  ;;  %v5170_v16 = vmul.f32 %v5051_v42, %v11412_v41  ;;  %v5171_v2 = vmul.f32 %v5051_v42, %v11415_v35  ;;  %v12755_v47 = vld [vmem:[#allocation6_spill] sm:$0xff] }
 0x551   : > { %v5101_v30 = vpop.permute.xlu1 %5100 }
 0x552   : > { %v5190_v17 = vmul.f32 %v5101_v30, %v11427_v26  ;;  %v5191_v14 = vmul.f32 %v5101_v30, %v11418_v43  ;;  %5582 = vst.msk [vmem:[#allocation2 + $0x50] sm:$0xff] %vm11731_vm5, %v7508_v29  ;;  %v5370_v59 = vadd.f32 %v12750_v61, %v5170_v16  ;;  %v5371_v25 = vadd.f32 %v12750_v61, %v5171_v2  ;;  %v12752_v43 = vld [vmem:[#allocation20_spill] sm:$0xff] }
 0x553   : > { %v5106_v6 = vpop.permute.xlu0 %5105 }
 0x554   : > { %v5390_v57 = vadd.f32 %v12751_v60, %v5190_v17  ;;  %v5391_v27 = vadd.f32 %v12751_v60, %v5191_v14  ;;  %v7499_v10 = vpack.c.bf16 %v5371_v25, %v5370_v59  ;;  %v5192_v35 = vmul.f32 %v5106_v6, %v11442_v52  ;;  %v12756_v60 = vld [vmem:[#allocation8_spill] sm:$0xff] }
 0x555   : > { %v5056_v41 = vpop.permute.xlu1 %5055  ;;  %v5193_v26 = vmul.f32 %v5106_v6, %v11433_v0 }
 0x556   : > { %v7509_v20 = vpack.c.bf16 %v5391_v27, %v5390_v57  ;;  %v5172_v39 = vmul.f32 %v5056_v41, %v12752_v43  ;;  %v5173_v51 = vmul.f32 %v5056_v41, %v12753_v4  ;;  %5573 = vst.msk [vmem:[#allocation2 + $0x8] sm:$0xff] %vm11731_vm5, %v7499_v10  ;;  %v5392_v63 = vadd.f32 %v12754_v50, %v5192_v35 }
 0x557   : > { %v5393_v5 = vadd.f32 %v12754_v50, %v5193_v26  ;;  %v5116_v0 = vpop.permute.xlu0 %5115 }
 0x558   : > { %5583 = vst.msk [vmem:[#allocation2 + $0x58] sm:$0xff] %vm11731_vm5, %v7509_v20  ;;  %v5372_v42 = vadd.f32 %v12755_v47, %v5172_v39  ;;  %v5373_v52 = vadd.f32 %v12755_v47, %v5173_v51  ;;  %v5196_v16 = vmul.f32 %v5116_v0, %v11469_v28  ;;  %v5197_v2 = vmul.f32 %v5116_v0, %v11472_v49 }
 0x559   : > { %v7510_v29 = vpack.c.bf16 %v5393_v5, %v5392_v63  ;;  %v5061_v30 = vpop.permute.xlu1 %5060 }
 0x55a   : > { %v7500_v17 = vpack.c.bf16 %v5373_v52, %v5372_v42  ;;  %v5174_v14 = vmul.f32 %v5061_v30, %v11458_v11  ;;  %v5175_v61 = vmul.f32 %v5061_v30, %v11461_v3  ;;  %v5396_v59 = vadd.f32 %v11627_v33, %v5196_v16 }
 0x55b   : > { %5584 = vst.msk [vmem:[#allocation2 + $0x60] sm:$0xff] %vm11731_vm5, %v7510_v29  ;;  %v5397_v25 = vadd.f32 %v11627_v33, %v5197_v2 }
 0x55c   : > { %5574 = vst.msk [vmem:[#allocation2 + $0x10] sm:$0xff] %vm11731_vm5, %v7500_v17  ;;  %v5374_v57 = vadd.f32 %v12756_v60, %v5174_v14  ;;  %v5375_v28 = vadd.f32 %v12756_v60, %v5175_v61 }
 0x55d   : > { %v7512_v49 = vpack.c.bf16 %v5397_v25, %v5396_v59  ;;  %v5111_v27 = vpop.permute.xlu1 %5110 }
 0x55e   : > { %v7501_v6 = vpack.c.bf16 %v5375_v28, %v5374_v57  ;;  %v5194_v11 = vmul.f32 %v5111_v27, %v11475_v19  ;;  %v5195_v3 = vmul.f32 %v5111_v27, %v11478_v32 }
 0x55f   : > { %5586 = vst.msk [vmem:[#allocation2 + $0x70] sm:$0xff] %vm11731_vm5, %v7512_v49  ;;  %v5126_v10 = vpop.permute.xlu0 %5125 }
 0x560   : > { %5575 = vst.msk [vmem:[#allocation2 + $0x18] sm:$0xff] %vm11731_vm5, %v7501_v6  ;;  %v5394_v33 = vadd.f32 %v11625_v18, %v5194_v11  ;;  %v5395_v41 = vadd.f32 %v11625_v18, %v5195_v3  ;;  %v5200_v35 = vmul.f32 %v5126_v10, %v11502_v44  ;;  %v5201_v26 = vmul.f32 %v5126_v10, %v11505_v40  ;;  %v12757_v6 = vld [vmem:[#allocation22_spill] sm:$0xff]  ;;  %v12758_v11 = vld [vmem:[#allocation23_spill] sm:$0xff] }
 0x561   : > { %v5121_v20 = vpop.permute.xlu1 %5120 }
 0x562   : > { %v7511_v43 = vpack.c.bf16 %v5395_v41, %v5394_v33  ;;  %v5198_v19 = vmul.f32 %v5121_v20, %v11492_v38  ;;  %v5199_v32 = vmul.f32 %v5121_v20, %v11495_v24  ;;  %v5400_v39 = vadd.f32 %v11712_v36, %v5200_v35 }
 0x563   : > { %v5401_v4 = vadd.f32 %v11712_v36, %v5201_v26 }
 0x564   : > { %5585 = vst.msk [vmem:[#allocation2 + $0x68] sm:$0xff] %vm11731_vm5, %v7511_v43  ;;  %v5398_v51 = vadd.f32 %v11710_v34, %v5198_v19  ;;  %v5399_v18 = vadd.f32 %v11710_v34, %v5199_v32 }
 0x565   : > { %v7514_v44 = vpack.c.bf16 %v5401_v4, %v5400_v39  ;;  %v5131_v50 = vpop.permute.xlu1 %5130 }
 0x566   : > { %v7513_v40 = vpack.c.bf16 %v5399_v18, %v5398_v51  ;;  %v5202_v63 = vmul.f32 %v5131_v50, %v11513_v1  ;;  %v5203_v38 = vmul.f32 %v5131_v50, %v11516_v46 }
 0x567   : > { %5588 = vst.msk [vmem:[#allocation2 + $0x80] sm:$0xff] %vm11731_vm5, %v7514_v44  ;;  %v5136_v24 = vpop.permute.xlu0 %5135 }
 0x568   : > { %5587 = vst.msk [vmem:[#allocation2 + $0x78] sm:$0xff] %vm11731_vm5, %v7513_v40  ;;  %v5402_v36 = vadd.f32 %v11714_v21, %v5202_v63  ;;  %v5403_v5 = vadd.f32 %v11714_v21, %v5203_v38  ;;  %v5204_v34 = vmul.f32 %v5136_v24, %v11524_v15  ;;  %v5205_v47 = vmul.f32 %v5136_v24, %v11527_v9 }
 0x56a   : > { %v7515_v42 = vpack.c.bf16 %v5403_v5, %v5402_v36  ;;  %v5404_v1 = vadd.f32 %v11716_v48, %v5204_v34  ;;  %v5405_v46 = vadd.f32 %v11716_v48, %v5205_v47 }
 0x56b   : > { %v5141_v52 = vpop.permute.xlu1 %5140 }
 0x56c   : > { %5589 = vst.msk [vmem:[#allocation2 + $0x88] sm:$0xff] %vm11731_vm5, %v7515_v42  ;;  %v7516_v0 = vpack.c.bf16 %v5405_v46, %v5404_v1  ;;  %v5206_v29 = vmul.f32 %v5141_v52, %v11535_v53  ;;  %v5207_v30 = vmul.f32 %v5141_v52, %v11538_v56 }
 0x56e   : > { %5590 = vst.msk [vmem:[#allocation2 + $0x90] sm:$0xff] %vm11731_vm5, %v7516_v0  ;;  %v5406_v15 = vadd.f32 %v11718_v31, %v5206_v29  ;;  %v5407_v9 = vadd.f32 %v11718_v31, %v5207_v30 }
 0x56f   : > { %v5146_v21 = vpop.permute.xlu0 %5145 }
 0x570   : > { %v7517_v16 = vpack.c.bf16 %v5407_v9, %v5406_v15  ;;  %v5208_v48 = vmul.f32 %v5146_v21, %v11546_v37  ;;  %v5209_v2 = vmul.f32 %v5146_v21, %v11549_v23 }
 0x572   : > { %5591 = vst.msk [vmem:[#allocation2 + $0x98] sm:$0xff] %vm11731_vm5, %v7517_v16  ;;  %v5408_v53 = vadd.f32 %v11720_v13, %v5208_v48  ;;  %v5409_v56 = vadd.f32 %v11720_v13, %v5209_v2 }
 0x573   : > { %v5151_v17 = vpop.permute.xlu1 %5150 }
 0x574   : > { %v7518_v14 = vpack.c.bf16 %v5409_v56, %v5408_v53  ;;  %v5210_v61 = vmul.f32 %v5151_v17, %v11557_v22  ;;  %v5211_v59 = vmul.f32 %v5151_v17, %v11560_v8 }
 0x576   : > { %5592 = vst.msk [vmem:[#allocation2 + $0xa0] sm:$0xff] %vm11731_vm5, %v7518_v14  ;;  %v5410_v37 = vadd.f32 %v11722_v62, %v5210_v61  ;;  %v5411_v23 = vadd.f32 %v11722_v62, %v5211_v59 }
 0x577   : > { %v5156_v31 = vpop.permute.xlu0 %5155 }
 0x578   : > { %v7519_v25 = vpack.c.bf16 %v5411_v23, %v5410_v37  ;;  %v5212_v60 = vmul.f32 %v5156_v31, %v11568_v58  ;;  %v5213_v57 = vmul.f32 %v5156_v31, %v11571_v12 }
 0x57a   : > { %5593 = vst.msk [vmem:[#allocation2 + $0xa8] sm:$0xff] %vm11731_vm5, %v7519_v25  ;;  %v5412_v22 = vadd.f32 %v11724_v7, %v5212_v60  ;;  %v5413_v8 = vadd.f32 %v11724_v7, %v5213_v57 }
 0x57b   : > { %v5161_v13 = vpop.permute.xlu1 %5160 }
 0x57c   : > { %v7520_v28 = vpack.c.bf16 %v5413_v8, %v5412_v22  ;;  %v5214_v12 = vmul.f32 %v5161_v13, %v12757_v6  ;;  %v5215_v3 = vmul.f32 %v5161_v13, %v12758_v11 }
 0x57e   : > { %5594 = vst.msk [vmem:[#allocation2 + $0xb0] sm:$0xff] %vm11731_vm5, %v7520_v28 }
 0x57f   : > { %v5166_v49 = vpop.permute.xlu0 %5165  ;;  %v5366_v58 = vpop.permute.xlu1 %5365 }
 0x580   : > { %v5216_v62 = vmul.f32 %v5166_v49, %v11590_v54  ;;  %v5217_v27 = vmul.f32 %v5166_v49, %v11593_v45 }
 0x582   : > { %v5416_v10 = vadd.f32 %v5366_v58, %v5216_v62  ;;  %v5417_v33 = vadd.f32 %v5366_v58, %v5217_v27 }
 0x583   : > { %v5361_v41 = vpop.permute.xlu0 %5360 }
 0x584   : > { %v7522_v35 = vpack.c.bf16 %v5417_v33, %v5416_v10  ;;  %v5414_v7 = vadd.f32 %v5361_v41, %v5214_v12  ;;  %v5415_v26 = vadd.f32 %v5361_v41, %v5215_v3 }
 0x586   : > { %5596 = vst.msk [vmem:[#allocation2 + $0xc0] sm:$0xff] %vm11731_vm5, %v7522_v35  ;;  %v7521_v20 = vpack.c.bf16 %v5415_v26, %v5414_v7 }
 0x588   : > { %5595 = vst.msk [vmem:[#allocation2 + $0xb8] sm:$0xff] %vm11731_vm5, %v7521_v20 }
 0x589 PF: > { %v8501_v54 = vld [vmem:[#allocation2 + $0x74] ss:$8 sps:$4 sm:$0xff]   ;;  %v8503_v45 = vld [vmem:[#allocation2 + $0x70] ss:$8 sps:$4 sm:$0xff]   ;;  %v8504_v43 = vld [vmem:[#allocation2 + $0x64] ss:$8 sps:$4 sm:$0xff]  }
 0x58a   : > { %5933 = vmatprep.subr.bf16.mxu0 %v8501_v54  ;;  %7820 = vmatprep.subr.bf16.mxu1 %v8501_v54  ;;  %v8506_v19 = vld [vmem:[#allocation2 + $0x60] ss:$8 sps:$4 sm:$0xff]   ;;  %v8507_v32 = vld [vmem:[#allocation2 + $0x54] ss:$8 sps:$4 sm:$0xff]   ;;  %v8668_v39 = vmov 0   ;;  %vm5886_vm6 = vcmask 588800  }
 0x58b   : > { %5934 = vmatpush1.bf16.msra.mxu0 %v8503_v45  ;;  %7833 = vmatpush1.bf16.msra.mxu1 %v8503_v45  ;;  %v8509_v4 = vld [vmem:[#allocation2 + $0x50] ss:$8 sps:$4 sm:$0xff]   ;;  %v8510_v55 = vld [vmem:[#allocation2 + $0x44] ss:$8 sps:$4 sm:$0xff]   ;;  %v8512_v51 = vld [vmem:[#allocation2 + $0x40] ss:$8 sps:$4 sm:$0xff]  }
 0x58c   : > { %5935 = vmatprep.subr.bf16.mxu0 %v8504_v43  ;;  %7821 = vmatprep.subr.bf16.mxu1 %v8504_v43  ;;  %v8513_v18 = vld [vmem:[#allocation2 + $0x34] ss:$8 sps:$4 sm:$0xff]   ;;  %v8515_v44 = vld [vmem:[#allocation2 + $0x30] ss:$8 sps:$4 sm:$0xff]   ;;  %v8516_v50 = vld [vmem:[#allocation2 + $0x24] ss:$8 sps:$4 sm:$0xff]  }
 0x58d   : > { %8500 = vset.pattern.permute.xlu1 %v8668_v39  ;;  %8499 = vset.pattern.permute.xlu0 %v8668_v39  ;;  %v8541_v40 = vld [vmem:[%s8757_s27 + $0x4] ss:$8 sps:$4 sm:$0xff]   ;;  %v8544_v63 = vld [vmem:[%s8757_s27 + $0x74] ss:$8 sps:$4 sm:$0xff]   ;;  %v8518_v38 = vld [vmem:[#allocation2 + $0x20] ss:$8 sps:$4 sm:$0xff]  }
 0x58e   : > { %v8519_v24 = vld [vmem:[#allocation2 + $0x14] ss:$8 sps:$4 sm:$0xff]   ;;  %7481 = vmatprep.mubr.msk.bf16.mxu0 %vm5886_vm6, %v8541_v40  ;;  %7488 = vmatprep.mubr.msk.bf16.mxu1 %vm5886_vm6, %v8544_v63  ;;  %v8521_v36 = vld [vmem:[#allocation2 + $0x10] ss:$8 sps:$4 sm:$0xff]   ;;  %v8522_v5 = vld [vmem:[#allocation2 + $0x4] ss:$8 sps:$4 sm:$0xff]  }
 0x58f   : > { %5936 = vmatpush1.bf16.msra.mxu0 %v8506_v19  ;;  %7834 = vmatpush1.bf16.msra.mxu1 %v8506_v19  ;;  %v5646_v34 = vld [vmem:[#allocation2 + $0xc0] sm:$0xff]  ;;  %vm5926_vm7 = vcmask 1043456   ;;  %v8527_v52 = vld [vmem:[#allocation2 + $0xb4] ss:$8 sps:$4 sm:$0xff]   ;;  %v6721_v0 = vld [vmem:[%s8767_s14 + $0x8] sm:$0xff]  ;;  %vm6094_vm8 = vcmask 556032  }
 0x590   : > { %5937 = vmatprep.subr.bf16.mxu0 %v8507_v32  ;;  %7822 = vmatprep.subr.bf16.mxu1 %v8507_v32  ;;  %v8524_v47 = vld [vmem:[#allocation2] ss:$8 sps:$4 sm:$0xff]   ;;  %v7479_v42 = vcombine.high %v5646_v34, %v5646_v34  ;;  %v7478_v1 = vcombine.low %v5646_v34, %v5646_v34  ;;  %v6723_v29 = vld [vmem:[%s8767_s14 + $0x18] sm:$0xff]  ;;  %v8530_v9 = vld [vmem:[#allocation2 + $0xa4] ss:$8 sps:$4 sm:$0xff]  }
 0x591   : > { %6752 = vperm.xlu1 %8500, %v6721_v0   ;;  %v6720_v30 = vld [vmem:[%s8767_s14] sm:$0xff]  ;;  %v8529_v15 = vld [vmem:[#allocation2 + $0xb0] ss:$8 sps:$4 sm:$0xff]   ;;  %v6725_v21 = vld [vmem:[%s8767_s14 + $0x28] sm:$0xff] }
 0x592   : > { %v5928_v46 = vsel %vm5926_vm7, %v7478_v1, 0  ;;  %6747 = vperm.xlu0 %8499, %v6720_v30   ;;  %v6722_v16 = vld [vmem:[%s8767_s14 + $0x10] sm:$0xff]  ;;  %v8532_v48 = vld [vmem:[#allocation2 + $0xa0] ss:$8 sps:$4 sm:$0xff]   ;;  %v6727_v53 = vld [vmem:[%s8767_s14 + $0x38] sm:$0xff] }
 0x593   : > { %5938 = vmatpush1.bf16.msra.mxu0 %v8509_v4  ;;  %7835 = vmatpush1.bf16.msra.mxu1 %v8509_v4  ;;  %v8533_v2 = vld [vmem:[#allocation2 + $0x94] ss:$8 sps:$4 sm:$0xff]   ;;  %v6724_v56 = vld [vmem:[%s8767_s14 + $0x20] sm:$0xff]  ;;  %v8535_v17 = vld [vmem:[#allocation2 + $0x90] ss:$8 sps:$4 sm:$0xff]  }
 0x594   : > { %5939 = vmatprep.subr.bf16.mxu0 %v8510_v55  ;;  %7823 = vmatprep.subr.bf16.mxu1 %v8510_v55  ;;  %v8536_v14 = vld [vmem:[#allocation2 + $0x84] ss:$8 sps:$4 sm:$0xff]   ;;  %v6726_v61 = vld [vmem:[%s8767_s14 + $0x30] sm:$0xff]  ;;  %v8538_v59 = vld [vmem:[#allocation2 + $0x80] ss:$8 sps:$4 sm:$0xff]  }
 0x595   : > { %6762 = vperm.xlu1 %8500, %v6723_v29   ;;  %v8539_v37 = vld [vmem:[%s8757_s27] ss:$8 sps:$4 sm:$0xff]   ;;  %v8542_v23 = vld [vmem:[%s8757_s27 + $0x70] ss:$8 sps:$4 sm:$0xff]   ;;  %v8545_v31 = vld [vmem:[%s8757_s27 + $0x14] ss:$8 sps:$4 sm:$0xff]  }
 0x596   : > { %6757 = vperm.xlu0 %8499, %v6722_v16   ;;  %v8547_v25 = vld [vmem:[%s8757_s27 + $0x84] ss:$8 sps:$4 sm:$0xff]   ;;  %v8549_v60 = vld [vmem:[%s8757_s27 + $0x10] ss:$8 sps:$4 sm:$0xff]   ;;  %v8550_v57 = vld [vmem:[%s8757_s27 + $0x80] ss:$8 sps:$4 sm:$0xff]  }
 0x597   : > { %5940 = vmatpush1.bf16.msra.mxu0 %v8512_v51  ;;  %7836 = vmatpush1.bf16.msra.mxu1 %v8512_v51  ;;  %v8551_v22 = vld [vmem:[%s8757_s27 + $0x24] ss:$8 sps:$4 sm:$0xff]   ;;  %v8553_v8 = vld [vmem:[%s8757_s27 + $0x94] ss:$8 sps:$4 sm:$0xff]   ;;  %v8555_v13 = vld [vmem:[%s8757_s27 + $0x20] ss:$8 sps:$4 sm:$0xff]  }
 0x598   : > { %5941 = vmatprep.subr.bf16.mxu0 %v8513_v18  ;;  %7824 = vmatprep.subr.bf16.mxu1 %v8513_v18  ;;  %v8556_v28 = vld [vmem:[%s8757_s27 + $0x90] ss:$8 sps:$4 sm:$0xff]   ;;  %v8557_v49 = vld [vmem:[%s8757_s27 + $0x34] ss:$8 sps:$4 sm:$0xff]   ;;  %v8559_v62 = vld [vmem:[%s8757_s27 + $0xa4] ss:$8 sps:$4 sm:$0xff]  }
 0x599   : > { %6772 = vperm.xlu1 %8500, %v6725_v21   ;;  %v8561_v27 = vld [vmem:[%s8757_s27 + $0x30] ss:$8 sps:$4 sm:$0xff]   ;;  %v8562_v58 = vld [vmem:[%s8757_s27 + $0xa0] ss:$8 sps:$4 sm:$0xff]   ;;  %v8563_v6 = vld [vmem:[%s8757_s27 + $0x44] ss:$8 sps:$4 sm:$0xff]  }
 0x59a   : > { %6767 = vperm.xlu0 %8499, %v6724_v56   ;;  %v8565_v12 = vld [vmem:[%s8757_s27 + $0xb4] ss:$8 sps:$4 sm:$0xff]   ;;  %v5621_v11 = vld [vmem:[%s8757_s27 + $0xc0] sm:$0xff]  ;;  %v8568_v10 = vld [vmem:[%s8757_s27 + $0xb0] ss:$8 sps:$4 sm:$0xff]  }
 0x59b   : > { %5942 = vmatpush1.bf16.msra.mxu0 %v8515_v44  ;;  %7837 = vmatpush1.bf16.msra.mxu1 %v8515_v44  ;;  %v8567_v3 = vld [vmem:[%s8757_s27 + $0x40] ss:$8 sps:$4 sm:$0xff]   ;;  %v8569_v33 = vld [vmem:[%s8757_s27 + $0x54] ss:$8 sps:$4 sm:$0xff]   ;;  %v7453_v41 = vcombine.high %v5621_v11, %v5621_v11  ;;  %v8571_v35 = vld [vmem:[%s8757_s27 + $0x50] ss:$8 sps:$4 sm:$0xff]   ;;  %v7452_v7 = vcombine.low %v5621_v11, %v5621_v11 }
 0x59c   : > { %5943 = vmatprep.subr.bf16.mxu0 %v8516_v50  ;;  %7825 = vmatprep.subr.bf16.mxu1 %v8516_v50  ;;  %v8574_v26 = vld [vmem:[%s8757_s27 + $0x64] ss:$8 sps:$4 sm:$0xff]   ;;  %v8576_v20 = vld [vmem:[%s8757_s27 + $0x60] ss:$8 sps:$4 sm:$0xff]  }
 0x59d   : > { %6782 = vperm.xlu1 %8500, %v6727_v53  }
 0x59e   : > { %6777 = vperm.xlu0 %8499, %v6726_v61  }
 0x59f   : > { %5944 = vmatpush1.bf16.msra.mxu0 %v8518_v38  ;;  %7838 = vmatpush1.bf16.msra.mxu1 %v8518_v38 }
 0x5a0   : > { %5945 = vmatprep.subr.bf16.mxu0 %v8519_v24  ;;  %7826 = vmatprep.subr.bf16.mxu1 %v8519_v24 }
 0x5a3   : > { %5946 = vmatpush1.bf16.msra.mxu0 %v8521_v36  ;;  %7839 = vmatpush1.bf16.msra.mxu1 %v8521_v36 }
 0x5a4   : > { %5947 = vmatprep.subr.bf16.mxu0 %v8522_v5  ;;  %7827 = vmatprep.subr.bf16.mxu1 %v8522_v5 }
 0x5a7   : > { %5948 = vmatpush1.bf16.msra.mxu0 %v8524_v47  ;;  %7840 = vmatpush1.bf16.msra.mxu1 %v8524_v47 }
 0x5a8   : > { %7480 = vmatprep.subr.msk.bf16.mxu0 %vm5926_vm7, %v7479_v42  ;;  %7828 = vmatprep.subr.msk.bf16.mxu1 %vm5926_vm7, %v7479_v42 }
 0x5ab   : > { %5956 = vmatpush2.bf16.msra.mxu0 %v5928_v46  ;;  %7841 = vmatpush2.bf16.msra.mxu1 %v5928_v46 }
 0x5ac   : > { %5957 = vmatprep.subr.bf16.mxu0 %v8527_v52  ;;  %7829 = vmatprep.subr.bf16.mxu1 %v8527_v52 }
 0x5af   : > { %5958 = vmatpush2.bf16.msra.mxu0 %v8529_v15  ;;  %7842 = vmatpush2.bf16.msra.mxu1 %v8529_v15 }
 0x5b0   : > { %5959 = vmatprep.subr.bf16.mxu0 %v8530_v9  ;;  %7830 = vmatprep.subr.bf16.mxu1 %v8530_v9 }
 0x5b3   : > { %5960 = vmatpush2.bf16.msra.mxu0 %v8532_v48  ;;  %7843 = vmatpush2.bf16.msra.mxu1 %v8532_v48 }
 0x5b4   : > { %5961 = vmatprep.subr.bf16.mxu0 %v8533_v2  ;;  %7831 = vmatprep.subr.bf16.mxu1 %v8533_v2 }
 0x5b7   : > { %5962 = vmatpush2.bf16.msra.mxu0 %v8535_v17  ;;  %7844 = vmatpush2.bf16.msra.mxu1 %v8535_v17 }
 0x5b8   : > { %5963 = vmatprep.subr.bf16.mxu0 %v8536_v14  ;;  %7832 = vmatprep.subr.bf16.mxu1 %v8536_v14 }
 0x5bb   : > { %5964 = vmatpush2.bf16.msra.mxu0 %v8538_v59  ;;  %7845 = vmatpush2.bf16.msra.mxu1 %v8538_v59 }
 0x5be   : > { %5966 = vmatmul.mubr.bf16.vlgmr.msra.gmra.mxu0 %v8539_v37  ;;  %6036 = vmatmul.mubr.bf16.vlgmr.msra.gmra.mxu1 %v8542_v23 }
 0x5bf   : > { %7482 = vmatprep.mubr.msk.bf16.mxu0 %vm5886_vm6, %v8545_v31  ;;  %7489 = vmatprep.mubr.msk.bf16.mxu1 %vm5886_vm6, %v8547_v25 }
 0x5c6   : > { %5976 = vmatmul.mubr.bf16.gmra.mxu0 %v8549_v60  ;;  %6046 = vmatmul.mubr.bf16.gmra.mxu1 %v8550_v57 }
 0x5c7   : > { %7483 = vmatprep.mubr.msk.bf16.mxu0 %vm5886_vm6, %v8551_v22  ;;  %7490 = vmatprep.mubr.msk.bf16.mxu1 %vm5886_vm6, %v8553_v8 }
 0x5ce   : > { %5986 = vmatmul.mubr.bf16.gmra.mxu0 %v8555_v13  ;;  %6056 = vmatmul.mubr.bf16.gmra.mxu1 %v8556_v28 }
 0x5cf   : > { %7484 = vmatprep.mubr.msk.bf16.mxu0 %vm5886_vm6, %v8557_v49  ;;  %7491 = vmatprep.mubr.msk.bf16.mxu1 %vm5886_vm6, %v8559_v62 }
 0x5d6   : > { %5996 = vmatmul.mubr.bf16.gmra.mxu0 %v8561_v27  ;;  %6066 = vmatmul.mubr.bf16.gmra.mxu1 %v8562_v58 }
 0x5d7   : > { %7485 = vmatprep.mubr.msk.bf16.mxu0 %vm5886_vm6, %v8563_v6  ;;  %7492 = vmatprep.mubr.msk.bf16.mxu1 %vm5886_vm6, %v8565_v12 }
 0x5de   : > { %6006 = vmatmul.mubr.bf16.gmra.mxu0 %v8567_v3  ;;  %6076 = vmatmul.mubr.bf16.gmra.mxu1 %v8568_v10 }
 0x5df   : > { %7486 = vmatprep.mubr.msk.bf16.mxu0 %vm5886_vm6, %v8569_v33  ;;  %7493 = vmatprep.mubr.msk.bf16.mxu1 %vm5886_vm6, %v7453_v41 }
 0x5e6   : > { %6016 = vmatmul.mubr.bf16.gmra.mxu0 %v8571_v35  ;;  %6086 = vmatmul.mubr.bf16.gmra.mxu1 %v7452_v7 }
 0x5e7   : > { %7487 = vmatprep.mubr.msk.bf16.mxu0 %vm5886_vm6, %v8574_v26 }
 0x5ee   : > { %6026 = vmatmul.mubr.bf16.gmra.mxu0 %v8576_v20 }
 0x67e   : > { %v11923_v54 = vpop.f32.mrf.mxu0  ;;  %v11925_v45 = vpop.f32.mrf.mxu1 }
 0x680   : > { %v11927_v43 = vpop.f32.mrf.mxu0  ;;  %v11929_v19 = vpop.f32.mrf.mxu1 }
 0x681   : > { %v6095_v32 = vsel %vm6094_vm8, %v11927_v43, 0.0  ;;  %v6151_v51 = vsel %vm6094_vm8, %v11929_v19, 0.0 }
 0x682   : > { %v11933_v39 = vpop.f32.mrf.mxu0  ;;  %v11935_v4 = vpop.f32.mrf.mxu1  ;;  %v6096_v55 = vadd.f32 %v6095_v32, %v11923_v54  ;;  %v6152_v24 = vadd.f32 %v6151_v51, %v11925_v45 }
 0x684   : > { %v11940_v18 = vpop.f32.mrf.mxu1  ;;  %6097 = vadd.xlane.f32.xlu0 %v6096_v55  ;;  %v11942_v44 = vpop.f32.mrf.mxu0 }
 0x685   : > { %v6155_v50 = vsel %vm6094_vm8, %v11940_v18, 0.0  ;;  %v6099_v36 = vsel %vm6094_vm8, %v11942_v44, 0.0 }
 0x686   : > { %v11946_v40 = vpop.f32.mrf.mxu0  ;;  %v11948_v63 = vpop.f32.mrf.mxu1  ;;  %v6156_v38 = vadd.f32 %v6155_v50, %v11935_v4  ;;  %v6100_v46 = vadd.f32 %v6099_v36, %v11933_v39 }
 0x688   : > { %6157 = vadd.xlane.f32.xlu1 %v6156_v38  ;;  %v11954_v5 = vpop.f32.mrf.mxu1  ;;  %6153 = vadd.xlane.f32.xlu0 %v6152_v24  ;;  %v11956_v34 = vpop.f32.mrf.mxu0 }
 0x689   : > { %v6103_v47 = vsel %vm6094_vm8, %v11956_v34, 0.0  ;;  %v6159_v0 = vsel %vm6094_vm8, %v11954_v5, 0.0 }
 0x68a   : > { %v11960_v42 = vpop.f32.mrf.mxu0  ;;  %v11962_v1 = vpop.f32.mrf.mxu1  ;;  %v6104_v52 = vadd.f32 %v6103_v47, %v11946_v40  ;;  %v6160_v16 = vadd.f32 %v6159_v0, %v11948_v63 }
 0x68c   : > { %v11968_v29 = vpop.f32.mrf.mxu1  ;;  %6101 = vadd.xlane.f32.xlu0 %v6100_v46  ;;  %6105 = vadd.xlane.f32.xlu1 %v6104_v52  ;;  %v11970_v30 = vpop.f32.mrf.mxu0 }
 0x68d   : > { %v6107_v15 = vsel %vm6094_vm8, %v11970_v30, 0.0  ;;  %v6163_v2 = vsel %vm6094_vm8, %v11968_v29, 0.0 }
 0x68e   : > { %v11974_v9 = vpop.f32.mrf.mxu0  ;;  %v11976_v21 = vpop.f32.mrf.mxu1  ;;  %v6108_v48 = vadd.f32 %v6107_v15, %v11960_v42  ;;  %v6164_v59 = vadd.f32 %v6163_v2, %v11962_v1 }
 0x690   : > { %v11982_v53 = vpop.f32.mrf.mxu1  ;;  %6161 = vadd.xlane.f32.xlu0 %v6160_v16  ;;  %6109 = vadd.xlane.f32.xlu1 %v6108_v48  ;;  %v11984_v56 = vpop.f32.mrf.mxu0 }
 0x691   : > { %v6111_v17 = vsel %vm6094_vm8, %v11984_v56, 0.0  ;;  %v6167_v23 = vsel %vm6094_vm8, %v11982_v53, 0.0 }
 0x692   : > { %v11988_v14 = vpop.f32.mrf.mxu0  ;;  %v11990_v61 = vpop.f32.mrf.mxu1  ;;  %v6112_v37 = vadd.f32 %v6111_v17, %v11974_v9  ;;  %v6168_v8 = vadd.f32 %v6167_v23, %v11976_v21 }
 0x694   : > { %v11996_v31 = vpop.f32.mrf.mxu1  ;;  %6165 = vadd.xlane.f32.xlu1 %v6164_v59  ;;  %6113 = vadd.xlane.f32.xlu0 %v6112_v37  ;;  %v11998_v25 = vpop.f32.mrf.mxu0 }
 0x695   : > { %v6115_v60 = vsel %vm6094_vm8, %v11998_v25, 0.0  ;;  %v6171_v28 = vsel %vm6094_vm8, %v11996_v31, 0.0 }
 0x696   : > { %v12002_v57 = vpop.f32.mrf.mxu0  ;;  %v12004_v22 = vpop.f32.mrf.mxu1  ;;  %v6116_v13 = vadd.f32 %v6115_v60, %v11988_v14  ;;  %v6172_v12 = vadd.f32 %v6171_v28, %v11990_v61 }
 0x698   : > { %v12010_v49 = vpop.f32.mrf.mxu1  ;;  %6169 = vadd.xlane.f32.xlu0 %v6168_v8  ;;  %6117 = vadd.xlane.f32.xlu1 %v6116_v13  ;;  %v12012_v62 = vpop.f32.mrf.mxu0 }
 0x699   : > { %v6119_v27 = vsel %vm6094_vm8, %v12012_v62, 0.0  ;;  %v6175_v3 = vsel %vm6094_vm8, %v12010_v49, 0.0 }
 0x69a   : > { %v12016_v58 = vpop.f32.mrf.mxu0  ;;  %v12018_v6 = vpop.f32.mrf.mxu1  ;;  %v6120_v11 = vadd.f32 %v6119_v27, %v12002_v57  ;;  %v6176_v26 = vadd.f32 %v6175_v3, %v12004_v22 }
 0x69c   : > { %v12024_v10 = vpop.f32.mrf.mxu1  ;;  %6173 = vadd.xlane.f32.xlu1 %v6172_v12  ;;  %6121 = vadd.xlane.f32.xlu0 %v6120_v11  ;;  %v12026_v33 = vpop.f32.mrf.mxu0 }
 0x69d   : > { %v6123_v41 = vsel %vm6094_vm8, %v12026_v33, 0.0  ;;  %v6179_v32 = vsel %vm6094_vm8, %v12024_v10, 0.0 }
 0x69e   : > { %v12030_v35 = vpop.f32.mrf.mxu0  ;;  %v12032_v7 = vpop.f32.mrf.mxu1  ;;  %v6124_v20 = vadd.f32 %v6123_v41, %v12016_v58  ;;  %v6180_v36 = vadd.f32 %v6179_v32, %v12018_v6 }
 0x6a0   : > { %v12038_v55 = vpop.f32.mrf.mxu1  ;;  %6177 = vadd.xlane.f32.xlu0 %v6176_v26  ;;  %6125 = vadd.xlane.f32.xlu1 %v6124_v20  ;;  %v12040_v51 = vpop.f32.mrf.mxu0 }
 0x6a1   : > { %v6127_v50 = vsel %vm6094_vm8, %v12040_v51, 0.0  ;;  %v6183_v46 = vsel %vm6094_vm8, %v12038_v55, 0.0 }
 0x6a2   : > { %v12044_v38 = vpop.f32.mrf.mxu0  ;;  %v12046_v24 = vpop.f32.mrf.mxu1  ;;  %v6128_v47 = vadd.f32 %v6127_v50, %v12030_v35  ;;  %v6184_v48 = vadd.f32 %v6183_v46, %v12032_v7  ;;  %v6729_v46 = vld [vmem:[%s8767_s14 + $0x48] sm:$0xff] }
 0x6a4   : > { %v12052_v52 = vpop.f32.mrf.mxu1  ;;  %6181 = vadd.xlane.f32.xlu1 %v6180_v36  ;;  %6129 = vadd.xlane.f32.xlu0 %v6128_v47  ;;  %v12054_v0 = vpop.f32.mrf.mxu0 }
 0x6a5   : > { %v6131_v15 = vsel %vm6094_vm8, %v12054_v0, 0.0  ;;  %v6187_v59 = vsel %vm6094_vm8, %v12052_v52, 0.0 }
 0x6a6   : > { %v12058_v16 = vpop.f32.mrf.mxu0  ;;  %v6132_v2 = vadd.f32 %v6131_v15, %v12044_v38  ;;  %v12062_v17 = vpop.f32.mrf.mxu1  ;;  %v6188_v28 = vadd.f32 %v6187_v59, %v12046_v24  ;;  %v6728_v15 = vld [vmem:[%s8767_s14 + $0x40] sm:$0xff] }
 0x6a8   : > { %6185 = vadd.xlane.f32.xlu0 %v6184_v48  ;;  %6133 = vadd.xlane.f32.xlu1 %v6132_v2  ;;  %v12066_v37 = vpop.f32.mrf.mxu0  ;;  %v12068_v23 = vpop.f32.mrf.mxu1 }
 0x6a9   : > { %v6135_v60 = vsel %vm6094_vm8, %v12066_v37, 0.0  ;;  %v6191_v8 = vsel %vm6094_vm8, %v12068_v23, 0.0 }
 0x6aa   : > { %v12074_v13 = vpop.f32.mrf.mxu0  ;;  %v6136_v27 = vadd.f32 %v6135_v60, %v12058_v16  ;;  %v6091_v12 = vpop.f32.mrf.mxu1  ;;  %v6192_v3 = vadd.f32 %v6191_v8, %v12062_v17 }
 0x6ab   : > { %v12100_v8 = vpop.permute.xlu0 %6747 }
 0x6ac   : > { %6189 = vadd.xlane.f32.xlu1 %v6188_v28  ;;  %6137 = vadd.xlane.f32.xlu0 %v6136_v27  ;;  %v12078_v11 = vpop.f32.mrf.mxu0  ;;  %v6092_v41 = vpop.f32.mrf.mxu1  ;;  %12759 = vst [vmem:[#allocation24_spill] sm:$0xff] %v12100_v8 }
 0x6ad   : > { %v6139_v26 = vsel %vm6094_vm8, %v12078_v11, 0.0  ;;  %v12102_v28 = vpop.permute.xlu1 %6752 }
 0x6ae   : > { %v12083_v20 = vpop.f32.mrf.mxu0  ;;  %v6140_v32 = vadd.f32 %v6139_v26, %v12074_v13  ;;  %12760 = vst [vmem:[#allocation25_spill] sm:$0xff] %v12102_v28 }
 0x6af   : > { %v12104_v27 = vpop.permute.xlu0 %6757 }
 0x6b0   : > { %6193 = vadd.xlane.f32.xlu0 %v6192_v3  ;;  %6141 = vadd.xlane.f32.xlu1 %v6140_v32  ;;  %v12086_v50 = vpop.f32.mrf.mxu0  ;;  %12761 = vst [vmem:[#allocation26_spill] sm:$0xff] %v12104_v27 }
 0x6b1   : > { %v6143_v36 = vsel %vm6094_vm8, %v12086_v50, 0.0  ;;  %v12106_v12 = vpop.permute.xlu1 %6762 }
 0x6b2   : > { %v6144_v47 = vadd.f32 %v6143_v36, %v12083_v20  ;;  %v12093_v48 = vpop.f32.mrf.mxu0  ;;  %12762 = vst [vmem:[#allocation27_spill] sm:$0xff] %v12106_v12 }
 0x6b3   : > { %v12108_v3 = vpop.permute.xlu0 %6767 }
 0x6b4   : > { %6145 = vadd.xlane.f32.xlu0 %v6144_v47  ;;  %v12095_v2 = vpop.f32.mrf.mxu0  ;;  %12763 = vst [vmem:[#allocation28_spill] sm:$0xff] %v12108_v3 }
 0x6b5   : > { %v6147_v59 = vsel %vm6094_vm8, %v12095_v2, 0.0  ;;  %v12110_v41 = vpop.permute.xlu1 %6772 }
 0x6b6   : > { %v6148_v60 = vadd.f32 %v6147_v59, %v12093_v48  ;;  %12764 = vst [vmem:[#allocation29_spill] sm:$0xff] %v12110_v41 }
 0x6b7   : > { %v12112_v26 = vpop.permute.xlu0 %6777 }
 0x6b8   : > { %12765 = vst [vmem:[#allocation30_spill] sm:$0xff] %v12112_v26 }
 0x6b9   : > { %v12114_v32 = vpop.permute.xlu1 %6782 }
 0x6ba   : > { %12766 = vst [vmem:[#allocation31_spill] sm:$0xff] %v12114_v32 }
 0x6c1   : > { %6792 = vperm.xlu1 %8500, %v6729_v46  }
 0x6ca   : > { %6787 = vperm.xlu0 %8499, %v6728_v15  }
 0x6e5   : > { %6149 = vadd.xlane.f32.xlu1 %v6148_v60 }
 0x70d   : > { %v6098_v36 = vpop.xlane.xlu0 %6097 }
 0x70e   : > { %v6195_v47 = vmul.f32 0.0051020407, %v6098_v36 }
 0x710   : > { %v12117_v46 = vsub.f32 %v11923_v54, %v6195_v47  ;;  %v12120_v15 = vsub.f32 %v11927_v43, %v6195_v47 }
 0x711   : > { %v6158_v59 = vpop.xlane.xlu1 %6157  ;;  %v6154_v60 = vpop.xlane.xlu0 %6153 }
 0x712   : > { %12767 = vst [vmem:[#allocation32_spill] sm:$0xff] %v12120_v15  ;;  %v6210_v27 = vmul.f32 0.0051020407, %v6158_v59  ;;  %v6209_v12 = vmul.f32 0.0051020407, %v6154_v60  ;;  %v6270_v3 = vmul.f32 %v12117_v46, %v12117_v46  ;;  %v6271_v26 = vmul.f32 %v12120_v15, %v12120_v15 }
 0x714   : > { %v12127_v32 = vsub.f32 %v11925_v45, %v6209_v12  ;;  %v12130_v36 = vsub.f32 %v11929_v19, %v6209_v12  ;;  %v12133_v54 = vsub.f32 %v11940_v18, %v6210_v27  ;;  %v6320_v59 = vsel %vm6094_vm8, %v6271_v26, 0.0 }
 0x715   : > { %v6102_v43 = vpop.xlane.xlu0 %6101  ;;  %v6106_v47 = vpop.xlane.xlu1 %6105  ;;  %v6321_v28 = vadd.f32 %v6320_v59, %v6270_v3  ;;  %v12139_v15 = vsub.f32 %v11935_v4, %v6210_v27 }
 0x716   : > { %12768 = vst [vmem:[#allocation33_spill] sm:$0xff] %v12133_v54  ;;  %v6196_v60 = vmul.f32 0.0051020407, %v6102_v43  ;;  %v6197_v41 = vmul.f32 0.0051020407, %v6106_v47  ;;  %v6298_v8 = vmul.f32 %v12127_v32, %v12127_v32  ;;  %v6299_v45 = vmul.f32 %v12130_v36, %v12130_v36 }
 0x717   : > { %12769 = vst [vmem:[#allocation34_spill] sm:$0xff] %v12139_v15  ;;  %6322 = vadd.xlane.f32.xlu1 %v6321_v28  ;;  %v6301_v27 = vmul.f32 %v12133_v54, %v12133_v54 }
 0x718   : > { %v12144_v19 = vsub.f32 %v11933_v39, %v6196_v60  ;;  %v12147_v18 = vsub.f32 %v11942_v44, %v6196_v60  ;;  %v12150_v12 = vsub.f32 %v11946_v40, %v6197_v41  ;;  %v12153_v3 = vsub.f32 %v11956_v34, %v6197_v41 }
 0x719   : > { %v6162_v26 = vpop.xlane.xlu0 %6161  ;;  %v6110_v43 = vpop.xlane.xlu1 %6109  ;;  %v6376_v4 = vsel %vm6094_vm8, %v6299_v45, 0.0  ;;  %v6300_v45 = vmul.f32 %v12139_v15, %v12139_v15 }
 0x71a   : > { %12770 = vst [vmem:[#allocation35_spill] sm:$0xff] %v12150_v12  ;;  %12771 = vst [vmem:[#allocation36_spill] sm:$0xff] %v12153_v3  ;;  %v6211_v47 = vmul.f32 0.0051020407, %v6162_v26  ;;  %v6198_v39 = vmul.f32 0.0051020407, %v6110_v43  ;;  %v6377_v59 = vadd.f32 %v6376_v4, %v6298_v8  ;;  %v6272_v44 = vmul.f32 %v12144_v19, %v12144_v19 }
 0x71b   : > { %v6273_v40 = vmul.f32 %v12147_v18, %v12147_v18  ;;  %v6274_v34 = vmul.f32 %v12150_v12, %v12150_v12  ;;  %v6275_v28 = vmul.f32 %v12153_v3, %v12153_v3  ;;  %v6380_v12 = vsel %vm6094_vm8, %v6301_v27, 0.0 }
 0x71c   : > { %v12167_v41 = vsub.f32 %v11948_v63, %v6211_v47  ;;  %v12170_v60 = vsub.f32 %v11954_v5, %v6211_v47  ;;  %v12173_v8 = vsub.f32 %v11970_v30, %v6198_v39  ;;  %6378 = vadd.xlane.f32.xlu1 %v6377_v59  ;;  %v12178_v26 = vsub.f32 %v11960_v42, %v6198_v39 }
 0x71d   : > { %v6166_v43 = vpop.xlane.xlu1 %6165  ;;  %v6114_v4 = vpop.xlane.xlu0 %6113  ;;  %v6324_v3 = vsel %vm6094_vm8, %v6273_v40, 0.0  ;;  %v6328_v63 = vsel %vm6094_vm8, %v6275_v28, 0.0  ;;  %v6381_v28 = vadd.f32 %v6380_v12, %v6300_v45 }
 0x71e   : > { %12772 = vst [vmem:[#allocation37_spill] sm:$0xff] %v12173_v8  ;;  %v6212_v5 = vmul.f32 0.0051020407, %v6166_v43  ;;  %v6199_v47 = vmul.f32 0.0051020407, %v6114_v4  ;;  %v6325_v54 = vadd.f32 %v6324_v3, %v6272_v44  ;;  %v6329_v30 = vadd.f32 %v6328_v63, %v6274_v34 }
 0x71f   : > { %v6302_v59 = vmul.f32 %v12167_v41, %v12167_v41  ;;  %v6303_v15 = vmul.f32 %v12170_v60, %v12170_v60  ;;  %v6277_v42 = vmul.f32 %v12173_v8, %v12173_v8 }
 0x720   : > { %v12190_v39 = vsub.f32 %v11968_v29, %v6212_v5  ;;  %v12193_v40 = vsub.f32 %v11974_v9, %v6199_v47  ;;  %v12196_v27 = vsub.f32 %v11984_v56, %v6199_v47  ;;  %6326 = vadd.xlane.f32.xlu0 %v6325_v54  ;;  %v12199_v3 = vsub.f32 %v11962_v1, %v6212_v5 }
 0x721   : > { %6330 = vadd.xlane.f32.xlu1 %v6329_v30  ;;  %v6170_v44 = vpop.xlane.xlu0 %6169  ;;  %v6118_v34 = vpop.xlane.xlu1 %6117  ;;  %v6384_v43 = vsel %vm6094_vm8, %v6303_v15, 0.0  ;;  %v6276_v29 = vmul.f32 %v12178_v26, %v12178_v26  ;;  %v6332_v8 = vsel %vm6094_vm8, %v6277_v42, 0.0 }
 0x722   : > { %v6213_v4 = vmul.f32 0.0051020407, %v6170_v44  ;;  %v6200_v63 = vmul.f32 0.0051020407, %v6118_v34  ;;  %v6385_v9 = vadd.f32 %v6384_v43, %v6302_v59  ;;  %v6278_v56 = vmul.f32 %v12193_v40, %v12193_v40 }
 0x723   : > { %v6279_v1 = vmul.f32 %v12196_v27, %v12196_v27  ;;  %v6305_v54 = vmul.f32 %v12190_v39, %v12190_v39  ;;  %v6333_v59 = vadd.f32 %v6332_v8, %v6276_v29 }
 0x724   : > { %v12212_v12 = vsub.f32 %v11976_v21, %v6213_v4  ;;  %v12215_v15 = vsub.f32 %v11982_v53, %v6213_v4  ;;  %v12218_v45 = vsub.f32 %v11998_v25, %v6200_v63  ;;  %6382 = vadd.xlane.f32.xlu0 %v6381_v28  ;;  %v12221_v5 = vsub.f32 %v11988_v14, %v6200_v63 }
 0x725   : > { %6386 = vadd.xlane.f32.xlu1 %v6385_v9  ;;  %v6174_v47 = vpop.xlane.xlu1 %6173  ;;  %v6122_v30 = vpop.xlane.xlu0 %6121  ;;  %v6336_v42 = vsel %vm6094_vm8, %v6279_v1, 0.0  ;;  %v6304_v21 = vmul.f32 %v12199_v3, %v12199_v3  ;;  %v6388_v43 = vsel %vm6094_vm8, %v6305_v54, 0.0 }
 0x726   : > { %v6214_v44 = vmul.f32 0.0051020407, %v6174_v47  ;;  %v6201_v34 = vmul.f32 0.0051020407, %v6122_v30  ;;  %v6337_v53 = vadd.f32 %v6336_v42, %v6278_v56  ;;  %v6306_v25 = vmul.f32 %v12212_v12, %v12212_v12 }
 0x727   : > { %v6307_v14 = vmul.f32 %v12215_v15, %v12215_v15  ;;  %v6281_v28 = vmul.f32 %v12218_v45, %v12218_v45  ;;  %v6389_v1 = vadd.f32 %v6388_v43, %v6304_v21 }
 0x728   : > { %v12234_v8 = vsub.f32 %v11996_v31, %v6214_v44  ;;  %v12237_v29 = vsub.f32 %v12002_v57, %v6201_v34  ;;  %v12240_v4 = vsub.f32 %v12012_v62, %v6201_v34  ;;  %6334 = vadd.xlane.f32.xlu0 %v6333_v59  ;;  %v12243_v63 = vsub.f32 %v11990_v61, %v6214_v44 }
 0x729   : > { %6338 = vadd.xlane.f32.xlu1 %v6337_v53  ;;  %v6178_v9 = vpop.xlane.xlu0 %6177  ;;  %v6126_v56 = vpop.xlane.xlu1 %6125  ;;  %v6392_v54 = vsel %vm6094_vm8, %v6307_v14, 0.0  ;;  %v6280_v31 = vmul.f32 %v12221_v5, %v12221_v5  ;;  %v6340_v42 = vsel %vm6094_vm8, %v6281_v28, 0.0 }
 0x72a   : > { %v6215_v47 = vmul.f32 0.0051020407, %v6178_v9  ;;  %v6202_v30 = vmul.f32 0.0051020407, %v6126_v56  ;;  %v6393_v57 = vadd.f32 %v6392_v54, %v6306_v25  ;;  %v6282_v62 = vmul.f32 %v12237_v29, %v12237_v29 }
 0x72b   : > { %v6283_v61 = vmul.f32 %v12240_v4, %v12240_v4  ;;  %v6309_v59 = vmul.f32 %v12234_v8, %v12234_v8  ;;  %v6341_v14 = vadd.f32 %v6340_v42, %v6280_v31 }
 0x72c   : > { %v12256_v21 = vsub.f32 %v12004_v22, %v6215_v47  ;;  %v12259_v44 = vsub.f32 %v12010_v49, %v6215_v47  ;;  %v12262_v34 = vsub.f32 %v12026_v33, %v6202_v30  ;;  %6390 = vadd.xlane.f32.xlu0 %v6389_v1  ;;  %v12265_v53 = vsub.f32 %v12016_v58, %v6202_v30 }
 0x72d   : > { %6394 = vadd.xlane.f32.xlu1 %v6393_v57  ;;  %v6182_v43 = vpop.xlane.xlu1 %6181  ;;  %v6130_v25 = vpop.xlane.xlu0 %6129  ;;  %v6344_v28 = vsel %vm6094_vm8, %v6283_v61, 0.0  ;;  %v6308_v22 = vmul.f32 %v12243_v63, %v12243_v63  ;;  %v6396_v54 = vsel %vm6094_vm8, %v6309_v59, 0.0 }
 0x72e   : > { %v6216_v9 = vmul.f32 0.0051020407, %v6182_v43  ;;  %v6203_v56 = vmul.f32 0.0051020407, %v6130_v25  ;;  %v6345_v49 = vadd.f32 %v6344_v28, %v6282_v62  ;;  %v6310_v33 = vmul.f32 %v12256_v21, %v12256_v21 }
 0x72f   : > { %v6311_v58 = vmul.f32 %v12259_v44, %v12259_v44  ;;  %v6285_v1 = vmul.f32 %v12262_v34, %v12262_v34  ;;  %v6397_v61 = vadd.f32 %v6396_v54, %v6308_v22 }
 0x730   : > { %v12278_v31 = vsub.f32 %v12024_v10, %v6216_v9  ;;  %v12281_v47 = vsub.f32 %v12030_v35, %v6203_v56  ;;  %v12284_v30 = vsub.f32 %v12040_v51, %v6203_v56  ;;  %6342 = vadd.xlane.f32.xlu0 %v6341_v14  ;;  %v12287_v57 = vsub.f32 %v12018_v6, %v6216_v9 }
 0x731   : > { %6346 = vadd.xlane.f32.xlu1 %v6345_v49  ;;  %v6186_v42 = vpop.xlane.xlu0 %6185  ;;  %v6134_v62 = vpop.xlane.xlu1 %6133  ;;  %v6400_v59 = vsel %vm6094_vm8, %v6311_v58, 0.0  ;;  %v6284_v10 = vmul.f32 %v12265_v53, %v12265_v53  ;;  %v6348_v28 = vsel %vm6094_vm8, %v6285_v1, 0.0 }
 0x732   : > { %v6217_v43 = vmul.f32 0.0051020407, %v6186_v42  ;;  %v6204_v25 = vmul.f32 0.0051020407, %v6134_v62  ;;  %v6401_v35 = vadd.f32 %v6400_v59, %v6310_v33  ;;  %v6286_v51 = vmul.f32 %v12281_v47, %v12281_v47 }
 0x733   : > { %v6287_v6 = vmul.f32 %v12284_v30, %v12284_v30  ;;  %v6313_v14 = vmul.f32 %v12278_v31, %v12278_v31  ;;  %v6349_v58 = vadd.f32 %v6348_v28, %v6284_v10 }
 0x734   : > { %v12300_v22 = vsub.f32 %v12032_v7, %v6217_v43  ;;  %v12303_v9 = vsub.f32 %v12038_v55, %v6217_v43  ;;  %v12306_v56 = vsub.f32 %v12054_v0, %v6204_v25  ;;  %6398 = vadd.xlane.f32.xlu0 %v6397_v61  ;;  %v12309_v49 = vsub.f32 %v12044_v38, %v6204_v25 }
 0x735   : > { %6402 = vadd.xlane.f32.xlu1 %v6401_v35  ;;  %v6190_v54 = vpop.xlane.xlu1 %6189  ;;  %v6138_v33 = vpop.xlane.xlu0 %6137  ;;  %v6352_v1 = vsel %vm6094_vm8, %v6287_v6, 0.0  ;;  %v6312_v7 = vmul.f32 %v12287_v57, %v12287_v57  ;;  %v6404_v59 = vsel %vm6094_vm8, %v6313_v14, 0.0 }
 0x736   : > { %v6218_v42 = vmul.f32 0.0051020407, %v6190_v54  ;;  %v6205_v62 = vmul.f32 0.0051020407, %v6138_v33  ;;  %v6353_v55 = vadd.f32 %v6352_v1, %v6286_v51  ;;  %v6314_v0 = vmul.f32 %v12300_v22, %v12300_v22 }
 0x737   : > { %v6315_v38 = vmul.f32 %v12303_v9, %v12303_v9  ;;  %v6289_v61 = vmul.f32 %v12306_v56, %v12306_v56  ;;  %v6405_v6 = vadd.f32 %v6404_v59, %v6312_v7 }
 0x738   : > { %v12322_v10 = vsub.f32 %v12052_v52, %v6218_v42  ;;  %v12325_v43 = vsub.f32 %v12058_v16, %v6205_v62  ;;  %v12328_v25 = vsub.f32 %v12066_v37, %v6205_v62  ;;  %6350 = vadd.xlane.f32.xlu0 %v6349_v58  ;;  %v12331_v35 = vsub.f32 %v12046_v24, %v6218_v42 }
 0x739   : > { %6354 = vadd.xlane.f32.xlu1 %v6353_v55  ;;  %v6194_v28 = vpop.xlane.xlu0 %6193  ;;  %v6142_v51 = vpop.xlane.xlu1 %6141  ;;  %v6408_v14 = vsel %vm6094_vm8, %v6315_v38, 0.0  ;;  %v6288_v52 = vmul.f32 %v12309_v49, %v12309_v49  ;;  %v6356_v1 = vsel %vm6094_vm8, %v6289_v61, 0.0 }
 0x73a   : > { %12773 = vst [vmem:[#allocation38_spill] sm:$0xff] %v12322_v10  ;;  %12774 = vst [vmem:[#allocation39_spill] sm:$0xff] %v12331_v35  ;;  %v6219_v54 = vmul.f32 0.0051020407, %v6194_v28  ;;  %v6206_v33 = vmul.f32 0.0051020407, %v6142_v51  ;;  %v6409_v16 = vadd.f32 %v6408_v14, %v6314_v0  ;;  %v6290_v37 = vmul.f32 %v12325_v43, %v12325_v43 }
 0x73b   : > { %v6291_v24 = vmul.f32 %v12328_v25, %v12328_v25  ;;  %v6317_v58 = vmul.f32 %v12322_v10, %v12322_v10  ;;  %v6357_v0 = vadd.f32 %v6356_v1, %v6288_v52  ;;  %v6316_v61 = vmul.f32 %v12331_v35, %v12331_v35 }
 0x73c   : > { %v12344_v7 = vsub.f32 %v12062_v17, %v6219_v54  ;;  %v12347_v42 = vsub.f32 %v12068_v23, %v6219_v54  ;;  %v12350_v62 = vsub.f32 %v12078_v11, %v6206_v33  ;;  %6406 = vadd.xlane.f32.xlu0 %v6405_v6  ;;  %v12353_v55 = vsub.f32 %v12074_v13, %v6206_v33 }
 0x73d   : > { %6410 = vadd.xlane.f32.xlu1 %v6409_v16  ;;  %v6146_v59 = vpop.xlane.xlu0 %6145  ;;  %v6360_v38 = vsel %vm6094_vm8, %v6291_v24, 0.0  ;;  %v6412_v23 = vsel %vm6094_vm8, %v6317_v58, 0.0 }
 0x73e   : > { %12775 = vst [vmem:[#allocation40_spill] sm:$0xff] %v12344_v7  ;;  %12776 = vst [vmem:[#allocation41_spill] sm:$0xff] %v12347_v42  ;;  %v6207_v17 = vmul.f32 0.0051020407, %v6146_v59  ;;  %v6361_v28 = vadd.f32 %v6360_v38, %v6290_v37  ;;  %v6318_v11 = vmul.f32 %v12344_v7, %v12344_v7  ;;  %v6319_v51 = vmul.f32 %v12347_v42, %v12347_v42  ;;  %v6731_v59 = vld [vmem:[%s8767_s14 + $0x58] sm:$0xff]  ;;  %v6496_v42 = vld [vmem:[%s8762_s30 + $0x8] sm:$0xff] }
 0x73f   : > { %v6293_v13 = vmul.f32 %v12350_v62, %v12350_v62  ;;  %v6413_v52 = vadd.f32 %v6412_v23, %v6316_v61  ;;  %v6292_v16 = vmul.f32 %v12353_v55, %v12353_v55  ;;  %v6735_v38 = vld [vmem:[%s8767_s14 + $0x78] sm:$0xff]  ;;  %v6737_v61 = vld [vmem:[%s8767_s14 + $0x88] sm:$0xff] }
 0x740   : > { %v12366_v6 = vsub.f32 %v12083_v20, %v6207_v17  ;;  %v12369_v14 = vsub.f32 %v12086_v50, %v6207_v17  ;;  %6358 = vadd.xlane.f32.xlu0 %v6357_v0  ;;  %v6416_v54 = vsel %vm6094_vm8, %v6319_v51, 0.0  ;;  %v6733_v0 = vld [vmem:[%s8767_s14 + $0x68] sm:$0xff]  ;;  %v6739_v17 = vld [vmem:[%s8767_s14 + $0x98] sm:$0xff] }
 0x741   : > { %6362 = vadd.xlane.f32.xlu1 %v6361_v28  ;;  %v6417_v33 = vadd.f32 %v6416_v54, %v6318_v11  ;;  %v6364_v50 = vsel %vm6094_vm8, %v6293_v13, 0.0  ;;  %v12385_v28 = vpop.permute.xlu1 %6792  ;;  %v6741_v23 = vld [vmem:[%s8767_s14 + $0xa8] sm:$0xff] }
 0x742   : > { %v6294_v1 = vmul.f32 %v12366_v6, %v12366_v6  ;;  %v6295_v20 = vmul.f32 %v12369_v14, %v12369_v14  ;;  %v6365_v58 = vadd.f32 %v6364_v50, %v6292_v16  ;;  %v6732_v50 = vld [vmem:[%s8767_s14 + $0x60] sm:$0xff] }
 0x744   : > { %6414 = vadd.xlane.f32.xlu0 %v6413_v52  ;;  %v6368_v37 = vsel %vm6094_vm8, %v6295_v20, 0.0  ;;  %v6730_v20 = vld [vmem:[%s8767_s14 + $0x50] sm:$0xff] }
 0x745   : > { %6418 = vadd.xlane.f32.xlu1 %v6417_v33  ;;  %v6369_v24 = vadd.f32 %v6368_v37, %v6294_v1  ;;  %v6738_v37 = vld [vmem:[%s8767_s14 + $0x90] sm:$0xff] }
 0x748   : > { %6366 = vadd.xlane.f32.xlu0 %v6365_v58 }
 0x749   : > { %6370 = vadd.xlane.f32.xlu1 %v6369_v24  ;;  %v6740_v24 = vld [vmem:[%s8767_s14 + $0xa0] sm:$0xff] }
 0x75a   : > { %6802 = vperm.xlu1 %8500, %v6731_v59  }
 0x75e   : > { %6812 = vperm.xlu1 %8500, %v6733_v0   ;;  %v6742_v0 = vld [vmem:[%s8767_s14 + $0xb0] sm:$0xff] }
 0x762   : > { %6822 = vperm.xlu1 %8500, %v6735_v38  }
 0x766   : > { %6832 = vperm.xlu1 %8500, %v6737_v61   ;;  %v12406_v61 = vpop.permute.xlu0 %6787 }
 0x76a   : > { %6842 = vperm.xlu1 %8500, %v6739_v17  }
 0x76e   : > { %6852 = vperm.xlu1 %8500, %v6741_v23   ;;  %v6150_v11 = vpop.xlane.xlu1 %6149 }
 0x76f   : > { %v6208_v51 = vmul.f32 0.0051020407, %v6150_v11 }
 0x771   : > { %v12389_v13 = vsub.f32 %v12093_v48, %v6208_v51  ;;  %v12392_v52 = vsub.f32 %v12095_v2, %v6208_v51  ;;  %v6734_v48 = vld [vmem:[%s8767_s14 + $0x70] sm:$0xff]  ;;  %v6736_v2 = vld [vmem:[%s8767_s14 + $0x80] sm:$0xff] }
 0x773   : > { %12777 = vst [vmem:[#allocation42_spill] sm:$0xff] %v12389_v13  ;;  %12778 = vst [vmem:[#allocation43_spill] sm:$0xff] %v12392_v52  ;;  %v6296_v54 = vmul.f32 %v12389_v13, %v12389_v13  ;;  %v6297_v33 = vmul.f32 %v12392_v52, %v12392_v52 }
 0x775   : > { %v6372_v16 = vsel %vm6094_vm8, %v6297_v33, 0.0 }
 0x776   : > { %v6373_v1 = vadd.f32 %v6372_v16, %v6296_v54 }
 0x778   : > { %6374 = vadd.xlane.f32.xlu0 %v6373_v1 }
 0x78e   : > { %6797 = vperm.xlu0 %8499, %v6730_v20  }
 0x792   : > { %6807 = vperm.xlu0 %8499, %v6732_v50  }
 0x796   : > { %6817 = vperm.xlu0 %8499, %v6734_v48  }
 0x79a   : > { %6827 = vperm.xlu0 %8499, %v6736_v2  }
 0x79e   : > { %6837 = vperm.xlu0 %8499, %v6738_v37  }
 0x7a0   : > { %v6323_v58 = vpop.xlane.xlu1 %6322 }
 0x7a1   : > { %v6420_v59 = vmul.f32 0.0051020407, %v6323_v58 }
 0x7a2   : > { %6847 = vperm.xlu0 %8499, %v6740_v24  }
 0x7a3   : > { %v6445_v38 = vadd.f32 0.001, %v6420_v59 }
 0x7a5   : > { %v6379_v17 = vpop.xlane.xlu1 %6378  ;;  %8577 = vrsqrt.f32 %v6445_v38 }
 0x7a6   : > { %v6434_v23 = vmul.f32 0.0051020407, %v6379_v17  ;;  %6857 = vperm.xlu0 %8499, %v6742_v0   ;;  %v6495_v0 = vld [vmem:[%s8762_s30] sm:$0xff] }
 0x7a8   : > { %v6459_v11 = vadd.f32 0.001, %v6434_v23 }
 0x7a9   : > { %v6327_v51 = vpop.xlane.xlu0 %6326 }
 0x7aa   : > { %8579 = vrsqrt.f32 %v6459_v11  ;;  %v6421_v54 = vmul.f32 0.0051020407, %v6327_v51  ;;  %v6331_v33 = vpop.xlane.xlu1 %6330 }
 0x7ab   : > { %v6422_v16 = vmul.f32 0.0051020407, %v6331_v33 }
 0x7ac   : > { %v6446_v1 = vadd.f32 0.001, %v6421_v54 }
 0x7ad   : > { %v6447_v20 = vadd.f32 0.001, %v6422_v16  ;;  %v6383_v50 = vpop.xlane.xlu0 %6382  ;;  %v6509_v16 = vld [vmem:[%s8762_s30 + $0x70] sm:$0xff] }
 0x7ae   : > { %8581 = vrsqrt.f32 %v6446_v1  ;;  %v6435_v48 = vmul.f32 0.0051020407, %v6383_v50  ;;  %v6387_v2 = vpop.xlane.xlu1 %6386 }
 0x7af   : > { %v6436_v37 = vmul.f32 0.0051020407, %v6387_v2  ;;  %8583 = vrsqrt.f32 %v6447_v20 }
 0x7b0   : > { %v6460_v24 = vadd.f32 0.001, %v6435_v48 }
 0x7b1   : > { %v6461_v58 = vadd.f32 0.001, %v6436_v37  ;;  %v6335_v59 = vpop.xlane.xlu0 %6334 }
 0x7b2   : > { %8585 = vrsqrt.f32 %v6460_v24  ;;  %v6423_v38 = vmul.f32 0.0051020407, %v6335_v59  ;;  %v6339_v17 = vpop.xlane.xlu1 %6338  ;;  %v8578_v23 = vpop.eup %8577 }
 0x7b3   : > { %8587 = vrsqrt.f32 %v6461_v58  ;;  %v6424_v51 = vmul.f32 0.0051020407, %v6339_v17  ;;  %v6520_v54 = vmul.f32 %v8578_v23, %v6495_v0 }
 0x7b4   : > { %v6448_v11 = vadd.f32 0.001, %v6423_v38 }
 0x7b5   : > { %v6391_v33 = vpop.xlane.xlu0 %6390  ;;  %6547 = vperm.xlu0 %8499, %v6520_v54   ;;  %v6449_v48 = vadd.f32 0.001, %v6424_v51 }
 0x7b6   : > { %v6437_v1 = vmul.f32 0.0051020407, %v6391_v33  ;;  %v6395_v50 = vpop.xlane.xlu1 %6394  ;;  %8589 = vrsqrt.f32 %v6448_v11  ;;  %v6497_v11 = vld [vmem:[%s8762_s30 + $0x10] sm:$0xff] }
 0x7b7   : > { %v8580_v2 = vpop.eup %8579  ;;  %v6438_v20 = vmul.f32 0.0051020407, %v6395_v50  ;;  %v6510_v50 = vld [vmem:[%s8762_s30 + $0x78] sm:$0xff] }
 0x7b8   : > { %v6462_v37 = vadd.f32 0.001, %v6437_v1  ;;  %v6534_v24 = vmul.f32 %v8580_v2, %v6509_v16 }
 0x7b9   : > { %v6343_v59 = vpop.xlane.xlu0 %6342  ;;  %v6463_v0 = vadd.f32 0.001, %v6438_v20 }
 0x7ba   : > { %8591 = vrsqrt.f32 %v6462_v37  ;;  %v6347_v58 = vpop.xlane.xlu1 %6346  ;;  %6617 = vperm.xlu1 %8500, %v6534_v24   ;;  %v6425_v17 = vmul.f32 0.0051020407, %v6343_v59 }
 0x7bb   : > { %v8582_v38 = vpop.eup %8581  ;;  %8593 = vrsqrt.f32 %v6449_v48  ;;  %v6426_v16 = vmul.f32 0.0051020407, %v6347_v58 }
 0x7bc   : > { %v6521_v23 = vmul.f32 %v8582_v38, %v6496_v42  ;;  %v8584_v33 = vpop.eup %8583  ;;  %8595 = vrsqrt.f32 %v6463_v0  ;;  %v6450_v2 = vadd.f32 0.001, %v6425_v17  ;;  %v6511_v42 = vld [vmem:[%s8762_s30 + $0x80] sm:$0xff]  ;;  %v6512_v0 = vld [vmem:[%s8762_s30 + $0x88] sm:$0xff] }
 0x7bd   : > { %v6399_v54 = vpop.xlane.xlu0 %6398  ;;  %v6522_v20 = vmul.f32 %v8584_v33, %v6497_v11  ;;  %v6451_v52 = vadd.f32 0.001, %v6426_v16 }
 0x7be   : > { %v6439_v7 = vmul.f32 0.0051020407, %v6399_v54  ;;  %v6403_v51 = vpop.xlane.xlu1 %6402  ;;  %6552 = vperm.xlu1 %8500, %v6521_v23  }
 0x7bf   : > { %v8586_v1 = vpop.eup %8585  ;;  %v6440_v54 = vmul.f32 0.0051020407, %v6403_v51 }
 0x7c0   : > { %v6464_v37 = vadd.f32 0.001, %v6439_v7  ;;  %v6535_v24 = vmul.f32 %v8586_v1, %v6510_v50  ;;  %v8588_v48 = vpop.eup %8587  ;;  %v6498_v7 = vld [vmem:[%s8762_s30 + $0x18] sm:$0xff] }
 0x7c1   : > { %v6351_v59 = vpop.xlane.xlu0 %6350  ;;  %v6536_v23 = vmul.f32 %v8588_v48, %v6511_v42  ;;  %v6465_v1 = vadd.f32 0.001, %v6440_v54 }
 0x7c2   : > { %8597 = vrsqrt.f32 %v6464_v37  ;;  %v6355_v38 = vpop.xlane.xlu1 %6354  ;;  %6622 = vperm.xlu0 %8499, %v6535_v24   ;;  %6557 = vperm.xlu1 %8500, %v6522_v20   ;;  %v6427_v33 = vmul.f32 0.0051020407, %v6351_v59 }
 0x7c3   : > { %8599 = vrsqrt.f32 %v6450_v2  ;;  %v8590_v13 = vpop.eup %8589  ;;  %v6499_v2 = vld [vmem:[%s8762_s30 + $0x20] sm:$0xff]  ;;  %v6428_v42 = vmul.f32 0.0051020407, %v6355_v38 }
 0x7c4   : > { %8601 = vrsqrt.f32 %v6451_v52  ;;  %v6523_v24 = vmul.f32 %v8590_v13, %v6498_v7  ;;  %v6452_v48 = vadd.f32 0.001, %v6427_v33  ;;  %v6513_v13 = vld [vmem:[%s8762_s30 + $0x90] sm:$0xff] }
 0x7c5   : > { %v6407_v58 = vpop.xlane.xlu0 %6406 }
 0x7c6   : > { %v6441_v17 = vmul.f32 0.0051020407, %v6407_v58  ;;  %6627 = vperm.xlu1 %8500, %v6536_v23   ;;  %v6411_v11 = vpop.xlane.xlu1 %6410 }
 0x7c7   : > { %v8592_v50 = vpop.eup %8591 }
 0x7c8   : > { %v6466_v37 = vadd.f32 0.001, %v6441_v17  ;;  %v6537_v10 = vmul.f32 %v8592_v50, %v6512_v0  ;;  %v8594_v16 = vpop.eup %8593  ;;  %v6514_v0 = vld [vmem:[%s8762_s30 + $0x98] sm:$0xff]  ;;  %v6453_v50 = vadd.f32 0.001, %v6428_v42 }
 0x7c9   : > { %v6359_v51 = vpop.xlane.xlu0 %6358  ;;  %v8596_v23 = vpop.eup %8595  ;;  %v6524_v59 = vmul.f32 %v8594_v16, %v6499_v2  ;;  %v6500_v16 = vld [vmem:[%s8762_s30 + $0x28] sm:$0xff] }
 0x7ca   : > { %8603 = vrsqrt.f32 %v6466_v37  ;;  %v6429_v20 = vmul.f32 0.0051020407, %v6359_v51  ;;  %6632 = vperm.xlu0 %8499, %v6537_v10   ;;  %6562 = vperm.xlu1 %8500, %v6523_v24   ;;  %v6363_v58 = vpop.xlane.xlu1 %6362  ;;  %v6442_v37 = vmul.f32 0.0051020407, %v6411_v11  ;;  %v6538_v38 = vmul.f32 %v8596_v23, %v6513_v13 }
 0x7cb   : > { %8605 = vrsqrt.f32 %v6465_v1  ;;  %v6430_v2 = vmul.f32 0.0051020407, %v6363_v58 }
 0x7cc   : > { %v6454_v52 = vadd.f32 0.001, %v6429_v20 }
 0x7cd   : > { %v6415_v54 = vpop.xlane.xlu0 %6414 }
 0x7ce   : > { %8607 = vrsqrt.f32 %v6454_v52  ;;  %v6443_v7 = vmul.f32 0.0051020407, %v6415_v54  ;;  %6567 = vperm.xlu1 %8500, %v6524_v59   ;;  %v6419_v20 = vpop.xlane.xlu1 %6418  ;;  %v6516_v59 = vld [vmem:[%s8762_s30 + $0xa8] sm:$0xff]  ;;  %v6501_v54 = vld [vmem:[%s8762_s30 + $0x30] sm:$0xff] }
 0x7cf   : > { %v8598_v17 = vpop.eup %8597  ;;  %8609 = vrsqrt.f32 %v6452_v48  ;;  %v6467_v48 = vadd.f32 0.001, %v6442_v37  ;;  %v6444_v13 = vmul.f32 0.0051020407, %v6419_v20  ;;  %v6502_v20 = vld [vmem:[%s8762_s30 + $0x38] sm:$0xff] }
 0x7d0   : > { %v6468_v10 = vadd.f32 0.001, %v6443_v7  ;;  %v6539_v24 = vmul.f32 %v8598_v17, %v6514_v0  ;;  %v8600_v33 = vpop.eup %8599  ;;  %v6455_v0 = vadd.f32 0.001, %v6430_v2  ;;  %v6518_v2 = vld [vmem:[%s8762_s30 + $0xb8] sm:$0xff] }
 0x7d1   : > { %v6367_v1 = vpop.xlane.xlu0 %6366  ;;  %v8602_v52 = vpop.eup %8601  ;;  %v6525_v42 = vmul.f32 %v8600_v33, %v6500_v16  ;;  %v6469_v33 = vadd.f32 0.001, %v6444_v13 }
 0x7d2   : > { %8611 = vrsqrt.f32 %v6468_v10  ;;  %v6431_v51 = vmul.f32 0.0051020407, %v6367_v1  ;;  %6642 = vperm.xlu0 %8499, %v6539_v24   ;;  %6637 = vperm.xlu1 %8500, %v6538_v38   ;;  %v6526_v58 = vmul.f32 %v8602_v52, %v6501_v54  ;;  %v6371_v10 = vpop.xlane.xlu1 %6370  ;;  %v6515_v24 = vld [vmem:[%s8762_s30 + $0xa0] sm:$0xff]  ;;  %v6506_v54 = vld [vmem:[%s8762_s30 + $0x58] sm:$0xff] }
 0x7d3   : > { %8613 = vrsqrt.f32 %v6453_v50  ;;  %v6504_v50 = vld [vmem:[%s8762_s30 + $0x48] sm:$0xff]  ;;  %v6432_v1 = vmul.f32 0.0051020407, %v6371_v10 }
 0x7d4   : > { %v6456_v11 = vadd.f32 0.001, %v6431_v51 }
 0x7d6   : > { %8615 = vrsqrt.f32 %v6456_v11  ;;  %6572 = vperm.xlu1 %8500, %v6525_v42  }
 0x7d7   : > { %v8604_v23 = vpop.eup %8603  ;;  %8617 = vrsqrt.f32 %v6467_v48  ;;  %v6457_v48 = vadd.f32 0.001, %v6432_v1 }
 0x7d8   : > { %v6541_v7 = vmul.f32 %v8604_v23, %v6516_v59  ;;  %v8606_v17 = vpop.eup %8605  ;;  %8619 = vrsqrt.f32 %v6455_v0  ;;  %v6503_v23 = vld [vmem:[%s8762_s30 + $0x40] sm:$0xff] }
 0x7d9   : > { %v6540_v51 = vmul.f32 %v8606_v17, %v6515_v24  ;;  %8621 = vrsqrt.f32 %v6469_v33  ;;  %v6517_v17 = vld [vmem:[%s8762_s30 + $0xb0] sm:$0xff]  ;;  %v6519_v33 = vld [vmem:[%s8762_s30 + $0xc0] sm:$0xff] }
 0x7da   : > { %6652 = vperm.xlu0 %8499, %v6541_v7   ;;  %6577 = vperm.xlu1 %8500, %v6526_v58   ;;  %8623 = vrsqrt.f32 %v6457_v48  ;;  %v6505_v24 = vld [vmem:[%s8762_s30 + $0x50] sm:$0xff] }
 0x7db   : > { %v8608_v37 = vpop.eup %8607 }
 0x7dc   : > { %v8610_v38 = vpop.eup %8609  ;;  %v6529_v16 = vmul.f32 %v8608_v37, %v6504_v50 }
 0x7dd   : > { %v6527_v42 = vmul.f32 %v8610_v38, %v6502_v20  ;;  %v6743_v20 = vld [vmem:[%s8767_s14 + $0xb8] sm:$0xff] }
 0x7de   : > { %6592 = vperm.xlu0 %8499, %v6529_v16   ;;  %6647 = vperm.xlu1 %8500, %v6540_v51   ;;  %v6507_v51 = vld [vmem:[%s8762_s30 + $0x60] sm:$0xff] }
 0x7df   : > { %v8612_v52 = vpop.eup %8611 }
 0x7e0   : > { %v6543_v11 = vmul.f32 %v8612_v52, %v6518_v2  ;;  %v8614_v59 = vpop.eup %8613 }
 0x7e1   : > { %v6528_v7 = vmul.f32 %v8614_v59, %v6503_v23 }
 0x7e2   : > { %6662 = vperm.xlu0 %8499, %v6543_v11   ;;  %6582 = vperm.xlu1 %8500, %v6527_v42  }
 0x7e3   : > { %v8616_v0 = vpop.eup %8615 }
 0x7e4   : > { %v6531_v13 = vmul.f32 %v8616_v0, %v6506_v54  ;;  %v8618_v58 = vpop.eup %8617  ;;  %v6508_v54 = vld [vmem:[%s8762_s30 + $0x68] sm:$0xff]  ;;  %v12438_v0 = vpop.permute.xlu1 %6802 }
 0x7e5   : > { %v8620_v10 = vpop.eup %8619  ;;  %v6542_v50 = vmul.f32 %v8618_v58, %v6517_v17  ;;  %v6744_v58 = vld [vmem:[%s8767_s14 + $0xc0] sm:$0xff] }
 0x7e6   : > { %6602 = vperm.xlu0 %8499, %v6531_v13   ;;  %6587 = vperm.xlu1 %8500, %v6528_v7   ;;  %v6530_v37 = vmul.f32 %v8620_v10, %v6505_v24  ;;  %v8622_v38 = vpop.eup %8621 }
 0x7e7   : > { %v6544_v1 = vmul.f32 %v8622_v38, %v6519_v33  ;;  %v8624_v16 = vpop.eup %8623 }
 0x7e8   : > { %v6532_v2 = vmul.f32 %v8624_v16, %v6507_v51  ;;  %v12441_v17 = vpop.permute.xlu1 %6812 }
 0x7e9   : > { %12780 = vst [vmem:[#allocation45_spill] sm:$0xff] %v12441_v17 }
 0x7ea   : > { %6657 = vperm.xlu1 %8500, %v6542_v50  }
 0x7ec   : > { %v6823_v50 = vpop.permute.xlu1 %6822 }
 0x7ee   : > { %6597 = vperm.xlu1 %8500, %v6530_v37  }
 0x7f0   : > { %v6833_v37 = vpop.permute.xlu1 %6832 }
 0x7f2   : > { %6667 = vperm.xlu1 %8500, %v6544_v1  }
 0x7f4   : > { %v12447_v33 = vpop.permute.xlu1 %6842 }
 0x7f6   : > { %6607 = vperm.xlu1 %8500, %v6532_v2  }
 0x7f8   : > { %v12451_v16 = vpop.permute.xlu1 %6852 }
 0x7fa   : > { %6862 = vperm.xlu1 %8500, %v6743_v20   ;;  %v12781_v20 = vld [vmem:[#allocation32_spill] sm:$0xff] }
 0x801   : > { %v6375_v52 = vpop.xlane.xlu0 %6374 }
 0x802   : > { %v6433_v48 = vmul.f32 0.0051020407, %v6375_v52 }
 0x804   : > { %v6458_v11 = vadd.f32 0.001, %v6433_v48  ;;  %v12782_v48 = vld [vmem:[#allocation24_spill] sm:$0xff] }
 0x806   : > { %8625 = vrsqrt.f32 %v6458_v11 }
 0x809   : > { %v12433_v42 = vpop.permute.xlu0 %6797 }
 0x80d   : > { %v12435_v59 = vpop.permute.xlu0 %6807 }
 0x80e   : > { %12779 = vst [vmem:[#allocation44_spill] sm:$0xff] %v12435_v59 }
 0x811   : > { %v6818_v7 = vpop.permute.xlu0 %6817 }
 0x813   : > { %v8626_v23 = vpop.eup %8625 }
 0x814   : > { %v6533_v13 = vmul.f32 %v8626_v23, %v6508_v54 }
 0x815   : > { %v6828_v10 = vpop.permute.xlu0 %6827 }
 0x816   : > { %6612 = vperm.xlu0 %8499, %v6533_v13  }
 0x819   : > { %v12443_v24 = vpop.permute.xlu0 %6837 }
 0x81a   : > { %6867 = vperm.xlu0 %8499, %v6744_v58  }
 0x81d   : > { %v12445_v38 = vpop.permute.xlu0 %6847 }
 0x821   : > { %v12449_v1 = vpop.permute.xlu0 %6857 }
 0x830   : > { %v6548_v51 = vpop.permute.xlu0 %6547 }
 0x831   : > { %v6670_v2 = vmul.f32 %v6548_v51, %v12117_v46  ;;  %v6671_v52 = vmul.f32 %v6548_v51, %v12781_v20 }
 0x833   : > { %v6870_v11 = vadd.f32 %v12782_v48, %v6670_v2  ;;  %v6871_v54 = vadd.f32 %v12782_v48, %v6671_v52  ;;  %v12783_v2 = vld [vmem:[#allocation25_spill] sm:$0xff] }
 0x835   : > { %v6618_v23 = vpop.permute.xlu1 %6617  ;;  %6920 = vst [vmem:[%s8772_s19] sm:$0xff] %v6870_v11  ;;  %6921 = vst.msk [vmem:[%s8772_s19 + $0x8] sm:$0xff] %vm6094_vm8, %v6871_v54 }
 0x836   : > { %v6698_v13 = vmul.f32 %v6618_v23, %v12127_v32  ;;  %v6699_v58 = vmul.f32 %v6618_v23, %v12130_v36 }
 0x838   : > { %v6898_v17 = vadd.f32 %v6818_v7, %v6698_v13  ;;  %v6899_v59 = vadd.f32 %v6818_v7, %v6699_v58  ;;  %v12784_v7 = vld [vmem:[#allocation34_spill] sm:$0xff] }
 0x839   : > { %v6553_v35 = vpop.permute.xlu1 %6552  ;;  %v12788_v13 = vld [vmem:[#allocation26_spill] sm:$0xff] }
 0x83a   : > { %6948 = vst [vmem:[%s8772_s19 + $0xe0] sm:$0xff] %v6898_v17  ;;  %6949 = vst.msk [vmem:[%s8772_s19 + $0xe8] sm:$0xff] %vm6094_vm8, %v6899_v59  ;;  %v6672_v46 = vmul.f32 %v6553_v35, %v12144_v19  ;;  %v6673_v51 = vmul.f32 %v6553_v35, %v12147_v18  ;;  %v12785_v59 = vld [vmem:[#allocation33_spill] sm:$0xff]  ;;  %v12786_v19 = vld [vmem:[#allocation35_spill] sm:$0xff] }
 0x83b   : > { %v12787_v18 = vld [vmem:[#allocation36_spill] sm:$0xff] }
 0x83c   : > { %v6872_v20 = vadd.f32 %v12783_v2, %v6672_v46  ;;  %v6873_v52 = vadd.f32 %v12783_v2, %v6673_v51 }
 0x83d   : > { %v6623_v32 = vpop.permute.xlu0 %6622  ;;  %v6558_v36 = vpop.permute.xlu1 %6557 }
 0x83e   : > { %6922 = vst [vmem:[%s8772_s19 + $0x10] sm:$0xff] %v6872_v20  ;;  %6923 = vst.msk [vmem:[%s8772_s19 + $0x18] sm:$0xff] %vm6094_vm8, %v6873_v52  ;;  %v6700_v17 = vmul.f32 %v6623_v32, %v12784_v7  ;;  %v6701_v48 = vmul.f32 %v6623_v32, %v12785_v59  ;;  %v6674_v11 = vmul.f32 %v6558_v36, %v12786_v19 }
 0x83f   : > { %v6675_v35 = vmul.f32 %v6558_v36, %v12787_v18 }
 0x840   : > { %v6900_v54 = vadd.f32 %v6823_v50, %v6700_v17  ;;  %v6901_v23 = vadd.f32 %v6823_v50, %v6701_v48  ;;  %v6874_v58 = vadd.f32 %v12788_v13, %v6674_v11 }
 0x841   : > { %v6875_v46 = vadd.f32 %v12788_v13, %v6675_v35  ;;  %v6628_v51 = vpop.permute.xlu1 %6627 }
 0x842   : > { %6950 = vst [vmem:[%s8772_s19 + $0xf0] sm:$0xff] %v6900_v54  ;;  %6951 = vst.msk [vmem:[%s8772_s19 + $0xf8] sm:$0xff] %vm6094_vm8, %v6901_v23  ;;  %v6702_v2 = vmul.f32 %v6628_v51, %v12167_v41  ;;  %v6703_v20 = vmul.f32 %v6628_v51, %v12170_v60  ;;  %v12789_v41 = vld [vmem:[#allocation37_spill] sm:$0xff] }
 0x843   : > { %6924 = vst [vmem:[%s8772_s19 + $0x20] sm:$0xff] %v6874_v58  ;;  %6925 = vst.msk [vmem:[%s8772_s19 + $0x28] sm:$0xff] %vm6094_vm8, %v6875_v46 }
 0x844   : > { %v6902_v52 = vadd.f32 %v6828_v10, %v6702_v2  ;;  %v6903_v32 = vadd.f32 %v6828_v10, %v6703_v20  ;;  %v12790_v10 = vld [vmem:[#allocation27_spill] sm:$0xff] }
 0x845   : > { %v6633_v50 = vpop.permute.xlu0 %6632  ;;  %v6563_v36 = vpop.permute.xlu1 %6562 }
 0x846   : > { %6952 = vst [vmem:[%s8772_s19 + $0x100] sm:$0xff] %v6902_v52  ;;  %6953 = vst.msk [vmem:[%s8772_s19 + $0x108] sm:$0xff] %vm6094_vm8, %v6903_v32  ;;  %v6704_v7 = vmul.f32 %v6633_v50, %v12199_v3  ;;  %v6705_v17 = vmul.f32 %v6633_v50, %v12190_v39  ;;  %v6676_v59 = vmul.f32 %v6563_v36, %v12178_v26  ;;  %v12791_v3 = vld [vmem:[#allocation28_spill] sm:$0xff] }
 0x847   : > { %v6677_v48 = vmul.f32 %v6563_v36, %v12789_v41  ;;  %v12793_v41 = vld [vmem:[#allocation30_spill] sm:$0xff] }
 0x848   : > { %v6904_v60 = vadd.f32 %v6833_v37, %v6704_v7  ;;  %v6905_v19 = vadd.f32 %v6833_v37, %v6705_v17  ;;  %v6876_v11 = vadd.f32 %v12790_v10, %v6676_v59 }
 0x849   : > { %v6877_v18 = vadd.f32 %v12790_v10, %v6677_v48  ;;  %v6568_v35 = vpop.permute.xlu1 %6567 }
 0x84a   : > { %6954 = vst [vmem:[%s8772_s19 + $0x110] sm:$0xff] %v6904_v60  ;;  %6955 = vst.msk [vmem:[%s8772_s19 + $0x118] sm:$0xff] %vm6094_vm8, %v6905_v19  ;;  %v6678_v39 = vmul.f32 %v6568_v35, %v12193_v40  ;;  %v6679_v26 = vmul.f32 %v6568_v35, %v12196_v27 }
 0x84b   : > { %6926 = vst [vmem:[%s8772_s19 + $0x30] sm:$0xff] %v6876_v11  ;;  %6927 = vst.msk [vmem:[%s8772_s19 + $0x38] sm:$0xff] %vm6094_vm8, %v6877_v18 }
 0x84c   : > { %v6878_v54 = vadd.f32 %v12791_v3, %v6678_v39  ;;  %v6879_v37 = vadd.f32 %v12791_v3, %v6679_v26 }
 0x84d   : > { %v6643_v23 = vpop.permute.xlu0 %6642  ;;  %v6638_v13 = vpop.permute.xlu1 %6637 }
 0x84e   : > { %6928 = vst [vmem:[%s8772_s19 + $0x40] sm:$0xff] %v6878_v54  ;;  %6929 = vst.msk [vmem:[%s8772_s19 + $0x48] sm:$0xff] %vm6094_vm8, %v6879_v37  ;;  %v6708_v58 = vmul.f32 %v6643_v23, %v12243_v63  ;;  %v6709_v46 = vmul.f32 %v6643_v23, %v12234_v8  ;;  %v6706_v40 = vmul.f32 %v6638_v13, %v12212_v12  ;;  %v12792_v8 = vld [vmem:[#allocation29_spill] sm:$0xff] }
 0x84f   : > { %v6707_v27 = vmul.f32 %v6638_v13, %v12215_v15 }
 0x850   : > { %v6908_v51 = vadd.f32 %v12447_v33, %v6708_v58  ;;  %v6909_v2 = vadd.f32 %v12447_v33, %v6709_v46  ;;  %v6906_v20 = vadd.f32 %v12443_v24, %v6706_v40 }
 0x851   : > { %v6907_v52 = vadd.f32 %v12443_v24, %v6707_v27  ;;  %v6573_v32 = vpop.permute.xlu1 %6572 }
 0x852   : > { %6958 = vst [vmem:[%s8772_s19 + $0x130] sm:$0xff] %v6908_v51  ;;  %6959 = vst.msk [vmem:[%s8772_s19 + $0x138] sm:$0xff] %vm6094_vm8, %v6909_v2  ;;  %v6680_v12 = vmul.f32 %v6573_v32, %v12221_v5  ;;  %v6681_v15 = vmul.f32 %v6573_v32, %v12218_v45  ;;  %v12796_v32 = vld [vmem:[#allocation38_spill] sm:$0xff] }
 0x853   : > { %6956 = vst [vmem:[%s8772_s19 + $0x120] sm:$0xff] %v6906_v20  ;;  %6957 = vst.msk [vmem:[%s8772_s19 + $0x128] sm:$0xff] %vm6094_vm8, %v6907_v52  ;;  %v12795_v52 = vld [vmem:[#allocation39_spill] sm:$0xff] }
 0x854   : > { %v6880_v63 = vadd.f32 %v12792_v8, %v6680_v12  ;;  %v6881_v33 = vadd.f32 %v12792_v8, %v6681_v15 }
 0x855   : > { %v6653_v50 = vpop.permute.xlu0 %6652  ;;  %v6578_v24 = vpop.permute.xlu1 %6577 }
 0x856   : > { %6930 = vst [vmem:[%s8772_s19 + $0x50] sm:$0xff] %v6880_v63  ;;  %6931 = vst.msk [vmem:[%s8772_s19 + $0x58] sm:$0xff] %vm6094_vm8, %v6881_v33  ;;  %v6712_v36 = vmul.f32 %v6653_v50, %v12287_v57  ;;  %v6713_v7 = vmul.f32 %v6653_v50, %v12278_v31  ;;  %v6682_v5 = vmul.f32 %v6578_v24, %v12237_v29 }
 0x857   : > { %v6683_v45 = vmul.f32 %v6578_v24, %v12240_v4  ;;  %v12799_v24 = vld [vmem:[#allocation43_spill] sm:$0xff] }
 0x858   : > { %v6912_v17 = vadd.f32 %v12451_v16, %v6712_v36  ;;  %v6913_v59 = vadd.f32 %v12451_v16, %v6713_v7  ;;  %v6882_v48 = vadd.f32 %v12793_v41, %v6682_v5  ;;  %v12800_v7 = vld [vmem:[#allocation40_spill] sm:$0xff] }
 0x859   : > { %v6883_v60 = vadd.f32 %v12793_v41, %v6683_v45  ;;  %v6593_v19 = vpop.permute.xlu0 %6592  ;;  %v6648_v10 = vpop.permute.xlu1 %6647  ;;  %v12801_v45 = vld [vmem:[#allocation41_spill] sm:$0xff] }
 0x85a   : > { %6962 = vst [vmem:[%s8772_s19 + $0x150] sm:$0xff] %v6912_v17  ;;  %6963 = vst.msk [vmem:[%s8772_s19 + $0x158] sm:$0xff] %vm6094_vm8, %v6913_v59  ;;  %v6688_v29 = vmul.f32 %v6593_v19, %v12309_v49  ;;  %v6689_v4 = vmul.f32 %v6593_v19, %v12306_v56  ;;  %v6710_v31 = vmul.f32 %v6648_v10, %v12256_v21  ;;  %v12794_v56 = vld [vmem:[#allocation31_spill] sm:$0xff]  ;;  %v12802_v59 = vld [vmem:[#allocation45_spill] sm:$0xff] }
 0x85b   : > { %6932 = vst [vmem:[%s8772_s19 + $0x60] sm:$0xff] %v6882_v48  ;;  %6933 = vst.msk [vmem:[%s8772_s19 + $0x68] sm:$0xff] %vm6094_vm8, %v6883_v60  ;;  %v6711_v57 = vmul.f32 %v6648_v10, %v12259_v44 }
 0x85c   : > { %v6888_v16 = vadd.f32 %v12385_v28, %v6688_v29  ;;  %v6889_v11 = vadd.f32 %v12385_v28, %v6689_v4  ;;  %v6910_v18 = vadd.f32 %v12445_v38, %v6710_v31 }
 0x85d   : > { %v6911_v35 = vadd.f32 %v12445_v38, %v6711_v57  ;;  %v6663_v39 = vpop.permute.xlu0 %6662  ;;  %v6583_v26 = vpop.permute.xlu1 %6582 }
 0x85e   : > { %6938 = vst [vmem:[%s8772_s19 + $0x90] sm:$0xff] %v6888_v16  ;;  %6939 = vst.msk [vmem:[%s8772_s19 + $0x98] sm:$0xff] %vm6094_vm8, %v6889_v11  ;;  %v6684_v21 = vmul.f32 %v6583_v26, %v12265_v53  ;;  %v6685_v44 = vmul.f32 %v6583_v26, %v12262_v34  ;;  %v6717_v12 = vmul.f32 %v6663_v39, %v12796_v32 }
 0x85f   : > { %6960 = vst [vmem:[%s8772_s19 + $0x140] sm:$0xff] %v6910_v18  ;;  %6961 = vst.msk [vmem:[%s8772_s19 + $0x148] sm:$0xff] %vm6094_vm8, %v6911_v35 }
 0x860   : > { %v6884_v49 = vadd.f32 %v12794_v56, %v6684_v21  ;;  %v6885_v28 = vadd.f32 %v12794_v56, %v6685_v44 }
 0x861   : > { %v6603_v38 = vpop.permute.xlu0 %6602  ;;  %v6588_v3 = vpop.permute.xlu1 %6587 }
 0x862   : > { %6934 = vst [vmem:[%s8772_s19 + $0x70] sm:$0xff] %v6884_v49  ;;  %6935 = vst.msk [vmem:[%s8772_s19 + $0x78] sm:$0xff] %vm6094_vm8, %v6885_v28  ;;  %v6692_v54 = vmul.f32 %v6603_v38, %v12353_v55  ;;  %v6693_v37 = vmul.f32 %v6603_v38, %v12350_v62  ;;  %v6686_v53 = vmul.f32 %v6588_v3, %v12281_v47 }
 0x863   : > { %v6687_v34 = vmul.f32 %v6588_v3, %v12284_v30 }
 0x864   : > { %v6892_v23 = vadd.f32 %v12438_v0, %v6692_v54  ;;  %v6893_v13 = vadd.f32 %v12438_v0, %v6693_v37  ;;  %v6886_v58 = vadd.f32 %v12406_v61, %v6686_v53 }
 0x865   : > { %v6887_v46 = vadd.f32 %v12406_v61, %v6687_v34  ;;  %v6658_v40 = vpop.permute.xlu1 %6657 }
 0x866   : > { %6942 = vst [vmem:[%s8772_s19 + $0xb0] sm:$0xff] %v6892_v23  ;;  %6943 = vst.msk [vmem:[%s8772_s19 + $0xb8] sm:$0xff] %vm6094_vm8, %v6893_v13  ;;  %v6714_v47 = vmul.f32 %v6658_v40, %v12300_v22  ;;  %v6715_v30 = vmul.f32 %v6658_v40, %v12303_v9 }
 0x867   : > { %6936 = vst [vmem:[%s8772_s19 + $0x80] sm:$0xff] %v6886_v58  ;;  %6937 = vst.msk [vmem:[%s8772_s19 + $0x88] sm:$0xff] %vm6094_vm8, %v6887_v46 }
 0x868   : > { %v6914_v62 = vadd.f32 %v12449_v1, %v6714_v47  ;;  %v6915_v55 = vadd.f32 %v12449_v1, %v6715_v30 }
 0x869   : > { %v6598_v0 = vpop.permute.xlu1 %6597 }
 0x86a   : > { %6964 = vst [vmem:[%s8772_s19 + $0x160] sm:$0xff] %v6914_v62  ;;  %6965 = vst.msk [vmem:[%s8772_s19 + $0x168] sm:$0xff] %vm6094_vm8, %v6915_v55  ;;  %v6690_v61 = vmul.f32 %v6598_v0, %v12325_v43  ;;  %v6691_v27 = vmul.f32 %v6598_v0, %v12328_v25  ;;  %v6716_v43 = vmul.f32 %v6663_v39, %v12795_v52  ;;  %v12797_v25 = vld [vmem:[#allocation44_spill] sm:$0xff] }
 0x86c   : > { %v6890_v51 = vadd.f32 %v12433_v42, %v6690_v61  ;;  %v6891_v22 = vadd.f32 %v12433_v42, %v6691_v27 }
 0x86d   : > { %v6668_v9 = vpop.permute.xlu1 %6667 }
 0x86e   : > { %6940 = vst [vmem:[%s8772_s19 + $0xa0] sm:$0xff] %v6890_v51  ;;  %6941 = vst.msk [vmem:[%s8772_s19 + $0xa8] sm:$0xff] %vm6094_vm8, %v6891_v22  ;;  %v6718_v5 = vmul.f32 %v6668_v9, %v12800_v7  ;;  %v6719_v17 = vmul.f32 %v6668_v9, %v12801_v45 }
 0x871   : > { %v6608_v1 = vpop.permute.xlu1 %6607 }
 0x872   : > { %v6694_v2 = vmul.f32 %v6608_v1, %v12366_v6  ;;  %v6695_v20 = vmul.f32 %v6608_v1, %v12369_v14  ;;  %v12798_v14 = vld [vmem:[#allocation42_spill] sm:$0xff] }
 0x874   : > { %v6894_v15 = vadd.f32 %v12797_v25, %v6694_v2  ;;  %v6895_v8 = vadd.f32 %v12797_v25, %v6695_v20 }
 0x875   : > { %v6863_v42 = vpop.permute.xlu1 %6862 }
 0x876   : > { %6944 = vst [vmem:[%s8772_s19 + $0xc0] sm:$0xff] %v6894_v15  ;;  %6945 = vst.msk [vmem:[%s8772_s19 + $0xc8] sm:$0xff] %vm6094_vm8, %v6895_v8  ;;  %v6916_v63 = vadd.f32 %v6863_v42, %v6716_v43  ;;  %v6917_v33 = vadd.f32 %v6863_v42, %v6717_v12 }
 0x878   : > { %6966 = vst [vmem:[%s8772_s19 + $0x170] sm:$0xff] %v6916_v63  ;;  %6967 = vst.msk [vmem:[%s8772_s19 + $0x178] sm:$0xff] %vm6094_vm8, %v6917_v33 }
 0x891   : > { %v6613_v6 = vpop.permute.xlu0 %6612 }
 0x892   : > { %v6696_v50 = vmul.f32 %v6613_v6, %v12798_v14  ;;  %v6697_v36 = vmul.f32 %v6613_v6, %v12799_v24 }
 0x894   : > { %v6896_v41 = vadd.f32 %v12802_v59, %v6696_v50  ;;  %v6897_v48 = vadd.f32 %v12802_v59, %v6697_v36 }
 0x895   : > { %v6868_v60 = vpop.permute.xlu0 %6867 }
 0x896   : > { %6946 = vst [vmem:[%s8772_s19 + $0xd0] sm:$0xff] %v6896_v41  ;;  %6947 = vst.msk [vmem:[%s8772_s19 + $0xd8] sm:$0xff] %vm6094_vm8, %v6897_v48  ;;  %v6918_v19 = vadd.f32 %v6868_v60, %v6718_v5  ;;  %v6919_v10 = vadd.f32 %v6868_v60, %v6719_v17 }
 0x898   : > { %6968 = vst [vmem:[%s8772_s19 + $0x180] sm:$0xff] %v6918_v19  ;;  %6969 = vst.msk [vmem:[%s8772_s19 + $0x188] sm:$0xff] %vm6094_vm8, %v6919_v10 }
 0x899 PF: > { %s20_s17 = sadd.s32 1, %s8665_s17   ;;  %s12803_s27 = sld [smem:[#allocation3_spill]] }
 0x89a   : > { %p17_p7 = scmp.ge.s32.totalorder %s20_s17, 8   ;;  %s12804_s13 = smov %s8657_s15 }
 0x89b   : > { %s12805_s14 = smov %s8661_s16  ;;  %s12806_s15 = smov %s12809_s18 }
 0x89c   :  { %19 = sbr.rel (!%p17_p7) target bundleno = 3 (0x3), region = 100 }
 0x89f   : > { %s12807_s16 = smov %s12803_s27 }

</bundles_post_ra>
